<compile_context>
chip_gen: v7x
topology: tpu7x:2x2x1
jax: 0.10.0
libtpu: 0.0.40
codegen_flags: <defaults>
</compile_context>

<pallas_src>
import functools

import jax
import jax.numpy as jnp
from jax.experimental import pallas as pl
from jax.experimental.pallas import tpu as pltpu


def _attn_kernel(xq_ref, xf_ref, wq_ref, bq_ref, wk_ref, bk_ref, wv_ref, bv_ref,
                 wo_ref, bo_ref, out_ref, *maybe_attw_ref,
                 num_heads, scale, seq_len):
    xq = xq_ref[0]                       # (TQ, E)  query tile, native dtype
    xf = xf_ref[0]                       # (Sp, E)  full (padded) sequence
    TQ, E = xq.shape
    Sp = xf.shape[0]
    H = num_heads
    D = E // H

    # Projections: MXU matmuls in the input dtype, f32 accumulation.
    q = jnp.dot(xq, wq_ref[...], preferred_element_type=jnp.float32) + bq_ref[...]
    k = jnp.dot(xf, wk_ref[...], preferred_element_type=jnp.float32) + bk_ref[...]
    v = jnp.dot(xf, wv_ref[...], preferred_element_type=jnp.float32) + bv_ref[...]

    # Fold 1/sqrt(head_dim) into q (touches TQ*E elems instead of H*TQ*Sp).
    q = q * scale

    # Head-major layout once, then clean batched dot_generals (batch dim = H).
    qh = jnp.transpose(q.reshape(TQ, H, D), (1, 0, 2))   # (H, TQ, D)
    kh = jnp.transpose(k.reshape(Sp, H, D), (1, 0, 2))   # (H, Sp, D)
    vh = jnp.transpose(v.reshape(Sp, H, D), (1, 0, 2))   # (H, Sp, D)

    # scores[h, q, s] = sum_d qh[h, q, d] * kh[h, s, d]
    scores = jax.lax.dot_general(
        qh, kh, (((2,), (2,)), ((0,), (0,))),
        preferred_element_type=jnp.float32)               # (H, TQ, Sp)

    if Sp != seq_len:
        # Mask padded keys so the softmax only normalizes over the real sequence.
        key_idx = jax.lax.broadcasted_iota(jnp.int32, scores.shape, 2)
        scores = jnp.where(key_idx < seq_len, scores, -1e30)

    # Numerically-stable softmax; normalize via a (H, TQ, 1) reciprocal.
    m = jnp.max(scores, axis=-1, keepdims=True)
    p = jnp.exp(scores - m)
    denom = jnp.sum(p, axis=-1, keepdims=True)
    attn = p * pl.reciprocal(denom, approx=False)          # (H, TQ, Sp)

    # dropout p = 0.0 -> identity.
    if maybe_attw_ref:
        attw_ref = maybe_attw_ref[0]
        attw_ref[0] = attn.astype(attw_ref.dtype)

    # ctx[h, q, d] = sum_s attn[h, q, s] * vh[h, s, d]
    ctx = jax.lax.dot_general(
        attn.astype(vh.dtype), vh, (((2,), (1,)), ((0,), (0,))),
        preferred_element_type=jnp.float32)                # (H, TQ, D)

    ctx = jnp.transpose(ctx, (1, 0, 2)).reshape(TQ, E)     # merge heads -> (TQ, E)

    out = jnp.dot(ctx.astype(wo_ref.dtype), wo_ref[...],
                  preferred_element_type=jnp.float32) + bo_ref[...]
    out_ref[0] = out.astype(out_ref.dtype)


def kan_siglip_attention(hidden_states, params, num_heads, *, q_tile=128,
                         return_attn_weights=True):
    """hidden_states: (B, S, E). params: (in,out) weights and (1,E) biases."""
    B, S, E = hidden_states.shape
    assert E % num_heads == 0
    D = E // num_heads
    scale = float(D) ** -0.5

    # Pad S to a multiple of 128 -> lane-dense attention-weight stores and an evenly
    # tiled query axis.
    S_pad = ((S + 127) // 128) * 128
    TQ = q_tile if (q_tile % 8 == 0 and S_pad % q_tile == 0) else 128
    TQ = min(TQ, S_pad)
    nq = S_pad // TQ

    x_pad = hidden_states
    if S_pad != S:
        x_pad = jnp.pad(hidden_states, ((0, 0), (0, S_pad - S), (0, 0)))

    kernel = functools.partial(_attn_kernel, num_heads=num_heads, scale=scale,
                               seq_len=S)

    w_spec = pl.BlockSpec((E, E), lambda b, qi: (0, 0))
    b_spec = pl.BlockSpec((1, E), lambda b, qi: (0, 0))

    out_shapes = [jax.ShapeDtypeStruct((B, S_pad, E), hidden_states.dtype)]
    out_specs = [pl.BlockSpec((1, TQ, E), lambda b, qi: (b, qi, 0))]
    if return_attn_weights:
        out_shapes.append(
            jax.ShapeDtypeStruct((B, num_heads, S_pad, S_pad), jnp.float32))
        out_specs.append(
            pl.BlockSpec((1, num_heads, TQ, S_pad), lambda b, qi: (b, 0, qi, 0)))

    # Explicit VMEM budget (double-buffered blocks + live intermediates), clamped to
    # v7x's 64 MiB physical VMEM.
    itemsize = jnp.dtype(hidden_states.dtype).itemsize
    w_itemsize = jnp.dtype(params["wq"].dtype).itemsize
    est = 2 * 4 * (E * E + E) * w_itemsize                # weights + biases
    est += 2 * (TQ + S_pad + TQ) * E * itemsize           # x tile, full-seq x, out tile
    if return_attn_weights:
        est += 2 * num_heads * TQ * S_pad * 4             # attw tile
    est += (TQ + 2 * S_pad) * E * 4                       # q, k, v (f32)
    est += 3 * num_heads * TQ * S_pad * 4                 # scores / p / attn
    vmem_limit = int(min(64 * 2**20, max(16 * 2**20, 2 * est)))

    outs = pl.pallas_call(
        kernel,
        out_shape=tuple(out_shapes),
        grid_spec=pltpu.PrefetchScalarGridSpec(
            num_scalar_prefetch=0,
            grid=(B, nq),
            in_specs=[
                pl.BlockSpec((1, TQ, E), lambda b, qi: (b, qi, 0)),    # query tile
                pl.BlockSpec((1, S_pad, E), lambda b, qi: (b, 0, 0)),  # full seq (K/V)
                w_spec, b_spec,                                        # q_proj
                w_spec, b_spec,                                        # k_proj
                w_spec, b_spec,                                        # v_proj
                w_spec, b_spec,                                        # out_proj
            ],
            out_specs=out_specs,
        ),
        compiler_params=pltpu.CompilerParams(
            dimension_semantics=("parallel", "parallel"),
            vmem_limit_bytes=vmem_limit),
    )(
        x_pad, x_pad,
        params["wq"], params["bq"],
        params["wk"], params["bk"],
        params["wv"], params["bv"],
        params["wo"], params["bo"],
    )

    out = outs[0][:, :S, :]
    if return_attn_weights:
        attw = outs[1][:, :, :S, :S]
        return out, attw
    return out


def _reference(hidden_states, params, num_heads):
    """Pure-JAX reference matching the PyTorch forward semantics."""
    B, S, E = hidden_states.shape
    D = E // num_heads
    scale = float(D) ** -0.5
    x = hidden_states.astype(jnp.float32)

    def lin(w, b):
        return jnp.einsum('bse,ef->bsf', x, w) + b[0]

    q = lin(params["wq"], params["bq"]).reshape(B, S, num_heads, D).transpose(0, 2, 1, 3)
    k = lin(params["wk"], params["bk"]).reshape(B, S, num_heads, D).transpose(0, 2, 1, 3)
    v = lin(params["wv"], params["bv"]).reshape(B, S, num_heads, D).transpose(0, 2, 1, 3)

    scores = jnp.einsum('bhsd,bhtd->bhst', q, k) * scale
    w = jax.nn.softmax(scores, axis=-1)
    ctx = jnp.einsum('bhst,bhtd->bhsd', w, v).transpose(0, 2, 1, 3).reshape(B, S, E)
    out = jnp.einsum('bse,ef->bsf', ctx, params["wo"]) + params["bo"][0]
    return out.astype(hidden_states.dtype), w


if __name__ == "__main__":
    # Small shapes consistent with the module: hidden_size=32, num_heads=4.
    B, S, E, H = 2, 8, 32, 4

    key = jax.random.PRNGKey(0)
    keys = jax.random.split(key, 9)

    scale_init = 0.02
    params = {
        "wq": scale_init * jax.random.normal(keys[0], (E, E), jnp.float32),
        "bq": scale_init * jax.random.normal(keys[1], (1, E), jnp.float32),
        "wk": scale_init * jax.random.normal(keys[2], (E, E), jnp.float32),
        "bk": scale_init * jax.random.normal(keys[3], (1, E), jnp.float32),
        "wv": scale_init * jax.random.normal(keys[4], (E, E), jnp.float32),
        "bv": scale_init * jax.random.normal(keys[5], (1, E), jnp.float32),
        "wo": scale_init * jax.random.normal(keys[6], (E, E), jnp.float32),
        "bo": scale_init * jax.random.normal(keys[7], (1, E), jnp.float32),
    }

    hidden_states = jax.random.normal(keys[8], (B, S, E), jnp.float32)

    # Full path (context output + attention weights, matching the PyTorch return).
    attn_out, attn_weights = kan_siglip_attention(
        hidden_states, params, H, return_attn_weights=True)
    attn_out = jax.block_until_ready(attn_out)
    attn_weights = jax.block_until_ready(attn_weights)

    # Bandwidth-saving path: skip the (B,H,S,S) writeback entirely.
    out_only = kan_siglip_attention(
        hidden_states, params, H, return_attn_weights=False)
    out_only = jax.block_until_ready(out_only)

    ref_out, ref_w = _reference(hidden_states, params, H)
    assert attn_out.shape == (B, S, E)
    assert attn_weights.shape == (B, H, S, S)
    assert jnp.allclose(attn_out, ref_out, atol=1e-4, rtol=1e-4)
    assert jnp.allclose(attn_weights, ref_w, atol=1e-4, rtol=1e-4)
    assert jnp.allclose(out_only, ref_out, atol=1e-4, rtol=1e-4)

    print("KERNEL_OK")
</pallas_src>

<mosaic_0001>
module attributes {stable_mosaic.version = 11 : i64} {
  func.func @_attn_kernel(%arg0: i32, %arg1: i32, %arg2: memref<1x128x32xf32, #tpu.memory_space<vmem>>, %arg3: memref<1x128x32xf32, #tpu.memory_space<vmem>>, %arg4: memref<32x32xf32, #tpu.memory_space<vmem>>, %arg5: memref<1x32xf32, #tpu.memory_space<vmem>>, %arg6: memref<32x32xf32, #tpu.memory_space<vmem>>, %arg7: memref<1x32xf32, #tpu.memory_space<vmem>>, %arg8: memref<32x32xf32, #tpu.memory_space<vmem>>, %arg9: memref<1x32xf32, #tpu.memory_space<vmem>>, %arg10: memref<32x32xf32, #tpu.memory_space<vmem>>, %arg11: memref<1x32xf32, #tpu.memory_space<vmem>>, %arg12: memref<1x128x32xf32, #tpu.memory_space<vmem>>, %arg13: memref<1x4x128x128xf32, #tpu.memory_space<vmem>>) attributes {dimension_semantics = [#tpu.dimension_semantics<parallel>, #tpu.dimension_semantics<parallel>], iteration_bounds = array<i64: 2, 1>, scalar_prefetch = 0 : i64, scratch_operands = 0 : i64, tpu.core_type = #tpu.core_type<tc>, window_params = [{transform_indices = @transform_0, window_bounds = array<i64: 1, 128, 32>}, {transform_indices = @transform_1, window_bounds = array<i64: 1, 128, 32>}, {pipeline_mode = #tpu.pipeline_mode<synchronous>, transform_indices = @transform_2, window_bounds = array<i64: 32, 32>}, {pipeline_mode = #tpu.pipeline_mode<synchronous>, transform_indices = @transform_3, window_bounds = array<i64: 1, 32>}, {pipeline_mode = #tpu.pipeline_mode<synchronous>, transform_indices = @transform_4, window_bounds = array<i64: 32, 32>}, {pipeline_mode = #tpu.pipeline_mode<synchronous>, transform_indices = @transform_5, window_bounds = array<i64: 1, 32>}, {pipeline_mode = #tpu.pipeline_mode<synchronous>, transform_indices = @transform_6, window_bounds = array<i64: 32, 32>}, {pipeline_mode = #tpu.pipeline_mode<synchronous>, transform_indices = @transform_7, window_bounds = array<i64: 1, 32>}, {pipeline_mode = #tpu.pipeline_mode<synchronous>, transform_indices = @transform_8, window_bounds = array<i64: 32, 32>}, {pipeline_mode = #tpu.pipeline_mode<synchronous>, transform_indices = @transform_9, window_bounds = array<i64: 1, 32>}, {transform_indices = @transform_10, window_bounds = array<i64: 1, 128, 32>}, {transform_indices = @transform_11, window_bounds = array<i64: 1, 4, 128, 128>}]} {
    %c0 = arith.constant 0 : index
    %c0_0 = arith.constant 0 : index
    %c0_1 = arith.constant 0 : index
    %0 = vector.load %arg2[%c0, %c0_0, %c0_1] : memref<1x128x32xf32, #tpu.memory_space<vmem>>, vector<1x128x32xf32>
    %1 = vector.shape_cast %0 : vector<1x128x32xf32> to vector<128x32xf32>
    %c0_2 = arith.constant 0 : index
    %c0_3 = arith.constant 0 : index
    %c0_4 = arith.constant 0 : index
    %2 = vector.load %arg3[%c0_2, %c0_3, %c0_4] : memref<1x128x32xf32, #tpu.memory_space<vmem>>, vector<1x128x32xf32>
    %3 = vector.shape_cast %2 : vector<1x128x32xf32> to vector<128x32xf32>
    %c0_5 = arith.constant 0 : index
    %c0_6 = arith.constant 0 : index
    %4 = vector.load %arg4[%c0_5, %c0_6] : memref<32x32xf32, #tpu.memory_space<vmem>>, vector<32x32xf32>
    %cst = arith.constant dense<0.000000e+00> : vector<128x32xf32>
    %5 = tpu.matmul %1, %4, %cst {dimension_numbers = #tpu.dot_dimension_numbers<[1], [0], [0], [1], [0, 0, 1, 1], [], []>} : vector<128x32xf32>, vector<32x32xf32>, vector<128x32xf32> -> vector<128x32xf32>
    %c0_7 = arith.constant 0 : index
    %c0_8 = arith.constant 0 : index
    %6 = vector.load %arg5[%c0_7, %c0_8] : memref<1x32xf32, #tpu.memory_space<vmem>>, vector<1x32xf32>
    %7 = vector.broadcast %6 : vector<1x32xf32> to vector<128x32xf32>
    %8 = arith.addf %5, %7 : vector<128x32xf32>
    %c0_9 = arith.constant 0 : index
    %c0_10 = arith.constant 0 : index
    %9 = vector.load %arg6[%c0_9, %c0_10] : memref<32x32xf32, #tpu.memory_space<vmem>>, vector<32x32xf32>
    %cst_11 = arith.constant dense<0.000000e+00> : vector<128x32xf32>
    %10 = tpu.matmul %3, %9, %cst_11 {dimension_numbers = #tpu.dot_dimension_numbers<[1], [0], [0], [1], [0, 0, 1, 1], [], []>} : vector<128x32xf32>, vector<32x32xf32>, vector<128x32xf32> -> vector<128x32xf32>
    %c0_12 = arith.constant 0 : index
    %c0_13 = arith.constant 0 : index
    %11 = vector.load %arg7[%c0_12, %c0_13] : memref<1x32xf32, #tpu.memory_space<vmem>>, vector<1x32xf32>
    %12 = vector.broadcast %11 : vector<1x32xf32> to vector<128x32xf32>
    %13 = arith.addf %10, %12 : vector<128x32xf32>
    %c0_14 = arith.constant 0 : index
    %c0_15 = arith.constant 0 : index
    %14 = vector.load %arg8[%c0_14, %c0_15] : memref<32x32xf32, #tpu.memory_space<vmem>>, vector<32x32xf32>
    %cst_16 = arith.constant dense<0.000000e+00> : vector<128x32xf32>
    %15 = tpu.matmul %3, %14, %cst_16 {dimension_numbers = #tpu.dot_dimension_numbers<[1], [0], [0], [1], [0, 0, 1, 1], [], []>} : vector<128x32xf32>, vector<32x32xf32>, vector<128x32xf32> -> vector<128x32xf32>
    %c0_17 = arith.constant 0 : index
    %c0_18 = arith.constant 0 : index
    %16 = vector.load %arg9[%c0_17, %c0_18] : memref<1x32xf32, #tpu.memory_space<vmem>>, vector<1x32xf32>
    %17 = vector.broadcast %16 : vector<1x32xf32> to vector<128x32xf32>
    %18 = arith.addf %15, %17 : vector<128x32xf32>
    %cst_19 = arith.constant 0.353553385 : f32
    %19 = vector.broadcast %cst_19 : f32 to vector<128x32xf32>
    %20 = arith.mulf %8, %19 : vector<128x32xf32>
    %21 = vector.shape_cast %20 : vector<128x32xf32> to vector<128x4x8xf32>
    %22 = tpu.transpose %21, [1, 0, 2] : vector<128x4x8xf32> -> vector<4x128x8xf32>
    %23 = vector.shape_cast %13 : vector<128x32xf32> to vector<128x4x8xf32>
    %24 = tpu.transpose %23, [1, 0, 2] : vector<128x4x8xf32> -> vector<4x128x8xf32>
    %25 = vector.shape_cast %18 : vector<128x32xf32> to vector<128x4x8xf32>
    %26 = tpu.transpose %25, [1, 0, 2] : vector<128x4x8xf32> -> vector<4x128x8xf32>
    %cst_20 = arith.constant dense<0.000000e+00> : vector<4x128x128xf32>
    %27 = tpu.matmul %22, %24, %cst_20 {dimension_numbers = #tpu.dot_dimension_numbers<[2], [2], [1], [1], [0, 0, 0, 1, 1, 1], [0], [0]>} : vector<4x128x8xf32>, vector<4x128x8xf32>, vector<4x128x128xf32> -> vector<4x128x128xf32>
    %28 = tpu.iota {dimensions = array<i32: 2>} : vector<4x128x128xi32>
    %c8_i32 = arith.constant 8 : i32
    %29 = vector.broadcast %c8_i32 : i32 to vector<4x128x128xi32>
    %30 = arith.cmpi slt, %28, %29 : vector<4x128x128xi32>
    %cst_21 = arith.constant -1.000000e+30 : f32
    %31 = vector.broadcast %cst_21 : f32 to vector<4x128x128xf32>
    %32 = arith.select %30, %27, %31 : vector<4x128x128xi1>, vector<4x128x128xf32>
    %cst_22 = arith.constant dense<0xFF800000> : vector<4x128xf32>
    %33 = vector.multi_reduction <maximumf>, %32, %cst_22 [2] : vector<4x128x128xf32> to vector<4x128xf32>
    %34 = vector.shape_cast %33 : vector<4x128xf32> to vector<4x128x1xf32>
    %35 = vector.broadcast %34 : vector<4x128x1xf32> to vector<4x128x128xf32>
    %36 = arith.subf %32, %35 : vector<4x128x128xf32>
    %37 = math.exp %36 : vector<4x128x128xf32>
    %cst_23 = arith.constant dense<0.000000e+00> : vector<4x128xf32>
    %38 = vector.multi_reduction <add>, %37, %cst_23 [2] : vector<4x128x128xf32> to vector<4x128xf32>
    %39 = vector.shape_cast %38 : vector<4x128xf32> to vector<4x128x1xf32>
    %40 = tpu.reciprocal %39 : vector<4x128x1xf32> -> vector<4x128x1xf32>
    %41 = vector.broadcast %40 : vector<4x128x1xf32> to vector<4x128x128xf32>
    %42 = arith.mulf %37, %41 : vector<4x128x128xf32>
    %c0_24 = arith.constant 0 : index
    %c0_25 = arith.constant 0 : index
    %c0_26 = arith.constant 0 : index
    %c0_27 = arith.constant 0 : index
    %43 = vector.load %arg13[%c0_24, %c0_25, %c0_26, %c0_27] : memref<1x4x128x128xf32, #tpu.memory_space<vmem>>, vector<1x4x128x128xf32>
    %44 = vector.shape_cast %43 : vector<1x4x128x128xf32> to vector<4x128x128xf32>
    %45 = vector.shape_cast %42 : vector<4x128x128xf32> to vector<1x4x128x128xf32>
    tpu.vector_store %arg13[%c0_24, %c0_25, %c0_26, %c0_27], %45 {strides = array<i32>} : memref<1x4x128x128xf32, #tpu.memory_space<vmem>>, vector<1x4x128x128xf32>,
    %cst_28 = arith.constant dense<0.000000e+00> : vector<4x128x8xf32>
    %46 = tpu.matmul %42, %26, %cst_28 {dimension_numbers = #tpu.dot_dimension_numbers<[2], [1], [1], [2], [0, 0, 0, 1, 1, 2], [0], [0]>} : vector<4x128x128xf32>, vector<4x128x8xf32>, vector<4x128x8xf32> -> vector<4x128x8xf32>
    %47 = tpu.transpose %46, [1, 0, 2] : vector<4x128x8xf32> -> vector<128x4x8xf32>
    %48 = vector.shape_cast %47 : vector<128x4x8xf32> to vector<128x32xf32>
    %c0_29 = arith.constant 0 : index
    %c0_30 = arith.constant 0 : index
    %49 = vector.load %arg10[%c0_29, %c0_30] : memref<32x32xf32, #tpu.memory_space<vmem>>, vector<32x32xf32>
    %cst_31 = arith.constant dense<0.000000e+00> : vector<128x32xf32>
    %50 = tpu.matmul %48, %49, %cst_31 {dimension_numbers = #tpu.dot_dimension_numbers<[1], [0], [0], [1], [0, 0, 1, 1], [], []>} : vector<128x32xf32>, vector<32x32xf32>, vector<128x32xf32> -> vector<128x32xf32>
    %c0_32 = arith.constant 0 : index
    %c0_33 = arith.constant 0 : index
    %51 = vector.load %arg11[%c0_32, %c0_33] : memref<1x32xf32, #tpu.memory_space<vmem>>, vector<1x32xf32>
    %52 = vector.broadcast %51 : vector<1x32xf32> to vector<128x32xf32>
    %53 = arith.addf %50, %52 : vector<128x32xf32>
    %c0_34 = arith.constant 0 : index
    %c0_35 = arith.constant 0 : index
    %c0_36 = arith.constant 0 : index
    %54 = vector.load %arg12[%c0_34, %c0_35, %c0_36] : memref<1x128x32xf32, #tpu.memory_space<vmem>>, vector<1x128x32xf32>
    %55 = vector.shape_cast %54 : vector<1x128x32xf32> to vector<128x32xf32>
    %56 = vector.shape_cast %53 : vector<128x32xf32> to vector<1x128x32xf32>
    tpu.vector_store %arg12[%c0_34, %c0_35, %c0_36], %56 {strides = array<i32>} : memref<1x128x32xf32, #tpu.memory_space<vmem>>, vector<1x128x32xf32>,
    return
  }
  func.func @transform_0(%arg0: i32, %arg1: i32) -> (i32, i32, i32) {
    %c0_i32 = arith.constant 0 : i32
    %c0_i32_0 = arith.constant 0 : i32
    return %arg0, %arg1, %c0_i32 : i32, i32, i32
  }
  func.func @transform_1(%arg0: i32, %arg1: i32) -> (i32, i32, i32) {
    %c0_i32 = arith.constant 0 : i32
    %c0_i32_0 = arith.constant 0 : i32
    %c0_i32_1 = arith.constant 0 : i32
    return %arg0, %c0_i32, %c0_i32_0 : i32, i32, i32
  }
  func.func @transform_2(%arg0: i32, %arg1: i32) -> (i32, i32) {
    %c0_i32 = arith.constant 0 : i32
    %c0_i32_0 = arith.constant 0 : i32
    %c0_i32_1 = arith.constant 0 : i32
    return %c0_i32, %c0_i32_0 : i32, i32
  }
  func.func @transform_3(%arg0: i32, %arg1: i32) -> (i32, i32) {
    %c0_i32 = arith.constant 0 : i32
    %c0_i32_0 = arith.constant 0 : i32
    %c0_i32_1 = arith.constant 0 : i32
    return %c0_i32, %c0_i32_0 : i32, i32
  }
  func.func @transform_4(%arg0: i32, %arg1: i32) -> (i32, i32) {
    %c0_i32 = arith.constant 0 : i32
    %c0_i32_0 = arith.constant 0 : i32
    %c0_i32_1 = arith.constant 0 : i32
    return %c0_i32, %c0_i32_0 : i32, i32
  }
  func.func @transform_5(%arg0: i32, %arg1: i32) -> (i32, i32) {
    %c0_i32 = arith.constant 0 : i32
    %c0_i32_0 = arith.constant 0 : i32
    %c0_i32_1 = arith.constant 0 : i32
    return %c0_i32, %c0_i32_0 : i32, i32
  }
  func.func @transform_6(%arg0: i32, %arg1: i32) -> (i32, i32) {
    %c0_i32 = arith.constant 0 : i32
    %c0_i32_0 = arith.constant 0 : i32
    %c0_i32_1 = arith.constant 0 : i32
    return %c0_i32, %c0_i32_0 : i32, i32
  }
  func.func @transform_7(%arg0: i32, %arg1: i32) -> (i32, i32) {
    %c0_i32 = arith.constant 0 : i32
    %c0_i32_0 = arith.constant 0 : i32
    %c0_i32_1 = arith.constant 0 : i32
    return %c0_i32, %c0_i32_0 : i32, i32
  }
  func.func @transform_8(%arg0: i32, %arg1: i32) -> (i32, i32) {
    %c0_i32 = arith.constant 0 : i32
    %c0_i32_0 = arith.constant 0 : i32
    %c0_i32_1 = arith.constant 0 : i32
    return %c0_i32, %c0_i32_0 : i32, i32
  }
  func.func @transform_9(%arg0: i32, %arg1: i32) -> (i32, i32) {
    %c0_i32 = arith.constant 0 : i32
    %c0_i32_0 = arith.constant 0 : i32
    %c0_i32_1 = arith.constant 0 : i32
    return %c0_i32, %c0_i32_0 : i32, i32
  }
  func.func @transform_10(%arg0: i32, %arg1: i32) -> (i32, i32, i32) {
    %c0_i32 = arith.constant 0 : i32
    %c0_i32_0 = arith.constant 0 : i32
    return %arg0, %arg1, %c0_i32 : i32, i32, i32
  }
  func.func @transform_11(%arg0: i32, %arg1: i32) -> (i32, i32, i32, i32) {
    %c0_i32 = arith.constant 0 : i32
    %c0_i32_0 = arith.constant 0 : i32
    %c0_i32_1 = arith.constant 0 : i32
    return %arg0, %c0_i32, %arg1, %c0_i32_0 : i32, i32, i32, i32
  }
}

</mosaic_0001>

<bundles_post_ra>
// kernel: tpu_custom_call.1
= control target key start
LH: loop header
LB: loop body
LE: loop exit
PB: predicated region body
PF: predicated region fallthrough
CT: control target
= control target key end

     0   :  { %s20926_s0 = inlined_call_operand.vmem [shape: f32[2,128,32], index: 0, kind: input, shape index: {}]   ;;  %s20927_s1 = inlined_call_operand.vmem [shape: f32[2,128,32], index: 1, kind: input, shape index: {}]   ;;  %s20928_s2 = inlined_call_operand.vmem [shape: f32[32,32], index: 2, kind: input, shape index: {}]   ;;  %s20929_s3 = inlined_call_operand.vmem [shape: f32[1,32], index: 3, kind: input, shape index: {}]   ;;  %s20930_s4 = inlined_call_operand.vmem [shape: f32[32,32], index: 4, kind: input, shape index: {}]   ;;  %s20931_s5 = inlined_call_operand.vmem [shape: f32[1,32], index: 5, kind: input, shape index: {}]   ;;  %s20932_s6 = inlined_call_operand.vmem [shape: f32[32,32], index: 6, kind: input, shape index: {}]   ;;  %s20933_s7 = inlined_call_operand.vmem [shape: f32[1,32], index: 7, kind: input, shape index: {}]   ;;  %s20934_s8 = inlined_call_operand.vmem [shape: f32[32,32], index: 8, kind: input, shape index: {}]   ;;  %s20935_s9 = inlined_call_operand.vmem [shape: f32[1,32], index: 9, kind: input, shape index: {}]   ;;  %s20936_s10 = inlined_call_operand.vmem [shape: f32[2,128,32], index: 10, kind: output, shape index: {0}]   ;;  %s20937_s11 = inlined_call_operand.hbm [shape: f32[2,4,128,128], index: 11, kind: output, shape index: {1}]  }
   0x1   :  { %21187 = sst [smem:[#allocation94_spill]] %s20926_s0 }
   0x2   :  { %17 = vsyncpa [#allocation3], 0 }
   0x3   :  { %19 = vsyncpa [#allocation3 + $0x1], 0  ;;  %s15208_s17 = smov 0   ;;  %s15210_s18 = smov 0  }
   0x4   :  { %s15212_s19 = smov 0   ;;  %s15214_s20 = smov 0  }
   0x5   :  { %s15216_s21 = smov 0   ;;  %s15218_s22 = smov 0  }
   0x6 LB: > { %21188 = sst [smem:[#allocation5_spill]] %s15132_s21  ;;  %s13128_s23 = sadd.s32 4294967295, %s15136_s22   ;;  %s15136_s22 = sphi %s15218_s22, %s25_s22   ;;  %s15132_s21 = sphi %s15216_s21, %s21738_s21   ;;  %s15128_s20 = sphi %s15214_s20, %s21737_s20   ;;  %s15124_s19 = sphi %s15212_s19, %s21741_s19   ;;  %s15120_s18 = sphi %s15210_s18, %s21740_s18   ;;  %s15116_s17 = sphi %s15208_s17, %s21739_s17  }
   0x7   : > { %s13129_s24 = sadd.s32 4294967294, %s15136_s22   ;;  %s37_s25 = sadd.s32 1, %s15132_s21 }
   0x8   : > { %s296_s26 = sadd.s32 1, %s15124_s19  ;;  %p39_p0 = scmp.ge.s32.totalorder %s37_s25, 2 }
   0x9   : > { %p306_p1 = scmp.ne.s32.totalorder %s15124_s19, %s15120_s18  ;;  %p307_p2 = scmp.eq.s32.totalorder %s13128_s23, 1 }
   0xa   : > { %p312_p3 = scmp.ne.s32.totalorder %s15120_s18, %s15116_s17  ;;  %s21743_s25 = smov (%p39_p0, %s37_s25), 0 }
   0xb   : > { %21189 = sst [smem:[#allocation6_spill]] %s21743_s25  ;;  %p15248_p4 = por %p307_p2, %p306_p1 }
   0xc   : > { %p313_p5 = scmp.eq.s32.totalorder %s13129_s24, 1  ;;  %s291_s28 = ssub.s32 %s15132_s21, %s21743_s25 }
   0xd   : > { %p13132_p6 = scmp.ge.s32.totalorder %s15136_s22, 1  ;;  %p294_p7 = scmp.eq.s32.totalorder %s291_s28, 0 }
   0xe   : > { %p15255_p8 = por %p313_p5, %p312_p3  ;;  %p376_p9 = scmp.lt.s32.totalorder %s15136_s22, 3 }
   0xf   : > { %s15261_s30 = scalar_select %p294_p7, %s15124_s19, %s296_s26  }
  0x10   : > { %p377_p10 = pnand %p13132_p6, %p376_p9 }
  0x12   : > { %380 = sbr.rel (%p377_p10) target bundleno = 1940 (0x794), region = 60 }
  0x19   : > { %v697_v0 = vld [vmem:[%s20930_s4] sm:$0xff]  ;;  %v698_v1 = vld [vmem:[%s20930_s4 + $0x8] sm:$0xff]  ;;  %v699_v2 = vld [vmem:[%s20930_s4 + $0x10] sm:$0xff]  ;;  %p435_p11 = scmp.lt.s32.totalorder %s15128_s20, 1  ;;  %vm503_vm0 = vcmask 261120   ;;  %s21192_s0 = sld [smem:[#allocation94_spill]] }
  0x1a   : > { %v14393_v3 = vpack.c.bf16 %v698_v1, %v697_v0  ;;  %v700_v4 = vld [vmem:[%s20930_s4 + $0x18] sm:$0xff]  ;;  %v492_v5 = vld [vmem:[%s20928_s2] sm:$0xff]  ;;  %v493_v6 = vld [vmem:[%s20928_s2 + $0x8] sm:$0xff]  ;;  %s15139_s16 = smov 120   ;;  %vm8081_vm1 = vcmask 64512   ;;  %s21184_s13 = sand.u32 1, %s15120_s18  }
  0x1b   : > { %v14397_v7 = vpack.c.bf16 %v700_v4, %v699_v2  ;;  %s436_s14 = scalar_select %p435_p11, %s15128_s20, 1  ;;  %v14385_v8 = vpack.c.bf16 %v493_v6, %v492_v5  ;;  %v494_v9 = vld [vmem:[%s20928_s2 + $0x10] sm:$0xff]  ;;  %v495_v10 = vld [vmem:[%s20928_s2 + $0x18] sm:$0xff]  ;;  %v901_v12 = vld [vmem:[%s20932_s6] sm:$0xff]  ;;  %vm12717_vm4 = vcmask 130048   ;;  %vm12734_vm5 = vcmask 195584  }
  0x1c   : > { %14394 = vmatprep.subr.bf16.mxu1 %v14393_v3  ;;  %v14389_v11 = vpack.c.bf16 %v495_v10, %v494_v9  ;;  %v902_v13 = vld [vmem:[%s20932_s6 + $0x8] sm:$0xff]  ;;  %v903_v17 = vld [vmem:[%s20932_s6 + $0x10] sm:$0xff]  ;;  %v904_v18 = vld [vmem:[%s20932_s6 + $0x18] sm:$0xff]  ;;  %s15143_s23 = smov 16   ;;  %s21736_s21 = sand.u32 1, %s15120_s18  }
  0x1d   : > { %14396 = vmatpush3.bf16.msra.mxu1 %v14393_v3  ;;  %s15295_s12 = sshll.u32 %s436_s14, 7  ;;  %14386 = vmatprep.subr.bf16.mxu0 %v14385_v8  ;;  %v14401_v16 = vpack.c.bf16 %v902_v13, %v901_v12  ;;  %v14405_v23 = vpack.c.bf16 %v904_v18, %v903_v17  ;;  %v15410_v50 = vld [vmem:[%s20931_s5] ss:$0 sm:$0xff]  ;;  %s15140_s14 = smov 104   ;;  %vm15863_vm2 = vmpackc.low %vm8081_vm1, %vm8081_vm1 }
  0x1e   : > { %14398 = vmatprep.subr.bf16.mxu1 %v14397_v7  ;;  %s15301_s15 = scalar_lea.vmem %s20927_s1, %s15295_s12  ;;  %14388 = vmatpush3.bf16.msra.mxu0 %v14385_v8  ;;  %v15422_v56 = vld [vmem:[%s20929_s3] ss:$0 sm:$0xff] }
  0x1f   : > { %s15307_s24 = scalar_lea.vmem %s21192_s0, %s15295_s12  ;;  %v15310_v14 = vld [vmem:[%s15301_s15] sm:$0xff]  ;;  %14390 = vmatprep.subr.bf16.mxu0 %v14389_v11  ;;  %v15323_v19 = vld [vmem:[%s15301_s15 + $0x8] sm:$0xff]  ;;  %v15327_v21 = vld [vmem:[%s15301_s15 + $0x10] sm:$0xff] }
  0x20   : > { %v460_v15 = vld [vmem:[%s15307_s24] sm:$0xff]  ;;  %13849 = vmatprep.mubr.msk.f32.mxu1 %vm503_vm0, %v15310_v14  ;;  %v461_v20 = vld [vmem:[%s15307_s24 + $0x8] sm:$0xff]  ;;  %v462_v22 = vld [vmem:[%s15307_s24 + $0x10] sm:$0xff] }
  0x21   : > { %13817 = vmatprep.mubr.msk.f32.mxu0 %vm503_vm0, %v460_v15  ;;  %14400 = vmatpush3.bf16.msra.mxu1 %v14397_v7  ;;  %v479_v24 = vld [vmem:[%s15301_s15 + $0x18] sm:$0xff]  ;;  %v480_v26 = vld [vmem:[%s15301_s15 + $0x20] sm:$0xff]  ;;  %v481_v28 = vld [vmem:[%s15301_s15 + $0x28] sm:$0xff] }
  0x22   : > { %14392 = vmatpush3.bf16.msra.mxu0 %v14389_v11  ;;  %v463_v25 = vld [vmem:[%s15307_s24 + $0x18] sm:$0xff]  ;;  %v464_v27 = vld [vmem:[%s15307_s24 + $0x20] sm:$0xff]  ;;  %v482_v29 = vld [vmem:[%s15301_s15 + $0x30] sm:$0xff] }
  0x23   : > { %14402 = vmatprep.subr.bf16.mxu0 %v14401_v16  ;;  %v465_v30 = vld [vmem:[%s15307_s24 + $0x28] sm:$0xff]  ;;  %v466_v31 = vld [vmem:[%s15307_s24 + $0x30] sm:$0xff]  ;;  %v483_v32 = vld [vmem:[%s15301_s15 + $0x38] sm:$0xff] }
  0x24   : > { %13850 = vmatmul.mubr.msk.f32.vlgmr.msra.gmra.mrb[0].mxu1 %vm503_vm0, %v15323_v19  ;;  %v484_v33 = vld [vmem:[%s15301_s15 + $0x40] sm:$0xff]  ;;  %v467_v34 = vld [vmem:[%s15307_s24 + $0x38] sm:$0xff]  ;;  %v485_v36 = vld [vmem:[%s15301_s15 + $0x48] sm:$0xff] }
  0x25   : > { %13818 = vmatmul.mubr.msk.f32.vlgmr.msra.gmra.mrb[0].mxu0 %vm503_vm0, %v461_v20  ;;  %13852 = vmatprep.mubr.msk.f32.mxu1 %vm503_vm0, %v15327_v21  ;;  %v468_v35 = vld [vmem:[%s15307_s24 + $0x40] sm:$0xff]  ;;  %v486_v37 = vld [vmem:[%s15301_s15 + $0x50] sm:$0xff]  ;;  %v469_v38 = vld [vmem:[%s15307_s24 + $0x48] sm:$0xff] }
  0x26   : > { %13820 = vmatprep.mubr.msk.f32.mxu0 %vm503_vm0, %v462_v22  ;;  %14404 = vmatpush3.bf16.msra.mxu0 %v14401_v16  ;;  %v470_v39 = vld [vmem:[%s15307_s24 + $0x50] sm:$0xff]  ;;  %v487_v40 = vld [vmem:[%s15301_s15 + $0x58] sm:$0xff]  ;;  %v488_v41 = vld [vmem:[%s15301_s15 + $0x60] sm:$0xff] }
  0x27   : > { %14406 = vmatprep.subr.bf16.mxu0 %v14405_v23  ;;  %v471_v42 = vld [vmem:[%s15307_s24 + $0x58] sm:$0xff]  ;;  %v472_v43 = vld [vmem:[%s15307_s24 + $0x60] sm:$0xff]  ;;  %v489_v44 = vld [vmem:[%s15301_s15 + $0x68] sm:$0xff] }
  0x28   : > { %13853 = vmatmul.mubr.msk.f32.gmra.mrb[2].mxu1 %vm503_vm0, %v479_v24  ;;  %v490_v45 = vld [vmem:[%s15301_s15 + $0x70] sm:$0xff]  ;;  %v473_v46 = vld [vmem:[%s15307_s24 + $0x68] sm:$0xff]  ;;  %v491_v48 = vld [vmem:[%s15301_s15 + $0x78] sm:$0xff]  ;;  %s15138_s15 = smov 112  }
  0x29   : > { %13821 = vmatmul.mubr.msk.f32.gmra.mrb[2].mxu0 %vm503_vm0, %v463_v25  ;;  %13855 = vmatprep.mubr.msk.f32.mxu1 %vm503_vm0, %v480_v26  ;;  %v474_v47 = vld [vmem:[%s15307_s24 + $0x70] sm:$0xff]  ;;  %v475_v49 = vld [vmem:[%s15307_s24 + $0x78] sm:$0xff]  ;;  %s21185_s24 = smov 8  }
  0x2a   : > { %13823 = vmatprep.mubr.msk.f32.mxu0 %vm503_vm0, %v464_v27  ;;  %14408 = vmatpush3.bf16.msra.mxu0 %v14405_v23 }
  0x2c   : > { %13856 = vmatmul.mubr.msk.f32.gmra.mrb[4].mxu1 %vm503_vm0, %v481_v28 }
  0x2d   : > { %13858 = vmatprep.mubr.msk.f32.mxu1 %vm503_vm0, %v482_v29  ;;  %13824 = vmatmul.mubr.msk.f32.gmra.mrb[4].mxu0 %vm503_vm0, %v465_v30 }
  0x2e   : > { %13826 = vmatprep.mubr.msk.f32.mxu0 %vm503_vm0, %v466_v31 }
  0x30   : > { %13859 = vmatmul.mubr.msk.f32.gmra.mrb[6].mxu1 %vm503_vm0, %v483_v32 }
  0x31   : > { %13861 = vmatprep.mubr.msk.f32.mxu1 %vm503_vm0, %v484_v33  ;;  %13827 = vmatmul.mubr.msk.f32.gmra.mrb[6].mxu0 %vm503_vm0, %v467_v34 }
  0x32   : > { %13829 = vmatprep.mubr.msk.f32.mxu0 %vm503_vm0, %v468_v35 }
  0x34   : > { %13862 = vmatmul.mubr.msk.f32.gmra.mrb[8].mxu1 %vm503_vm0, %v485_v36 }
  0x35   : > { %13864 = vmatprep.mubr.msk.f32.mxu1 %vm503_vm0, %v486_v37  ;;  %13830 = vmatmul.mubr.msk.f32.gmra.mrb[8].mxu0 %vm503_vm0, %v469_v38 }
  0x36   : > { %13832 = vmatprep.mubr.msk.f32.mxu0 %vm503_vm0, %v470_v39 }
  0x38   : > { %13865 = vmatmul.mubr.msk.f32.gmra.mrb[10].mxu1 %vm503_vm0, %v487_v40 }
  0x39   : > { %13867 = vmatprep.mubr.msk.f32.mxu1 %vm503_vm0, %v488_v41  ;;  %13833 = vmatmul.mubr.msk.f32.gmra.mrb[10].mxu0 %vm503_vm0, %v471_v42 }
  0x3a   : > { %13835 = vmatprep.mubr.msk.f32.mxu0 %vm503_vm0, %v472_v43 }
  0x3c   : > { %13868 = vmatmul.mubr.msk.f32.gmra.mrb[12].mxu1 %vm503_vm0, %v489_v44 }
  0x3d   : > { %13870 = vmatprep.mubr.msk.f32.mxu1 %vm503_vm0, %v490_v45  ;;  %13836 = vmatmul.mubr.msk.f32.gmra.mrb[12].mxu0 %vm503_vm0, %v473_v46 }
  0x3e   : > { %13838 = vmatprep.mubr.msk.f32.mxu0 %vm503_vm0, %v474_v47  ;;  %v15141_v47 = vmov 1983009808  }
  0x40   : > { %13871 = vmatmul.mubr.msk.f32.gmra.mrb[14].mxu1 %vm503_vm0, %v491_v48 }
  0x41   : > { %13839 = vmatmul.mubr.msk.f32.gmra.mrb[14].mxu0 %vm503_vm0, %v475_v49  ;;  %v20940_v49 = vlaneseq }
  0x42   : > { %13881 = vmatprep.mubr.msk.f32.mxu0 %vm503_vm0, %v15310_v14 }
  0x45   : > { %13882 = vmatmul.mubr.msk.f32.vlgmr.msra.gmra.mrb[16].mxu0 %vm503_vm0, %v15323_v19 }
  0x46   : > { %13884 = vmatprep.mubr.msk.f32.mxu0 %vm503_vm0, %v15327_v21 }
  0x49   : > { %13885 = vmatmul.mubr.msk.f32.gmra.mrb[18].mxu0 %vm503_vm0, %v479_v24 }
  0x4a   : > { %13887 = vmatprep.mubr.msk.f32.mxu0 %vm503_vm0, %v480_v26 }
  0x4d   : > { %13888 = vmatmul.mubr.msk.f32.gmra.mrb[20].mxu0 %vm503_vm0, %v481_v28 }
  0x4e   : > { %13890 = vmatprep.mubr.msk.f32.mxu0 %vm503_vm0, %v482_v29 }
  0x51   : > { %13891 = vmatmul.mubr.msk.f32.gmra.mrb[22].mxu0 %vm503_vm0, %v483_v32 }
  0x52   : > { %13893 = vmatprep.mubr.msk.f32.mxu0 %vm503_vm0, %v484_v33 }
  0x55   : > { %13894 = vmatmul.mubr.msk.f32.gmra.mrb[24].mxu0 %vm503_vm0, %v485_v36 }
  0x56   : > { %13896 = vmatprep.mubr.msk.f32.mxu0 %vm503_vm0, %v486_v37 }
  0x59   : > { %13897 = vmatmul.mubr.msk.f32.gmra.mrb[26].mxu0 %vm503_vm0, %v487_v40 }
  0x5a   : > { %13899 = vmatprep.mubr.msk.f32.mxu0 %vm503_vm0, %v488_v41 }
  0x5d   : > { %13900 = vmatmul.mubr.msk.f32.gmra.mrb[28].mxu0 %vm503_vm0, %v489_v44 }
  0x5e   : > { %13902 = vmatprep.mubr.msk.f32.mxu0 %vm503_vm0, %v490_v45 }
  0x61   : > { %13903 = vmatmul.mubr.msk.f32.gmra.mrb[30].mxu0 %vm503_vm0, %v491_v48  ;;  %v1236_v48 = vunpack.c.l.s4 %v15141_v47 }
  0xf7   : > { %v13851_v51 = vpop.f32.mrb[0].mxu1 }
  0xf8   : > { %v15413_v52 = vadd.f32 %v13851_v51, %v15410_v50  ;;  %v822_v53 = vpop.f32.mrb[1].mxu1  ;;  %v13819_v54 = vpop.f32.mrb[0].mxu0  ;;  %v15142_v51 = vmov 1934713408  }
  0xf9   : > { %v618_v55 = vpop.f32.mrb[1].mxu0  ;;  %v15425_v58 = vadd.f32 %v15410_v50, %v822_v53  ;;  %v624_v62 = vadd.f32 %v13819_v54, %v15422_v56  ;;  %v1268_v53 = vunpack.c.l.s4 %v15142_v51  ;;  %v1237_v54 = vunpack.c.0.s8 %v1236_v48 }
  0xfa   : > { %3475 = vrot.lane.b32.xlu1 %v15413_v52, %s15138_s15  ;;  %3427 = vrot.lane.b32.xlu0 %v15413_v52, %s15139_s16  ;;  %v619_v5 = vadd.f32 %v15422_v56, %v618_v55  ;;  %v1239_v55 = vshrl.u32 %v20940_v49, 7 }
  0xfb   : > { %v13854_v57 = vpop.f32.mrb[2].mxu1  ;;  %v15436_v3 = vmul.f32 0.35355338, %v624_v62 }
  0xfc   : > { %v832_v59 = vpop.f32.mrb[3].mxu1  ;;  %v13822_v60 = vpop.f32.mrb[2].mxu0  ;;  %v15451_v10 = vmul.f32 0.35355338, %v619_v5  ;;  %v15474_v20 = vadd.f32 %v13854_v57, %v15410_v50 }
  0xfd   : > { %v628_v61 = vpop.f32.mrb[3].mxu0  ;;  %v15477_v21 = vadd.f32 %v15410_v50, %v832_v59  ;;  %v634_v30 = vadd.f32 %v13822_v60, %v15422_v56 }
  0xfe   : > { %3523 = vrot.lane.b32.xlu1 %v15413_v52, %s15140_s14  ;;  %3425 = vrot.lane.b32.xlu0 %v15425_v58, %s15139_s16  ;;  %v629_v32 = vadd.f32 %v15422_v56, %v628_v61 }
  0xff   : > { %v13857_v63 = vpop.f32.mrb[4].mxu1  ;;  %v15504_v31 = vmul.f32 0.35355338, %v634_v30 }
 0x100   : > { %v842_v0 = vpop.f32.mrb[5].mxu1  ;;  %v15432_v1 = vpop.f32.mrb[4].mxu0  ;;  %v15519_v35 = vmul.f32 0.35355338, %v629_v32  ;;  %v15526_v36 = vadd.f32 %v13857_v63, %v15410_v50 }
 0x101   : > { %v15434_v2 = vpop.f32.mrb[5].mxu0  ;;  %v15529_v37 = vadd.f32 %v15410_v50, %v842_v0  ;;  %v644_v57 = vadd.f32 %v15432_v1, %v15422_v56  ;;  %v1269_v0 = vunpack.c.0.s8 %v1268_v53 }
 0x102   : > { %3473 = vrot.lane.b32.xlu1 %v15425_v58, %s15138_s15  ;;  %3521 = vrot.lane.b32.xlu0 %v15425_v58, %s15140_s14  ;;  %v639_v59 = vadd.f32 %v15422_v56, %v15434_v2 }
 0x103   : > { %v13860_v4 = vpop.f32.mrb[6].mxu1 }
 0x104   : > { %v852_v6 = vpop.f32.mrb[7].mxu1  ;;  %v15443_v7 = vpop.f32.mrb[6].mxu0  ;;  %v15548_v40 = vadd.f32 %v13860_v4, %v15410_v50 }
 0x105   : > { %v15445_v8 = vpop.f32.mrb[7].mxu0  ;;  %v15551_v41 = vadd.f32 %v15410_v50, %v852_v6  ;;  %v654_v60 = vadd.f32 %v15443_v7, %v15422_v56  ;;  %v15638_v6 = vsub.s32 %v1237_v54, %v1239_v55  ;;  %v15640_v7 = vmul.f32 0.35355338, %v644_v57 }
 0x106   : > { %1139 = vrot.lane.b32.xlu0 %v15436_v3, %s15138_s15  ;;  %1091 = vrot.lane.b32.xlu1 %v15436_v3, %s15139_s16  ;;  %v649_v61 = vadd.f32 %v15422_v56, %v15445_v8  ;;  %v15642_v8 = vmul.f32 0.35355338, %v639_v59 }
 0x107   : > { %v13863_v9 = vpop.f32.mrb[8].mxu1  ;;  %21193 = vst [vmem:[#allocation7_spill] sm:$0xff] %v15638_v6  ;;  %21194 = vst [vmem:[#allocation8_spill] sm:$0xff] %v15640_v7 }
 0x108   : > { %v15454_v11 = vadd.f32 %v13863_v9, %v15410_v50  ;;  %v862_v12 = vpop.f32.mrb[9].mxu1  ;;  %v15456_v13 = vpop.f32.mrb[8].mxu0  ;;  %21195 = vst [vmem:[#allocation9_spill] sm:$0xff] %v15642_v8 }
 0x109   : > { %v15459_v14 = vadd.f32 %v15410_v50, %v862_v12  ;;  %v15461_v15 = vpop.f32.mrb[9].mxu0  ;;  %v664_v4 = vadd.f32 %v15456_v13, %v15422_v56 }
 0x10a   : > { %1187 = vrot.lane.b32.xlu1 %v15436_v3, %s15140_s14  ;;  %1089 = vrot.lane.b32.xlu0 %v15451_v10, %s15139_s16  ;;  %v659_v5 = vadd.f32 %v15422_v56, %v15461_v15  ;;  %v15652_v15 = vmul.f32 0.35355338, %v654_v60 }
 0x10b   : > { %v13866_v16 = vpop.f32.mrb[10].mxu1 }
 0x10c   : > { %v15468_v17 = vadd.f32 %v13866_v16, %v15410_v50  ;;  %v872_v18 = vpop.f32.mrb[11].mxu1  ;;  %v15515_v33 = vpop.f32.mrb[10].mxu0  ;;  %21196 = vst [vmem:[#allocation10_spill] sm:$0xff] %v15652_v15  ;;  %v15654_v16 = vmul.f32 0.35355338, %v649_v61 }
 0x10d   : > { %v15471_v19 = vadd.f32 %v15410_v50, %v872_v18  ;;  %v15517_v34 = vpop.f32.mrb[11].mxu0  ;;  %v674_v1 = vadd.f32 %v15515_v33, %v15422_v56  ;;  %v13174_v18 = vld [vmem:[%s20933_s7] ss:$0 sm:$0xff]  ;;  %v15663_v30 = vmul.f32 0.35355338, %v659_v5 }
 0x10e   : > { %1137 = vrot.lane.b32.xlu1 %v15451_v10, %s15138_s15  ;;  %1185 = vrot.lane.b32.xlu0 %v15451_v10, %s15140_s14  ;;  %v669_v2 = vadd.f32 %v15422_v56, %v15517_v34  ;;  %21197 = vst [vmem:[#allocation11_spill] sm:$0xff] %v15654_v16 }
 0x10f   : > { %v13869_v22 = vpop.f32.mrb[12].mxu1  ;;  %21200 = vst [vmem:[#allocation14_spill] sm:$0xff] %v15663_v30  ;;  %v15665_v32 = vmul.f32 0.35355338, %v674_v1 }
 0x110   : > { %v15484_v23 = vadd.f32 %v13869_v22, %v15410_v50  ;;  %v882_v24 = vpop.f32.mrb[13].mxu1  ;;  %v15539_v38 = vpop.f32.mrb[12].mxu0  ;;  %v15659_v22 = vsub.s32 %v1269_v0, %v1239_v55  ;;  %v15667_v34 = vmul.f32 0.35355338, %v669_v2 }
 0x111   : > { %v15487_v25 = vadd.f32 %v15410_v50, %v882_v24  ;;  %v15541_v39 = vpop.f32.mrb[13].mxu0  ;;  %v684_v9 = vadd.f32 %v15539_v38, %v15422_v56  ;;  %21201 = vst [vmem:[#allocation15_spill] sm:$0xff] %v15665_v32 }
 0x112   : > { %3431 = vrot.lane.b32.xlu1 %v15474_v20, %s15139_s16  ;;  %3429 = vrot.lane.b32.xlu0 %v15477_v21, %s15139_s16  ;;  %21198 = vst [vmem:[#allocation12_spill] sm:$0xff] %v15659_v22  ;;  %21202 = vst [vmem:[#allocation16_spill] sm:$0xff] %v15667_v34  ;;  %v15671_v38 = vadd.f32 %v15422_v56, %v15541_v39 }
 0x113   : > { %v13872_v26 = vpop.f32.mrb[14].mxu1  ;;  %v15677_v48 = vmul.f32 0.35355338, %v684_v9 }
 0x114   : > { %v15494_v27 = vadd.f32 %v13872_v26, %v15410_v50  ;;  %v892_v28 = vpop.f32.mrb[15].mxu1  ;;  %v15565_v42 = vpop.f32.mrb[14].mxu0 }
 0x115   : > { %v15497_v29 = vadd.f32 %v15410_v50, %v892_v28  ;;  %v15567_v43 = vpop.f32.mrb[15].mxu0  ;;  %v15661_v28 = vmul.f32 0.35355338, %v664_v4  ;;  %21203 = vst [vmem:[#allocation17_spill] sm:$0xff] %v15677_v48  ;;  %v15681_v51 = vadd.f32 %v15565_v42, %v15422_v56 }
 0x116   : > { %3479 = vrot.lane.b32.xlu1 %v15474_v20, %s15138_s15  ;;  %3477 = vrot.lane.b32.xlu0 %v15477_v21, %s15138_s15  ;;  %v15685_v53 = vadd.f32 %v15422_v56, %v15567_v43 }
 0x117   : > { %21199 = vst [vmem:[#allocation13_spill] sm:$0xff] %v15661_v28 }
 0x118   : > { %v15577_v44 = vpop.f32.mrb[16].mxu0 }
 0x119   : > { %v15595_v45 = vpop.f32.mrb[17].mxu0  ;;  %v15688_v39 = vadd.f32 %v15577_v44, %v13174_v18 }
 0x11a   : > { %3527 = vrot.lane.b32.xlu1 %v15474_v20, %s15140_s14  ;;  %3525 = vrot.lane.b32.xlu0 %v15477_v21, %s15140_s14  ;;  %v15695_v42 = vadd.f32 %v13174_v18, %v15595_v45 }
 0x11b   : > { %21204 = vst [vmem:[#allocation18_spill] sm:$0xff] %v15688_v39 }
 0x11c   : > { %v13886_v46 = vpop.f32.mrb[18].mxu0  ;;  %21205 = vst [vmem:[#allocation19_spill] sm:$0xff] %v15695_v42 }
 0x11d   : > { %v988_v50 = vpop.f32.mrb[19].mxu0 }
 0x11e   : > { %1095 = vrot.lane.b32.xlu1 %v15504_v31, %s15139_s16  ;;  %1143 = vrot.lane.b32.xlu0 %v15504_v31, %s15138_s15  ;;  %v15699_v56 = vadd.f32 %v13174_v18, %v988_v50 }
 0x120   : > { %v13889_v47 = vpop.f32.mrb[20].mxu0  ;;  %21207 = vst [vmem:[#allocation21_spill] sm:$0xff] %v15699_v56 }
 0x121   : > { %v15701_v43 = vadd.f32 %v13889_v47, %v13174_v18 }
 0x122   : > { %1191 = vrot.lane.b32.xlu1 %v15504_v31, %s15140_s14  ;;  %1093 = vrot.lane.b32.xlu0 %v15519_v35, %s15139_s16 }
 0x123   : > { %21208 = vst [vmem:[#allocation22_spill] sm:$0xff] %v15701_v43 }
 0x126   : > { %1141 = vrot.lane.b32.xlu1 %v15519_v35, %s15138_s15  ;;  %1189 = vrot.lane.b32.xlu0 %v15519_v35, %s15140_s14 }
 0x12a   : > { %3435 = vrot.lane.b32.xlu1 %v15526_v36, %s15139_s16  ;;  %3433 = vrot.lane.b32.xlu0 %v15529_v37, %s15139_s16 }
 0x12e   : > { %3483 = vrot.lane.b32.xlu1 %v15526_v36, %s15138_s15  ;;  %3481 = vrot.lane.b32.xlu0 %v15529_v37, %s15138_s15 }
 0x132   : > { %3531 = vrot.lane.b32.xlu1 %v15526_v36, %s15140_s14  ;;  %3529 = vrot.lane.b32.xlu0 %v15529_v37, %s15140_s14 }
 0x136   : > { %3439 = vrot.lane.b32.xlu1 %v15548_v40, %s15139_s16  ;;  %3437 = vrot.lane.b32.xlu0 %v15551_v41, %s15139_s16 }
 0x13a   : > { %3487 = vrot.lane.b32.xlu1 %v15548_v40, %s15138_s15  ;;  %3485 = vrot.lane.b32.xlu0 %v15551_v41, %s15138_s15 }
 0x13e   : > { %3535 = vrot.lane.b32.xlu1 %v15548_v40, %s15140_s14  ;;  %3533 = vrot.lane.b32.xlu0 %v15551_v41, %s15140_s14 }
 0x142   : > { %3443 = vrot.lane.b32.xlu1 %v15454_v11, %s15139_s16  ;;  %3441 = vrot.lane.b32.xlu0 %v15459_v14, %s15139_s16 }
 0x146   : > { %3491 = vrot.lane.b32.xlu1 %v15454_v11, %s15138_s15  ;;  %3489 = vrot.lane.b32.xlu0 %v15459_v14, %s15138_s15 }
 0x14a   : > { %3539 = vrot.lane.b32.xlu1 %v15454_v11, %s15140_s14  ;;  %3537 = vrot.lane.b32.xlu0 %v15459_v14, %s15140_s14 }
 0x14e   : > { %3447 = vrot.lane.b32.xlu1 %v15468_v17, %s15139_s16  ;;  %3445 = vrot.lane.b32.xlu0 %v15471_v19, %s15139_s16 }
 0x152   : > { %3495 = vrot.lane.b32.xlu1 %v15468_v17, %s15138_s15  ;;  %3493 = vrot.lane.b32.xlu0 %v15471_v19, %s15138_s15 }
 0x156   : > { %3543 = vrot.lane.b32.xlu1 %v15468_v17, %s15140_s14  ;;  %3541 = vrot.lane.b32.xlu0 %v15471_v19, %s15140_s14 }
 0x15a   : > { %3451 = vrot.lane.b32.xlu1 %v15484_v23, %s15139_s16  ;;  %3449 = vrot.lane.b32.xlu0 %v15487_v25, %s15139_s16 }
 0x15e   : > { %3499 = vrot.lane.b32.xlu1 %v15484_v23, %s15138_s15  ;;  %3497 = vrot.lane.b32.xlu0 %v15487_v25, %s15138_s15 }
 0x162   : > { %3547 = vrot.lane.b32.xlu1 %v15484_v23, %s15140_s14  ;;  %3545 = vrot.lane.b32.xlu0 %v15487_v25, %s15140_s14 }
 0x166   : > { %3455 = vrot.lane.b32.xlu1 %v15494_v27, %s15139_s16  ;;  %3453 = vrot.lane.b32.xlu0 %v15497_v29, %s15139_s16 }
 0x16a   : > { %3503 = vrot.lane.b32.xlu1 %v15494_v27, %s15138_s15  ;;  %3501 = vrot.lane.b32.xlu0 %v15497_v29, %s15138_s15 }
 0x16c   : > { %v3476_v62 = vpop.permute.xlu1 %3475  ;;  %v3428_v63 = vpop.permute.xlu0 %3427 }
 0x16d   : > { %v3637_v12 = vcombine.low %v15413_v52, %v3476_v62  ;;  %v3638_v13 = vcombine.high %v15413_v52, %v3476_v62  ;;  %v15697_v62 = vadd.f32 %v13886_v46, %v13174_v18 }
 0x16e   : > { %3551 = vrot.lane.b32.xlu1 %v15494_v27, %s15140_s14  ;;  %3549 = vrot.lane.b32.xlu0 %v15497_v29, %s15140_s14 }
 0x16f   : > { %v3645_v54 = vrot.slane %v3637_v12, %v15638_v6  ;;  %v3652_v55 = vrot.slane %v3638_v13, %v15638_v6  ;;  %21206 = vst [vmem:[#allocation20_spill] sm:$0xff] %v15697_v62  ;;  %v15713_v13 = vpop.f32.mrb[21].mxu0 }
 0x170   : > { %v3524_v24 = vpop.permute.xlu1 %3523  ;;  %v3426_v26 = vpop.permute.xlu0 %3425 }
 0x171   : > { %v3653_v33 = vcombine.low %v3428_v63, %v3524_v24  ;;  %v3654_v52 = vcombine.high %v3428_v63, %v3524_v24 }
 0x172   : > { %1145 = vrot.lane.b32.xlu1 %v15642_v8, %s15138_s15  ;;  %1097 = vrot.lane.b32.xlu0 %v15642_v8, %s15139_s16 }
 0x173   : > { %v3661_v57 = vrot.slane %v3653_v33, %v15638_v6  ;;  %v3668_v59 = vrot.slane %v3654_v52, %v15638_v6 }
 0x174   : > { %v3474_v60 = vpop.permute.xlu1 %3473  ;;  %v3522_v61 = vpop.permute.xlu0 %3521 }
 0x175   : > { %v3669_v44 = vcombine.low %v3645_v54, %v3661_v57  ;;  %v3670_v63 = vcombine.high %v3645_v54, %v3661_v57  ;;  %v3685_v0 = vcombine.low %v3652_v55, %v3668_v59  ;;  %v3686_v4 = vcombine.high %v3652_v55, %v3668_v59 }
 0x176   : > { %v3569_v5 = vcombine.low %v15425_v58, %v3474_v60  ;;  %v3570_v1 = vcombine.high %v15425_v58, %v3474_v60  ;;  %v3585_v2 = vcombine.low %v3426_v26, %v3522_v61  ;;  %v3586_v9 = vcombine.high %v3426_v26, %v3522_v61  ;;  %1099 = vrot.lane.b32.xlu1 %v15640_v7, %s15139_s16 }
 0x177   : > { %v3677_v45 = vrot.slane %v3669_v44, %v15659_v22  ;;  %v3684_v46 = vrot.slane %v3670_v63, %v15659_v22  ;;  %v3693_v50 = vrot.slane %v3685_v0, %v15659_v22  ;;  %v3700_v12 = vrot.slane %v3686_v4, %v15659_v22  ;;  %1193 = vrot.lane.b32.xlu0 %v15642_v8, %s15140_s14 }
 0x178   : > { %v3577_v58 = vrot.slane %v3569_v5, %v15638_v6  ;;  %v3584_v18 = vrot.slane %v3570_v1, %v15638_v6  ;;  %v3593_v24 = vrot.slane %v3585_v2, %v15638_v6  ;;  %v3600_v26 = vrot.slane %v3586_v9, %v15638_v6  ;;  %v1140_v33 = vpop.permute.xlu0 %1139  ;;  %v1092_v52 = vpop.permute.xlu1 %1091 }
 0x179   : > { %v4725_v47 = vcombine.low %v3677_v45, %v3684_v46  ;;  %v13225_v54 = vcombine.high %v3677_v45, %v3684_v46  ;;  %v4741_v55 = vcombine.low %v3693_v50, %v3700_v12  ;;  %v13226_v57 = vcombine.high %v3693_v50, %v3700_v12 }
 0x17a   : > { %v3601_v59 = vcombine.low %v3577_v58, %v3593_v24  ;;  %v3602_v60 = vcombine.high %v3577_v58, %v3593_v24  ;;  %v3617_v61 = vcombine.low %v3584_v18, %v3600_v26  ;;  %v3618_v44 = vcombine.high %v3584_v18, %v3600_v26  ;;  %1195 = vrot.lane.b32.xlu1 %v15640_v7, %s15140_s14 }
 0x17b   : > { %v15722_v63 = vrot.slane %v4725_v47, %v15638_v6  ;;  %v15725_v0 = vrot.slane %v13225_v54, %v15638_v6  ;;  %v15728_v4 = vrot.slane %v4741_v55, %v15638_v6  ;;  %v15731_v5 = vrot.slane %v13226_v57, %v15638_v6  ;;  %1147 = vrot.lane.b32.xlu0 %v15640_v7, %s15138_s15 }
 0x17c   : > { %v3609_v1 = vrot.slane %v3601_v59, %v15659_v22  ;;  %v3616_v2 = vrot.slane %v3602_v60, %v15659_v22  ;;  %v3625_v9 = vrot.slane %v3617_v61, %v15659_v22  ;;  %v3632_v45 = vrot.slane %v3618_v44, %v15659_v22  ;;  %v1188_v46 = vpop.permute.xlu1 %1187  ;;  %v1090_v50 = vpop.permute.xlu0 %1089 }
 0x17d   : > { %21209 = vst [vmem:[#allocation23_spill] sm:$0xff] %v15722_v63  ;;  %21210 = vst [vmem:[#allocation24_spill] sm:$0xff] %v15725_v0  ;;  %v1301_v12 = vcombine.low %v15436_v3, %v1140_v33  ;;  %v1302_v58 = vcombine.high %v15436_v3, %v1140_v33  ;;  %v1317_v18 = vcombine.low %v1092_v52, %v1188_v46 }
 0x17e   : > { %21211 = vst [vmem:[#allocation25_spill] sm:$0xff] %v15728_v4  ;;  %21212 = vst [vmem:[#allocation26_spill] sm:$0xff] %v15731_v5  ;;  %v1318_v24 = vcombine.high %v1092_v52, %v1188_v46  ;;  %v4657_v26 = vcombine.low %v3609_v1, %v3616_v2  ;;  %v13223_v47 = vcombine.high %v3609_v1, %v3616_v2  ;;  %1149 = vrot.lane.b32.xlu1 %v15654_v16, %s15138_s15 }
 0x17f   : > { %v4673_v54 = vcombine.low %v3625_v9, %v3632_v45  ;;  %v13224_v55 = vcombine.high %v3625_v9, %v3632_v45  ;;  %v1309_v57 = vrot.slane %v1301_v12, %v15638_v6  ;;  %v1316_v59 = vrot.slane %v1302_v58, %v15638_v6  ;;  %1101 = vrot.lane.b32.xlu0 %v15654_v16, %s15139_s16  ;;  %v15761_v58 = vpop.f32.mrb[22].mxu0 }
 0x180   : > { %v1325_v60 = vrot.slane %v1317_v18, %v15638_v6  ;;  %v1332_v61 = vrot.slane %v1318_v24, %v15638_v6  ;;  %v15750_v3 = vrot.slane %v4657_v26, %v15638_v6  ;;  %v15753_v33 = vrot.slane %v13223_v47, %v15638_v6  ;;  %v1138_v1 = vpop.permute.xlu1 %1137  ;;  %v1186_v2 = vpop.permute.xlu0 %1185 }
 0x181   : > { %v15756_v52 = vrot.slane %v4673_v54, %v15638_v6  ;;  %v15759_v44 = vrot.slane %v13224_v55, %v15638_v6  ;;  %v1233_v18 = vcombine.low %v15451_v10, %v1138_v1  ;;  %v1234_v24 = vcombine.high %v15451_v10, %v1138_v1 }
 0x182   : > { %21213 = vst [vmem:[#allocation27_spill] sm:$0xff] %v15750_v3  ;;  %21214 = vst [vmem:[#allocation28_spill] sm:$0xff] %v15753_v33  ;;  %v1333_v9 = vcombine.low %v1309_v57, %v1325_v60  ;;  %v1334_v45 = vcombine.high %v1309_v57, %v1325_v60  ;;  %v1349_v46 = vcombine.low %v1316_v59, %v1332_v61  ;;  %1103 = vrot.lane.b32.xlu1 %v15652_v15, %s15139_s16 }
 0x183   : > { %21215 = vst [vmem:[#allocation29_spill] sm:$0xff] %v15756_v52  ;;  %21216 = vst [vmem:[#allocation30_spill] sm:$0xff] %v15759_v44  ;;  %v1350_v12 = vcombine.high %v1316_v59, %v1332_v61  ;;  %v1249_v26 = vcombine.low %v1090_v50, %v1186_v2  ;;  %v1250_v47 = vcombine.high %v1090_v50, %v1186_v2  ;;  %1197 = vrot.lane.b32.xlu0 %v15654_v16, %s15140_s14 }
 0x184   : > { %v1341_v54 = vrot.slane %v1333_v9, %v15659_v22  ;;  %v1348_v55 = vrot.slane %v1334_v45, %v15659_v22  ;;  %v1357_v49 = vrot.slane %v1349_v46, %v15659_v22  ;;  %v1241_v59 = vrot.slane %v1233_v18, %v15638_v6  ;;  %v15777_v61 = vpop.permute.xlu1 %3431  ;;  %v15779_v1 = vpop.permute.xlu0 %3429 }
 0x185   : > { %v1364_v57 = vrot.slane %v1350_v12, %v15659_v22  ;;  %v1248_v10 = vrot.slane %v1234_v24, %v15638_v6  ;;  %v1257_v50 = vrot.slane %v1249_v26, %v15638_v6  ;;  %v1264_v60 = vrot.slane %v1250_v47, %v15638_v6 }
 0x186   : > { %v2389_v2 = vcombine.low %v1341_v54, %v1348_v55  ;;  %v13193_v9 = vcombine.high %v1341_v54, %v1348_v55  ;;  %1199 = vrot.lane.b32.xlu1 %v15652_v15, %s15140_s14 }
 0x187   : > { %v2405_v45 = vcombine.low %v1357_v49, %v1364_v57  ;;  %v13194_v46 = vcombine.high %v1357_v49, %v1364_v57  ;;  %v1265_v12 = vcombine.low %v1241_v59, %v1257_v50  ;;  %v1266_v7 = vcombine.high %v1241_v59, %v1257_v50  ;;  %1151 = vrot.lane.b32.xlu0 %v15652_v15, %s15138_s15  ;;  %v15789_v49 = vpop.f32.mrb[23].mxu0 }
 0x188   : > { %v1281_v8 = vcombine.low %v1248_v10, %v1264_v60  ;;  %v1282_v16 = vcombine.high %v1248_v10, %v1264_v60  ;;  %v2396_v18 = vrot.slane %v2389_v2, %v15638_v6  ;;  %v2404_v24 = vrot.slane %v13193_v9, %v15638_v6  ;;  %v3480_v10 = vpop.permute.xlu1 %3479  ;;  %v3478_v50 = vpop.permute.xlu0 %3477 }
 0x189   : > { %v2412_v26 = vrot.slane %v2405_v45, %v15638_v6  ;;  %v2420_v47 = vrot.slane %v13194_v46, %v15638_v6  ;;  %v15792_v54 = vrot.slane %v1265_v12, %v15659_v22  ;;  %v15795_v55 = vrot.slane %v1266_v7, %v15659_v22 }
 0x18a   : > { %v15798_v57 = vrot.slane %v1281_v8, %v15659_v22  ;;  %v15801_v59 = vrot.slane %v1282_v16, %v15659_v22  ;;  %v2421_v60 = vcombine.low %v2396_v18, %v2404_v24  ;;  %v2422_v2 = vcombine.high %v2396_v18, %v2404_v24  ;;  %1153 = vrot.lane.b32.xlu1 %v15663_v30, %s15138_s15 }
 0x18b   : > { %v2437_v9 = vcombine.low %v2412_v26, %v2420_v47  ;;  %v2438_v45 = vcombine.high %v2412_v26, %v2420_v47  ;;  %1105 = vrot.lane.b32.xlu0 %v15663_v30, %s15139_s16  ;;  %v3773_v47 = vcombine.low %v15474_v20, %v3480_v10  ;;  %v3774_v8 = vcombine.high %v15474_v20, %v3480_v10 }
 0x18c   : > { %v15814_v16 = vrot.slane %v2421_v60, %v15659_v22  ;;  %v15817_v18 = vrot.slane %v2422_v2, %v15659_v22  ;;  %v3705_v7 = vcombine.low %v15477_v21, %v3478_v50  ;;  %v3706_v60 = vcombine.high %v15477_v21, %v3478_v50  ;;  %v3528_v12 = vpop.permute.xlu1 %3527  ;;  %v3526_v2 = vpop.permute.xlu0 %3525 }
 0x18d   : > { %v15820_v24 = vrot.slane %v2437_v9, %v15659_v22  ;;  %v15823_v26 = vrot.slane %v2438_v45, %v15659_v22  ;;  %v4689_v9 = vcombine.low %v15750_v3, %v15753_v33  ;;  %v4705_v45 = vcombine.low %v15756_v52, %v15759_v44 }
 0x18e   : > { %21217 = vst [vmem:[#allocation31_spill] sm:$0xff] %v15814_v16  ;;  %21218 = vst [vmem:[#allocation32_spill] sm:$0xff] %v15817_v18  ;;  %v4757_v46 = vcombine.low %v15722_v63, %v15725_v0  ;;  %v4773_v18 = vcombine.low %v15728_v4, %v15731_v5  ;;  %v3781_v20 = vrot.slane %v3773_v47, %v15638_v6  ;;  %1107 = vrot.lane.b32.xlu1 %v15661_v28, %s15139_s16  ;;  %v15859_v0 = vpop.f32.mrb[24].mxu0 }
 0x18f   : > { %21219 = vst [vmem:[#allocation33_spill] sm:$0xff] %v15820_v24  ;;  %21220 = vst [vmem:[#allocation34_spill] sm:$0xff] %v15823_v26  ;;  %v3788_v10 = vrot.slane %v3774_v8, %v15638_v6  ;;  %v3713_v21 = vrot.slane %v3705_v7, %v15638_v6  ;;  %v15843_v50 = vrot.slane %v3706_v60, %v15638_v6  ;;  %1201 = vrot.lane.b32.xlu0 %v15663_v30, %s15140_s14 }
 0x190   : > { %v4697_v26 = vrot.slane %v4689_v9, %v15659_v22  ;;  %v4713_v16 = vrot.slane %v4705_v45, %v15659_v22  ;;  %v4765_v24 = vrot.slane %v4757_v46, %v15659_v22  ;;  %v4781_v15 = vrot.slane %v4773_v18, %v15659_v22  ;;  %v15857_v4 = vpop.permute.xlu1 %1095  ;;  %v1144_v9 = vpop.permute.xlu0 %1143 }
 0x191   : > { %v3789_v8 = vcombine.low %v15777_v61, %v3528_v12  ;;  %v3790_v7 = vcombine.high %v15777_v61, %v3528_v12  ;;  %v3721_v47 = vcombine.low %v15779_v1, %v3526_v2  ;;  %v3722_v60 = vcombine.high %v15779_v1, %v3526_v2 }
 0x192   : > { %v4721_v5 = vcombine.low %v4697_v26, %v4713_v16  ;;  %v4789_v45 = vcombine.low %v4765_v24, %v4781_v15  ;;  %v4722_v63 = vcombine.high %v4697_v26, %v4713_v16  ;;  %v4790_v46 = vcombine.high %v4765_v24, %v4781_v15  ;;  %1203 = vrot.lane.b32.xlu1 %v15661_v28, %s15140_s14 }
 0x193   : > { %v3797_v61 = vrot.slane %v3789_v8, %v15638_v6  ;;  %v3804_v12 = vrot.slane %v3790_v7, %v15638_v6  ;;  %v3729_v1 = vrot.slane %v3721_v47, %v15638_v6  ;;  %v3736_v2 = vrot.slane %v3722_v60, %v15638_v6  ;;  %1155 = vrot.lane.b32.xlu0 %v15661_v28, %s15138_s15 }
 0x194   : > { %v14409_v15 = vpack.c.bf16 %v4789_v45, %v4721_v5  ;;  %v14457_v16 = vpack.c.bf16 %v4790_v46, %v4722_v63  ;;  %v1437_v24 = vcombine.low %v15504_v31, %v1144_v9  ;;  %v1438_v26 = vcombine.high %v15504_v31, %v1144_v9  ;;  %v1192_v44 = vpop.permute.xlu1 %1191  ;;  %v15877_v47 = vpop.permute.xlu0 %1093 }
 0x195   : > { %v3805_v30 = vcombine.low %v3781_v20, %v3797_v61  ;;  %v3806_v8 = vcombine.high %v3781_v20, %v3797_v61  ;;  %v3821_v52 = vcombine.low %v3788_v10, %v3804_v12  ;;  %v3822_v7 = vcombine.high %v3788_v10, %v3804_v12  ;;  %v15903_v12 = vpop.f32.mrb[25].mxu0 }
 0x196   : > { %14411 = vmatprep.subr.msk.bf16.mxu1 %vm15863_vm2, %v14409_v15  ;;  %14459 = vmatprep.subr.msk.bf16.mxu0 %vm15863_vm2, %v14457_v16  ;;  %v3737_v63 = vcombine.low %v3713_v21, %v3729_v1  ;;  %v3738_v5 = vcombine.high %v3713_v21, %v3729_v1  ;;  %v3753_v31 = vcombine.low %v15843_v50, %v3736_v2  ;;  %v15885_v60 = vmul.f32 0.35355338, %v15671_v38 }
 0x197   : > { %14414 = vmatpush3.bf16.xpose.msk.msra.mxu1 %vm15863_vm2, %v14409_v15  ;;  %14462 = vmatpush3.bf16.xpose.msk.msra.mxu0 %vm15863_vm2, %v14457_v16  ;;  %v3813_v20 = vrot.slane %v3805_v30, %v15659_v22  ;;  %v3820_v10 = vrot.slane %v3806_v8, %v15659_v22  ;;  %v3829_v9 = vrot.slane %v3821_v52, %v15659_v22  ;;  %v15895_v45 = vmul.f32 0.35355338, %v15681_v51 }
 0x198   : > { %21223 = vst [vmem:[#allocation35_spill] sm:$0xff] %v15885_v60  ;;  %v3836_v21 = vrot.slane %v3822_v7, %v15659_v22  ;;  %v3745_v38 = vrot.slane %v3737_v63, %v15659_v22  ;;  %v3752_v46 = vrot.slane %v3738_v5, %v15659_v22  ;;  %v3754_v61 = vcombine.high %v15843_v50, %v3736_v2  ;;  %v1142_v15 = vpop.permute.xlu1 %1141  ;;  %v1190_v16 = vpop.permute.xlu0 %1189 }
 0x199   : > { %21224 = vst [vmem:[#allocation36_spill] sm:$0xff] %v15895_v45  ;;  %1157 = vrot.lane.b32.xlu1 %v15667_v34, %s15138_s15  ;;  %v4861_v30 = vcombine.low %v3813_v20, %v3820_v10  ;;  %v13229_v1 = vcombine.high %v3813_v20, %v3820_v10  ;;  %v3761_v52 = vrot.slane %v3753_v31, %v15659_v22 }
 0x19a   : > { %v1445_v51 = vrot.slane %v1437_v24, %v15638_v6  ;;  %1109 = vrot.lane.b32.xlu0 %v15667_v34, %s15139_s16  ;;  %v4877_v8 = vcombine.low %v3829_v9, %v3836_v21  ;;  %v13230_v7 = vcombine.high %v3829_v9, %v3836_v21  ;;  %v3768_v50 = vrot.slane %v3754_v61, %v15659_v22 }
 0x19b   : > { %v4793_v2 = vcombine.low %v3745_v38, %v3752_v46  ;;  %v15911_v63 = vrot.slane %v4861_v30, %v15638_v6  ;;  %v15914_v5 = vrot.slane %v13229_v1, %v15638_v6  ;;  %v13227_v20 = vcombine.high %v3745_v38, %v3752_v46 }
 0x19c   : > { %v1452_v31 = vrot.slane %v1438_v26, %v15638_v6  ;;  %v15918_v24 = vrot.slane %v4877_v8, %v15638_v6  ;;  %v15921_v10 = vrot.slane %v13230_v7, %v15638_v6  ;;  %v4809_v21 = vcombine.low %v3761_v52, %v3768_v50  ;;  %v15945_v8 = vpop.permute.xlu1 %3435  ;;  %v15947_v7 = vpop.permute.xlu0 %3433 }
 0x19d   : > { %21225 = vst [vmem:[#allocation37_spill] sm:$0xff] %v15911_v63  ;;  %21226 = vst [vmem:[#allocation38_spill] sm:$0xff] %v15914_v5  ;;  %v15924_v9 = vrot.slane %v4793_v2, %v15638_v6  ;;  %1111 = vrot.lane.b32.xlu1 %v15665_v32, %s15139_s16  ;;  %v15929_v61 = vrot.slane %v13227_v20, %v15638_v6  ;;  %v13228_v30 = vcombine.high %v3761_v52, %v3768_v50 }
 0x19e   : > { %21227 = vst [vmem:[#allocation39_spill] sm:$0xff] %v15918_v24  ;;  %21228 = vst [vmem:[#allocation40_spill] sm:$0xff] %v15921_v10  ;;  %v21229_v26 = vcombine.low %v15792_v54, %v15795_v55  ;;  %v21231_v46 = vcombine.high %v15792_v54, %v15795_v55  ;;  %1205 = vrot.lane.b32.xlu0 %v15667_v34, %s15140_s14  ;;  %v15950_v52 = vrot.slane %v4809_v21, %v15638_v6 }
 0x19f   : > { %v21234_v50 = vcombine.low %v15798_v57, %v15801_v59  ;;  %v21236_v54 = vcombine.high %v15798_v57, %v15801_v59  ;;  %v1453_v20 = vcombine.low %v15857_v4, %v1192_v44  ;;  %v1369_v34 = vcombine.low %v15519_v35, %v1142_v15 }
 0x1a0   : > { %v15935_v38 = vrot.slane %v21229_v26, %v15638_v6  ;;  %v15941_v1 = vrot.slane %v21231_v46, %v15638_v6  ;;  %21233 = vst [vmem:[#allocation43_spill] sm:$0xff] %v15950_v52  ;;  %v15966_v26 = vrot.slane %v13228_v30, %v15638_v6  ;;  %v1454_v46 = vcombine.high %v15857_v4, %v1192_v44 }
 0x1a1   : > { %v15956_v2 = vrot.slane %v21234_v50, %v15638_v6  ;;  %v15962_v55 = vrot.slane %v21236_v54, %v15638_v6  ;;  %v1461_v28 = vrot.slane %v1453_v20, %v15638_v6  ;;  %v1370_v57 = vcombine.high %v15519_v35, %v1142_v15  ;;  %1207 = vrot.lane.b32.xlu1 %v15665_v32, %s15140_s14  ;;  %v3482_v20 = vpop.permute.xlu0 %3481 }
 0x1a2   : > { %21230 = vst [vmem:[#allocation41_spill] sm:$0xff] %v15935_v38  ;;  %21232 = vst [vmem:[#allocation42_spill] sm:$0xff] %v15941_v1  ;;  %v2353_v21 = vcombine.low %v15935_v38, %v15941_v1  ;;  %v1385_v59 = vcombine.low %v15877_v47, %v1190_v16  ;;  %v1468_v54 = vrot.slane %v1454_v46, %v15638_v6  ;;  %1159 = vrot.lane.b32.xlu0 %v15665_v32, %s15138_s15 }
 0x1a3   : > { %21235 = vst [vmem:[#allocation44_spill] sm:$0xff] %v15956_v2  ;;  %21237 = vst [vmem:[#allocation45_spill] sm:$0xff] %v15962_v55  ;;  %v2369_v50 = vcombine.low %v15956_v2, %v15962_v55  ;;  %v1377_v4 = vrot.slane %v1369_v34, %v15638_v6  ;;  %v1386_v44 = vcombine.high %v15877_v47, %v1190_v16  ;;  %v3484_v2 = vpop.permute.xlu1 %3483  ;;  %v15989_v34 = vpop.f32.mrb[26].mxu0 }
 0x1a4   : > { %21238 = vst [vmem:[#allocation46_spill] sm:$0xff] %v15966_v26  ;;  %v2361_v30 = vrot.slane %v2353_v21, %v15659_v22  ;;  %v1469_v15 = vcombine.low %v1445_v51, %v1461_v28  ;;  %v1470_v55 = vcombine.high %v1445_v51, %v1461_v28  ;;  %v1384_v38 = vrot.slane %v1370_v57, %v15638_v6 }
 0x1a5   : > { %v2377_v35 = vrot.slane %v2369_v50, %v15659_v22  ;;  %v1485_v1 = vcombine.low %v1452_v31, %v1468_v54  ;;  %v1486_v3 = vcombine.high %v1452_v31, %v1468_v54  ;;  %v1393_v21 = vrot.slane %v1385_v59, %v15638_v6  ;;  %1161 = vrot.lane.b32.xlu1 %v15885_v60, %s15138_s15  ;;  %v3530_v59 = vpop.permute.xlu0 %3529 }
 0x1a6   : > { %v1400_v46 = vrot.slane %v1386_v44, %v15638_v6  ;;  %v15992_v32 = vrot.slane %v1469_v15, %v15659_v22  ;;  %v15995_v33 = vrot.slane %v1470_v55, %v15659_v22  ;;  %1113 = vrot.lane.b32.xlu0 %v15885_v60, %s15139_s16  ;;  %v4825_v54 = vcombine.low %v15924_v9, %v15929_v61 }
 0x1a7   : > { %v2385_v47 = vcombine.low %v2361_v30, %v2377_v35  ;;  %v2386_v16 = vcombine.high %v2361_v30, %v2377_v35  ;;  %v16000_v28 = vrot.slane %v1485_v1, %v15659_v22  ;;  %v16003_v51 = vrot.slane %v1486_v3, %v15659_v22  ;;  %v3532_v57 = vpop.permute.xlu1 %3531 }
 0x1a8   : > { %21239 = vst [vmem:[#allocation47_spill] sm:$0xff] %v15992_v32  ;;  %21240 = vst [vmem:[#allocation48_spill] sm:$0xff] %v15995_v33  ;;  %v1401_v31 = vcombine.low %v1377_v4, %v1393_v21  ;;  %v1402_v50 = vcombine.high %v1377_v4, %v1393_v21  ;;  %v1417_v30 = vcombine.low %v1384_v38, %v1400_v46  ;;  %v16014_v3 = vmul.f32 0.35355338, %v15685_v53 }
 0x1a9   : > { %21241 = vst [vmem:[#allocation49_spill] sm:$0xff] %v16000_v28  ;;  %21242 = vst [vmem:[#allocation50_spill] sm:$0xff] %v16003_v51  ;;  %13937 = vmatprep.mubr.msk.f32.mxu1 %vm8081_vm1, %v2385_v47  ;;  %13993 = vmatprep.mubr.msk.f32.mxu0 %vm8081_vm1, %v2386_v16  ;;  %v1418_v15 = vcombine.high %v1384_v38, %v1400_v46  ;;  %v3909_v47 = vcombine.low %v15526_v36, %v3484_v2 }
 0x1aa   : > { %21243 = vst [vmem:[#allocation51_spill] sm:$0xff] %v16014_v3  ;;  %v16021_v44 = vrot.slane %v1401_v31, %v15659_v22  ;;  %v16024_v35 = vrot.slane %v1402_v50, %v15659_v22  ;;  %v16027_v21 = vrot.slane %v1417_v30, %v15659_v22  ;;  %v3910_v53 = vcombine.high %v15526_v36, %v3484_v2  ;;  %v16043_v30 = vpop.permute.xlu0 %3437 }
 0x1ab   : > { %1115 = vrot.lane.b32.xlu1 %v15677_v48, %s15139_s16  ;;  %v3841_v50 = vcombine.low %v15529_v37, %v3482_v20  ;;  %v3842_v38 = vcombine.high %v15529_v37, %v3482_v20  ;;  %1209 = vrot.lane.b32.xlu0 %v15885_v60, %s15140_s14  ;;  %v16041_v46 = vpop.permute.xlu1 %3439  ;;  %v16046_v36 = vrot.slane %v1418_v15, %v15659_v22 }
 0x1ac   : > { %v3917_v2 = vrot.slane %v3909_v47, %v15638_v6  ;;  %v3924_v4 = vrot.slane %v3910_v53, %v15638_v6  ;;  %v4841_v20 = vcombine.low %v15950_v52, %v15966_v26  ;;  %v4893_v55 = vcombine.low %v15911_v63, %v15914_v5 }
 0x1ad   : > { %v3849_v1 = vrot.slane %v3841_v50, %v15638_v6  ;;  %v16054_v37 = vrot.slane %v3842_v38, %v15638_v6  ;;  %v4833_v53 = vrot.slane %v4825_v54, %v15659_v22  ;;  %v4909_v50 = vcombine.low %v15918_v24, %v15921_v10 }
 0x1ae   : > { %v4849_v38 = vrot.slane %v4841_v20, %v15659_v22  ;;  %v4901_v31 = vrot.slane %v4893_v55, %v15659_v22  ;;  %v3925_v16 = vcombine.low %v15945_v8, %v3532_v57  ;;  %v3926_v60 = vcombine.high %v15945_v8, %v3532_v57  ;;  %v16077_v54 = vpop.permute.xlu0 %3485 }
 0x1af   : > { %1211 = vrot.lane.b32.xlu1 %v15677_v48, %s15140_s14  ;;  %1163 = vrot.lane.b32.xlu0 %v15677_v48, %s15138_s15  ;;  %v16075_v47 = vpop.permute.xlu1 %3487  ;;  %v4917_v15 = vrot.slane %v4909_v50, %v15659_v22  ;;  %v3857_v51 = vcombine.low %v15947_v7, %v3530_v59  ;;  %v3858_v28 = vcombine.high %v15947_v7, %v3530_v59  ;;  %v16086_v48 = vpop.f32.mrb[27].mxu0 }
 0x1b0   : > { %v4045_v55 = vcombine.low %v15548_v40, %v16075_v47  ;;  %v4857_v20 = vcombine.low %v4833_v53, %v4849_v38  ;;  %v4858_v33 = vcombine.high %v4833_v53, %v4849_v38  ;;  %v3933_v8 = vrot.slane %v3925_v16, %v15638_v6 }
 0x1b1   : > { %v3940_v57 = vrot.slane %v3926_v60, %v15638_v6  ;;  %v4925_v32 = vcombine.low %v4901_v31, %v4917_v15  ;;  %v4926_v24 = vcombine.high %v4901_v31, %v4917_v15  ;;  %v3865_v10 = vrot.slane %v3857_v51, %v15638_v6 }
 0x1b2   : > { %v3872_v50 = vrot.slane %v3858_v28, %v15638_v6  ;;  %v3941_v7 = vcombine.low %v3917_v2, %v3933_v8  ;;  %v3942_v59 = vcombine.high %v3917_v2, %v3933_v8  ;;  %v16094_v60 = vpop.permute.xlu0 %3533 }
 0x1b3   : > { %1119 = vrot.lane.b32.xlu1 %v15895_v45, %s15139_s16  ;;  %v3957_v63 = vcombine.low %v3924_v4, %v3940_v57  ;;  %v3958_v5 = vcombine.high %v3924_v4, %v3940_v57  ;;  %1117 = vrot.lane.b32.xlu0 %v16014_v3, %s15139_s16  ;;  %v3536_v16 = vpop.permute.xlu1 %3535  ;;  %v14415_v53 = vpack.c.bf16 %v4925_v32, %v4857_v20 }
 0x1b4   : > { %v14463_v38 = vpack.c.bf16 %v4926_v24, %v4858_v33  ;;  %v3873_v31 = vcombine.low %v3849_v1, %v3865_v10  ;;  %v3874_v15 = vcombine.high %v3849_v1, %v3865_v10  ;;  %v3949_v51 = vrot.slane %v3941_v7, %v15659_v22 }
 0x1b5   : > { %v3956_v28 = vrot.slane %v3942_v59, %v15659_v22  ;;  %v3965_v52 = vrot.slane %v3957_v63, %v15659_v22  ;;  %v3972_v2 = vrot.slane %v3958_v5, %v15659_v22  ;;  %14417 = vmatprep.subr.msk.bf16.mxu1 %vm15863_vm2, %v14415_v53  ;;  %v3889_v33 = vcombine.low %v16054_v37, %v3872_v50 }
 0x1b6   : > { %14465 = vmatprep.subr.msk.bf16.mxu0 %vm15863_vm2, %v14463_v38  ;;  %v3881_v4 = vrot.slane %v3873_v31, %v15659_v22  ;;  %v3888_v32 = vrot.slane %v3874_v15, %v15659_v22  ;;  %14420 = vmatpush3.bf16.xpose.msk.msra.mxu1 %vm15863_vm2, %v14415_v53  ;;  %v16113_v1 = vpop.permute.xlu0 %3441  ;;  %v3890_v8 = vcombine.high %v16054_v37, %v3872_v50 }
 0x1b7   : > { %14468 = vmatpush3.bf16.xpose.msk.msra.mxu0 %vm15863_vm2, %v14463_v38  ;;  %v4997_v63 = vcombine.low %v3949_v51, %v3956_v28  ;;  %v13233_v5 = vcombine.high %v3949_v51, %v3956_v28  ;;  %v5013_v24 = vcombine.low %v3965_v52, %v3972_v2  ;;  %v16111_v10 = vpop.permute.xlu1 %3443  ;;  %v13234_v20 = vcombine.high %v3965_v52, %v3972_v2 }
 0x1b8   : > { %v3897_v57 = vrot.slane %v3889_v33, %v15659_v22  ;;  %v4929_v7 = vcombine.low %v3881_v4, %v3888_v32  ;;  %1165 = vrot.lane.b32.xlu1 %v16014_v3, %s15138_s15  ;;  %v13231_v31 = vcombine.high %v3881_v4, %v3888_v32  ;;  %1213 = vrot.lane.b32.xlu0 %v16014_v3, %s15140_s14 }
 0x1b9   : > { %v16120_v59 = vrot.slane %v4997_v63, %v15638_v6  ;;  %v16123_v53 = vrot.slane %v13233_v5, %v15638_v6  ;;  %v16126_v38 = vrot.slane %v5013_v24, %v15638_v6  ;;  %v16131_v52 = vrot.slane %v13234_v20, %v15638_v6 }
 0x1ba   : > { %v3904_v37 = vrot.slane %v3890_v8, %v15659_v22  ;;  %v16135_v50 = vrot.slane %v4929_v7, %v15638_v6  ;;  %v4046_v15 = vcombine.high %v15548_v40, %v16075_v47  ;;  %v16140_v51 = vrot.slane %v13231_v31, %v15638_v6  ;;  %v16149_v33 = vpop.permute.xlu0 %3489 }
 0x1bb   : > { %21244 = vst [vmem:[#allocation52_spill] sm:$0xff] %v16120_v59  ;;  %21245 = vst [vmem:[#allocation53_spill] sm:$0xff] %v16123_v53  ;;  %v4053_v28 = vrot.slane %v4045_v55, %v15638_v6  ;;  %v3977_v2 = vcombine.low %v15551_v41, %v16077_v54  ;;  %v3978_v4 = vcombine.high %v15551_v41, %v16077_v54  ;;  %v16147_v32 = vpop.permute.xlu1 %3491 }
 0x1bc   : > { %21246 = vst [vmem:[#allocation54_spill] sm:$0xff] %v16126_v38  ;;  %21247 = vst [vmem:[#allocation55_spill] sm:$0xff] %v16131_v52  ;;  %v4945_v63 = vcombine.low %v3897_v57, %v3904_v37  ;;  %v13232_v5 = vcombine.high %v3897_v57, %v3904_v37  ;;  %v4060_v24 = vrot.slane %v4046_v15, %v15638_v6  ;;  %1215 = vrot.lane.b32.xlu1 %v15895_v45, %s15140_s14 }
 0x1bd   : > { %21248 = vst [vmem:[#allocation56_spill] sm:$0xff] %v16135_v50  ;;  %21249 = vst [vmem:[#allocation57_spill] sm:$0xff] %v16140_v51  ;;  %v4061_v40 = vcombine.low %v16041_v46, %v3536_v16  ;;  %v3985_v47 = vrot.slane %v3977_v2, %v15638_v6  ;;  %v3992_v55 = vrot.slane %v3978_v4, %v15638_v6  ;;  %1167 = vrot.lane.b32.xlu0 %v15895_v45, %s15138_s15 }
 0x1be   : > { %v4062_v20 = vcombine.high %v16041_v46, %v3536_v16  ;;  %v3993_v41 = vcombine.low %v16043_v30, %v16094_v60  ;;  %v16163_v54 = vrot.slane %v4945_v63, %v15638_v6  ;;  %v16166_v8 = vrot.slane %v13232_v5, %v15638_v6  ;;  %v16179_v2 = vpop.permute.xlu0 %3537 }
 0x1bf   : > { %v4069_v57 = vrot.slane %v4061_v40, %v15638_v6  ;;  %v3994_v7 = vcombine.high %v16043_v30, %v16094_v60  ;;  %v4181_v16 = vcombine.low %v15454_v11, %v16147_v32  ;;  %v4182_v37 = vcombine.high %v15454_v11, %v16147_v32  ;;  %v16177_v15 = vpop.permute.xlu1 %3539  ;;  %v16186_v60 = vpop.f32.mrb[28].mxu0 }
 0x1c0   : > { %21250 = vst [vmem:[#allocation58_spill] sm:$0xff] %v16163_v54  ;;  %21251 = vst [vmem:[#allocation59_spill] sm:$0xff] %v16166_v8  ;;  %v4076_v31 = vrot.slane %v4062_v20, %v15638_v6  ;;  %v4001_v46 = vrot.slane %v3993_v41, %v15638_v6  ;;  %v4113_v30 = vcombine.low %v15459_v14, %v16149_v33  ;;  %5811 = vrot.lane.b32.xlu1 %v15688_v39, %s15138_s15 }
 0x1c1   : > { %v4077_v4 = vcombine.low %v4053_v28, %v4069_v57  ;;  %v4078_v63 = vcombine.high %v4053_v28, %v4069_v57  ;;  %v4008_v5 = vrot.slane %v3994_v7, %v15638_v6  ;;  %21252 = vst [vmem:[#allocation60_spill] sm:$0xff] %v16186_v60  ;;  %5763 = vrot.lane.b32.xlu0 %v15688_v39, %s15139_s16 }
 0x1c2   : > { %v4093_v40 = vcombine.low %v4060_v24, %v4076_v31  ;;  %v4094_v20 = vcombine.high %v4060_v24, %v4076_v31  ;;  %v4009_v41 = vcombine.low %v3985_v47, %v4001_v46  ;;  %v4010_v11 = vcombine.high %v3985_v47, %v4001_v46  ;;  %v16198_v47 = vpop.permute.xlu0 %3445 }
 0x1c3   : > { %v4085_v32 = vrot.slane %v4077_v4, %v15659_v22  ;;  %v4092_v28 = vrot.slane %v4078_v63, %v15659_v22  ;;  %v4025_v57 = vcombine.low %v3992_v55, %v4008_v5  ;;  %v4026_v7 = vcombine.high %v3992_v55, %v4008_v5  ;;  %v16196_v24 = vpop.permute.xlu1 %3447 }
 0x1c4   : > { %v4101_v45 = vrot.slane %v4093_v40, %v15659_v22  ;;  %v4108_v3 = vrot.slane %v4094_v20, %v15659_v22  ;;  %v4017_v26 = vrot.slane %v4009_v41, %v15659_v22  ;;  %v4024_v60 = vrot.slane %v4010_v11, %v15659_v22  ;;  %5859 = vrot.lane.b32.xlu1 %v15688_v39, %s15140_s14 }
 0x1c5   : > { %v5133_v31 = vcombine.low %v4085_v32, %v4092_v28  ;;  %v13237_v46 = vcombine.high %v4085_v32, %v4092_v28  ;;  %v4033_v4 = vrot.slane %v4025_v57, %v15659_v22  ;;  %v4040_v63 = vrot.slane %v4026_v7, %v15659_v22  ;;  %5857 = vrot.lane.b32.xlu0 %v15695_v42, %s15140_s14 }
 0x1c6   : > { %v5149_v55 = vcombine.low %v4101_v45, %v4108_v3  ;;  %v13238_v5 = vcombine.high %v4101_v45, %v4108_v3  ;;  %v5065_v40 = vcombine.low %v4017_v26, %v4024_v60  ;;  %v13235_v20 = vcombine.high %v4017_v26, %v4024_v60 }
 0x1c7   : > { %v16207_v41 = vrot.slane %v5133_v31, %v15638_v6  ;;  %v16210_v11 = vrot.slane %v13237_v46, %v15638_v6  ;;  %v5081_v32 = vcombine.low %v4033_v4, %v4040_v63  ;;  %v13236_v28 = vcombine.high %v4033_v4, %v4040_v63  ;;  %v16224_v3 = vpop.permute.xlu1 %3495  ;;  %v16236_v63 = vpop.permute.xlu0 %3493 }
 0x1c8   : > { %v16213_v57 = vrot.slane %v5149_v55, %v15638_v6  ;;  %v16216_v7 = vrot.slane %v13238_v5, %v15638_v6  ;;  %v16219_v45 = vrot.slane %v5065_v40, %v15638_v6  ;;  %v16222_v26 = vrot.slane %v13235_v20, %v15638_v6  ;;  %5761 = vrot.lane.b32.xlu1 %v15695_v42, %s15139_s16 }
 0x1c9   : > { %21253 = vst [vmem:[#allocation61_spill] sm:$0xff] %v16207_v41  ;;  %21254 = vst [vmem:[#allocation62_spill] sm:$0xff] %v16210_v11  ;;  %v16227_v60 = vrot.slane %v5081_v32, %v15638_v6  ;;  %v16230_v31 = vrot.slane %v13236_v28, %v15638_v6  ;;  %v4189_v46 = vrot.slane %v4181_v16, %v15638_v6  ;;  %5765 = vrot.lane.b32.xlu0 %v15699_v56, %s15139_s16 }
 0x1ca   : > { %21255 = vst [vmem:[#allocation63_spill] sm:$0xff] %v16213_v57  ;;  %21256 = vst [vmem:[#allocation64_spill] sm:$0xff] %v16216_v7  ;;  %v4196_v4 = vrot.slane %v4182_v37, %v15638_v6  ;;  %v4114_v55 = vcombine.high %v15459_v14, %v16149_v33  ;;  %v4121_v5 = vrot.slane %v4113_v30, %v15638_v6 }
 0x1cb   : > { %21257 = vst [vmem:[#allocation65_spill] sm:$0xff] %v16219_v45  ;;  %21258 = vst [vmem:[#allocation66_spill] sm:$0xff] %v16222_v26  ;;  %v4961_v40 = vcombine.low %v16135_v50, %v16140_v51  ;;  %v4977_v20 = vcombine.low %v16163_v54, %v16166_v8  ;;  %v5029_v16 = vcombine.low %v16120_v59, %v16123_v53  ;;  %v16275_v8 = vpop.permute.xlu0 %3541 }
 0x1cc   : > { %21259 = vst [vmem:[#allocation67_spill] sm:$0xff] %v16227_v60  ;;  %21260 = vst [vmem:[#allocation68_spill] sm:$0xff] %v16230_v31  ;;  %v5045_v37 = vcombine.low %v16126_v38, %v16131_v52  ;;  %v4197_v14 = vcombine.low %v16111_v10, %v16177_v15  ;;  %v4198_v33 = vcombine.high %v16111_v10, %v16177_v15  ;;  %5809 = vrot.lane.b32.xlu1 %v15695_v42, %s15138_s15 }
 0x1cd   : > { %v4128_v30 = vrot.slane %v4114_v55, %v15638_v6  ;;  %v4969_v32 = vrot.slane %v4961_v40, %v15659_v22  ;;  %v4985_v28 = vrot.slane %v4977_v20, %v15659_v22  ;;  %v4129_v39 = vcombine.low %v16113_v1, %v16179_v2  ;;  %v16269_v20 = vpop.permute.xlu1 %3543  ;;  %5813 = vrot.lane.b32.xlu0 %v15699_v56, %s15138_s15 }
 0x1ce   : > { %v5037_v59 = vrot.slane %v5029_v16, %v15659_v22  ;;  %v5053_v53 = vrot.slane %v5045_v37, %v15659_v22  ;;  %v4205_v38 = vrot.slane %v4197_v14, %v15638_v6  ;;  %v4212_v52 = vrot.slane %v4198_v33, %v15638_v6  ;;  %v16273_v16 = vpop.f32.mrb[29].mxu0 }
 0x1cf   : > { %v4993_v10 = vcombine.low %v4969_v32, %v4985_v28  ;;  %v4994_v15 = vcombine.high %v4969_v32, %v4985_v28  ;;  %v4130_v55 = vcombine.high %v16113_v1, %v16179_v2  ;;  %v4137_v40 = vrot.slane %v4129_v39, %v15638_v6 }
 0x1d0   : > { %v5061_v37 = vcombine.low %v5037_v59, %v5053_v53  ;;  %v5062_v14 = vcombine.high %v5037_v59, %v5053_v53  ;;  %v4213_v33 = vcombine.low %v4189_v46, %v4205_v38  ;;  %v4214_v54 = vcombine.high %v4189_v46, %v4205_v38  ;;  %5767 = vrot.lane.b32.xlu1 %v15697_v62, %s15139_s16 }
 0x1d1   : > { %v4229_v42 = vcombine.low %v4196_v4, %v4212_v52  ;;  %v4230_v32 = vcombine.high %v4196_v4, %v4212_v52  ;;  %v4144_v28 = vrot.slane %v4130_v55, %v15638_v6  ;;  %v4145_v1 = vcombine.low %v4121_v5, %v4137_v40  ;;  %5861 = vrot.lane.b32.xlu0 %v15699_v56, %s15140_s14 }
 0x1d2   : > { %v14421_v2 = vpack.c.bf16 %v5061_v37, %v4993_v10  ;;  %v14469_v39 = vpack.c.bf16 %v5062_v14, %v4994_v15  ;;  %v4221_v50 = vrot.slane %v4213_v33, %v15659_v22  ;;  %v4228_v51 = vrot.slane %v4214_v54, %v15659_v22  ;;  %v16296_v15 = vpop.permute.xlu1 %3451  ;;  %v16305_v37 = vpop.permute.xlu0 %3449 }
 0x1d3   : > { %v4237_v59 = vrot.slane %v4229_v42, %v15659_v22  ;;  %v4244_v53 = vrot.slane %v4230_v32, %v15659_v22  ;;  %v4146_v38 = vcombine.high %v4121_v5, %v4137_v40  ;;  %v4153_v46 = vrot.slane %v4145_v1, %v15659_v22  ;;  %v16309_v14 = vpop.f32.mrb[30].mxu0 }
 0x1d4   : > { %14423 = vmatprep.subr.msk.bf16.mxu1 %vm15863_vm2, %v14421_v2  ;;  %14471 = vmatprep.subr.msk.bf16.mxu0 %vm15863_vm2, %v14469_v39  ;;  %v5269_v52 = vcombine.low %v4221_v50, %v4228_v51  ;;  %v13241_v54 = vcombine.high %v4221_v50, %v4228_v51  ;;  %v4161_v4 = vcombine.low %v4128_v30, %v4144_v28 }
 0x1d5   : > { %14426 = vmatpush3.bf16.xpose.msk.msra.mxu1 %vm15863_vm2, %v14421_v2  ;;  %14474 = vmatpush3.bf16.xpose.msk.msra.mxu0 %vm15863_vm2, %v14469_v39  ;;  %v5285_v42 = vcombine.low %v4237_v59, %v4244_v53  ;;  %v13242_v5 = vcombine.high %v4237_v59, %v4244_v53  ;;  %v4160_v10 = vrot.slane %v4146_v38, %v15659_v22  ;;  %v16317_v39 = vpop.f32.mrb[31].mxu0 }
 0x1d6   : > { %v16299_v55 = vrot.slane %v5269_v52, %v15638_v6  ;;  %v16302_v40 = vrot.slane %v13241_v54, %v15638_v6  ;;  %v4162_v50 = vcombine.high %v4128_v30, %v4144_v28  ;;  %v4169_v51 = vrot.slane %v4161_v4, %v15659_v22  ;;  %5815 = vrot.lane.b32.xlu1 %v15697_v62, %s15138_s15 }
 0x1d7   : > { %21261 = vst [vmem:[#allocation69_spill] sm:$0xff] %v16309_v14  ;;  %v16312_v33 = vrot.slane %v5285_v42, %v15638_v6  ;;  %v16315_v32 = vrot.slane %v13242_v5, %v15638_v6  ;;  %v5201_v1 = vcombine.low %v4153_v46, %v4160_v10  ;;  %v13239_v2 = vcombine.high %v4153_v46, %v4160_v10 }
 0x1d8   : > { %21263 = vst [vmem:[#allocation71_spill] sm:$0xff] %v16317_v39  ;;  %v4176_v30 = vrot.slane %v4162_v50, %v15659_v22  ;;  %v4317_v28 = vcombine.low %v15468_v17, %v16224_v3  ;;  %v4318_v59 = vcombine.high %v15468_v17, %v16224_v3  ;;  %v4249_v53 = vcombine.low %v15471_v19, %v16236_v63 }
 0x1d9   : > { %21262 = vst [vmem:[#allocation70_spill] sm:$0xff] %v16312_v33  ;;  %v16327_v38 = vrot.slane %v5201_v1, %v15638_v6  ;;  %v16330_v52 = vrot.slane %v13239_v2, %v15638_v6  ;;  %v4250_v46 = vcombine.high %v15471_v19, %v16236_v63  ;;  %v5097_v54 = vcombine.low %v16219_v45, %v16222_v26  ;;  %v16345_v63 = vpop.permute.xlu1 %3499 }
 0x1da   : > { %v5217_v4 = vcombine.low %v4169_v51, %v4176_v30  ;;  %v13240_v42 = vcombine.high %v4169_v51, %v4176_v30  ;;  %v4325_v5 = vrot.slane %v4317_v28, %v15638_v6  ;;  %v4332_v17 = vrot.slane %v4318_v59, %v15638_v6  ;;  %5863 = vrot.lane.b32.xlu1 %v15697_v62, %s15140_s14  ;;  %v16357_v28 = vpop.permute.xlu0 %3497 }
 0x1db   : > { %v4257_v3 = vrot.slane %v4249_v53, %v15638_v6  ;;  %v4264_v10 = vrot.slane %v4250_v46, %v15638_v6  ;;  %v5105_v50 = vrot.slane %v5097_v54, %v15659_v22  ;;  %v5113_v19 = vcombine.low %v16227_v60, %v16230_v31 }
 0x1dc   : > { %v16348_v51 = vrot.slane %v5217_v4, %v15638_v6  ;;  %v16351_v1 = vrot.slane %v13240_v42, %v15638_v6  ;;  %v5165_v2 = vcombine.low %v16207_v41, %v16210_v11  ;;  %v5181_v30 = vcombine.low %v16213_v57, %v16216_v7 }
 0x1dd   : > { %v5121_v59 = vrot.slane %v5113_v19, %v15659_v22  ;;  %v4333_v53 = vcombine.low %v16196_v24, %v16269_v20  ;;  %v4334_v46 = vcombine.high %v16196_v24, %v16269_v20  ;;  %v4265_v54 = vcombine.low %v16198_v47, %v16275_v8 }
 0x1de   : > { %v5173_v4 = vrot.slane %v5165_v2, %v15659_v22  ;;  %v5189_v42 = vrot.slane %v5181_v30, %v15659_v22  ;;  %v4266_v56 = vcombine.high %v16198_v47, %v16275_v8  ;;  %v4453_v62 = vcombine.low %v15484_v23, %v16345_v63  ;;  %5771 = vrot.lane.b32.xlu1 %v15701_v43, %s15139_s16  ;;  %v16378_v14 = vpop.permute.xlu0 %3545 }
 0x1df   : > { %v5129_v19 = vcombine.low %v5105_v50, %v5121_v59  ;;  %v5130_v57 = vcombine.high %v5105_v50, %v5121_v59  ;;  %v4341_v24 = vrot.slane %v4333_v53, %v15638_v6  ;;  %v4348_v20 = vrot.slane %v4334_v46, %v15638_v6 }
 0x1e0   : > { %v5197_v7 = vcombine.low %v5173_v4, %v5189_v42  ;;  %v5198_v41 = vcombine.high %v5173_v4, %v5189_v42  ;;  %v4273_v2 = vrot.slane %v4265_v54, %v15638_v6  ;;  %v4280_v30 = vrot.slane %v4266_v56, %v15638_v6 }
 0x1e1   : > { %v4349_v11 = vcombine.low %v4325_v5, %v4341_v24  ;;  %v4350_v8 = vcombine.high %v4325_v5, %v4341_v24  ;;  %v4365_v47 = vcombine.low %v4332_v17, %v4348_v20  ;;  %v4366_v60 = vcombine.high %v4332_v17, %v4348_v20  ;;  %v3548_v17 = vpop.permute.xlu1 %3547 }
 0x1e2   : > { %v14427_v31 = vpack.c.bf16 %v5197_v7, %v5129_v19  ;;  %v14475_v45 = vpack.c.bf16 %v5198_v41, %v5130_v57  ;;  %v4281_v26 = vcombine.low %v4257_v3, %v4273_v2  ;;  %v4282_v39 = vcombine.high %v4257_v3, %v4273_v2  ;;  %5819 = vrot.lane.b32.xlu1 %v15701_v43, %s15138_s15  ;;  %v16417_v20 = vpop.permute.xlu0 %3453 }
 0x1e3   : > { %v4357_v50 = vrot.slane %v4349_v11, %v15659_v22  ;;  %v4364_v59 = vrot.slane %v4350_v8, %v15659_v22  ;;  %v4373_v53 = vrot.slane %v4365_v47, %v15659_v22  ;;  %v4380_v56 = vrot.slane %v4366_v60, %v15659_v22 }
 0x1e4   : > { %14429 = vmatprep.subr.msk.bf16.mxu1 %vm15863_vm2, %v14427_v31  ;;  %14477 = vmatprep.subr.msk.bf16.mxu0 %vm15863_vm2, %v14475_v45  ;;  %v4289_v41 = vrot.slane %v4281_v26, %v15659_v22  ;;  %v4296_v57 = vrot.slane %v4282_v39, %v15659_v22  ;;  %v4297_v7 = vcombine.low %v4264_v10, %v4280_v30 }
 0x1e5   : > { %14432 = vmatpush3.bf16.xpose.msk.msra.mxu1 %vm15863_vm2, %v14427_v31  ;;  %14480 = vmatpush3.bf16.xpose.msk.msra.mxu0 %vm15863_vm2, %v14475_v45  ;;  %v5405_v11 = vcombine.low %v4357_v50, %v4364_v59  ;;  %v13245_v5 = vcombine.high %v4357_v50, %v4364_v59  ;;  %v5421_v60 = vcombine.low %v4373_v53, %v4380_v56 }
 0x1e6   : > { %v13246_v3 = vcombine.high %v4373_v53, %v4380_v56  ;;  %v4298_v46 = vcombine.high %v4264_v10, %v4280_v30  ;;  %v4305_v54 = vrot.slane %v4297_v7, %v15659_v22  ;;  %v5337_v4 = vcombine.low %v4289_v41, %v4296_v57  ;;  %5867 = vrot.lane.b32.xlu1 %v15701_v43, %s15140_s14 }
 0x1e7   : > { %v16400_v26 = vrot.slane %v5405_v11, %v15638_v6  ;;  %v16403_v31 = vrot.slane %v13245_v5, %v15638_v6  ;;  %v16406_v45 = vrot.slane %v5421_v60, %v15638_v6  ;;  %v13243_v39 = vcombine.high %v4289_v41, %v4296_v57  ;;  %v16438_v57 = vpop.permute.xlu1 %3455 }
 0x1e8   : > { %v16409_v42 = vrot.slane %v13246_v3, %v15638_v6  ;;  %v4312_v10 = vrot.slane %v4298_v46, %v15659_v22  ;;  %v16413_v19 = vrot.slane %v5337_v4, %v15638_v6  ;;  %v4454_v24 = vcombine.high %v15484_v23, %v16345_v63 }
 0x1e9   : > { %21264 = vst [vmem:[#allocation72_spill] sm:$0xff] %v16400_v26  ;;  %21265 = vst [vmem:[#allocation73_spill] sm:$0xff] %v16403_v31  ;;  %v16420_v2 = vrot.slane %v13243_v39, %v15638_v6  ;;  %v4461_v30 = vrot.slane %v4453_v62, %v15638_v6  ;;  %v4385_v8 = vcombine.low %v15487_v25, %v16357_v28 }
 0x1ea   : > { %21266 = vst [vmem:[#allocation74_spill] sm:$0xff] %v16406_v45  ;;  %21267 = vst [vmem:[#allocation75_spill] sm:$0xff] %v16409_v42  ;;  %v4386_v47 = vcombine.high %v15487_v25, %v16357_v28  ;;  %v5353_v50 = vcombine.low %v4305_v54, %v4312_v10  ;;  %v13244_v59 = vcombine.high %v4305_v54, %v4312_v10  ;;  %v16461_v10 = vld [vmem:[%s20933_s7] ss:$0 sm:$0xff] }
 0x1eb   : > { %21268 = vst [vmem:[#allocation76_spill] sm:$0xff] %v16413_v19  ;;  %v4468_v53 = vrot.slane %v4454_v24, %v15638_v6  ;;  %v5233_v23 = vcombine.low %v16327_v38, %v16330_v52  ;;  %v4393_v63 = vrot.slane %v4385_v8, %v15638_v6  ;;  %v5249_v62 = vcombine.low %v16348_v51, %v16351_v1  ;;  %v3502_v8 = vpop.permute.xlu0 %3501  ;;  %v3504_v43 = vpop.permute.xlu1 %3503 }
 0x1ec   : > { %v16432_v56 = vrot.slane %v4386_v47, %v15638_v6  ;;  %v5301_v41 = vcombine.low %v16299_v55, %v16302_v40  ;;  %v16441_v25 = vrot.slane %v5353_v50, %v15638_v6  ;;  %v16444_v28 = vrot.slane %v13244_v59, %v15638_v6 }
 0x1ed   : > { %v5241_v7 = vrot.slane %v5233_v23, %v15659_v22  ;;  %v5317_v11 = vcombine.low %v16312_v33, %v16315_v32  ;;  %v5257_v5 = vrot.slane %v5249_v62, %v15659_v22  ;;  %v4469_v3 = vcombine.low %v16296_v15, %v3548_v17 }
 0x1ee   : > { %21269 = vst [vmem:[#allocation77_spill] sm:$0xff] %v16441_v25  ;;  %21270 = vst [vmem:[#allocation78_spill] sm:$0xff] %v16444_v28  ;;  %v5309_v60 = vrot.slane %v5301_v41, %v15659_v22  ;;  %v4470_v46 = vcombine.high %v16296_v15, %v3548_v17  ;;  %v4401_v4 = vcombine.low %v16305_v37, %v16378_v14 }
 0x1ef   : > { %v5325_v54 = vrot.slane %v5317_v11, %v15659_v22  ;;  %v4402_v39 = vcombine.high %v16305_v37, %v16378_v14  ;;  %v16465_v24 = vadd.f32 %v16461_v10, %v15713_v13  ;;  %v5265_v47 = vcombine.low %v5241_v7, %v5257_v5 }
 0x1f0   : > { %v5266_v15 = vcombine.high %v5241_v7, %v5257_v5  ;;  %v4477_v17 = vrot.slane %v4469_v3, %v15638_v6  ;;  %v4484_v50 = vrot.slane %v4470_v46, %v15638_v6  ;;  %v4409_v37 = vrot.slane %v4401_v4, %v15638_v6 }
 0x1f1   : > { %21271 = vst [vmem:[#allocation79_spill] sm:$0xff] %v16465_v24  ;;  %v5333_v59 = vcombine.low %v5309_v60, %v5325_v54  ;;  %v5334_v23 = vcombine.high %v5309_v60, %v5325_v54  ;;  %v4416_v14 = vrot.slane %v4402_v39, %v15638_v6  ;;  %5769 = vrot.lane.b32.xlu0 %v16465_v24, %s15139_s16  ;;  %v3550_v39 = vpop.permute.xlu0 %3549 }
 0x1f2   : > { %v4485_v62 = vcombine.low %v4461_v30, %v4477_v17  ;;  %v4486_v41 = vcombine.high %v4461_v30, %v4477_v17  ;;  %v4501_v13 = vcombine.low %v4468_v53, %v4484_v50  ;;  %v4502_v11 = vcombine.high %v4468_v53, %v4484_v50 }
 0x1f3   : > { %v14433_v33 = vpack.c.bf16 %v5333_v59, %v5265_v47  ;;  %v14481_v7 = vpack.c.bf16 %v5334_v23, %v5266_v15  ;;  %v4417_v5 = vcombine.low %v4393_v63, %v4409_v37  ;;  %v4418_v3 = vcombine.high %v4393_v63, %v4409_v37 }
 0x1f4   : > { %v4493_v46 = vrot.slane %v4485_v62, %v15659_v22  ;;  %v4500_v60 = vrot.slane %v4486_v41, %v15659_v22  ;;  %v4509_v54 = vrot.slane %v4501_v13, %v15659_v22  ;;  %v4516_v4 = vrot.slane %v4502_v11, %v15659_v22  ;;  %v3552_v11 = vpop.permute.xlu1 %3551 }
 0x1f5   : > { %14435 = vmatprep.subr.msk.bf16.mxu1 %vm15863_vm2, %v14433_v33  ;;  %14483 = vmatprep.subr.msk.bf16.mxu0 %vm15863_vm2, %v14481_v7  ;;  %v4425_v30 = vrot.slane %v4417_v5, %v15659_v22  ;;  %v4432_v53 = vrot.slane %v4418_v3, %v15659_v22  ;;  %v4433_v63 = vcombine.low %v16432_v56, %v4416_v14 }
 0x1f6   : > { %14438 = vmatpush3.bf16.xpose.msk.msra.mxu1 %vm15863_vm2, %v14433_v33  ;;  %14486 = vmatpush3.bf16.xpose.msk.msra.mxu0 %vm15863_vm2, %v14481_v7  ;;  %v5541_v47 = vcombine.low %v4493_v46, %v4500_v60  ;;  %v13249_v15 = vcombine.high %v4493_v46, %v4500_v60  ;;  %v5557_v17 = vcombine.low %v4509_v54, %v4516_v4 }
 0x1f7   : > { %v13250_v50 = vcombine.high %v4509_v54, %v4516_v4  ;;  %v4434_v59 = vcombine.high %v16432_v56, %v4416_v14  ;;  %v4441_v23 = vrot.slane %v4433_v63, %v15659_v22  ;;  %v5473_v37 = vcombine.low %v4425_v30, %v4432_v53  ;;  %5817 = vrot.lane.b32.xlu0 %v16465_v24, %s15138_s15 }
 0x1f8   : > { %v16493_v62 = vrot.slane %v5541_v47, %v15638_v6  ;;  %v16496_v33 = vrot.slane %v13249_v15, %v15638_v6  ;;  %v16499_v41 = vrot.slane %v5557_v17, %v15638_v6  ;;  %v13247_v13 = vcombine.high %v4425_v30, %v4432_v53  ;;  %v16518_v47 = vpop.permute.xlu0 %1097 }
 0x1f9   : > { %v16502_v7 = vrot.slane %v13250_v50, %v15638_v6  ;;  %v4448_v56 = vrot.slane %v4434_v59, %v15659_v22  ;;  %v16506_v14 = vrot.slane %v5473_v37, %v15638_v6  ;;  %v4589_v5 = vcombine.low %v15494_v27, %v3504_v43 }
 0x1fa   : > { %21272 = vst [vmem:[#allocation80_spill] sm:$0xff] %v16493_v62  ;;  %21273 = vst [vmem:[#allocation81_spill] sm:$0xff] %v16496_v33  ;;  %v16510_v3 = vrot.slane %v13247_v13, %v15638_v6  ;;  %v4590_v46 = vcombine.high %v15494_v27, %v3504_v43  ;;  %v4521_v60 = vcombine.low %v15497_v29, %v3502_v8 }
 0x1fb   : > { %21274 = vst [vmem:[#allocation82_spill] sm:$0xff] %v16499_v41  ;;  %21275 = vst [vmem:[#allocation83_spill] sm:$0xff] %v16502_v7  ;;  %v4522_v54 = vcombine.high %v15497_v29, %v3502_v8  ;;  %v5489_v4 = vcombine.low %v4441_v23, %v4448_v56  ;;  %v13248_v30 = vcombine.high %v4441_v23, %v4448_v56  ;;  %5865 = vrot.lane.b32.xlu0 %v16465_v24, %s15140_s14 }
 0x1fc   : > { %v4597_v53 = vrot.slane %v4589_v5, %v15638_v6  ;;  %v5369_v63 = vcombine.low %v16413_v19, %v16420_v2  ;;  %v4604_v15 = vrot.slane %v4590_v46, %v15638_v6  ;;  %v4529_v27 = vrot.slane %v4521_v60, %v15638_v6  ;;  %v1146_v5 = vpop.permute.xlu1 %1145 }
 0x1fd   : > { %v4536_v43 = vrot.slane %v4522_v54, %v15638_v6  ;;  %v5385_v29 = vcombine.low %v16441_v25, %v16444_v28  ;;  %v16528_v8 = vrot.slane %v5489_v4, %v15638_v6  ;;  %v16531_v17 = vrot.slane %v13248_v30, %v15638_v6 }
 0x1fe   : > { %v5377_v50 = vrot.slane %v5369_v63, %v15659_v22  ;;  %v5437_v59 = vcombine.low %v16400_v26, %v16403_v31  ;;  %v5453_v37 = vcombine.low %v16406_v45, %v16409_v42  ;;  %v16541_v13 = vadd.f32 %v16461_v10, %v15761_v58  ;;  %v1194_v42 = vpop.permute.xlu0 %1193 }
 0x1ff   : > { %v5393_v23 = vrot.slane %v5385_v29, %v15659_v22  ;;  %v4605_v56 = vcombine.low %v16438_v57, %v3552_v11  ;;  %v4606_v60 = vcombine.high %v16438_v57, %v3552_v11  ;;  %v4537_v54 = vcombine.low %v16417_v20, %v3550_v39  ;;  %v21277_v57 = vld [vmem:[#allocation9_spill] sm:$0xff] }
 0x200   : > { %21276 = vst [vmem:[#allocation84_spill] sm:$0xff] %v16541_v13  ;;  %v5445_v46 = vrot.slane %v5437_v59, %v15659_v22  ;;  %v4538_v4 = vcombine.high %v16417_v20, %v3550_v39  ;;  %v5461_v63 = vrot.slane %v5453_v37, %v15659_v22  ;;  %5775 = vrot.lane.b32.xlu1 %v16541_v13, %s15139_s16 }
 0x201   : > { %v5401_v30 = vcombine.low %v5377_v50, %v5393_v23  ;;  %v5402_v29 = vcombine.high %v5377_v50, %v5393_v23  ;;  %v4613_v24 = vrot.slane %v4605_v56, %v15638_v6  ;;  %v4620_v58 = vrot.slane %v4606_v60, %v15638_v6 }
 0x202   : > { %v4545_v45 = vrot.slane %v4537_v54, %v15638_v6  ;;  %v4552_v59 = vrot.slane %v4538_v4, %v15638_v6  ;;  %v1505_v11 = vcombine.low %v21277_v57, %v1146_v5  ;;  %v5469_v26 = vcombine.low %v5445_v46, %v5461_v63 }
 0x203   : > { %v5470_v20 = vcombine.high %v5445_v46, %v5461_v63  ;;  %v4621_v39 = vcombine.low %v4597_v53, %v4613_v24  ;;  %v4622_v31 = vcombine.high %v4597_v53, %v4613_v24  ;;  %v4637_v37 = vcombine.low %v4604_v15, %v4620_v58  ;;  %v16568_v53 = vpop.permute.xlu1 %1099  ;;  %v16574_v63 = vpop.permute.xlu0 %1147 }
 0x204   : > { %v4638_v50 = vcombine.high %v4604_v15, %v4620_v58  ;;  %v4553_v23 = vcombine.low %v4529_v27, %v4545_v45  ;;  %v4554_v56 = vcombine.high %v4529_v27, %v4545_v45  ;;  %v14439_v25 = vpack.c.bf16 %v5469_v26, %v5401_v30  ;;  %5823 = vrot.lane.b32.xlu1 %v16541_v13, %s15138_s15 }
 0x205   : > { %v14487_v28 = vpack.c.bf16 %v5470_v20, %v5402_v29  ;;  %v4629_v19 = vrot.slane %v4621_v39, %v15659_v22  ;;  %v4636_v60 = vrot.slane %v4622_v31, %v15659_v22  ;;  %v4645_v54 = vrot.slane %v4637_v37, %v15659_v22 }
 0x206   : > { %v4652_v4 = vrot.slane %v4638_v50, %v15659_v22  ;;  %v4561_v46 = vrot.slane %v4553_v23, %v15659_v22  ;;  %v4568_v24 = vrot.slane %v4554_v56, %v15659_v22  ;;  %14441 = vmatprep.subr.msk.bf16.mxu1 %vm15863_vm2, %v14439_v25  ;;  %v4569_v31 = vcombine.low %v4536_v43, %v4552_v59 }
 0x207   : > { %14489 = vmatprep.subr.msk.bf16.mxu0 %vm15863_vm2, %v14487_v28  ;;  %v5677_v26 = vcombine.low %v4629_v19, %v4636_v60  ;;  %v13253_v45 = vcombine.high %v4629_v19, %v4636_v60  ;;  %14444 = vmatpush3.bf16.xpose.msk.msra.mxu1 %vm15863_vm2, %v14439_v25  ;;  %v4570_v30 = vcombine.high %v4536_v43, %v4552_v59 }
 0x208   : > { %14492 = vmatpush3.bf16.xpose.msk.msra.mxu0 %vm15863_vm2, %v14487_v28  ;;  %v5693_v15 = vcombine.low %v4645_v54, %v4652_v4  ;;  %v13254_v27 = vcombine.high %v4645_v54, %v4652_v4  ;;  %v4577_v19 = vrot.slane %v4569_v31, %v15659_v22  ;;  %v5609_v20 = vcombine.low %v4561_v46, %v4568_v24 }
 0x209   : > { %v16577_v29 = vrot.slane %v5677_v26, %v15638_v6  ;;  %v16580_v58 = vrot.slane %v13253_v45, %v15638_v6  ;;  %5871 = vrot.lane.b32.xlu1 %v16541_v13, %s15140_s14  ;;  %v4584_v43 = vrot.slane %v4570_v30, %v15659_v22  ;;  %v13251_v59 = vcombine.high %v4561_v46, %v4568_v24 }
 0x20a   : > { %v16586_v25 = vrot.slane %v5693_v15, %v15638_v6  ;;  %v16589_v28 = vrot.slane %v13254_v27, %v15638_v6  ;;  %v16593_v39 = vrot.slane %v5609_v20, %v15638_v6  ;;  %v1506_v37 = vcombine.high %v21277_v57, %v1146_v5 }
 0x20b   : > { %21278 = vst [vmem:[#allocation9_spill] sm:$0xff] %v16577_v29  ;;  %21279 = vst [vmem:[#allocation85_spill] sm:$0xff] %v16580_v58  ;;  %v1513_v50 = vrot.slane %v1505_v11, %v15638_v6  ;;  %v16599_v23 = vadd.f32 %v16461_v10, %v15789_v49  ;;  %v16602_v56 = vrot.slane %v13251_v59, %v15638_v6  ;;  %v1196_v49 = vpop.permute.xlu1 %1195 }
 0x20c   : > { %21280 = vst [vmem:[#allocation86_spill] sm:$0xff] %v16586_v25  ;;  %21281 = vst [vmem:[#allocation87_spill] sm:$0xff] %v16589_v28  ;;  %v5625_v60 = vcombine.low %v4577_v19, %v4584_v43  ;;  %v13252_v54 = vcombine.high %v4577_v19, %v4584_v43  ;;  %v1521_v4 = vcombine.low %v16518_v47, %v1194_v42 }
 0x20d   : > { %21282 = vst [vmem:[#allocation88_spill] sm:$0xff] %v16593_v39  ;;  %21283 = vst [vmem:[#allocation89_spill] sm:$0xff] %v16599_v23  ;;  %v1520_v46 = vrot.slane %v1506_v37, %v15638_v6  ;;  %v1522_v24 = vcombine.high %v16518_v47, %v1194_v42  ;;  %v5505_v5 = vcombine.low %v16506_v14, %v16510_v3  ;;  %5773 = vrot.lane.b32.xlu0 %v16599_v23, %s15139_s16  ;;  %v1102_v47 = vpop.permute.xlu0 %1101 }
 0x20e   : > { %21284 = vst [vmem:[#allocation90_spill] sm:$0xff] %v16602_v56  ;;  %v5521_v57 = vcombine.low %v16528_v8, %v16531_v17  ;;  %v16614_v11 = vrot.slane %v5625_v60, %v15638_v6  ;;  %v16617_v26 = vrot.slane %v13252_v54, %v15638_v6  ;;  %v1529_v45 = vrot.slane %v1521_v4, %v15638_v6 }
 0x20f   : > { %v5573_v42 = vcombine.low %v16493_v62, %v16496_v33  ;;  %v1536_v31 = vrot.slane %v1522_v24, %v15638_v6  ;;  %v5513_v15 = vrot.slane %v5505_v5, %v15659_v22  ;;  %v5589_v30 = vcombine.low %v16499_v41, %v16502_v7 }
 0x210   : > { %21285 = vst [vmem:[#allocation91_spill] sm:$0xff] %v16614_v11  ;;  %21286 = vst [vmem:[#allocation92_spill] sm:$0xff] %v16617_v26  ;;  %v5529_v27 = vrot.slane %v5521_v57, %v15659_v22  ;;  %v1537_v19 = vcombine.low %v1513_v50, %v1529_v45  ;;  %v1538_v20 = vcombine.high %v1513_v50, %v1529_v45 }
 0x211   : > { %v5581_v43 = vrot.slane %v5573_v42, %v15659_v22  ;;  %v16630_v59 = vadd.f32 %v16461_v10, %v15859_v0  ;;  %v1553_v37 = vcombine.low %v1520_v46, %v1536_v31  ;;  %v1554_v60 = vcombine.high %v1520_v46, %v1536_v31  ;;  %5821 = vrot.lane.b32.xlu0 %v16599_v23, %s15138_s15  ;;  %v1150_v31 = vpop.permute.xlu1 %1149 }
 0x212   : > { %v5537_v54 = vcombine.low %v5513_v15, %v5529_v27  ;;  %v5597_v4 = vrot.slane %v5589_v30, %v15659_v22  ;;  %v16636_v24 = vrot.slane %v1537_v19, %v15659_v22  ;;  %v16639_v5 = vrot.slane %v1538_v20, %v15659_v22  ;;  %v1198_v20 = vpop.permute.xlu0 %1197 }
 0x213   : > { %21287 = vst [vmem:[#allocation93_spill] sm:$0xff] %v16630_v59  ;;  %v5538_v50 = vcombine.high %v5513_v15, %v5529_v27  ;;  %v1589_v57 = vcombine.low %v16568_v53, %v1196_v49  ;;  %5779 = vrot.lane.b32.xlu1 %v16630_v59, %s15139_s16  ;;  %v16645_v0 = vrot.slane %v1553_v37, %v15659_v22  ;;  %v21288_v15 = vld [vmem:[#allocation8_spill] sm:$0xff] }
 0x214   : > { %v16648_v46 = vrot.slane %v1554_v60, %v15659_v22  ;;  %v5605_v45 = vcombine.low %v5581_v43, %v5597_v4  ;;  %v5606_v42 = vcombine.high %v5581_v43, %v5597_v4  ;;  %v1590_v27 = vcombine.high %v16568_v53, %v1196_v49  ;;  %v21289_v49 = vld [vmem:[#allocation11_spill] sm:$0xff] }
 0x215   : > { %v1597_v19 = vrot.slane %v1589_v57, %v15638_v6  ;;  %5869 = vrot.lane.b32.xlu0 %v16599_v23, %s15140_s14  ;;  %v1573_v30 = vcombine.low %v21288_v15, %v16574_v63  ;;  %v1574_v53 = vcombine.high %v21288_v15, %v16574_v63  ;;  %v1641_v57 = vcombine.low %v21289_v49, %v1150_v31 }
 0x216   : > { %v14445_v13 = vpack.c.bf16 %v5605_v45, %v5537_v54  ;;  %v14493_v43 = vpack.c.bf16 %v5606_v42, %v5538_v50  ;;  %v1604_v4 = vrot.slane %v1590_v27, %v15638_v6  ;;  %v1642_v54 = vcombine.high %v21289_v49, %v1150_v31  ;;  %v16687_v31 = vpop.permute.xlu1 %1103 }
 0x217   : > { %5827 = vrot.lane.b32.xlu1 %v16630_v59, %s15138_s15  ;;  %v16677_v50 = vadd.f32 %v16461_v10, %v15903_v12  ;;  %v1657_v45 = vcombine.low %v1102_v47, %v1198_v20  ;;  %v1581_v63 = vrot.slane %v1573_v30, %v15638_v6  ;;  %v1588_v42 = vrot.slane %v1574_v53, %v15638_v6 }
 0x218   : > { %14447 = vmatprep.subr.msk.bf16.mxu1 %vm15863_vm2, %v14445_v13  ;;  %14495 = vmatprep.subr.msk.bf16.mxu0 %vm15863_vm2, %v14493_v43  ;;  %v1649_v15 = vrot.slane %v1641_v57, %v15638_v6  ;;  %v1656_v27 = vrot.slane %v1642_v54, %v15638_v6  ;;  %v1658_v49 = vcombine.high %v1102_v47, %v1198_v20 }
 0x219   : > { %21290 = vst [vmem:[#allocation8_spill] sm:$0xff] %v16677_v50  ;;  %14450 = vmatpush3.bf16.xpose.msk.msra.mxu1 %vm15863_vm2, %v14445_v13  ;;  %14498 = vmatpush3.bf16.xpose.msk.msra.mxu0 %vm15863_vm2, %v14493_v43  ;;  %v1665_v12 = vrot.slane %v1657_v45, %v15638_v6  ;;  %v5641_v60 = vcombine.low %v16593_v39, %v16602_v56 }
 0x21a   : > { %5777 = vrot.lane.b32.xlu0 %v16677_v50, %s15139_s16  ;;  %v1605_v13 = vcombine.low %v1581_v63, %v1597_v19  ;;  %v1606_v43 = vcombine.high %v1581_v63, %v1597_v19  ;;  %v1621_v30 = vcombine.low %v1588_v42, %v1604_v4  ;;  %v1622_v37 = vcombine.high %v1588_v42, %v1604_v4 }
 0x21b   : > { %5875 = vrot.lane.b32.xlu1 %v16630_v59, %s15140_s14  ;;  %v1672_v53 = vrot.slane %v1658_v49, %v15638_v6  ;;  %v1673_v57 = vcombine.low %v1649_v15, %v1665_v12  ;;  %v1674_v54 = vcombine.high %v1649_v15, %v1665_v12  ;;  %v5649_v47 = vrot.slane %v5641_v60, %v15659_v22  ;;  %v21292_v12 = vld [vmem:[#allocation28_spill] sm:$0xff]  ;;  %v21294_v15 = vld [vmem:[#allocation30_spill] sm:$0xff]  ;;  %v21295_v59 = vld [vmem:[#allocation29_spill] sm:$0xff] }
 0x21c   : > { %v16699_v20 = vrot.slane %v1605_v13, %v15659_v22  ;;  %v16702_v45 = vrot.slane %v1606_v43, %v15659_v22  ;;  %v16705_v23 = vrot.slane %v1621_v30, %v15659_v22  ;;  %v16708_v19 = vrot.slane %v1622_v37, %v15659_v22  ;;  %v21293_v37 = vld [vmem:[#allocation27_spill] sm:$0xff] }
 0x21d   : > { %v16711_v4 = vrot.slane %v1673_v57, %v15659_v22  ;;  %v16714_v63 = vrot.slane %v1674_v54, %v15659_v22  ;;  %v1689_v42 = vcombine.low %v1656_v27, %v1672_v53  ;;  %v1690_v60 = vcombine.high %v1656_v27, %v1672_v53  ;;  %v1200_v53 = vpop.permute.xlu1 %1199  ;;  %v21297_v43 = vld [vmem:[#allocation23_spill] sm:$0xff] }
 0x21e   : > { %5825 = vrot.lane.b32.xlu0 %v16677_v50, %s15138_s15  ;;  %v5657_v57 = vcombine.low %v16614_v11, %v16617_v26  ;;  %v5709_v54 = vcombine.low %v16577_v29, %v16580_v58  ;;  %v4690_v49 = vcombine.high %v21293_v37, %v21292_v12  ;;  %v4706_v11 = vcombine.high %v21295_v59, %v21294_v15  ;;  %v21296_v29 = vld [vmem:[#allocation24_spill] sm:$0xff]  ;;  %v21298_v59 = vld [vmem:[#allocation26_spill] sm:$0xff]  ;;  %v21299_v15 = vld [vmem:[#allocation25_spill] sm:$0xff] }
 0x21f   : > { %v16727_v13 = vrot.slane %v1689_v42, %v15659_v22  ;;  %v16730_v27 = vrot.slane %v1690_v60, %v15659_v22  ;;  %v5725_v42 = vcombine.low %v16586_v25, %v16589_v28  ;;  %v16744_v60 = vadd.f32 %v16461_v10, %v15989_v34 }
 0x220   : > { %v5665_v25 = vrot.slane %v5657_v57, %v15659_v22  ;;  %v5717_v34 = vrot.slane %v5709_v54, %v15659_v22  ;;  %v4758_v58 = vcombine.high %v21297_v43, %v21296_v29  ;;  %v4704_v37 = vrot.slane %v4690_v49, %v15659_v22  ;;  %v1152_v57 = vpop.permute.xlu0 %1151 }
 0x221   : > { %21291 = vst [vmem:[#allocation11_spill] sm:$0xff] %v16744_v60  ;;  %v5733_v28 = vrot.slane %v5725_v42, %v15659_v22  ;;  %5783 = vrot.lane.b32.xlu1 %v16744_v60, %s15139_s16  ;;  %v4720_v12 = vrot.slane %v4706_v11, %v15659_v22  ;;  %v4774_v30 = vcombine.high %v21299_v15, %v21298_v59  ;;  %v1154_v7 = vpop.permute.xlu1 %1153 }
 0x222   : > { %5873 = vrot.lane.b32.xlu0 %v16677_v50, %s15140_s14  ;;  %v1725_v50 = vcombine.low %v16687_v31, %v1200_v53  ;;  %v5673_v26 = vcombine.low %v5649_v47, %v5665_v25  ;;  %v5674_v39 = vcombine.high %v5649_v47, %v5665_v25  ;;  %v4772_v29 = vrot.slane %v4758_v58, %v15659_v22  ;;  %v21300_v25 = vld [vmem:[#allocation10_spill] sm:$0xff] }
 0x223   : > { %v5741_v54 = vcombine.low %v5717_v34, %v5733_v28  ;;  %v5742_v42 = vcombine.high %v5717_v34, %v5733_v28  ;;  %v4723_v56 = vcombine.low %v4704_v37, %v4720_v12  ;;  %v4788_v43 = vrot.slane %v4774_v30, %v15659_v22 }
 0x224   : > { %v4724_v41 = vcombine.high %v4704_v37, %v4720_v12  ;;  %v1726_v11 = vcombine.high %v16687_v31, %v1200_v53  ;;  %v1733_v59 = vrot.slane %v1725_v50, %v15638_v6  ;;  %v1709_v28 = vcombine.low %v21300_v25, %v1152_v57  ;;  %v1106_v34 = vpop.permute.xlu0 %1105 }
 0x225   : > { %v14451_v49 = vpack.c.bf16 %v5741_v54, %v5673_v26  ;;  %v14499_v62 = vpack.c.bf16 %v5742_v42, %v5674_v39  ;;  %5831 = vrot.lane.b32.xlu1 %v16744_v60, %s15138_s15  ;;  %v4791_v15 = vcombine.low %v4772_v29, %v4788_v43  ;;  %v4792_v33 = vcombine.high %v4772_v29, %v4788_v43  ;;  %v21301_v39 = vld [vmem:[#allocation14_spill] sm:$0xff]  ;;  %v21303_v54 = vld [vmem:[#allocation31_spill] sm:$0xff] }
 0x226   : > { %v1710_v47 = vcombine.high %v21300_v25, %v1152_v57  ;;  %v1740_v58 = vrot.slane %v1726_v11, %v15638_v6  ;;  %v1777_v26 = vcombine.low %v21301_v39, %v1154_v7  ;;  %v1778_v50 = vcombine.high %v21301_v39, %v1154_v7  ;;  %v21302_v7 = vld [vmem:[#allocation33_spill] sm:$0xff] }
 0x227   : > { %14453 = vmatprep.subr.msk.bf16.mxu1 %vm15863_vm2, %v14451_v49  ;;  %14501 = vmatprep.subr.msk.bf16.mxu0 %vm15863_vm2, %v14499_v62  ;;  %v14505_v31 = vpack.c.bf16 %v4791_v15, %v4723_v56  ;;  %v14553_v30 = vpack.c.bf16 %v4792_v33, %v4724_v41  ;;  %v1717_v53 = vrot.slane %v1709_v28, %v15638_v6 }
 0x228   : > { %14456 = vmatpush3.bf16.xpose.msk.msra.mxu1 %vm15863_vm2, %v14451_v49  ;;  %14504 = vmatpush3.bf16.xpose.msk.msra.mxu0 %vm15863_vm2, %v14499_v62  ;;  %v1724_v37 = vrot.slane %v1710_v47, %v15638_v6  ;;  %v16790_v12 = vrot.slane %v1777_v26, %v15638_v6  ;;  %v16793_v57 = vrot.slane %v1778_v50, %v15638_v6 }
 0x229   : > { %v2453_v42 = vcombine.low %v21303_v54, %v21302_v7  ;;  %5879 = vrot.lane.b32.xlu1 %v16744_v60, %s15140_s14  ;;  %14507 = vmatprep.subr.msk.bf16.mxu1 %vm15863_vm2, %v14505_v31  ;;  %v1741_v62 = vcombine.low %v1717_v53, %v1733_v59  ;;  %v1742_v33 = vcombine.high %v1717_v53, %v1733_v59 }
 0x22a   : > { %14555 = vmatprep.subr.msk.bf16.mxu0 %vm15863_vm2, %v14553_v30  ;;  %v2454_v41 = vcombine.high %v21303_v54, %v21302_v7  ;;  %v1757_v56 = vcombine.low %v1724_v37, %v1740_v58  ;;  %v1758_v29 = vcombine.high %v1724_v37, %v1740_v58  ;;  %v21304_v43 = vcombine.low %v16021_v44, %v16024_v35  ;;  %v1202_v7 = vpop.permute.xlu0 %1201  ;;  %v21316_v54 = vld [vmem:[#allocation48_spill] sm:$0xff] }
 0x22b   : > { %v21305_v11 = vcombine.high %v16021_v44, %v16024_v35  ;;  %v16818_v25 = vrot.slane %v1741_v62, %v15659_v22  ;;  %v16821_v59 = vrot.slane %v1742_v33, %v15659_v22  ;;  %v21306_v28 = vcombine.low %v16027_v21, %v16046_v36 }
 0x22c   : > { %v16809_v49 = vrot.slane %v21304_v43, %v15638_v6  ;;  %v21307_v58 = vcombine.high %v16027_v21, %v16046_v36  ;;  %v16836_v44 = vrot.slane %v1757_v56, %v15659_v22  ;;  %v16839_v35 = vrot.slane %v1758_v29, %v15659_v22  ;;  %v21310_v56 = vld [vmem:[#allocation43_spill] sm:$0xff]  ;;  %v21311_v43 = vld [vmem:[#allocation38_spill] sm:$0xff] }
 0x22d   : > { %v16815_v15 = vrot.slane %v21305_v11, %v15638_v6  ;;  %v16827_v47 = vrot.slane %v21306_v28, %v15638_v6  ;;  %v16845_v50 = vadd.f32 %v16461_v10, %v16086_v48  ;;  %v4826_v37 = vcombine.high %v15924_v9, %v15929_v61  ;;  %v21309_v61 = vld [vmem:[#allocation46_spill] sm:$0xff]  ;;  %v21312_v11 = vld [vmem:[#allocation37_spill] sm:$0xff]  ;;  %v21313_v28 = vld [vmem:[#allocation40_spill] sm:$0xff] }
 0x22e   : > { %v16833_v39 = vrot.slane %v21307_v58, %v15638_v6  ;;  %v4842_v29 = vcombine.high %v21310_v56, %v21309_v61  ;;  %v1794_v48 = vcombine.high %v1106_v34, %v1202_v7 }
 0x22f   : > { %v2489_v26 = vcombine.low %v16809_v49, %v16815_v15  ;;  %21308 = vst [vmem:[#allocation28_spill] sm:$0xff] %v16845_v50  ;;  %13938 = vmatmul.mubr.msk.f32.vlgmr.msra.gmra.mrb[16].mxu1 %vm8081_vm1, %v2453_v42  ;;  %13994 = vmatmul.mubr.msk.f32.vlgmr.msra.gmra.mrb[32].mxu0 %vm8081_vm1, %v2454_v41  ;;  %v4840_v9 = vrot.slane %v4826_v37, %v15659_v22  ;;  %v21314_v41 = vld [vmem:[#allocation39_spill] sm:$0xff] }
 0x230   : > { %v2505_v36 = vcombine.low %v16827_v47, %v16833_v39  ;;  %14510 = vmatpush3.bf16.xpose.msk.msra.mxu1 %vm15863_vm2, %v14505_v31  ;;  %14558 = vmatpush3.bf16.xpose.msk.msra.mxu0 %vm15863_vm2, %v14553_v30  ;;  %v4894_v42 = vcombine.high %v21312_v11, %v21311_v43  ;;  %v4910_v58 = vcombine.high %v21314_v41, %v21313_v28  ;;  %v21315_v37 = vld [vmem:[#allocation47_spill] sm:$0xff]  ;;  %v1108_v11 = vpop.permute.xlu1 %1107 }
 0x231   : > { %v2497_v62 = vrot.slane %v2489_v26, %v15659_v22  ;;  %v1793_v26 = vcombine.low %v1106_v34, %v1202_v7  ;;  %5781 = vrot.lane.b32.xlu0 %v16845_v50, %s15139_s16  ;;  %v4856_v30 = vrot.slane %v4842_v29, %v15659_v22  ;;  %v21317_v21 = vcombine.low %v21315_v37, %v21316_v54 }
 0x232   : > { %v2513_v33 = vrot.slane %v2505_v36, %v15659_v22  ;;  %v4908_v56 = vrot.slane %v4894_v42, %v15659_v22  ;;  %v4924_v43 = vrot.slane %v4910_v58, %v15659_v22  ;;  %v1808_v7 = vrot.slane %v1794_v48, %v15638_v6 }
 0x233   : > { %v16881_v61 = vrot.slane %v21317_v21, %v15638_v6  ;;  %v1801_v34 = vrot.slane %v1793_v26, %v15638_v6  ;;  %v21318_v21 = vcombine.high %v21315_v37, %v21316_v54 }
 0x234   : > { %v2521_v31 = vcombine.low %v2497_v62, %v2513_v33  ;;  %v2522_v36 = vcombine.high %v2497_v62, %v2513_v33  ;;  %v4859_v62 = vcombine.low %v4840_v9, %v4856_v30  ;;  %v4860_v33 = vcombine.high %v4840_v9, %v4856_v30  ;;  %v21319_v9 = vld [vmem:[#allocation49_spill] sm:$0xff] }
 0x235   : > { %v16893_v29 = vrot.slane %v21318_v21, %v15638_v6  ;;  %v4927_v42 = vcombine.low %v4908_v56, %v4924_v43  ;;  %v4928_v28 = vcombine.high %v4908_v56, %v4924_v43  ;;  %v1809_v41 = vcombine.low %v16790_v12, %v1801_v34  ;;  %5829 = vrot.lane.b32.xlu0 %v16845_v50, %s15138_s15 }
 0x236   : > { %13940 = vmatprep.mubr.msk.f32.mxu1 %vm8081_vm1, %v2521_v31  ;;  %13996 = vmatprep.mubr.msk.f32.mxu0 %vm8081_vm1, %v2522_v36  ;;  %v1810_v58 = vcombine.high %v16790_v12, %v1801_v34  ;;  %v1825_v48 = vcombine.low %v16793_v57, %v1808_v7  ;;  %v1826_v26 = vcombine.high %v16793_v57, %v1808_v7  ;;  %v21320_v31 = vld [vmem:[#allocation50_spill] sm:$0xff] }
 0x237   : > { %v21321_v36 = vcombine.low %v21319_v9, %v21320_v31  ;;  %v21322_v30 = vcombine.high %v21319_v9, %v21320_v31  ;;  %v14511_v12 = vpack.c.bf16 %v4927_v42, %v4859_v62  ;;  %v14559_v56 = vpack.c.bf16 %v4928_v28, %v4860_v33 }
 0x238   : > { %v16914_v43 = vrot.slane %v1809_v41, %v15659_v22  ;;  %v16917_v34 = vrot.slane %v1810_v58, %v15659_v22  ;;  %v16920_v57 = vrot.slane %v1825_v48, %v15659_v22  ;;  %v16923_v7 = vrot.slane %v1826_v26, %v15659_v22  ;;  %v1204_v41 = vpop.permute.xlu1 %1203  ;;  %v21329_v48 = vld [vmem:[#allocation60_spill] sm:$0xff] }
 0x239   : > { %v16905_v54 = vrot.slane %v21321_v36, %v15638_v6  ;;  %v16911_v37 = vrot.slane %v21322_v30, %v15638_v6  ;;  %v2557_v21 = vcombine.low %v16881_v61, %v16893_v29  ;;  %14513 = vmatprep.subr.msk.bf16.mxu1 %vm15863_vm2, %v14511_v12  ;;  %14561 = vmatprep.subr.msk.bf16.mxu0 %vm15863_vm2, %v14559_v56  ;;  %v1156_v36 = vpop.permute.xlu0 %1155 }
 0x23a   : > { %v21323_v42 = vcombine.low %v16636_v24, %v16639_v5  ;;  %14516 = vmatpush3.bf16.xpose.msk.msra.mxu1 %vm15863_vm2, %v14511_v12  ;;  %v21324_v30 = vcombine.high %v16636_v24, %v16639_v5  ;;  %v21325_v58 = vcombine.low %v16645_v0, %v16648_v46  ;;  %v16971_v12 = vadd.f32 %v16461_v10, %v21329_v48 }
 0x23b   : > { %v2573_v9 = vcombine.low %v16905_v54, %v16911_v37  ;;  %v2565_v26 = vrot.slane %v2557_v21, %v15659_v22  ;;  %v21327_v21 = vcombine.high %v16645_v0, %v16648_v46  ;;  %14564 = vmatpush3.bf16.xpose.msk.msra.mxu0 %vm15863_vm2, %v14559_v56  ;;  %v1862_v62 = vcombine.high %v1108_v11, %v1204_v41  ;;  %v21331_v46 = vld [vmem:[#allocation13_spill] sm:$0xff] }
 0x23c   : > { %v16941_v28 = vrot.slane %v21323_v42, %v15638_v6  ;;  %v16955_v42 = vrot.slane %v21324_v30, %v15638_v6  ;;  %v16961_v33 = vrot.slane %v21325_v58, %v15638_v6  ;;  %21330 = vst [vmem:[#allocation29_spill] sm:$0xff] %v16971_v12  ;;  %v1861_v30 = vcombine.low %v1108_v11, %v1204_v41  ;;  %v1158_v53 = vpop.permute.xlu1 %1157 }
 0x23d   : > { %v2581_v31 = vrot.slane %v2573_v9, %v15659_v22  ;;  %v16967_v9 = vrot.slane %v21327_v21, %v15638_v6  ;;  %5877 = vrot.lane.b32.xlu0 %v16845_v50, %s15140_s14  ;;  %v1845_v21 = vcombine.low %v21331_v46, %v1156_v36  ;;  %v1846_v48 = vcombine.high %v21331_v46, %v1156_v36 }
 0x23e   : > { %21326 = vst [vmem:[#allocation27_spill] sm:$0xff] %v16961_v33  ;;  %v2625_v58 = vcombine.low %v16941_v28, %v16955_v42  ;;  %5787 = vrot.lane.b32.xlu1 %v16971_v12, %s15139_s16  ;;  %v1869_v11 = vrot.slane %v1861_v30, %v15638_v6  ;;  %v1876_v56 = vrot.slane %v1862_v62, %v15638_v6 }
 0x23f   : > { %21328 = vst [vmem:[#allocation30_spill] sm:$0xff] %v16967_v9  ;;  %v2589_v24 = vcombine.low %v2565_v26, %v2581_v31  ;;  %v2590_v5 = vcombine.high %v2565_v26, %v2581_v31  ;;  %v2641_v0 = vcombine.low %v16961_v33, %v16967_v9  ;;  %v21332_v41 = vcombine.low %v16699_v20, %v16702_v45 }
 0x240   : > { %v2633_v31 = vrot.slane %v2625_v58, %v15659_v22  ;;  %v1853_v46 = vrot.slane %v1845_v21, %v15638_v6  ;;  %v21336_v30 = vcombine.low %v16705_v23, %v16708_v19  ;;  %v21338_v58 = vcombine.high %v16705_v23, %v16708_v19 }
 0x241   : > { %13941 = vmatmul.mubr.msk.f32.gmra.mrb[18].mxu1 %vm8081_vm1, %v2589_v24  ;;  %13997 = vmatmul.mubr.msk.f32.gmra.mrb[34].mxu0 %vm8081_vm1, %v2590_v5  ;;  %v16993_v26 = vrot.slane %v21332_v41, %v15638_v6  ;;  %v2649_v36 = vrot.slane %v2641_v0, %v15659_v22  ;;  %v1860_v24 = vrot.slane %v1846_v48, %v15638_v6 }
 0x242   : > { %v21334_v5 = vcombine.high %v16699_v20, %v16702_v45  ;;  %v17009_v41 = vrot.slane %v21336_v30, %v15638_v6  ;;  %v17015_v0 = vrot.slane %v21338_v58, %v15638_v6  ;;  %v21340_v21 = vcombine.low %v16711_v4, %v16714_v63  ;;  %5835 = vrot.lane.b32.xlu1 %v16971_v12, %s15138_s15 }
 0x243   : > { %21333 = vst [vmem:[#allocation24_spill] sm:$0xff] %v16993_v26  ;;  %v2657_v20 = vcombine.low %v2633_v31, %v2649_v36  ;;  %v2658_v45 = vcombine.high %v2633_v31, %v2649_v36  ;;  %v1878_v50 = vcombine.high %v1853_v46, %v1869_v11  ;;  %v1893_v30 = vcombine.low %v1860_v24, %v1876_v56 }
 0x244   : > { %v17003_v62 = vrot.slane %v21334_v5, %v15638_v6  ;;  %21337 = vst [vmem:[#allocation26_spill] sm:$0xff] %v17009_v41  ;;  %21339 = vst [vmem:[#allocation25_spill] sm:$0xff] %v17015_v0  ;;  %v17021_v48 = vrot.slane %v21340_v21, %v15638_v6  ;;  %v1877_v5 = vcombine.low %v1853_v46, %v1869_v11 }
 0x245   : > { %v1894_v60 = vcombine.high %v1860_v24, %v1876_v56  ;;  %v2709_v19 = vcombine.low %v17009_v41, %v17015_v0  ;;  %13943 = vmatprep.mubr.msk.f32.mxu1 %vm8081_vm1, %v2657_v20  ;;  %13999 = vmatprep.mubr.msk.f32.mxu0 %vm8081_vm1, %v2658_v45  ;;  %v17035_v11 = vrot.slane %v1878_v50, %v15659_v22  ;;  %v21350_v41 = vld [vmem:[#allocation59_spill] sm:$0xff]  ;;  %v21351_v0 = vld [vmem:[#allocation58_spill] sm:$0xff] }
 0x246   : > { %21335 = vst [vmem:[#allocation23_spill] sm:$0xff] %v17003_v62  ;;  %21341 = vst [vmem:[#allocation10_spill] sm:$0xff] %v17021_v48  ;;  %v2693_v23 = vcombine.low %v16993_v26, %v17003_v62  ;;  %v17032_v58 = vrot.slane %v1877_v5, %v15659_v22  ;;  %v21342_v56 = vcombine.high %v16711_v4, %v16714_v63  ;;  %v1110_v5 = vpop.permute.xlu0 %1109  ;;  %5883 = vrot.lane.b32.xlu1 %v16971_v12, %s15140_s14 }
 0x247   : > { %v17044_v36 = vrot.slane %v1893_v30, %v15659_v22  ;;  %v17047_v46 = vrot.slane %v1894_v60, %v15659_v22  ;;  %v2717_v21 = vrot.slane %v2709_v19, %v15659_v22  ;;  %v21344_v4 = vcombine.low %v16727_v13, %v16730_v27  ;;  %v17067_v30 = vpop.permute.xlu1 %1111  ;;  %v21353_v19 = vld [vmem:[#allocation52_spill] sm:$0xff] }
 0x248   : > { %v17041_v31 = vrot.slane %v21342_v56, %v15638_v6  ;;  %v2701_v24 = vrot.slane %v2693_v23, %v15659_v22  ;;  %v21346_v60 = vcombine.high %v16727_v13, %v16730_v27  ;;  %v21348_v27 = vld [vmem:[#allocation57_spill] sm:$0xff]  ;;  %v4978_v12 = vcombine.high %v21351_v0, %v21350_v41 }
 0x249   : > { %v17059_v63 = vrot.slane %v21344_v4, %v15638_v6  ;;  %v21352_v23 = vld [vmem:[#allocation53_spill] sm:$0xff] }
 0x24a   : > { %21343 = vst [vmem:[#allocation14_spill] sm:$0xff] %v17041_v31  ;;  %v17065_v45 = vrot.slane %v21346_v60, %v15638_v6  ;;  %v2725_v56 = vcombine.low %v2701_v24, %v2717_v21  ;;  %v2726_v4 = vcombine.high %v2701_v24, %v2717_v21  ;;  %v2761_v20 = vcombine.low %v17021_v48, %v17041_v31  ;;  %v21349_v60 = vld [vmem:[#allocation56_spill] sm:$0xff]  ;;  %v21354_v24 = vld [vmem:[#allocation55_spill] sm:$0xff]  ;;  %v21355_v21 = vld [vmem:[#allocation54_spill] sm:$0xff]  ;;  %v1206_v33 = vpop.permute.xlu0 %1205 }
 0x24b   : > { %21345 = vst [vmem:[#allocation33_spill] sm:$0xff] %v17059_v63  ;;  %v4962_v50 = vcombine.high %v21349_v60, %v21348_v27  ;;  %v5030_v26 = vcombine.high %v21353_v19, %v21352_v23  ;;  %v5046_v62 = vcombine.high %v21355_v21, %v21354_v24  ;;  %v21356_v48 = vld [vmem:[#allocation16_spill] sm:$0xff]  ;;  %v4992_v41 = vrot.slane %v4978_v12, %v15659_v22 }
 0x24c   : > { %21347 = vst [vmem:[#allocation31_spill] sm:$0xff] %v17065_v45  ;;  %v2777_v13 = vcombine.low %v17059_v63, %v17065_v45  ;;  %13944 = vmatmul.mubr.msk.f32.gmra.mrb[20].mxu1 %vm8081_vm1, %v2725_v56  ;;  %14000 = vmatmul.mubr.msk.f32.gmra.mrb[36].mxu0 %vm8081_vm1, %v2726_v4  ;;  %v1913_v31 = vcombine.low %v21356_v48, %v1158_v53 }
 0x24d   : > { %v2769_v63 = vrot.slane %v2761_v20, %v15659_v22  ;;  %v4976_v27 = vrot.slane %v4962_v50, %v15659_v22  ;;  %v5044_v0 = vrot.slane %v5030_v26, %v15659_v22  ;;  %v5060_v56 = vrot.slane %v5046_v62, %v15659_v22  ;;  %v17098_v20 = vpop.permute.xlu1 %1207 }
 0x24e   : > { %v2785_v45 = vrot.slane %v2777_v13, %v15659_v22  ;;  %v1914_v4 = vcombine.high %v21356_v48, %v1158_v53  ;;  %v1921_v23 = vrot.slane %v1913_v31, %v15638_v6  ;;  %v17103_v12 = vadd.f32 %v16461_v10, %v16273_v16 }
 0x24f   : > { %v4995_v24 = vcombine.low %v4976_v27, %v4992_v41  ;;  %v4996_v21 = vcombine.high %v4976_v27, %v4992_v41  ;;  %v5063_v13 = vcombine.low %v5044_v0, %v5060_v56  ;;  %v5064_v9 = vcombine.high %v5044_v0, %v5060_v56  ;;  %v21363_v56 = vld [vmem:[#allocation69_spill] sm:$0xff] }
 0x250   : > { %v2793_v19 = vcombine.low %v2769_v63, %v2785_v45  ;;  %v2794_v60 = vcombine.high %v2769_v63, %v2785_v45  ;;  %v1928_v50 = vrot.slane %v1914_v4, %v15638_v6  ;;  %21357 = vst [vmem:[#allocation46_spill] sm:$0xff] %v17103_v12  ;;  %v21358_v53 = vcombine.low %v16818_v25, %v16821_v59 }
 0x251   : > { %v21359_v62 = vcombine.high %v16818_v25, %v16821_v59  ;;  %v21360_v16 = vcombine.low %v16836_v44, %v16839_v35  ;;  %v14517_v63 = vpack.c.bf16 %v5063_v13, %v4995_v24  ;;  %v14565_v45 = vpack.c.bf16 %v5064_v9, %v4996_v21  ;;  %5785 = vrot.lane.b32.xlu0 %v17103_v12, %s15139_s16  ;;  %v21370_v13 = vld [vmem:[#allocation67_spill] sm:$0xff] }
 0x252   : > { %13946 = vmatprep.mubr.msk.f32.mxu1 %vm8081_vm1, %v2793_v19  ;;  %14002 = vmatprep.mubr.msk.f32.mxu0 %vm8081_vm1, %v2794_v60  ;;  %v17111_v26 = vrot.slane %v21358_v53, %v15638_v6  ;;  %v21362_v27 = vcombine.high %v16836_v44, %v16839_v35  ;;  %v1929_v0 = vcombine.low %v1110_v5, %v1206_v33  ;;  %v21365_v19 = vld [vmem:[#allocation71_spill] sm:$0xff] }
 0x253   : > { %v17117_v48 = vrot.slane %v21359_v62, %v15638_v6  ;;  %v17123_v31 = vrot.slane %v21360_v16, %v15638_v6  ;;  %v1930_v59 = vcombine.high %v1110_v5, %v1206_v33  ;;  %v17137_v4 = vadd.f32 %v16461_v10, %v21363_v56  ;;  %14519 = vmatprep.subr.msk.bf16.mxu1 %vm15863_vm2, %v14517_v63  ;;  %v21367_v33 = vld [vmem:[#allocation66_spill] sm:$0xff]  ;;  %v21368_v5 = vld [vmem:[#allocation65_spill] sm:$0xff]  ;;  %v17160_v62 = vpop.permute.xlu1 %1161 }
 0x254   : > { %v17129_v41 = vrot.slane %v21362_v27, %v15638_v6  ;;  %v17141_v9 = vadd.f32 %v16461_v10, %v21365_v19  ;;  %14567 = vmatprep.subr.msk.bf16.mxu0 %vm15863_vm2, %v14565_v45  ;;  %v1937_v35 = vrot.slane %v1929_v0, %v15638_v6  ;;  %v5098_v60 = vcombine.high %v21368_v5, %v21367_v33  ;;  %v21369_v10 = vld [vmem:[#allocation68_spill] sm:$0xff]  ;;  %v21371_v19 = vld [vmem:[#allocation62_spill] sm:$0xff] }
 0x255   : > { %21361 = vst [vmem:[#allocation43_spill] sm:$0xff] %v17123_v31  ;;  %v2829_v25 = vcombine.low %v17111_v26, %v17117_v48  ;;  %21364 = vst [vmem:[#allocation38_spill] sm:$0xff] %v17137_v4  ;;  %v1944_v21 = vrot.slane %v1930_v59, %v15638_v6  ;;  %14522 = vmatpush3.bf16.xpose.msk.msra.mxu1 %vm15863_vm2, %v14517_v63  ;;  %14570 = vmatpush3.bf16.xpose.msk.msra.mxu0 %vm15863_vm2, %v14565_v45  ;;  %v21372_v45 = vld [vmem:[#allocation61_spill] sm:$0xff] }
 0x256   : > { %21366 = vst [vmem:[#allocation37_spill] sm:$0xff] %v17141_v9  ;;  %v2845_v44 = vcombine.low %v17123_v31, %v17129_v41  ;;  %v5114_v53 = vcombine.high %v21370_v13, %v21369_v10  ;;  %v1945_v27 = vcombine.low %v1921_v23, %v1937_v35  ;;  %v1946_v0 = vcombine.high %v1921_v23, %v1937_v35  ;;  %v1160_v13 = vpop.permute.xlu0 %1159 }
 0x257   : > { %v2837_v24 = vrot.slane %v2829_v25, %v15659_v22  ;;  %v5112_v56 = vrot.slane %v5098_v60, %v15659_v22  ;;  %5789 = vrot.lane.b32.xlu1 %v17141_v9, %s15139_s16  ;;  %v1961_v25 = vcombine.low %v1928_v50, %v1944_v21  ;;  %v1962_v59 = vcombine.high %v1928_v50, %v1944_v21 }
 0x258   : > { %v2853_v16 = vrot.slane %v2845_v44, %v15659_v22  ;;  %v5128_v63 = vrot.slane %v5114_v53, %v15659_v22  ;;  %v5166_v33 = vcombine.high %v21372_v45, %v21371_v19  ;;  %5833 = vrot.lane.b32.xlu0 %v17103_v12, %s15138_s15  ;;  %v17172_v44 = vrot.slane %v1945_v27, %v15659_v22  ;;  %v21374_v27 = vld [vmem:[#allocation63_spill] sm:$0xff] }
 0x259   : > { %v17175_v23 = vrot.slane %v1946_v0, %v15659_v22  ;;  %v17178_v35 = vrot.slane %v1961_v25, %v15659_v22  ;;  %v17181_v50 = vrot.slane %v1962_v59, %v15659_v22  ;;  %v1997_v45 = vcombine.low %v17067_v30, %v17098_v20 }
 0x25a   : > { %v2861_v5 = vcombine.low %v2837_v24, %v2853_v16  ;;  %v2862_v10 = vcombine.high %v2837_v24, %v2853_v16  ;;  %v5131_v60 = vcombine.low %v5112_v56, %v5128_v63  ;;  %v5180_v21 = vrot.slane %v5166_v33, %v15659_v22  ;;  %v21373_v16 = vld [vmem:[#allocation64_spill] sm:$0xff]  ;;  %v17200_v33 = vpop.permute.xlu1 %1115  ;;  %v17241_v31 = vpop.permute.xlu0 %1113 }
 0x25b   : > { %v5182_v0 = vcombine.high %v21374_v27, %v21373_v16  ;;  %v5132_v19 = vcombine.high %v5112_v56, %v5128_v63  ;;  %5837 = vrot.lane.b32.xlu1 %v17141_v9, %s15138_s15  ;;  %v21375_v16 = vld [vmem:[#allocation15_spill] sm:$0xff]  ;;  %v2005_v56 = vrot.slane %v1997_v45, %v15638_v6  ;;  %v21376_v63 = vcombine.low %v16914_v43, %v16917_v34 }
 0x25c   : > { %13947 = vmatmul.mubr.msk.f32.gmra.mrb[22].mxu1 %vm8081_vm1, %v2861_v5  ;;  %14003 = vmatmul.mubr.msk.f32.gmra.mrb[38].mxu0 %vm8081_vm1, %v2862_v10  ;;  %v1998_v10 = vcombine.high %v17067_v30, %v17098_v20  ;;  %v1981_v27 = vcombine.low %v21375_v16, %v1160_v13  ;;  %v1982_v25 = vcombine.high %v21375_v16, %v1160_v13 }
 0x25d   : > { %v5196_v5 = vrot.slane %v5182_v0, %v15659_v22  ;;  %5881 = vrot.lane.b32.xlu0 %v17103_v12, %s15140_s14  ;;  %v17214_v59 = vrot.slane %v21376_v63, %v15638_v6  ;;  %v21378_v0 = vcombine.high %v16914_v43, %v16917_v34  ;;  %v21379_v20 = vcombine.low %v16920_v57, %v16923_v7 }
 0x25e   : > { %v2012_v53 = vrot.slane %v1998_v10, %v15638_v6  ;;  %v1989_v24 = vrot.slane %v1981_v27, %v15638_v6  ;;  %v1996_v63 = vrot.slane %v1982_v25, %v15638_v6  ;;  %v21380_v43 = vcombine.high %v16920_v57, %v16923_v7 }
 0x25f   : > { %21377 = vst [vmem:[#allocation40_spill] sm:$0xff] %v17214_v59  ;;  %v17220_v30 = vrot.slane %v21378_v0, %v15638_v6  ;;  %v17226_v13 = vrot.slane %v21379_v20, %v15638_v6  ;;  %v5199_v16 = vcombine.low %v5180_v21, %v5196_v5  ;;  %v5200_v45 = vcombine.high %v5180_v21, %v5196_v5  ;;  %v21381_v20 = vld [vmem:[#allocation35_spill] sm:$0xff] }
 0x260   : > { %v17235_v34 = vrot.slane %v21380_v43, %v15638_v6  ;;  %v2049_v12 = vcombine.low %v21381_v20, %v17160_v62  ;;  %5839 = vrot.lane.b32.xlu1 %v17137_v4, %s15138_s15  ;;  %v2013_v25 = vcombine.low %v1989_v24, %v2005_v56  ;;  %v2014_v10 = vcombine.high %v1989_v24, %v2005_v56  ;;  %s13133_s15 = sshll.u32 %s21184_s13, 9  ;;  %s21729_s13 = smov 8  }
 0x261   : > { %v2897_v0 = vcombine.low %v17214_v59, %v17220_v30  ;;  %v14523_v21 = vpack.c.bf16 %v5199_v16, %v5131_v60  ;;  %v14571_v5 = vpack.c.bf16 %v5200_v45, %v5132_v19  ;;  %5791 = vrot.lane.b32.xlu0 %v17137_v4, %s15139_s16  ;;  %v2029_v57 = vcombine.low %v1996_v63, %v2012_v53  ;;  %v17250_v59 = vpop.permute.xlu1 %1211  ;;  %s19613_s16 = scalar_lea.vmem [#allocation2], %s13133_s15  ;;  %s20838_s15 = scalar_lea.sflag [#allocation3], %s21736_s21 }
 0x262   : > { %v2030_v7 = vcombine.high %v1996_v63, %v2012_v53  ;;  %v2913_v43 = vcombine.low %v17226_v13, %v17235_v34  ;;  %v17257_v60 = vrot.slane %v2013_v25, %v15659_v22  ;;  %v17260_v24 = vrot.slane %v2014_v10, %v15659_v22  ;;  %s13000_s28 = sshll.u32 %s19613_s16, 4  ;;  %s20834_s28 = int_to_ptr.vmem [resolvable:$true] %s13000_s28 }
 0x263   : > { %v2905_v27 = vrot.slane %v2897_v0, %v15659_v22  ;;  %14525 = vmatprep.subr.msk.bf16.mxu1 %vm15863_vm2, %v14523_v21  ;;  %14573 = vmatprep.subr.msk.bf16.mxu0 %vm15863_vm2, %v14571_v5  ;;  %v2050_v53 = vcombine.high %v21381_v20, %v17160_v62  ;;  %v17265_v19 = vrot.slane %v2029_v57, %v15659_v22  ;;  %s15058_s25 = scalar_lea.vmem %s20834_s28, 8192 }
 0x264   : > { %v17268_v56 = vrot.slane %v2030_v7, %v15659_v22  ;;  %v2921_v16 = vrot.slane %v2913_v43, %v15659_v22  ;;  %v2057_v45 = vrot.slane %v2049_v12, %v15638_v6  ;;  %14528 = vmatpush3.bf16.xpose.msk.msra.mxu1 %vm15863_vm2, %v14523_v21  ;;  %14576 = vmatpush3.bf16.xpose.msk.msra.mxu0 %vm15863_vm2, %v14571_v5  ;;  %v1210_v7 = vpop.permute.xlu0 %1209  ;;  %p15059_p12 = scmp.ne.s32.totalorder %s20834_s28, %s15058_s25 }
 0x265   : > { %v2064_v62 = vrot.slane %v2050_v53, %v15638_v6  ;;  %v21382_v20 = vcombine.low %v17032_v58, %v17035_v11  ;;  %5887 = vrot.lane.b32.xlu1 %v17137_v4, %s15140_s14  ;;  %v21383_v5 = vcombine.high %v17032_v58, %v17035_v11  ;;  %v21384_v53 = vcombine.low %v17044_v36, %v17047_v46 }
 0x266   : > { %v2929_v10 = vcombine.low %v2905_v27, %v2921_v16  ;;  %v2930_v57 = vcombine.high %v2905_v27, %v2921_v16  ;;  %v21385_v27 = vcombine.high %v17044_v36, %v17047_v46  ;;  %v5234_v21 = vcombine.high %v16327_v38, %v16330_v52  ;;  %5885 = vrot.lane.b32.xlu0 %v17141_v9, %s15140_s14  ;;  %v21386_v36 = vld [vmem:[#allocation70_spill] sm:$0xff]  ;;  %s15145_s14 = smov 24   ;;  %p15060_p13 = pnand %p15059_p12, %p15248_p4 }
 0x267   : > { %v17285_v25 = vrot.slane %v21382_v20, %v15638_v6  ;;  %v17297_v43 = vrot.slane %v21383_v5, %v15638_v6  ;;  %v17303_v20 = vrot.slane %v21384_v53, %v15638_v6  ;;  %v5250_v58 = vcombine.high %v16348_v51, %v16351_v1  ;;  %v17323_v5 = vpop.permute.xlu1 %1119 }
 0x268   : > { %v17309_v16 = vrot.slane %v21385_v27, %v15638_v6  ;;  %13949 = vmatprep.mubr.msk.f32.mxu1 %vm8081_vm1, %v2929_v10  ;;  %14005 = vmatprep.mubr.msk.f32.mxu0 %vm8081_vm1, %v2930_v57  ;;  %v5302_v11 = vcombine.high %v16299_v55, %v16302_v40  ;;  %v5318_v46 = vcombine.high %v21386_v36, %v16315_v32  ;;  %p15061_p0 = pneg %p15060_p13 }
 0x269   : > { %v2965_v38 = vcombine.low %v17285_v25, %v17297_v43  ;;  %v5248_v10 = vrot.slane %v5234_v21, %v15659_v22  ;;  %v2065_v57 = vcombine.low %v17241_v31, %v1210_v7  ;;  %v5264_v51 = vrot.slane %v5250_v58, %v15659_v22 }
 0x26a   : > { %v2981_v52 = vcombine.low %v17303_v20, %v17309_v16  ;;  %v5316_v1 = vrot.slane %v5302_v11, %v15659_v22  ;;  %v5332_v55 = vrot.slane %v5318_v46, %v15659_v22  ;;  %v2066_v40 = vcombine.high %v17241_v31, %v1210_v7 }
 0x26b   : > { %v2973_v32 = vrot.slane %v2965_v38, %v15659_v22  ;;  %v2073_v27 = vrot.slane %v2065_v57, %v15638_v6  ;;  %v2133_v36 = vcombine.low %v17200_v33, %v17250_v59  ;;  %v5267_v21 = vcombine.low %v5248_v10, %v5264_v51  ;;  %v17343_v57 = vpop.permute.xlu1 %1165 }
 0x26c   : > { %v2989_v53 = vrot.slane %v2981_v52, %v15659_v22  ;;  %v5335_v12 = vcombine.low %v5316_v1, %v5332_v55  ;;  %v5268_v0 = vcombine.high %v5248_v10, %v5264_v51  ;;  %v5336_v63 = vcombine.high %v5316_v1, %v5332_v55  ;;  %v1164_v52 = vpop.permute.xlu0 %1163 }
 0x26d   : > { %v2080_v11 = vrot.slane %v2066_v40, %v15638_v6  ;;  %v2081_v46 = vcombine.low %v2057_v45, %v2073_v27  ;;  %v2082_v7 = vcombine.high %v2057_v45, %v2073_v27  ;;  %v2134_v38 = vcombine.high %v17200_v33, %v17250_v59 }
 0x26e   : > { %v2997_v58 = vcombine.low %v2973_v32, %v2989_v53  ;;  %v2998_v4 = vcombine.high %v2973_v32, %v2989_v53  ;;  %v14529_v9 = vpack.c.bf16 %v5335_v12, %v5267_v21  ;;  %v14577_v31 = vpack.c.bf16 %v5336_v63, %v5268_v0  ;;  %v21387_v0 = vld [vmem:[#allocation17_spill] sm:$0xff] }
 0x26f   : > { %v17348_v10 = vrot.slane %v2081_v46, %v15659_v22  ;;  %v2097_v51 = vcombine.low %v2064_v62, %v2080_v11  ;;  %v2098_v1 = vcombine.high %v2064_v62, %v2080_v11  ;;  %v17355_v59 = vrot.slane %v2082_v7, %v15659_v22 }
 0x270   : > { %13950 = vmatmul.mubr.msk.f32.gmra.mrb[24].mxu1 %vm8081_vm1, %v2997_v58  ;;  %14006 = vmatmul.mubr.msk.f32.gmra.mrb[40].mxu0 %vm8081_vm1, %v2998_v4  ;;  %v2141_v33 = vrot.slane %v2133_v36, %v15638_v6  ;;  %v2148_v45 = vrot.slane %v2134_v38, %v15638_v6  ;;  %v2117_v62 = vcombine.low %v21387_v0, %v1164_v52  ;;  %v21395_v38 = vld [vmem:[#allocation76_spill] sm:$0xff] }
 0x271   : > { %14531 = vmatprep.subr.msk.bf16.mxu1 %vm15863_vm2, %v14529_v9  ;;  %14579 = vmatprep.subr.msk.bf16.mxu0 %vm15863_vm2, %v14577_v31  ;;  %v17360_v4 = vrot.slane %v2097_v51, %v15659_v22  ;;  %v17363_v63 = vrot.slane %v2098_v1, %v15659_v22  ;;  %v2118_v12 = vcombine.high %v21387_v0, %v1164_v52  ;;  %v17409_v51 = vpop.permute.xlu1 %1215 }
 0x272   : > { %14534 = vmatpush3.bf16.xpose.msk.msra.mxu1 %vm15863_vm2, %v14529_v9  ;;  %14582 = vmatpush3.bf16.xpose.msk.msra.mxu0 %vm15863_vm2, %v14577_v31  ;;  %v21388_v32 = vcombine.low %v17172_v44, %v17175_v23  ;;  %v21390_v27 = vcombine.high %v17172_v44, %v17175_v23  ;;  %v2125_v58 = vrot.slane %v2117_v62, %v15638_v6 }
 0x273   : > { %v2132_v11 = vrot.slane %v2118_v12, %v15638_v6  ;;  %v21391_v46 = vcombine.low %v17178_v35, %v17181_v50  ;;  %v21393_v44 = vcombine.high %v17178_v35, %v17181_v50  ;;  %v5370_v52 = vcombine.high %v21395_v38, %v16420_v2  ;;  %v21399_v38 = vld [vmem:[#allocation72_spill] sm:$0xff] }
 0x274   : > { %v17379_v53 = vrot.slane %v21388_v32, %v15638_v6  ;;  %v17385_v9 = vrot.slane %v21390_v27, %v15638_v6  ;;  %v2149_v1 = vcombine.low %v2125_v58, %v2141_v33  ;;  %v2150_v0 = vcombine.high %v2125_v58, %v2141_v33  ;;  %v1118_v32 = vpop.permute.xlu0 %1117 }
 0x275   : > { %v17397_v31 = vrot.slane %v21391_v46, %v15638_v6  ;;  %v17403_v23 = vrot.slane %v21393_v44, %v15638_v6  ;;  %v2165_v62 = vcombine.low %v2132_v11, %v2148_v45  ;;  %v2166_v12 = vcombine.high %v2132_v11, %v2148_v45  ;;  %v21396_v46 = vld [vmem:[#allocation78_spill] sm:$0xff]  ;;  %v21397_v44 = vld [vmem:[#allocation77_spill] sm:$0xff] }
 0x276   : > { %21389 = vst [vmem:[#allocation39_spill] sm:$0xff] %v17379_v53  ;;  %v3033_v7 = vcombine.low %v17379_v53, %v17385_v9  ;;  %v5384_v50 = vrot.slane %v5370_v52, %v15659_v22  ;;  %v5386_v21 = vcombine.high %v21397_v44, %v21396_v46  ;;  %v17418_v36 = vrot.slane %v2149_v1, %v15659_v22  ;;  %v21400_v46 = vld [vmem:[#allocation75_spill] sm:$0xff]  ;;  %v21401_v44 = vld [vmem:[#allocation74_spill] sm:$0xff] }
 0x277   : > { %21392 = vst [vmem:[#allocation47_spill] sm:$0xff] %v17397_v31  ;;  %21394 = vst [vmem:[#allocation48_spill] sm:$0xff] %v17403_v23  ;;  %v3049_v35 = vcombine.low %v17397_v31, %v17403_v23  ;;  %v17421_v2 = vrot.slane %v2150_v0, %v15659_v22  ;;  %v17424_v33 = vrot.slane %v2165_v62, %v15659_v22 }
 0x278   : > { %v3041_v27 = vrot.slane %v3033_v7, %v15659_v22  ;;  %v17427_v45 = vrot.slane %v2166_v12, %v15659_v22  ;;  %v5400_v11 = vrot.slane %v5386_v21, %v15659_v22  ;;  %v21398_v7 = vld [vmem:[#allocation73_spill] sm:$0xff]  ;;  %v5454_v1 = vcombine.high %v21401_v44, %v21400_v46 }
 0x279   : > { %v3057_v58 = vrot.slane %v3049_v35, %v15659_v22  ;;  %v5438_v52 = vcombine.high %v21399_v38, %v21398_v7  ;;  %v17444_v38 = vpop.permute.xlu1 %5811  ;;  %v21402_v62 = vcombine.low %v17257_v60, %v17260_v24  ;;  %v21404_v35 = vcombine.high %v17257_v60, %v17260_v24  ;;  %v21407_v60 = vld [vmem:[#allocation51_spill] sm:$0xff] }
 0x27a   : > { %v5403_v55 = vcombine.low %v5384_v50, %v5400_v11  ;;  %v5468_v46 = vrot.slane %v5454_v1, %v15659_v22  ;;  %v5404_v44 = vcombine.high %v5384_v50, %v5400_v11  ;;  %v21405_v50 = vcombine.low %v17265_v19, %v17268_v56 }
 0x27b   : > { %v3065_v40 = vcombine.low %v3041_v27, %v3057_v58  ;;  %v3066_v21 = vcombine.high %v3041_v27, %v3057_v58  ;;  %v5452_v7 = vrot.slane %v5438_v52, %v15659_v22  ;;  %v17451_v0 = vrot.slane %v21402_v62, %v15638_v6  ;;  %v1214_v27 = vpop.permute.xlu0 %1213 }
 0x27c   : > { %v17457_v12 = vrot.slane %v21404_v35, %v15638_v6  ;;  %v17465_v58 = vrot.slane %v21405_v50, %v15638_v6  ;;  %v21406_v11 = vcombine.high %v17265_v19, %v17268_v56  ;;  %v2185_v24 = vcombine.low %v21407_v60, %v17343_v57 }
 0x27d   : > { %21403 = vst [vmem:[#allocation49_spill] sm:$0xff] %v17451_v0  ;;  %13952 = vmatprep.mubr.msk.f32.mxu1 %vm8081_vm1, %v3065_v40  ;;  %14008 = vmatprep.mubr.msk.f32.mxu0 %vm8081_vm1, %v3066_v21  ;;  %v5471_v1 = vcombine.low %v5452_v7, %v5468_v46  ;;  %v5472_v62 = vcombine.high %v5452_v7, %v5468_v46 }
 0x27e   : > { %v17471_v52 = vrot.slane %v21406_v11, %v15638_v6  ;;  %v3101_v40 = vcombine.low %v17451_v0, %v17457_v12  ;;  %v2186_v35 = vcombine.high %v21407_v60, %v17343_v57  ;;  %v2193_v50 = vrot.slane %v2185_v24, %v15638_v6  ;;  %v17489_v60 = vpop.permute.xlu1 %5859  ;;  %v21411_v24 = vld [vmem:[#allocation82_spill] sm:$0xff] }
 0x27f   : > { %v2201_v31 = vcombine.low %v1118_v32, %v1214_v27  ;;  %v2202_v19 = vcombine.high %v1118_v32, %v1214_v27  ;;  %v14535_v56 = vpack.c.bf16 %v5471_v1, %v5403_v55  ;;  %v14583_v11 = vpack.c.bf16 %v5472_v62, %v5404_v44  ;;  %v21408_v32 = vld [vmem:[#allocation81_spill] sm:$0xff]  ;;  %v21409_v44 = vld [vmem:[#allocation80_spill] sm:$0xff] }
 0x280   : > { %v3117_v21 = vcombine.low %v17465_v58, %v17471_v52  ;;  %v3109_v23 = vrot.slane %v3101_v40, %v15659_v22  ;;  %v2200_v53 = vrot.slane %v2186_v35, %v15638_v6  ;;  %v5506_v57 = vcombine.high %v16506_v14, %v16510_v3 }
 0x281   : > { %v2209_v46 = vrot.slane %v2201_v31, %v15638_v6  ;;  %v2216_v0 = vrot.slane %v2202_v19, %v15638_v6  ;;  %14537 = vmatprep.subr.msk.bf16.mxu1 %vm15863_vm2, %v14535_v56  ;;  %14585 = vmatprep.subr.msk.bf16.mxu0 %vm15863_vm2, %v14583_v11  ;;  %v5522_v55 = vcombine.high %v16528_v8, %v16531_v17  ;;  %v21410_v31 = vld [vmem:[#allocation83_spill] sm:$0xff] }
 0x282   : > { %v3125_v7 = vrot.slane %v3117_v21, %v15659_v22  ;;  %v5574_v27 = vcombine.high %v21409_v44, %v21408_v32  ;;  %v5590_v1 = vcombine.high %v21411_v24, %v21410_v31  ;;  %14540 = vmatpush3.bf16.xpose.msk.msra.mxu1 %vm15863_vm2, %v14535_v56  ;;  %14588 = vmatpush3.bf16.xpose.msk.msra.mxu0 %vm15863_vm2, %v14583_v11  ;;  %v17529_v44 = vpop.permute.xlu1 %5761 }
 0x283   : > { %v2217_v14 = vcombine.low %v2193_v50, %v2209_v46  ;;  %v2218_v3 = vcombine.high %v2193_v50, %v2209_v46  ;;  %v2233_v35 = vcombine.low %v2200_v53, %v2216_v0  ;;  %v2234_v21 = vcombine.high %v2200_v53, %v2216_v0 }
 0x284   : > { %v3133_v62 = vcombine.low %v3109_v23, %v3125_v7  ;;  %v3134_v40 = vcombine.high %v3109_v23, %v3125_v7  ;;  %v5520_v8 = vrot.slane %v5506_v57, %v15659_v22  ;;  %v5536_v17 = vrot.slane %v5522_v55, %v15659_v22  ;;  %v1168_v7 = vpop.permute.xlu0 %1167 }
 0x285   : > { %v17510_v23 = vrot.slane %v2217_v14, %v15659_v22  ;;  %v17513_v50 = vrot.slane %v2218_v3, %v15659_v22  ;;  %v5588_v19 = vrot.slane %v5574_v27, %v15659_v22  ;;  %v17517_v53 = vrot.slane %v2233_v35, %v15659_v22  ;;  %v21412_v14 = vld [vmem:[#allocation36_spill] sm:$0xff] }
 0x286   : > { %13953 = vmatmul.mubr.msk.f32.gmra.mrb[26].mxu1 %vm8081_vm1, %v3133_v62  ;;  %14009 = vmatmul.mubr.msk.f32.gmra.mrb[42].mxu0 %vm8081_vm1, %v3134_v40  ;;  %v17520_v0 = vrot.slane %v2234_v21, %v15659_v22  ;;  %v5539_v56 = vcombine.low %v5520_v8, %v5536_v17  ;;  %v5604_v11 = vrot.slane %v5590_v1, %v15659_v22 }
 0x287   : > { %v3273_v46 = vcombine.low %v17510_v23, %v17513_v50  ;;  %v5540_v55 = vcombine.high %v5520_v8, %v5536_v17  ;;  %v2269_v32 = vcombine.low %v17323_v5, %v17409_v51  ;;  %v2270_v62 = vcombine.high %v17323_v5, %v17409_v51 }
 0x288   : > { %v5607_v24 = vcombine.low %v5588_v19, %v5604_v11  ;;  %v5608_v1 = vcombine.high %v5588_v19, %v5604_v11  ;;  %v2253_v3 = vcombine.low %v21412_v14, %v1168_v7  ;;  %v2254_v35 = vcombine.high %v21412_v14, %v1168_v7 }
 0x289   : > { %v2277_v40 = vrot.slane %v2269_v32, %v15638_v6  ;;  %v21413_v17 = vcombine.low %v17348_v10, %v17355_v59  ;;  %v21414_v19 = vcombine.high %v17348_v10, %v17355_v59  ;;  %v2284_v5 = vrot.slane %v2270_v62, %v15638_v6 }
 0x28a   : > { %v14541_v21 = vpack.c.bf16 %v5607_v24, %v5539_v56  ;;  %v14589_v8 = vpack.c.bf16 %v5608_v1, %v5540_v55  ;;  %v2261_v51 = vrot.slane %v2253_v3, %v15638_v6  ;;  %v2268_v7 = vrot.slane %v2254_v35, %v15638_v6  ;;  %v21418_v24 = vld [vmem:[#allocation18_spill] sm:$0xff] }
 0x28b   : > { %v17544_v27 = vrot.slane %v21413_v17, %v15638_v6  ;;  %v17550_v11 = vrot.slane %v21414_v19, %v15638_v6  ;;  %v21415_v56 = vcombine.low %v17360_v4, %v17363_v63  ;;  %v21417_v10 = vcombine.high %v17360_v4, %v17363_v63  ;;  %v5810_v17 = vpop.permute.xlu1 %5809 }
 0x28c   : > { %14543 = vmatprep.subr.msk.bf16.mxu1 %vm15863_vm2, %v14541_v21  ;;  %14591 = vmatprep.subr.msk.bf16.mxu0 %vm15863_vm2, %v14589_v8  ;;  %v5973_v1 = vcombine.low %v21418_v24, %v17444_v38  ;;  %v2285_v62 = vcombine.low %v2261_v51, %v2277_v40  ;;  %v2286_v14 = vcombine.high %v2261_v51, %v2277_v40 }
 0x28d   : > { %v17559_v55 = vrot.slane %v21415_v56, %v15638_v6  ;;  %v17569_v59 = vrot.slane %v21417_v10, %v15638_v6  ;;  %v3169_v32 = vcombine.low %v17544_v27, %v17550_v11  ;;  %v2301_v3 = vcombine.low %v2268_v7, %v2284_v5  ;;  %14546 = vmatpush3.bf16.xpose.msk.msra.mxu1 %vm15863_vm2, %v14541_v21 }
 0x28e   : > { %v2302_v35 = vcombine.high %v2268_v7, %v2284_v5  ;;  %v5974_v63 = vcombine.high %v21418_v24, %v17444_v38  ;;  %v17583_v56 = vrot.slane %v5973_v1, %v15638_v6  ;;  %14594 = vmatpush3.bf16.xpose.msk.msra.mxu0 %vm15863_vm2, %v14589_v8  ;;  %v2293_v40 = vrot.slane %v2285_v62, %v15659_v22 }
 0x28f   : > { %21416 = vst [vmem:[#allocation50_spill] sm:$0xff] %v17559_v55  ;;  %v3177_v19 = vrot.slane %v3169_v32, %v15659_v22  ;;  %v3185_v4 = vcombine.low %v17559_v55, %v17569_v59  ;;  %v2300_v5 = vrot.slane %v2286_v14, %v15659_v22  ;;  %v2309_v21 = vrot.slane %v2301_v3, %v15659_v22 }
 0x290   : > { %v2316_v51 = vrot.slane %v2302_v35, %v15659_v22  ;;  %v17593_v10 = vrot.slane %v5974_v63, %v15638_v6  ;;  %v21419_v38 = vcombine.low %v17418_v36, %v17421_v2  ;;  %v21421_v8 = vcombine.high %v17418_v36, %v17421_v2  ;;  %v21427_v2 = vld [vmem:[#allocation90_spill] sm:$0xff] }
 0x291   : > { %v3193_v7 = vrot.slane %v3185_v4, %v15659_v22  ;;  %v3341_v1 = vcombine.low %v2293_v40, %v2300_v5  ;;  %v13221_v62 = vcombine.high %v2293_v40, %v2300_v5  ;;  %v21423_v63 = vcombine.low %v17424_v33, %v17427_v45  ;;  %v21428_v40 = vld [vmem:[#allocation88_spill] sm:$0xff] }
 0x292   : > { %v17599_v32 = vrot.slane %v21419_v38, %v15638_v6  ;;  %v17605_v24 = vrot.slane %v21421_v8, %v15638_v6  ;;  %v3357_v14 = vcombine.low %v2309_v21, %v2316_v51  ;;  %v13222_v3 = vcombine.high %v2309_v21, %v2316_v51  ;;  %v21429_v21 = vld [vmem:[#allocation92_spill] sm:$0xff]  ;;  %v21432_v8 = vld [vmem:[#allocation9_spill] sm:$0xff] }
 0x293   : > { %v3201_v35 = vcombine.low %v3177_v19, %v3193_v7  ;;  %v3202_v4 = vcombine.high %v3177_v19, %v3193_v7  ;;  %v17611_v31 = vrot.slane %v21423_v63, %v15638_v6  ;;  %v21425_v38 = vcombine.high %v17424_v33, %v17427_v45  ;;  %v21430_v19 = vld [vmem:[#allocation91_spill] sm:$0xff]  ;;  %v21431_v7 = vld [vmem:[#allocation85_spill] sm:$0xff]  ;;  %v17627_v63 = vpop.permute.xlu1 %5767 }
 0x294   : > { %21420 = vst [vmem:[#allocation60_spill] sm:$0xff] %v17599_v32  ;;  %21422 = vst [vmem:[#allocation13_spill] sm:$0xff] %v17605_v24  ;;  %v3237_v36 = vcombine.low %v17599_v32, %v17605_v24  ;;  %v5642_v5 = vcombine.high %v21428_v40, %v21427_v2  ;;  %v5658_v51 = vcombine.high %v21430_v19, %v21429_v21  ;;  %v21433_v45 = vld [vmem:[#allocation87_spill] sm:$0xff] }
 0x295   : > { %21424 = vst [vmem:[#allocation57_spill] sm:$0xff] %v17611_v31  ;;  %v17617_v57 = vrot.slane %v21425_v38, %v15638_v6  ;;  %v5710_v55 = vcombine.high %v21432_v8, %v21431_v7  ;;  %13955 = vmatprep.mubr.msk.f32.mxu1 %vm8081_vm1, %v3201_v35  ;;  %14011 = vmatprep.mubr.msk.f32.mxu0 %vm8081_vm1, %v3202_v4  ;;  %v21434_v38 = vld [vmem:[#allocation86_spill] sm:$0xff]  ;;  %v5764_v35 = vpop.permute.xlu0 %5763 }
 0x296   : > { %v5726_v32 = vcombine.high %v21434_v38, %v21433_v45  ;;  %v17636_v2 = vrot.slane %v3273_v46, %v15638_v6  ;;  %v3245_v40 = vrot.slane %v3237_v36, %v15659_v22  ;;  %v5656_v21 = vrot.slane %v5642_v5, %v15659_v22 }
 0x297   : > { %21426 = vst [vmem:[#allocation56_spill] sm:$0xff] %v17617_v57  ;;  %v3253_v33 = vcombine.low %v17611_v31, %v17617_v57  ;;  %v5672_v19 = vrot.slane %v5658_v51, %v15659_v22  ;;  %v5724_v7 = vrot.slane %v5710_v55, %v15659_v22  ;;  %v21435_v45 = vcombine.high %v17510_v23, %v17513_v50 }
 0x298   : > { %v5740_v8 = vrot.slane %v5726_v32, %v15659_v22  ;;  %v21436_v46 = vcombine.low %v17517_v53, %v17520_v0  ;;  %v21437_v55 = vcombine.high %v17517_v53, %v17520_v0  ;;  %v21438_v32 = vld [vmem:[#allocation19_spill] sm:$0xff]  ;;  %v5816_v53 = vpop.permute.xlu1 %5815 }
 0x299   : > { %v3261_v4 = vrot.slane %v3253_v33, %v15659_v22  ;;  %v17648_v38 = vrot.slane %v21435_v45, %v15638_v6  ;;  %v5675_v5 = vcombine.low %v5656_v21, %v5672_v19  ;;  %v5676_v51 = vcombine.high %v5656_v21, %v5672_v19 }
 0x29a   : > { %v17654_v36 = vrot.slane %v21436_v46, %v15638_v6  ;;  %v17660_v33 = vrot.slane %v21437_v55, %v15638_v6  ;;  %v5905_v31 = vcombine.low %v21438_v32, %v5810_v17  ;;  %v5743_v50 = vcombine.low %v5724_v7, %v5740_v8 }
 0x29b   : > { %v3269_v57 = vcombine.low %v3245_v40, %v3261_v4  ;;  %v3270_v23 = vcombine.high %v3245_v40, %v3261_v4  ;;  %v5744_v45 = vcombine.high %v5724_v7, %v5740_v8  ;;  %v3305_v24 = vcombine.low %v17636_v2, %v17648_v38 }
 0x29c   : > { %v3321_v46 = vcombine.low %v17654_v36, %v17660_v33  ;;  %v5906_v21 = vcombine.high %v21438_v32, %v5810_v17  ;;  %v17669_v19 = vrot.slane %v5905_v31, %v15638_v6  ;;  %v14547_v0 = vpack.c.bf16 %v5743_v50, %v5675_v5  ;;  %v17684_v17 = vpop.permute.xlu0 %5857  ;;  %v21444_v5 = vld [vmem:[#allocation41_spill] sm:$0xff] }
 0x29d   : > { %13956 = vmatmul.mubr.msk.f32.gmra.mrb[28].mxu1 %vm8081_vm1, %v3269_v57  ;;  %14012 = vmatmul.mubr.msk.f32.gmra.mrb[44].mxu0 %vm8081_vm1, %v3270_v23  ;;  %v14595_v40 = vpack.c.bf16 %v5744_v45, %v5676_v51  ;;  %v17674_v7 = vrot.slane %v3341_v1, %v15638_v6  ;;  %v3313_v4 = vrot.slane %v3305_v24, %v15659_v22  ;;  %v21443_v1 = vld [vmem:[#allocation42_spill] sm:$0xff]  ;;  %v21445_v50 = vld [vmem:[#allocation45_spill] sm:$0xff]  ;;  %v21446_v45 = vld [vmem:[#allocation44_spill] sm:$0xff] }
 0x29e   : > { %v3329_v8 = vrot.slane %v3321_v46, %v15659_v22  ;;  %v17679_v55 = vrot.slane %v5906_v21, %v15638_v6  ;;  %v17682_v31 = vrot.slane %v13221_v62, %v15638_v6  ;;  %14549 = vmatprep.subr.msk.bf16.mxu1 %vm15863_vm2, %v14547_v0  ;;  %v17691_v57 = vrot.slane %v3357_v14, %v15638_v6 }
 0x29f   : > { %21439 = vst [vmem:[#allocation59_spill] sm:$0xff] %v17674_v7  ;;  %14597 = vmatprep.subr.msk.bf16.mxu0 %vm15863_vm2, %v14595_v40  ;;  %v17694_v24 = vrot.slane %v13222_v3, %v15638_v6  ;;  %v2354_v51 = vcombine.high %v21444_v5, %v21443_v1  ;;  %14552 = vmatpush3.bf16.xpose.msk.msra.mxu1 %vm15863_vm2, %v14547_v0  ;;  %v17716_v1 = vpop.permute.xlu1 %5863 }
 0x2a0   : > { %21440 = vst [vmem:[#allocation58_spill] sm:$0xff] %v17682_v31  ;;  %21441 = vst [vmem:[#allocation53_spill] sm:$0xff] %v17691_v57  ;;  %14600 = vmatpush3.bf16.xpose.msk.msra.mxu0 %vm15863_vm2, %v14595_v40  ;;  %v3337_v62 = vcombine.low %v3313_v4, %v3329_v8  ;;  %v3338_v32 = vcombine.high %v3313_v4, %v3329_v8  ;;  %v3373_v23 = vcombine.low %v17674_v7, %v17682_v31  ;;  %v21447_v40 = vld [vmem:[#allocation34_spill] sm:$0xff]  ;;  %v21448_v4 = vld [vmem:[#allocation32_spill] sm:$0xff] }
 0x2a1   : > { %21442 = vst [vmem:[#allocation52_spill] sm:$0xff] %v17694_v24  ;;  %v3389_v14 = vcombine.low %v17691_v57, %v17694_v24  ;;  %v2368_v3 = vrot.slane %v2354_v51, %v15659_v22  ;;  %v2370_v46 = vcombine.high %v21446_v45, %v21445_v50  ;;  %v5989_v21 = vcombine.low %v5764_v35, %v17489_v60  ;;  %v21449_v45 = vld [vmem:[#allocation20_spill] sm:$0xff]  ;;  %v17728_v57 = vpop.permute.xlu0 %5765 }
 0x2a2   : > { %13958 = vmatprep.mubr.msk.f32.mxu1 %vm8081_vm1, %v3337_v62  ;;  %14014 = vmatprep.mubr.msk.f32.mxu0 %vm8081_vm1, %v3338_v32  ;;  %v3381_v18 = vrot.slane %v3373_v23, %v15659_v22  ;;  %v5990_v0 = vcombine.high %v5764_v35, %v17489_v60  ;;  %v2455_v8 = vcombine.low %v21448_v4, %v21447_v40 }
 0x2a3   : > { %v3397_v5 = vrot.slane %v3389_v14, %v15659_v22  ;;  %v2384_v51 = vrot.slane %v2370_v46, %v15659_v22  ;;  %v5997_v50 = vrot.slane %v5989_v21, %v15638_v6  ;;  %v2456_v62 = vcombine.high %v21448_v4, %v21447_v40 }
 0x2a4   : > { %v6004_v32 = vrot.slane %v5990_v0, %v15638_v6  ;;  %v6109_v23 = vcombine.low %v21449_v45, %v5816_v53  ;;  %v6110_v60 = vcombine.high %v21449_v45, %v5816_v53  ;;  %v2490_v35 = vcombine.high %v16809_v49, %v16815_v15 }
 0x2a5   : > { %v3405_v24 = vcombine.low %v3381_v18, %v3397_v5  ;;  %v3406_v14 = vcombine.high %v3381_v18, %v3397_v5  ;;  %v2387_v7 = vcombine.low %v2368_v3, %v2384_v51  ;;  %v2388_v46 = vcombine.high %v2368_v3, %v2384_v51  ;;  %v17752_v3 = vpop.permute.xlu1 %5771  ;;  %v17771_v45 = vpop.permute.xlu0 %5813 }
 0x2a6   : > { %v6005_v21 = vcombine.low %v17583_v56, %v5997_v50  ;;  %v6006_v31 = vcombine.high %v17583_v56, %v5997_v50  ;;  %v6021_v40 = vcombine.low %v17593_v10, %v6004_v32  ;;  %v6022_v0 = vcombine.high %v17593_v10, %v6004_v32 }
 0x2a7   : > { %13959 = vmatmul.mubr.msk.f32.gmra.mrb[30].mxu1 %vm8081_vm1, %v3405_v24  ;;  %14015 = vmatmul.mubr.msk.f32.gmra.mrb[46].mxu0 %vm8081_vm1, %v3406_v14  ;;  %v6117_v49 = vrot.slane %v6109_v23, %v15638_v6  ;;  %v17738_v15 = vrot.slane %v6110_v60, %v15638_v6  ;;  %v2504_v53 = vrot.slane %v2490_v35, %v15659_v22 }
 0x2a8   : > { %14049 = vmatprep.mubr.msk.f32.mxu1 %vm8081_vm1, %v2387_v7  ;;  %14105 = vmatprep.mubr.msk.f32.mxu0 %vm8081_vm1, %v2388_v46  ;;  %v17744_v56 = vrot.slane %v6005_v21, %v15659_v22  ;;  %v17747_v10 = vrot.slane %v6006_v31, %v15659_v22  ;;  %v17750_v24 = vrot.slane %v6021_v40, %v15659_v22 }
 0x2a9   : > { %v17755_v18 = vrot.slane %v6022_v0, %v15659_v22  ;;  %v2506_v4 = vcombine.high %v16827_v47, %v16833_v39  ;;  %v5921_v7 = vcombine.low %v17529_v44, %v17684_v17  ;;  %v5922_v5 = vcombine.high %v17529_v44, %v17684_v17  ;;  %v17792_v21 = vpop.permute.xlu1 %5819 }
 0x2aa   : > { %v2558_v50 = vcombine.high %v16881_v61, %v16893_v29  ;;  %v2574_v32 = vcombine.high %v16905_v54, %v16911_v37  ;;  %v6125_v60 = vcombine.low %v17627_v63, %v17716_v1 }
 0x2ab   : > { %14050 = vmatmul.mubr.msk.f32.vlgmr.msra.gmra.mrb[32].mxu1 %vm8081_vm1, %v2455_v8  ;;  %14106 = vmatmul.mubr.msk.f32.vlgmr.msra.gmra.mrb[48].mxu0 %vm8081_vm1, %v2456_v62  ;;  %v2520_v44 = vrot.slane %v2506_v4, %v15659_v22  ;;  %v5929_v17 = vrot.slane %v5921_v7, %v15638_v6  ;;  %v5936_v61 = vrot.slane %v5922_v5, %v15638_v6  ;;  %v17809_v4 = vpop.permute.xlu0 %5861 }
 0x2ac   : > { %v2572_v29 = vrot.slane %v2558_v50, %v15659_v22  ;;  %v2588_v54 = vrot.slane %v2574_v32, %v15659_v22  ;;  %v6126_v8 = vcombine.high %v17627_v63, %v17716_v1 }
 0x2ad   : > { %v2523_v37 = vcombine.low %v2504_v53, %v2520_v44  ;;  %v2524_v23 = vcombine.high %v2504_v53, %v2520_v44  ;;  %v5937_v62 = vcombine.low %v17669_v19, %v5929_v17  ;;  %v5938_v35 = vcombine.high %v17669_v19, %v5929_v17 }
 0x2ae   : > { %v5953_v14 = vcombine.low %v17679_v55, %v5936_v61  ;;  %v5954_v46 = vcombine.high %v17679_v55, %v5936_v61  ;;  %v2591_v40 = vcombine.low %v2572_v29, %v2588_v54  ;;  %v2592_v0 = vcombine.high %v2572_v29, %v2588_v54  ;;  %v21460_v61 = vld [vmem:[#allocation21_spill] sm:$0xff] }
 0x2af   : > { %14052 = vmatprep.mubr.msk.f32.mxu1 %vm8081_vm1, %v2523_v37  ;;  %14108 = vmatprep.mubr.msk.f32.mxu0 %vm8081_vm1, %v2524_v23  ;;  %v6133_v53 = vrot.slane %v6125_v60, %v15638_v6  ;;  %v17798_v63 = vrot.slane %v5937_v62, %v15659_v22  ;;  %v17801_v1 = vrot.slane %v5938_v35, %v15659_v22  ;;  %v21450_v60 = vld [vmem:[#allocation30_spill] sm:$0xff]  ;;  %v21452_v35 = vld [vmem:[#allocation23_spill] sm:$0xff] }
 0x2b0   : > { %v17804_v19 = vrot.slane %v5953_v14, %v15659_v22  ;;  %v17807_v55 = vrot.slane %v5954_v46, %v15659_v22  ;;  %14053 = vmatmul.mubr.msk.f32.gmra.mrb[34].mxu1 %vm8081_vm1, %v2591_v40  ;;  %14109 = vmatmul.mubr.msk.f32.gmra.mrb[50].mxu0 %vm8081_vm1, %v2592_v0  ;;  %v6140_v7 = vrot.slane %v6126_v8, %v15638_v6  ;;  %v21451_v8 = vld [vmem:[#allocation27_spill] sm:$0xff]  ;;  %v21453_v14 = vld [vmem:[#allocation24_spill] sm:$0xff]  ;;  %v21454_v40 = vld [vmem:[#allocation25_spill] sm:$0xff] }
 0x2b1   : > { %v6141_v5 = vcombine.low %v6117_v49, %v6133_v53  ;;  %v6142_v50 = vcombine.high %v6117_v49, %v6133_v53  ;;  %v6993_v32 = vcombine.low %v17798_v63, %v17801_v1  ;;  %v13255_v44 = vcombine.high %v17798_v63, %v17801_v1  ;;  %v21455_v0 = vld [vmem:[#allocation26_spill] sm:$0xff] }
 0x2b2   : > { %v7009_v17 = vcombine.low %v17804_v19, %v17807_v55  ;;  %v6157_v49 = vcombine.low %v17738_v15, %v6140_v7  ;;  %v6158_v37 = vcombine.high %v17738_v15, %v6140_v7  ;;  %v2626_v23 = vcombine.high %v16941_v28, %v16955_v42  ;;  %v21458_v42 = vld [vmem:[#allocation31_spill] sm:$0xff]  ;;  %v21459_v28 = vld [vmem:[#allocation33_spill] sm:$0xff] }
 0x2b3   : > { %v17823_v29 = vrot.slane %v6141_v5, %v15659_v22  ;;  %v17826_v54 = vrot.slane %v6142_v50, %v15659_v22  ;;  %v2642_v62 = vcombine.high %v21451_v8, %v21450_v60  ;;  %v2694_v46 = vcombine.high %v21453_v14, %v21452_v35  ;;  %v17838_v5 = vpop.permute.xlu1 %5867  ;;  %v17854_v35 = vpop.permute.xlu0 %5769  ;;  %v21456_v14 = vld [vmem:[#allocation14_spill] sm:$0xff] }
 0x2b4   : > { %v2710_v53 = vcombine.high %v21455_v0, %v21454_v40  ;;  %v17841_v50 = vrot.slane %v6157_v49, %v15659_v22  ;;  %v17844_v39 = vrot.slane %v6158_v37, %v15659_v22  ;;  %v2640_v15 = vrot.slane %v2626_v23, %v15659_v22  ;;  %v21457_v40 = vld [vmem:[#allocation10_spill] sm:$0xff] }
 0x2b5   : > { %v2656_v7 = vrot.slane %v2642_v62, %v15659_v22  ;;  %v2708_v60 = vrot.slane %v2694_v46, %v15659_v22  ;;  %v2762_v0 = vcombine.high %v21457_v40, %v21456_v14  ;;  %v2778_v23 = vcombine.high %v21459_v28, %v21458_v42  ;;  %v21461_v42 = vld [vmem:[#allocation43_spill] sm:$0xff] }
 0x2b6   : > { %v2724_v8 = vrot.slane %v2710_v53, %v15659_v22  ;;  %v6041_v49 = vcombine.low %v21460_v61, %v17771_v45  ;;  %v6042_v37 = vcombine.high %v21460_v61, %v17771_v45  ;;  %v2830_v28 = vcombine.high %v17111_v26, %v17117_v48 }
 0x2b7   : > { %v2659_v47 = vcombine.low %v2640_v15, %v2656_v7  ;;  %v2660_v62 = vcombine.high %v2640_v15, %v2656_v7  ;;  %v2776_v53 = vrot.slane %v2762_v0, %v15659_v22  ;;  %v2792_v31 = vrot.slane %v2778_v23, %v15659_v22  ;;  %v21462_v7 = vld [vmem:[#allocation22_spill] sm:$0xff]  ;;  %v17888_v40 = vpop.permute.xlu0 %5817 }
 0x2b8   : > { %v2727_v51 = vcombine.low %v2708_v60, %v2724_v8  ;;  %v2728_v46 = vcombine.high %v2708_v60, %v2724_v8  ;;  %v2846_v15 = vcombine.high %v21461_v42, %v17129_v41  ;;  %v6245_v60 = vcombine.low %v21462_v7, %v17792_v21  ;;  %v17878_v8 = vpop.permute.xlu1 %5775 }
 0x2b9   : > { %14055 = vmatprep.mubr.msk.f32.mxu1 %vm8081_vm1, %v2659_v47  ;;  %14111 = vmatprep.mubr.msk.f32.mxu0 %vm8081_vm1, %v2660_v62  ;;  %v2795_v45 = vcombine.low %v2776_v53, %v2792_v31  ;;  %v2796_v61 = vcombine.high %v2776_v53, %v2792_v31  ;;  %v6049_v47 = vrot.slane %v6041_v49, %v15638_v6  ;;  %v21463_v31 = vld [vmem:[#allocation40_spill] sm:$0xff] }
 0x2ba   : > { %14056 = vmatmul.mubr.msk.f32.gmra.mrb[36].mxu1 %vm8081_vm1, %v2727_v51  ;;  %14112 = vmatmul.mubr.msk.f32.gmra.mrb[52].mxu0 %vm8081_vm1, %v2728_v46  ;;  %v6056_v14 = vrot.slane %v6042_v37, %v15638_v6  ;;  %v2844_v26 = vrot.slane %v2830_v28, %v15659_v22  ;;  %v2860_v48 = vrot.slane %v2846_v15, %v15659_v22 }
 0x2bb   : > { %v6246_v41 = vcombine.high %v21462_v7, %v17792_v21  ;;  %14058 = vmatprep.mubr.msk.f32.mxu1 %vm8081_vm1, %v2795_v45  ;;  %14114 = vmatprep.mubr.msk.f32.mxu0 %vm8081_vm1, %v2796_v61  ;;  %v6253_v51 = vrot.slane %v6245_v60, %v15638_v6  ;;  %v2898_v49 = vcombine.high %v21463_v31, %v17220_v30 }
 0x2bc   : > { %v2914_v37 = vcombine.high %v17226_v13, %v17235_v34  ;;  %v2863_v0 = vcombine.low %v2844_v26, %v2860_v48  ;;  %v2864_v23 = vcombine.high %v2844_v26, %v2860_v48  ;;  %v6057_v21 = vcombine.low %v17728_v57, %v17809_v4  ;;  %v17913_v15 = vpop.permute.xlu1 %5823  ;;  %v17920_v26 = vpop.permute.xlu0 %5865 }
 0x2bd   : > { %v6260_v62 = vrot.slane %v6246_v41, %v15638_v6  ;;  %v2912_v46 = vrot.slane %v2898_v49, %v15659_v22  ;;  %v6058_v28 = vcombine.high %v17728_v57, %v17809_v4  ;;  %v2966_v30 = vcombine.high %v17285_v25, %v17297_v43 }
 0x2be   : > { %v2928_v53 = vrot.slane %v2914_v37, %v15659_v22  ;;  %14059 = vmatmul.mubr.msk.f32.gmra.mrb[38].mxu1 %vm8081_vm1, %v2863_v0  ;;  %14115 = vmatmul.mubr.msk.f32.gmra.mrb[54].mxu0 %vm8081_vm1, %v2864_v23  ;;  %v6065_v13 = vrot.slane %v6057_v21, %v15638_v6  ;;  %v2982_v34 = vcombine.high %v17303_v20, %v17309_v16 }
 0x2bf   : > { %v6261_v42 = vcombine.low %v17752_v3, %v17838_v5  ;;  %v6072_v57 = vrot.slane %v6058_v28, %v15638_v6  ;;  %v2980_v25 = vrot.slane %v2966_v30, %v15659_v22  ;;  %v6262_v61 = vcombine.high %v17752_v3, %v17838_v5  ;;  %v21492_v28 = vld [vmem:[#allocation11_spill] sm:$0xff] }
 0x2c0   : > { %v2931_v7 = vcombine.low %v2912_v46, %v2928_v53  ;;  %v2932_v60 = vcombine.high %v2912_v46, %v2928_v53  ;;  %v6073_v43 = vcombine.low %v6049_v47, %v6065_v13  ;;  %v6074_v4 = vcombine.high %v6049_v47, %v6065_v13  ;;  %v17944_v46 = vpop.permute.xlu1 %5871 }
 0x2c1   : > { %v2996_v45 = vrot.slane %v2982_v34, %v15659_v22  ;;  %v6089_v20 = vcombine.low %v6056_v14, %v6072_v57  ;;  %v6090_v16 = vcombine.high %v6056_v14, %v6072_v57  ;;  %v6269_v48 = vrot.slane %v6261_v42, %v15638_v6  ;;  %v21466_v57 = vld [vmem:[#allocation47_spill] sm:$0xff] }
 0x2c2   : > { %14061 = vmatprep.mubr.msk.f32.mxu1 %vm8081_vm1, %v2931_v7  ;;  %14117 = vmatprep.mubr.msk.f32.mxu0 %vm8081_vm1, %v2932_v60  ;;  %v17926_v41 = vrot.slane %v6073_v43, %v15659_v22  ;;  %v17929_v47 = vrot.slane %v6074_v4, %v15659_v22  ;;  %v6276_v37 = vrot.slane %v6262_v61, %v15638_v6  ;;  %v21464_v7 = vld [vmem:[#allocation39_spill] sm:$0xff]  ;;  %v17960_v43 = vpop.permute.xlu0 %5773 }
 0x2c3   : > { %v2999_v31 = vcombine.low %v2980_v25, %v2996_v45  ;;  %v3000_v49 = vcombine.high %v2980_v25, %v2996_v45  ;;  %v17932_v3 = vrot.slane %v6089_v20, %v15659_v22  ;;  %v17935_v5 = vrot.slane %v6090_v16, %v15659_v22  ;;  %v21467_v45 = vld [vmem:[#allocation49_spill] sm:$0xff] }
 0x2c4   : > { %v6277_v0 = vcombine.low %v6253_v51, %v6269_v48  ;;  %v6278_v21 = vcombine.high %v6253_v51, %v6269_v48  ;;  %v6293_v13 = vcombine.low %v6260_v62, %v6276_v37  ;;  %v6294_v42 = vcombine.high %v6260_v62, %v6276_v37  ;;  %v21465_v51 = vld [vmem:[#allocation48_spill] sm:$0xff]  ;;  %v21468_v37 = vld [vmem:[#allocation50_spill] sm:$0xff] }
 0x2c5   : > { %14062 = vmatmul.mubr.msk.f32.gmra.mrb[40].mxu1 %vm8081_vm1, %v2999_v31  ;;  %14118 = vmatmul.mubr.msk.f32.gmra.mrb[56].mxu0 %vm8081_vm1, %v3000_v49  ;;  %v3034_v60 = vcombine.high %v21464_v7, %v17385_v9  ;;  %v3050_v25 = vcombine.high %v21466_v57, %v21465_v51  ;;  %v3102_v61 = vcombine.high %v21467_v45, %v17457_v12 }
 0x2c6   : > { %v17951_v30 = vrot.slane %v6277_v0, %v15659_v22  ;;  %v17954_v34 = vrot.slane %v6278_v21, %v15659_v22  ;;  %v17963_v4 = vrot.slane %v6293_v13, %v15659_v22  ;;  %v3118_v20 = vcombine.high %v17465_v58, %v17471_v52  ;;  %v21469_v21 = vld [vmem:[#allocation79_spill] sm:$0xff] }
 0x2c7   : > { %v3170_v62 = vcombine.high %v17544_v27, %v17550_v11  ;;  %v17972_v16 = vrot.slane %v6294_v42, %v15659_v22  ;;  %v3048_v31 = vrot.slane %v3034_v60, %v15659_v22  ;;  %v3064_v49 = vrot.slane %v3050_v25, %v15659_v22  ;;  %v17991_v42 = vpop.permute.xlu1 %5779 }
 0x2c8   : > { %v3116_v12 = vrot.slane %v3102_v61, %v15659_v22  ;;  %v3132_v58 = vrot.slane %v3118_v20, %v15659_v22  ;;  %v3186_v0 = vcombine.high %v21468_v37, %v17569_v59  ;;  %v6177_v13 = vcombine.low %v21469_v21, %v17888_v40  ;;  %v21470_v20 = vld [vmem:[#allocation13_spill] sm:$0xff]  ;;  %v17999_v59 = vpop.permute.xlu0 %5821  ;;  %v21472_v37 = vld [vmem:[#allocation56_spill] sm:$0xff] }
 0x2c9   : > { %v3184_v52 = vrot.slane %v3170_v62, %v15659_v22  ;;  %v3067_v7 = vcombine.low %v3048_v31, %v3064_v49  ;;  %v3068_v60 = vcombine.high %v3048_v31, %v3064_v49  ;;  %v6178_v45 = vcombine.high %v21469_v21, %v17888_v40  ;;  %v21471_v62 = vld [vmem:[#allocation60_spill] sm:$0xff]  ;;  %v21473_v31 = vld [vmem:[#allocation57_spill] sm:$0xff] }
 0x2ca   : > { %v3135_v51 = vcombine.low %v3116_v12, %v3132_v58  ;;  %v3136_v57 = vcombine.high %v3116_v12, %v3132_v58  ;;  %v3200_v25 = vrot.slane %v3186_v0, %v15659_v22  ;;  %v6185_v61 = vrot.slane %v6177_v13, %v15638_v6  ;;  %v21474_v12 = vld [vmem:[#allocation84_spill] sm:$0xff] }
 0x2cb   : > { %v3238_v11 = vcombine.high %v21471_v62, %v21470_v20  ;;  %14064 = vmatprep.mubr.msk.f32.mxu1 %vm8081_vm1, %v3067_v7  ;;  %14120 = vmatprep.mubr.msk.f32.mxu0 %vm8081_vm1, %v3068_v60  ;;  %v3254_v49 = vcombine.high %v21473_v31, %v21472_v37  ;;  %v6381_v58 = vcombine.low %v21474_v12, %v17913_v15  ;;  %v21475_v37 = vld [vmem:[#allocation58_spill] sm:$0xff]  ;;  %v21476_v31 = vld [vmem:[#allocation59_spill] sm:$0xff] }
 0x2cc   : > { %v6382_v40 = vcombine.high %v21474_v12, %v17913_v15  ;;  %14065 = vmatmul.mubr.msk.f32.gmra.mrb[42].mxu1 %vm8081_vm1, %v3135_v51  ;;  %14121 = vmatmul.mubr.msk.f32.gmra.mrb[58].mxu0 %vm8081_vm1, %v3136_v57  ;;  %v3203_v0 = vcombine.low %v3184_v52, %v3200_v25  ;;  %v3204_v21 = vcombine.high %v3184_v52, %v3200_v25 }
 0x2cd   : > { %v6192_v13 = vrot.slane %v6178_v45, %v15638_v6  ;;  %v3252_v7 = vrot.slane %v3238_v11, %v15659_v22  ;;  %v3268_v60 = vrot.slane %v3254_v49, %v15659_v22  ;;  %v6389_v20 = vrot.slane %v6381_v58, %v15638_v6  ;;  %v18024_v11 = vpop.permute.xlu1 %5827 }
 0x2ce   : > { %v6396_v62 = vrot.slane %v6382_v40, %v15638_v6  ;;  %14067 = vmatprep.mubr.msk.f32.mxu1 %vm8081_vm1, %v3203_v0  ;;  %14123 = vmatprep.mubr.msk.f32.mxu0 %vm8081_vm1, %v3204_v21  ;;  %v3306_v15 = vcombine.high %v17636_v2, %v17648_v38  ;;  %v3322_v52 = vcombine.high %v17654_v36, %v17660_v33  ;;  %v21477_v36 = vld [vmem:[#allocation52_spill] sm:$0xff]  ;;  %v21478_v33 = vld [vmem:[#allocation53_spill] sm:$0xff]  ;;  %v5870_v40 = vpop.permute.xlu0 %5869 }
 0x2cf   : > { %v6193_v51 = vcombine.low %v17854_v35, %v17920_v26  ;;  %v3271_v57 = vcombine.low %v3252_v7, %v3268_v60  ;;  %v3272_v25 = vcombine.high %v3252_v7, %v3268_v60  ;;  %v6194_v45 = vcombine.high %v17854_v35, %v17920_v26 }
 0x2d0   : > { %v3374_v49 = vcombine.high %v21476_v31, %v21475_v37  ;;  %v3320_v12 = vrot.slane %v3306_v15, %v15659_v22  ;;  %v3336_v2 = vrot.slane %v3322_v52, %v15659_v22  ;;  %v3390_v58 = vcombine.high %v21478_v33, %v21477_v36 }
 0x2d1   : > { %v6201_v38 = vrot.slane %v6193_v51, %v15638_v6  ;;  %14068 = vmatmul.mubr.msk.f32.gmra.mrb[44].mxu1 %vm8081_vm1, %v3271_v57  ;;  %14124 = vmatmul.mubr.msk.f32.gmra.mrb[60].mxu0 %vm8081_vm1, %v3272_v25  ;;  %v6208_v0 = vrot.slane %v6194_v45, %v15638_v6  ;;  %v6397_v26 = vcombine.low %v17878_v8, %v17944_v46 }
 0x2d2   : > { %v3388_v35 = vrot.slane %v3374_v49, %v15659_v22  ;;  %v3339_v21 = vcombine.low %v3320_v12, %v3336_v2  ;;  %v3340_v7 = vcombine.high %v3320_v12, %v3336_v2  ;;  %v3404_v37 = vrot.slane %v3390_v58, %v15659_v22  ;;  %v18066_v33 = vpop.permute.xlu0 %5777 }
 0x2d3   : > { %v6209_v60 = vcombine.low %v6185_v61, %v6201_v38  ;;  %v6210_v15 = vcombine.high %v6185_v61, %v6201_v38  ;;  %v6225_v52 = vcombine.low %v6192_v13, %v6208_v0  ;;  %v6226_v51 = vcombine.high %v6192_v13, %v6208_v0  ;;  %v18053_v61 = vpop.permute.xlu1 %5875  ;;  %v21491_v0 = vld [vmem:[#allocation8_spill] sm:$0xff] }
 0x2d4   : > { %v6398_v57 = vcombine.high %v17878_v8, %v17944_v46  ;;  %14070 = vmatprep.mubr.msk.f32.mxu1 %vm8081_vm1, %v3339_v21  ;;  %14126 = vmatprep.mubr.msk.f32.mxu0 %vm8081_vm1, %v3340_v7  ;;  %v6405_v31 = vrot.slane %v6397_v26, %v15638_v6  ;;  %v3407_v8 = vcombine.low %v3388_v35, %v3404_v37 }
 0x2d5   : > { %v18047_v25 = vrot.slane %v6209_v60, %v15659_v22  ;;  %v18050_v45 = vrot.slane %v6210_v15, %v15659_v22  ;;  %v18056_v13 = vrot.slane %v6225_v52, %v15659_v22  ;;  %v18059_v49 = vrot.slane %v6226_v51, %v15659_v22  ;;  %v21479_v60 = vld [vmem:[#allocation89_spill] sm:$0xff] }
 0x2d6   : > { %v3408_v46 = vcombine.high %v3388_v35, %v3404_v37  ;;  %v6412_v38 = vrot.slane %v6398_v57, %v15638_v6  ;;  %v6413_v36 = vcombine.low %v6389_v20, %v6405_v31  ;;  %14071 = vmatmul.mubr.msk.f32.gmra.mrb[46].mxu1 %vm8081_vm1, %v3407_v8  ;;  %v6414_v35 = vcombine.high %v6389_v20, %v6405_v31  ;;  %v21480_v37 = vld [vmem:[#allocation93_spill] sm:$0xff] }
 0x2d7   : > { %v6313_v15 = vcombine.low %v21479_v60, %v17999_v59  ;;  %v6314_v51 = vcombine.high %v21479_v60, %v17999_v59  ;;  %v6517_v57 = vcombine.low %v21480_v37, %v18024_v11  ;;  %v6518_v20 = vcombine.high %v21480_v37, %v18024_v11  ;;  %v5826_v37 = vpop.permute.xlu0 %5825 }
 0x2d8   : > { %14127 = vmatmul.mubr.msk.f32.gmra.mrb[62].mxu0 %vm8081_vm1, %v3408_v46  ;;  %v18075_v26 = vrot.slane %v6413_v36, %v15659_v22  ;;  %v6429_v21 = vcombine.low %v6396_v62, %v6412_v38  ;;  %v6430_v7 = vcombine.high %v6396_v62, %v6412_v38  ;;  %v18080_v52 = vrot.slane %v6414_v35, %v15659_v22  ;;  %v18096_v38 = vpop.permute.xlu1 %5783 }
 0x2d9   : > { %v6321_v8 = vrot.slane %v6313_v15, %v15638_v6  ;;  %v6329_v46 = vcombine.low %v17960_v43, %v5870_v40  ;;  %v6328_v11 = vrot.slane %v6314_v51, %v15638_v6  ;;  %v6525_v35 = vrot.slane %v6517_v57, %v15638_v6 }
 0x2da   : > { %v18089_v31 = vrot.slane %v6429_v21, %v15659_v22  ;;  %v18092_v62 = vrot.slane %v6430_v7, %v15659_v22  ;;  %v18109_v60 = vrot.slane %v6518_v20, %v15638_v6  ;;  %v6330_v15 = vcombine.high %v17960_v43, %v5870_v40 }
 0x2db   : > { %v6337_v59 = vrot.slane %v6329_v46, %v15638_v6  ;;  %v18117_v51 = vrot.slane %v6993_v32, %v15638_v6  ;;  %v18123_v57 = vrot.slane %v13255_v44, %v15638_v6  ;;  %v18129_v43 = vrot.slane %v7009_v17, %v15638_v6 }
 0x2dc   : > { %v6344_v40 = vrot.slane %v6330_v15, %v15638_v6  ;;  %v21482_v20 = vcombine.high %v17804_v19, %v17807_v55  ;;  %v21483_v63 = vcombine.low %v17744_v56, %v17747_v10  ;;  %v21485_v44 = vcombine.high %v17744_v56, %v17747_v10 }
 0x2dd   : > { %21481 = vst [vmem:[#allocation55_spill] sm:$0xff] %v18129_v43  ;;  %v6345_v46 = vcombine.low %v6321_v8, %v6337_v59  ;;  %v6346_v15 = vcombine.high %v6321_v8, %v6337_v59  ;;  %v7025_v7 = vcombine.low %v18117_v51, %v18123_v57  ;;  %v21487_v19 = vcombine.low %v17750_v24, %v17755_v18  ;;  %v5832_v8 = vpop.permute.xlu1 %5831 }
 0x2de   : > { %v18136_v32 = vrot.slane %v21482_v20, %v15638_v6  ;;  %v18142_v1 = vrot.slane %v21483_v63, %v15638_v6  ;;  %v18148_v17 = vrot.slane %v21485_v44, %v15638_v6  ;;  %v6361_v20 = vcombine.low %v6328_v11, %v6344_v40 }
 0x2df   : > { %v18156_v55 = vrot.slane %v21487_v19, %v15638_v6  ;;  %v6362_v63 = vcombine.high %v6328_v11, %v6344_v40  ;;  %v21489_v56 = vcombine.high %v17750_v24, %v17755_v18  ;;  %v18167_v59 = vrot.slane %v6345_v46, %v15659_v22  ;;  %v5874_v46 = vpop.permute.xlu0 %5873 }
 0x2e0   : > { %21484 = vst [vmem:[#allocation54_spill] sm:$0xff] %v18142_v1  ;;  %21486 = vst [vmem:[#allocation16_spill] sm:$0xff] %v18148_v17  ;;  %v7041_v21 = vcombine.low %v18129_v43, %v18136_v32  ;;  %v18170_v44 = vrot.slane %v6346_v15, %v15659_v22  ;;  %v7033_v19 = vrot.slane %v7025_v7, %v15659_v22 }
 0x2e1   : > { %21488 = vst [vmem:[#allocation69_spill] sm:$0xff] %v18156_v55  ;;  %v18164_v10 = vrot.slane %v21489_v56, %v15638_v6  ;;  %v7093_v11 = vcombine.low %v18142_v1, %v18148_v17  ;;  %v18176_v40 = vrot.slane %v6361_v20, %v15659_v22  ;;  %v18179_v36 = vrot.slane %v6362_v63, %v15659_v22  ;;  %v5880_v53 = vpop.permute.xlu1 %5879 }
 0x2e2   : > { %v7049_v24 = vrot.slane %v7041_v21, %v15659_v22  ;;  %v6533_v20 = vcombine.low %v17991_v42, %v18053_v61  ;;  %v6534_v15 = vcombine.high %v17991_v42, %v18053_v61  ;;  %v6450_v12 = vcombine.high %v21491_v0, %v5826_v37 }
 0x2e3   : > { %21490 = vst [vmem:[#allocation71_spill] sm:$0xff] %v18164_v10  ;;  %v7109_v18 = vcombine.low %v18156_v55, %v18164_v10  ;;  %v7101_v56 = vrot.slane %v7093_v11, %v15659_v22  ;;  %v6449_v11 = vcombine.low %v21491_v0, %v5826_v37  ;;  %v6653_v63 = vcombine.low %v21492_v28, %v5832_v8 }
 0x2e4   : > { %v7057_v27 = vcombine.low %v7033_v19, %v7049_v24  ;;  %v7058_v9 = vcombine.high %v7033_v19, %v7049_v24  ;;  %v6541_v7 = vrot.slane %v6533_v20, %v15638_v6  ;;  %v6548_v21 = vrot.slane %v6534_v15, %v15638_v6  ;;  %v18206_v20 = vpop.permute.xlu0 %5781 }
 0x2e5   : > { %v7117_v48 = vrot.slane %v7109_v18, %v15659_v22  ;;  %v6457_v19 = vrot.slane %v6449_v11, %v15638_v6  ;;  %v6464_v42 = vrot.slane %v6450_v12, %v15638_v6  ;;  %v6654_v61 = vcombine.high %v21492_v28, %v5832_v8  ;;  %v18232_v15 = vpop.permute.xlu1 %5787 }
 0x2e6   : > { %v6549_v23 = vcombine.low %v6525_v35, %v6541_v7  ;;  %v6550_v14 = vcombine.high %v6525_v35, %v6541_v7  ;;  %v6565_v37 = vcombine.low %v18109_v60, %v6548_v21  ;;  %v6566_v35 = vcombine.high %v18109_v60, %v6548_v21 }
 0x2e7   : > { %v7125_v58 = vcombine.low %v7101_v56, %v7117_v48  ;;  %v7126_v2 = vcombine.high %v7101_v56, %v7117_v48  ;;  %v6465_v28 = vcombine.low %v18066_v33, %v5874_v46  ;;  %v6669_v8 = vcombine.low %v18096_v38, %v5880_v53 }
 0x2e8   : > { %v18209_v48 = vrot.slane %v6549_v23, %v15659_v22  ;;  %v18212_v0 = vrot.slane %v6550_v14, %v15659_v22  ;;  %v18220_v23 = vrot.slane %v6565_v37, %v15659_v22  ;;  %v18223_v14 = vrot.slane %v6566_v35, %v15659_v22 }
 0x2e9   : > { %v14601_v24 = vpack.c.bf16 %v7125_v58, %v7057_v27  ;;  %v14633_v18 = vpack.c.bf16 %v7126_v2, %v7058_v9  ;;  %v6661_v9 = vrot.slane %v6653_v63, %v15638_v6  ;;  %v6668_v27 = vrot.slane %v6654_v61, %v15638_v6  ;;  %v5830_v61 = vpop.permute.xlu0 %5829 }
 0x2ea   : > { %v6466_v58 = vcombine.high %v18066_v33, %v5874_v46  ;;  %v6473_v60 = vrot.slane %v6465_v28, %v15638_v6  ;;  %v6670_v63 = vcombine.high %v18096_v38, %v5880_v53  ;;  %v21493_v21 = vcombine.low %v17926_v41, %v17929_v47 }
 0x2eb   : > { %14602 = vmatprep.subr.bf16.mxu1 %v14601_v24  ;;  %14634 = vmatprep.subr.bf16.mxu0 %v14633_v18  ;;  %v21495_v35 = vcombine.high %v17926_v41, %v17929_v47  ;;  %v21497_v38 = vcombine.low %v17932_v3, %v17935_v5  ;;  %v21501_v12 = vcombine.low %v17823_v29, %v17826_v54 }
 0x2ec   : > { %14604 = vmatpush3.bf16.msra.mxu1 %v14601_v24  ;;  %14636 = vmatpush3.bf16.msra.mxu0 %v14633_v18  ;;  %v18243_v11 = vrot.slane %v21493_v21, %v15638_v6  ;;  %v6480_v33 = vrot.slane %v6466_v58, %v15638_v6  ;;  %v6481_v46 = vcombine.low %v6457_v19, %v6473_v60 }
 0x2ed   : > { %v6482_v24 = vcombine.high %v6457_v19, %v6473_v60  ;;  %v6677_v18 = vrot.slane %v6669_v8, %v15638_v6  ;;  %v6684_v37 = vrot.slane %v6670_v63, %v15638_v6  ;;  %v18252_v53 = vrot.slane %v21495_v35, %v15638_v6 }
 0x2ee   : > { %21494 = vst [vmem:[#allocation66_spill] sm:$0xff] %v18243_v11  ;;  %v18258_v28 = vrot.slane %v21497_v38, %v15638_v6  ;;  %v21499_v19 = vcombine.high %v17932_v3, %v17935_v5  ;;  %v18267_v60 = vrot.slane %v6481_v46, %v15659_v22  ;;  %v6497_v41 = vcombine.low %v6464_v42, %v6480_v33  ;;  %v5836_v46 = vpop.permute.xlu1 %5835 }
 0x2ef   : > { %21496 = vst [vmem:[#allocation65_spill] sm:$0xff] %v18252_v53  ;;  %v18270_v8 = vrot.slane %v6482_v24, %v15659_v22  ;;  %v6498_v47 = vcombine.high %v6464_v42, %v6480_v33  ;;  %v6685_v63 = vcombine.low %v6661_v9, %v6677_v18  ;;  %v6686_v21 = vcombine.high %v6661_v9, %v6677_v18 }
 0x2f0   : > { %21498 = vst [vmem:[#allocation68_spill] sm:$0xff] %v18258_v28  ;;  %v18264_v58 = vrot.slane %v21499_v19, %v15638_v6  ;;  %v6701_v35 = vcombine.low %v6668_v27, %v6684_v37  ;;  %v6702_v56 = vcombine.high %v6668_v27, %v6684_v37  ;;  %v18273_v38 = vrot.slane %v6497_v41, %v15659_v22  ;;  %v5878_v41 = vpop.permute.xlu0 %5877 }
 0x2f1   : > { %v18276_v7 = vrot.slane %v6498_v47, %v15659_v22  ;;  %v18283_v24 = vrot.slane %v6685_v63, %v15659_v22  ;;  %v18286_v42 = vrot.slane %v6686_v21, %v15659_v22  ;;  %v7161_v37 = vcombine.low %v18243_v11, %v18252_v53 }
 0x2f2   : > { %21500 = vst [vmem:[#allocation67_spill] sm:$0xff] %v18264_v58  ;;  %v18289_v9 = vrot.slane %v6701_v35, %v15659_v22  ;;  %v18292_v27 = vrot.slane %v6702_v56, %v15659_v22  ;;  %v7177_v19 = vcombine.low %v18258_v28, %v18264_v58  ;;  %v18316_v18 = vrot.slane %v21501_v12, %v15638_v6  ;;  %v21509_v12 = vld [vmem:[#allocation28_spill] sm:$0xff]  ;;  %v5884_v58 = vpop.permute.xlu1 %5883 }
 0x2f3   : > { %v7169_v35 = vrot.slane %v7161_v37, %v15659_v22  ;;  %v21503_v56 = vcombine.high %v17823_v29, %v17826_v54  ;;  %v21505_v21 = vcombine.low %v17841_v50, %v17844_v39  ;;  %v21507_v37 = vcombine.high %v17841_v50, %v17844_v39 }
 0x2f4   : > { %v7185_v2 = vrot.slane %v7177_v19, %v15659_v22  ;;  %21502 = vst [vmem:[#allocation62_spill] sm:$0xff] %v18316_v18  ;;  %v6585_v33 = vcombine.low %v21509_v12, %v5830_v61  ;;  %v6586_v5 = vcombine.high %v21509_v12, %v5830_v61  ;;  %v6601_v12 = vcombine.low %v18206_v20, %v5878_v41 }
 0x2f5   : > { %v18322_v47 = vrot.slane %v21503_v56, %v15638_v6  ;;  %v18328_v63 = vrot.slane %v21505_v21, %v15638_v6  ;;  %v18334_v19 = vrot.slane %v21507_v37, %v15638_v6  ;;  %v21510_v56 = vld [vmem:[#allocation29_spill] sm:$0xff] }
 0x2f6   : > { %v7193_v3 = vcombine.low %v7169_v35, %v7185_v2  ;;  %v7194_v54 = vcombine.high %v7169_v35, %v7185_v2  ;;  %v6789_v28 = vcombine.low %v21510_v56, %v5836_v46  ;;  %v6593_v11 = vrot.slane %v6585_v33, %v15638_v6  ;;  %v18350_v35 = vpop.permute.xlu0 %5785  ;;  %v18372_v53 = vpop.permute.xlu1 %5789 }
 0x2f7   : > { %21504 = vst [vmem:[#allocation61_spill] sm:$0xff] %v18322_v47  ;;  %21506 = vst [vmem:[#allocation64_spill] sm:$0xff] %v18328_v63  ;;  %v7229_v29 = vcombine.low %v18316_v18, %v18322_v47  ;;  %v7245_v21 = vcombine.low %v18328_v63, %v18334_v19  ;;  %v6600_v39 = vrot.slane %v6586_v5, %v15638_v6 }
 0x2f8   : > { %21508 = vst [vmem:[#allocation63_spill] sm:$0xff] %v18334_v19  ;;  %v6790_v50 = vcombine.high %v21510_v56, %v5836_v46  ;;  %v6797_v61 = vrot.slane %v6789_v28, %v15638_v6  ;;  %v6602_v2 = vcombine.high %v18206_v20, %v5878_v41  ;;  %v6805_v33 = vcombine.low %v18232_v15, %v5884_v58 }
 0x2f9   : > { %v7237_v37 = vrot.slane %v7229_v29, %v15659_v22  ;;  %v7253_v18 = vrot.slane %v7245_v21, %v15659_v22  ;;  %v6806_v5 = vcombine.high %v18232_v15, %v5884_v58  ;;  %v6609_v46 = vrot.slane %v6601_v12, %v15638_v6 }
 0x2fa   : > { %v6804_v63 = vrot.slane %v6790_v50, %v15638_v6  ;;  %v6616_v29 = vrot.slane %v6602_v2, %v15638_v6  ;;  %v21511_v28 = vcombine.low %v18047_v25, %v18050_v45  ;;  %v21513_v20 = vcombine.high %v18047_v25, %v18050_v45 }
 0x2fb   : > { %v7261_v21 = vcombine.low %v7237_v37, %v7253_v18  ;;  %v7262_v50 = vcombine.high %v7237_v37, %v7253_v18  ;;  %v6813_v15 = vrot.slane %v6805_v33, %v15638_v6  ;;  %v6820_v58 = vrot.slane %v6806_v5, %v15638_v6 }
 0x2fc   : > { %v18362_v56 = vrot.slane %v21511_v28, %v15638_v6  ;;  %v18368_v41 = vrot.slane %v21513_v20, %v15638_v6  ;;  %v6617_v12 = vcombine.low %v6593_v11, %v6609_v46  ;;  %v6618_v2 = vcombine.high %v6593_v11, %v6609_v46  ;;  %v5834_v11 = vpop.permute.xlu0 %5833 }
 0x2fd   : > { %v6633_v19 = vcombine.low %v6600_v39, %v6616_v29  ;;  %v6634_v47 = vcombine.high %v6600_v39, %v6616_v29  ;;  %v14605_v28 = vpack.c.bf16 %v7261_v21, %v7193_v3  ;;  %v14637_v55 = vpack.c.bf16 %v7262_v50, %v7194_v54 }
 0x2fe   : > { %21512 = vst [vmem:[#allocation15_spill] sm:$0xff] %v18362_v56  ;;  %21514 = vst [vmem:[#allocation35_spill] sm:$0xff] %v18368_v41  ;;  %v6821_v10 = vcombine.low %v6797_v61, %v6813_v15  ;;  %v6822_v1 = vcombine.high %v6797_v61, %v6813_v15  ;;  %v18375_v25 = vrot.slane %v6617_v12, %v15659_v22  ;;  %v21515_v61 = vlaneseq }
 0x2ff   : > { %v18378_v45 = vrot.slane %v6618_v2, %v15659_v22  ;;  %v18381_v18 = vrot.slane %v6633_v19, %v15659_v22  ;;  %v18384_v37 = vrot.slane %v6634_v47, %v15659_v22  ;;  %14606 = vmatprep.subr.bf16.mxu1 %v14605_v28  ;;  %14638 = vmatprep.subr.bf16.mxu0 %v14637_v55  ;;  %v21529_v47 = vld [vmem:[#allocation37_spill] sm:$0xff] }
 0x300   : > { %v18387_v3 = vrot.slane %v6821_v10, %v15659_v22  ;;  %v18390_v54 = vrot.slane %v6822_v1, %v15659_v22  ;;  %v6837_v39 = vcombine.low %v6804_v63, %v6820_v58  ;;  %v18393_v33 = vand.u32 127, %v21515_v61  ;;  %14608 = vmatpush3.bf16.msra.mxu1 %v14605_v28  ;;  %14640 = vmatpush3.bf16.msra.mxu0 %v14637_v55 }
 0x301   : > { %v6838_v1 = vcombine.high %v6804_v63, %v6820_v58  ;;  %v21516_v20 = vcombine.low %v18056_v13, %v18059_v49  ;;  %v21518_v50 = vcombine.high %v18056_v13, %v18059_v49  ;;  %v7297_v15 = vcombine.low %v18362_v56, %v18368_v41  ;;  %v5838_v58 = vpop.permute.xlu1 %5837 }
 0x302   : > { %v18404_v46 = vrot.slane %v6837_v39, %v15659_v22  ;;  %v21520_v2 = vcombine.low %v17951_v30, %v17954_v34  ;;  %v21522_v39 = vcombine.high %v17951_v30, %v17954_v34  ;;  %v21524_v49 = vcombine.low %v17963_v4, %v17972_v16  ;;  %v21528_v34 = vld [vmem:[#allocation46_spill] sm:$0xff]  ;;  %v13939_v10 = vpop.f32.mrb[16].mxu1  ;;  %v13995_v5 = vpop.f32.mrb[32].mxu0 }
 0x303   : > { %v18414_v21 = vrot.slane %v21516_v20, %v15638_v6  ;;  %v18420_v63 = vrot.slane %v21518_v50, %v15638_v6  ;;  %v18425_v12 = vrot.slane %v6838_v1, %v15659_v22  ;;  %vm9048_vm3 = vcmp.lt.s32.totalorder %v18393_v33, 8 }
 0x304   : > { %v18431_v28 = vrot.slane %v21520_v2, %v15638_v6  ;;  %v18437_v13 = vrot.slane %v21522_v39, %v15638_v6  ;;  %v18443_v61 = vrot.slane %v21524_v49, %v15638_v6  ;;  %v7305_v1 = vrot.slane %v7297_v15, %v15659_v22  ;;  %v5882_v39 = vpop.permute.xlu0 %5881  ;;  %v18468_v49 = vpop.f32.mrb[17].mxu1 }
 0x305   : > { %21517 = vst [vmem:[#allocation70_spill] sm:$0xff] %v18414_v21  ;;  %21519 = vst [vmem:[#allocation17_spill] sm:$0xff] %v18420_v63  ;;  %v7313_v20 = vcombine.low %v18414_v21, %v18420_v63  ;;  %v21526_v50 = vcombine.high %v17963_v4, %v17972_v16  ;;  %v6721_v2 = vcombine.low %v21528_v34, %v5834_v11  ;;  %v18470_v21 = vpop.f32.mrb[33].mxu0 }
 0x306   : > { %21521 = vst [vmem:[#allocation76_spill] sm:$0xff] %v18431_v28  ;;  %21523 = vst [vmem:[#allocation78_spill] sm:$0xff] %v18437_v13  ;;  %v7365_v15 = vcombine.low %v18431_v28, %v18437_v13  ;;  %v6722_v29 = vcombine.high %v21528_v34, %v5834_v11  ;;  %v6857_v19 = vcombine.low %v21529_v47, %v5838_v58 }
 0x307   : > { %21525 = vst [vmem:[#allocation77_spill] sm:$0xff] %v18443_v61  ;;  %v18453_v30 = vrot.slane %v21526_v50, %v15638_v6  ;;  %v7321_v4 = vrot.slane %v7313_v20, %v15659_v22  ;;  %v6729_v50 = vrot.slane %v6721_v2, %v15638_v6  ;;  %v6858_v11 = vcombine.high %v21529_v47, %v5838_v58 }
 0x308   : > { %v7373_v55 = vrot.slane %v7365_v15, %v15659_v22  ;;  %v6736_v28 = vrot.slane %v6722_v29, %v15638_v6  ;;  %v6737_v34 = vcombine.low %v18350_v35, %v5882_v39  ;;  %v18478_v2 = vrot.slane %v6857_v19, %v15638_v6  ;;  %v21530_v29 = vld [vmem:[#allocation38_spill] sm:$0xff]  ;;  %v5792_v43 = vpop.permute.xlu0 %5791 }
 0x309   : > { %21527 = vst [vmem:[#allocation73_spill] sm:$0xff] %v18453_v30  ;;  %v7381_v16 = vcombine.low %v18443_v61, %v18453_v30  ;;  %v7329_v20 = vcombine.low %v7305_v1, %v7321_v4  ;;  %v7330_v61 = vcombine.high %v7305_v1, %v7321_v4  ;;  %v5840_v30 = vpop.permute.xlu1 %5839  ;;  %v18481_v63 = vrot.slane %v6858_v11, %v15638_v6 }
 0x30a   : > { %v6738_v56 = vcombine.high %v18350_v35, %v5882_v39  ;;  %v6745_v15 = vrot.slane %v6737_v34, %v15638_v6  ;;  %v6925_v41 = vcombine.low %v21530_v29, %v5840_v30  ;;  %v6926_v17 = vcombine.high %v21530_v29, %v5840_v30 }
 0x30b   : > { %v7389_v13 = vrot.slane %v7381_v16, %v15659_v22  ;;  %v21531_v19 = vcombine.low %v18167_v59, %v18170_v44 }
 0x30c   : > { %v6752_v4 = vrot.slane %v6738_v56, %v15638_v6  ;;  %v6753_v16 = vcombine.low %v6729_v50, %v6745_v15  ;;  %v6754_v11 = vcombine.high %v6729_v50, %v6745_v15  ;;  %v18495_v35 = vrot.slane %v6925_v41, %v15638_v6 }
 0x30d   : > { %v7397_v47 = vcombine.low %v7373_v55, %v7389_v13  ;;  %v7398_v58 = vcombine.high %v7373_v55, %v7389_v13  ;;  %v18491_v1 = vrot.slane %v21531_v19, %v15638_v6  ;;  %v18498_v55 = vrot.slane %v6926_v17, %v15638_v6 }
 0x30e   : > { %v21532_v13 = vcombine.high %v18167_v59, %v18170_v44  ;;  %v18507_v29 = vrot.slane %v6753_v16, %v15659_v22  ;;  %v18510_v56 = vrot.slane %v6754_v11, %v15659_v22  ;;  %v6769_v50 = vcombine.low %v6736_v28, %v6752_v4 }
 0x30f   : > { %v14609_v39 = vpack.c.bf16 %v7397_v47, %v7329_v20  ;;  %v14641_v34 = vpack.c.bf16 %v7398_v58, %v7330_v61  ;;  %v6770_v41 = vcombine.high %v6736_v28, %v6752_v4  ;;  %v21533_v17 = vcombine.low %v18176_v40, %v18179_v36 }
 0x310   : > { %v18504_v30 = vrot.slane %v21532_v13, %v15638_v6  ;;  %v21534_v59 = vcombine.high %v18176_v40, %v18179_v36  ;;  %v18528_v28 = vsel %vm9048_vm3, %v13939_v10, -1e+30  ;;  %v18531_v15 = vrot.slane %v6769_v50, %v15659_v22  ;;  %v5888_v40 = vpop.permute.xlu1 %5887 }
 0x311   : > { %14610 = vmatprep.subr.bf16.mxu1 %v14609_v39  ;;  %14642 = vmatprep.subr.bf16.mxu0 %v14641_v34  ;;  %v18516_v61 = vrot.slane %v21533_v17, %v15638_v6  ;;  %21535 = vst [vmem:[#allocation72_spill] sm:$0xff] %v18528_v28  ;;  %v18534_v47 = vrot.slane %v6770_v41, %v15659_v22  ;;  %v18540_v58 = vsel %vm9048_vm3, %v13995_v5, -1e+30 }
 0x312   : > { %v18522_v44 = vrot.slane %v21534_v59, %v15638_v6  ;;  %v7433_v20 = vcombine.low %v18491_v1, %v18504_v30  ;;  %14612 = vmatpush3.bf16.msra.mxu1 %v14609_v39  ;;  %14644 = vmatpush3.bf16.msra.mxu0 %v14641_v34  ;;  %21536 = vst [vmem:[#allocation75_spill] sm:$0xff] %v18540_v58  ;;  %v5886_v39 = vpop.permute.xlu0 %5885 }
 0x313   : > { %v21537_v16 = vcombine.low %v18075_v26, %v18080_v52  ;;  %9115 = vmax.xlane.f32.xlu0 %v18528_v28  ;;  %v21539_v13 = vcombine.high %v18075_v26, %v18080_v52  ;;  %v21541_v41 = vcombine.low %v18089_v31, %v18092_v62  ;;  %v6941_v34 = vcombine.low %v5792_v43, %v5888_v40 }
 0x314   : > { %v7441_v19 = vrot.slane %v7433_v20, %v15659_v22  ;;  %v7449_v4 = vcombine.low %v18516_v61, %v18522_v44  ;;  %v21543_v20 = vcombine.high %v18089_v31, %v18092_v62  ;;  %v6942_v5 = vcombine.high %v5792_v43, %v5888_v40  ;;  %v18590_v40 = vpop.f32.mrb[18].mxu1 }
 0x315   : > { %v18551_v11 = vrot.slane %v21537_v16, %v15638_v6  ;;  %v18562_v50 = vrot.slane %v21539_v13, %v15638_v6  ;;  %v18568_v17 = vrot.slane %v21541_v41, %v15638_v6  ;;  %v6873_v52 = vcombine.low %v18372_v53, %v5886_v39  ;;  %v18599_v28 = vpop.f32.mrb[19].mxu1 }
 0x316   : > { %v7457_v59 = vrot.slane %v7449_v4, %v15659_v22  ;;  %v18575_v16 = vrot.slane %v21543_v20, %v15638_v6  ;;  %v6874_v13 = vcombine.high %v18372_v53, %v5886_v39  ;;  %v21545_v41 = vcombine.low %v18267_v60, %v18270_v8  ;;  %v18592_v20 = vpop.f32.mrb[34].mxu0 }
 0x317   : > { %21538 = vst [vmem:[#allocation74_spill] sm:$0xff] %v18551_v11  ;;  %21540 = vst [vmem:[#allocation51_spill] sm:$0xff] %v18562_v50  ;;  %v7501_v26 = vcombine.low %v18551_v11, %v18562_v50  ;;  %v6949_v43 = vrot.slane %v6941_v34, %v15638_v6  ;;  %9147 = vmax.xlane.f32.xlu0 %v18540_v58  ;;  %v6956_v39 = vrot.slane %v6942_v5, %v15638_v6 }
 0x318   : > { %21542 = vst [vmem:[#allocation81_spill] sm:$0xff] %v18568_v17  ;;  %21544 = vst [vmem:[#allocation80_spill] sm:$0xff] %v18575_v16  ;;  %v18585_v4 = vrot.slane %v21545_v41, %v15638_v6  ;;  %v7465_v10 = vcombine.low %v7441_v19, %v7457_v59  ;;  %v7517_v31 = vcombine.low %v18568_v17, %v18575_v16  ;;  %v18601_v17 = vpop.f32.mrb[35].mxu0 }
 0x319   : > { %v7466_v62 = vcombine.high %v7441_v19, %v7457_v59  ;;  %v7509_v53 = vrot.slane %v7501_v26, %v15659_v22  ;;  %v6881_v41 = vrot.slane %v6873_v52, %v15638_v6  ;;  %v6888_v36 = vrot.slane %v6874_v13, %v15638_v6 }
 0x31a   : > { %v7525_v19 = vrot.slane %v7517_v31, %v15659_v22  ;;  %v6957_v34 = vcombine.low %v18495_v35, %v6949_v43  ;;  %v6958_v59 = vcombine.high %v18495_v35, %v6949_v43  ;;  %v21546_v26 = vcombine.high %v18267_v60, %v18270_v8 }
 0x31b   : > { %v6973_v5 = vcombine.low %v18498_v55, %v6956_v39  ;;  %v6974_v52 = vcombine.high %v18498_v55, %v6956_v39  ;;  %v6889_v13 = vcombine.low %v18478_v2, %v6881_v41  ;;  %v6890_v16 = vcombine.high %v18478_v2, %v6881_v41 }
 0x31c   : > { %v18610_v58 = vrot.slane %v21546_v26, %v15638_v6  ;;  %v7533_v11 = vcombine.low %v7509_v53, %v7525_v19  ;;  %v7534_v31 = vcombine.high %v7509_v53, %v7525_v19  ;;  %v18617_v50 = vrot.slane %v6957_v34, %v15659_v22 }
 0x31d   : > { %v18620_v35 = vrot.slane %v6958_v59, %v15659_v22  ;;  %v18623_v60 = vrot.slane %v6973_v5, %v15659_v22  ;;  %v18626_v8 = vrot.slane %v6974_v52, %v15659_v22  ;;  %v18629_v55 = vrot.slane %v6889_v13, %v15659_v22 }
 0x31e   : > { %v18632_v43 = vrot.slane %v6890_v16, %v15659_v22  ;;  %v14613_v2 = vpack.c.bf16 %v7533_v11, %v7465_v10  ;;  %v14645_v53 = vpack.c.bf16 %v7534_v31, %v7466_v62  ;;  %v6905_v59 = vcombine.low %v18481_v63, %v6888_v36 }
 0x31f   : > { %v6906_v26 = vcombine.high %v18481_v63, %v6888_v36  ;;  %v21547_v16 = vcombine.low %v18273_v38, %v18276_v7  ;;  %v18657_v5 = vsel %vm9048_vm3, %v18468_v49, -1e+30  ;;  %v21549_v52 = vcombine.high %v18273_v38, %v18276_v7 }
 0x320   : > { %14614 = vmatprep.subr.bf16.mxu1 %v14613_v2  ;;  %14646 = vmatprep.subr.bf16.mxu0 %v14645_v53  ;;  %21548 = vst [vmem:[#allocation83_spill] sm:$0xff] %v18657_v5  ;;  %v18660_v63 = vrot.slane %v6905_v59, %v15659_v22  ;;  %v18674_v31 = vsel %vm9048_vm3, %v18470_v21, -1e+30  ;;  %v7569_v49 = vcombine.low %v18585_v4, %v18610_v58 }
 0x321   : > { %v18652_v62 = vrot.slane %v21547_v16, %v15638_v6  ;;  %14616 = vmatpush3.bf16.msra.mxu1 %v14613_v2  ;;  %14648 = vmatpush3.bf16.msra.mxu0 %v14645_v53  ;;  %v18663_v36 = vrot.slane %v6906_v26, %v15659_v22  ;;  %v18669_v13 = vrot.slane %v21549_v52, %v15638_v6  ;;  %v18697_v26 = vpop.f32.mrb[20].mxu1  ;;  %v18699_v16 = vpop.f32.mrb[36].mxu0 }
 0x322   : > { %21550 = vst [vmem:[#allocation82_spill] sm:$0xff] %v18674_v31  ;;  %v21551_v2 = vcombine.low %v18209_v48, %v18212_v0  ;;  %v21552_v7 = vcombine.high %v18209_v48, %v18212_v0  ;;  %v21553_v21 = vcombine.low %v18220_v23, %v18223_v14  ;;  %9145 = vmax.xlane.f32.xlu1 %v18674_v31  ;;  %v18715_v34 = vpop.f32.mrb[37].mxu0 }
 0x323   : > { %v7585_v0 = vcombine.low %v18652_v62, %v18669_v13  ;;  %9113 = vmax.xlane.f32.xlu0 %v18657_v5  ;;  %v7577_v19 = vrot.slane %v7569_v49, %v15659_v22  ;;  %v21555_v39 = vcombine.low %v18375_v25, %v18378_v45  ;;  %v21558_v52 = vcombine.low %v18381_v18, %v18384_v37 }
 0x324   : > { %v18682_v53 = vrot.slane %v21551_v2, %v15638_v6  ;;  %v18688_v38 = vrot.slane %v21552_v7, %v15638_v6  ;;  %v18694_v59 = vrot.slane %v21553_v21, %v15638_v6  ;;  %v21554_v2 = vcombine.high %v18220_v23, %v18223_v14  ;;  %v18713_v21 = vpop.f32.mrb[21].mxu1 }
 0x325   : > { %v18725_v48 = vrot.slane %v21555_v39, %v15638_v6  ;;  %v21557_v23 = vcombine.high %v18375_v25, %v18378_v45  ;;  %v18740_v11 = vrot.slane %v21558_v52, %v15638_v6  ;;  %v21560_v39 = vcombine.high %v18381_v18, %v18384_v37 }
 0x326   : > { %v18711_v7 = vrot.slane %v21554_v2, %v15638_v6  ;;  %v7637_v41 = vcombine.low %v18682_v53, %v18688_v38  ;;  %v7593_v2 = vrot.slane %v7585_v0, %v15659_v22  ;;  %v21561_v0 = vcombine.low %v18283_v24, %v18286_v42 }
 0x327   : > { %21556 = vst [vmem:[#allocation36_spill] sm:$0xff] %v18725_v48  ;;  %v18731_v14 = vrot.slane %v21557_v23, %v15638_v6  ;;  %21559 = vst [vmem:[#allocation18_spill] sm:$0xff] %v18740_v11  ;;  %v18746_v10 = vrot.slane %v21560_v39, %v15638_v6  ;;  %v21563_v52 = vcombine.high %v18283_v24, %v18286_v42 }
 0x328   : > { %v7653_v49 = vcombine.low %v18694_v59, %v18711_v7  ;;  %v7645_v25 = vrot.slane %v7637_v41, %v15659_v22  ;;  %v18755_v23 = vrot.slane %v21561_v0, %v15638_v6  ;;  %v7601_v18 = vcombine.low %v7577_v19, %v7593_v2 }
 0x329   : > { %v7705_v45 = vcombine.low %v18725_v48, %v18731_v14  ;;  %v18761_v5 = vrot.slane %v21563_v52, %v15638_v6  ;;  %v7602_v39 = vcombine.high %v7577_v19, %v7593_v2  ;;  %v7721_v41 = vcombine.low %v18740_v11, %v18746_v10 }
 0x32a   : > { %21562 = vst [vmem:[#allocation90_spill] sm:$0xff] %v18755_v23  ;;  %v7661_v37 = vrot.slane %v7653_v49, %v15659_v22  ;;  %v21565_v0 = vcombine.low %v18289_v9, %v18292_v27  ;;  %v21567_v24 = vcombine.high %v18289_v9, %v18292_v27  ;;  %v21570_v27 = vcombine.high %v18507_v29, %v18510_v56 }
 0x32b   : > { %21564 = vst [vmem:[#allocation88_spill] sm:$0xff] %v18761_v5  ;;  %v7713_v31 = vrot.slane %v7705_v45, %v15659_v22  ;;  %v7773_v19 = vcombine.low %v18755_v23, %v18761_v5  ;;  %v7729_v52 = vrot.slane %v7721_v41, %v15659_v22  ;;  %v21569_v45 = vcombine.low %v18507_v29, %v18510_v56 }
 0x32c   : > { %v18771_v48 = vrot.slane %v21565_v0, %v15638_v6  ;;  %v18777_v42 = vrot.slane %v21567_v24, %v15638_v6  ;;  %v7669_v2 = vcombine.low %v7645_v25, %v7661_v37  ;;  %v7670_v49 = vcombine.high %v7645_v25, %v7661_v37 }
 0x32d   : > { %v18786_v11 = vrot.slane %v21569_v45, %v15638_v6  ;;  %v7781_v0 = vrot.slane %v7773_v19, %v15659_v22  ;;  %v18795_v24 = vrot.slane %v21570_v27, %v15638_v6  ;;  %v21571_v25 = vcombine.low %v18531_v15, %v18534_v47 }
 0x32e   : > { %21566 = vst [vmem:[#allocation92_spill] sm:$0xff] %v18771_v48  ;;  %21568 = vst [vmem:[#allocation91_spill] sm:$0xff] %v18777_v42  ;;  %v7789_v9 = vcombine.low %v18771_v48, %v18777_v42  ;;  %v14617_v41 = vpack.c.bf16 %v7669_v2, %v7601_v18  ;;  %v14649_v45 = vpack.c.bf16 %v7670_v49, %v7602_v39  ;;  %v18839_v2 = vsel %vm9048_vm3, %v18590_v40, -1e+30 }
 0x32f   : > { %v18801_v37 = vrot.slane %v21571_v25, %v15638_v6  ;;  %v7737_v23 = vcombine.low %v7713_v31, %v7729_v52  ;;  %v7738_v5 = vcombine.high %v7713_v31, %v7729_v52  ;;  %v21572_v48 = vcombine.high %v18531_v15, %v18534_v47  ;;  %9119 = vmax.xlane.f32.xlu1 %v18839_v2 }
 0x330   : > { %v7797_v19 = vrot.slane %v7789_v9, %v15659_v22  ;;  %v7841_v29 = vcombine.low %v18786_v11, %v18795_v24  ;;  %v21573_v56 = vcombine.low %v18387_v3, %v18390_v54  ;;  %14618 = vmatprep.subr.bf16.mxu1 %v14617_v41  ;;  %14650 = vmatprep.subr.bf16.mxu0 %v14649_v45  ;;  %v18845_v52 = vsel %vm9048_vm3, %v18592_v20, -1e+30 }
 0x331   : > { %v18808_v42 = vrot.slane %v21572_v48, %v15638_v6  ;;  %v21574_v31 = vcombine.high %v18387_v3, %v18390_v54  ;;  %v21575_v15 = vcombine.low %v18404_v46, %v18425_v12  ;;  %v21576_v48 = vcombine.high %v18404_v46, %v18425_v12  ;;  %14620 = vmatpush3.bf16.msra.mxu1 %v14617_v41 }
 0x332   : > { %v18816_v27 = vrot.slane %v21573_v56, %v15638_v6  ;;  %14652 = vmatpush3.bf16.msra.mxu0 %v14649_v45  ;;  %v7805_v3 = vcombine.low %v7781_v0, %v7797_v19  ;;  %v7806_v54 = vcombine.high %v7781_v0, %v7797_v19  ;;  %v7849_v49 = vrot.slane %v7841_v29, %v15659_v22  ;;  %v18873_v56 = vpop.f32.mrb[22].mxu1 }
 0x333   : > { %v18822_v18 = vrot.slane %v21574_v31, %v15638_v6  ;;  %v18828_v47 = vrot.slane %v21575_v15, %v15638_v6  ;;  %v18834_v39 = vrot.slane %v21576_v48, %v15638_v6  ;;  %v7857_v46 = vcombine.low %v18801_v37, %v18808_v42  ;;  %9151 = vmax.xlane.f32.xlu0 %v18845_v52  ;;  %v18875_v31 = vpop.f32.mrb[38].mxu0  ;;  %v18886_v48 = vpop.f32.mrb[23].mxu1 }
 0x334   : > { %v21577_v0 = vcombine.low %v18629_v55, %v18632_v43  ;;  %v14621_v25 = vpack.c.bf16 %v7805_v3, %v7737_v23  ;;  %v14653_v20 = vpack.c.bf16 %v7806_v54, %v7738_v5  ;;  %v21578_v41 = vcombine.high %v18629_v55, %v18632_v43  ;;  %v18888_v3 = vpop.f32.mrb[39].mxu0 }
 0x335   : > { %v7909_v12 = vcombine.low %v18816_v27, %v18822_v18  ;;  %v7925_v40 = vcombine.low %v18828_v47, %v18834_v39  ;;  %v21579_v19 = vcombine.low %v18660_v63, %v18663_v36  ;;  %v7865_v5 = vrot.slane %v7857_v46, %v15659_v22 }
 0x336   : > { %v18857_v9 = vrot.slane %v21577_v0, %v15638_v6  ;;  %v18864_v45 = vrot.slane %v21578_v41, %v15638_v6  ;;  %v21580_v43 = vcombine.high %v18660_v63, %v18663_v36  ;;  %14622 = vmatprep.subr.bf16.mxu1 %v14621_v25  ;;  %14654 = vmatprep.subr.bf16.mxu0 %v14653_v20 }
 0x337   : > { %v18870_v29 = vrot.slane %v21579_v19, %v15638_v6  ;;  %v7917_v23 = vrot.slane %v7909_v12, %v15659_v22  ;;  %v7933_v55 = vrot.slane %v7925_v40, %v15659_v22  ;;  %v21581_v46 = vcombine.low %v18617_v50, %v18620_v35  ;;  %14624 = vmatpush3.bf16.msra.mxu1 %v14621_v25 }
 0x338   : > { %v18884_v15 = vrot.slane %v21580_v43, %v15638_v6  ;;  %v7977_v54 = vcombine.low %v18857_v9, %v18864_v45  ;;  %v21582_v63 = vcombine.high %v18617_v50, %v18620_v35  ;;  %v18907_v40 = vsel %vm9048_vm3, %v18599_v28, -1e+30  ;;  %14656 = vmatpush3.bf16.msra.mxu0 %v14653_v20 }
 0x339   : > { %v18896_v12 = vrot.slane %v21581_v46, %v15638_v6  ;;  %21583 = vst [vmem:[#allocation85_spill] sm:$0xff] %v18907_v40  ;;  %v7873_v0 = vcombine.low %v7849_v49, %v7865_v5  ;;  %v7941_v41 = vcombine.low %v7917_v23, %v7933_v55  ;;  %v7874_v19 = vcombine.high %v7849_v49, %v7865_v5 }
 0x33a   : > { %v18902_v36 = vrot.slane %v21582_v63, %v15638_v6  ;;  %v18912_v43 = vsel %vm9048_vm3, %v18601_v17, -1e+30  ;;  %v7942_v46 = vcombine.high %v7917_v23, %v7933_v55  ;;  %v7985_v50 = vrot.slane %v7977_v54, %v15659_v22  ;;  %9117 = vmax.xlane.f32.xlu1 %v18907_v40  ;;  %v21586_v63 = vld [vmem:[#allocation55_spill] sm:$0xff] }
 0x33b   : > { %v7993_v35 = vcombine.low %v18870_v29, %v18884_v15  ;;  %v21584_v28 = vcombine.low %v18623_v60, %v18626_v8  ;;  %v14625_v49 = vpack.c.bf16 %v7941_v41, %v7873_v0  ;;  %v21585_v17 = vcombine.high %v18623_v60, %v18626_v8  ;;  %9149 = vmax.xlane.f32.xlu0 %v18912_v43  ;;  %v21587_v41 = vld [vmem:[#allocation16_spill] sm:$0xff] }
 0x33c   : > { %v8045_v5 = vcombine.low %v18896_v12, %v18902_v36  ;;  %v7026_v23 = vcombine.high %v18117_v51, %v18123_v57  ;;  %v14657_v55 = vpack.c.bf16 %v7942_v46, %v7874_v19  ;;  %v7042_v0 = vcombine.high %v21586_v63, %v18136_v32  ;;  %v21589_v51 = vld [vmem:[#allocation71_spill] sm:$0xff]  ;;  %v21590_v57 = vld [vmem:[#allocation69_spill] sm:$0xff] }
 0x33d   : > { %v18921_v25 = vrot.slane %v21584_v28, %v15638_v6  ;;  %v18928_v20 = vrot.slane %v21585_v17, %v15638_v6  ;;  %v8001_v54 = vrot.slane %v7993_v35, %v15659_v22  ;;  %v21588_v28 = vld [vmem:[#allocation54_spill] sm:$0xff]  ;;  %14626 = vmatprep.subr.bf16.mxu1 %v14625_v49  ;;  %v7110_v6 = vcombine.high %v21590_v57, %v21589_v51  ;;  %v21595_v57 = vld [vmem:[#allocation17_spill] sm:$0xff] }
 0x33e   : > { %v7094_v40 = vcombine.high %v21588_v28, %v21587_v41  ;;  %v8053_v60 = vrot.slane %v8045_v5, %v15659_v22  ;;  %v7040_v17 = vrot.slane %v7026_v23, %v15659_v22  ;;  %14658 = vmatprep.subr.bf16.mxu0 %v14657_v55  ;;  %14628 = vmatpush3.bf16.msra.mxu1 %v14625_v49  ;;  %v18950_v35 = vsel %vm9048_vm3, %v18697_v26, -1e+30 }
 0x33f   : > { %v8061_v8 = vcombine.low %v18921_v25, %v18928_v20  ;;  %v8009_v19 = vcombine.low %v7985_v50, %v8001_v54  ;;  %v8010_v46 = vcombine.high %v7985_v50, %v8001_v54  ;;  %v7056_v32 = vrot.slane %v7042_v0, %v15659_v22  ;;  %14660 = vmatpush3.bf16.msra.mxu0 %v14657_v55 }
 0x340   : > { %v7108_v63 = vrot.slane %v7094_v40, %v15659_v22  ;;  %v7124_v23 = vrot.slane %v7110_v6, %v15659_v22  ;;  %v18958_v49 = vsel %vm9048_vm3, %v18699_v16, -1e+30  ;;  %9123 = vmax.xlane.f32.xlu1 %v18950_v35  ;;  %v18965_v40 = vsel %vm9048_vm3, %v18713_v21, -1e+30  ;;  %v21594_v21 = vld [vmem:[#allocation15_spill] sm:$0xff] }
 0x341   : > { %v8069_v5 = vrot.slane %v8061_v8, %v15659_v22  ;;  %v7059_v50 = vcombine.low %v7040_v17, %v7056_v32  ;;  %v7060_v54 = vcombine.high %v7040_v17, %v7056_v32  ;;  %9155 = vmax.xlane.f32.xlu0 %v18958_v49  ;;  %v18970_v16 = vsel %vm9048_vm3, %v18715_v34, -1e+30  ;;  %v21593_v17 = vld [vmem:[#allocation35_spill] sm:$0xff]  ;;  %v21597_v34 = vld [vmem:[#allocation78_spill] sm:$0xff]  ;;  %v21598_v32 = vld [vmem:[#allocation76_spill] sm:$0xff] }
 0x342   : > { %v7127_v55 = vcombine.low %v7108_v63, %v7124_v23  ;;  %v7128_v41 = vcombine.high %v7108_v63, %v7124_v23  ;;  %v7298_v51 = vcombine.high %v21594_v21, %v21593_v17  ;;  %v18989_v63 = vsel %vm9048_vm3, %v18873_v56, -1e+30 }
 0x343   : > { %v8077_v26 = vcombine.low %v8053_v60, %v8069_v5  ;;  %v8078_v0 = vcombine.high %v8053_v60, %v8069_v5  ;;  %v7366_v5 = vcombine.high %v21598_v32, %v21597_v34  ;;  %v18994_v23 = vsel %vm9048_vm3, %v18875_v31, -1e+30 }
 0x344   : > { %9121 = vmax.xlane.f32.xlu1 %v18965_v40  ;;  %v18973_v8 = vpack.c.bf16 %v7127_v55, %v7059_v50  ;;  %v18976_v60 = vpack.c.bf16 %v7128_v41, %v7060_v54  ;;  %v7312_v50 = vrot.slane %v7298_v51, %v15659_v22  ;;  %v21600_v55 = vld [vmem:[#allocation77_spill] sm:$0xff]  ;;  %v19006_v56 = vsel %vm9048_vm3, %v18886_v48, -1e+30 }
 0x345   : > { %v14629_v6 = vpack.c.bf16 %v8077_v26, %v8009_v19  ;;  %v14661_v28 = vpack.c.bf16 %v8078_v0, %v8010_v46  ;;  %9153 = vmax.xlane.f32.xlu0 %v18970_v16  ;;  %v21596_v19 = vld [vmem:[#allocation70_spill] sm:$0xff]  ;;  %v7380_v26 = vrot.slane %v7366_v5, %v15659_v22  ;;  %v21599_v0 = vld [vmem:[#allocation73_spill] sm:$0xff]  ;;  %v7434_v21 = vcombine.high %v18491_v1, %v18504_v30 }
 0x346   : > { %21591 = vst [vmem:[#allocation9_spill] sm:$0xff] %v18973_v8  ;;  %21592 = vst [vmem:[#allocation87_spill] sm:$0xff] %v18976_v60  ;;  %v7314_v46 = vcombine.high %v21596_v19, %v21595_v57  ;;  %v7382_v41 = vcombine.high %v21600_v55, %v21599_v0  ;;  %v7450_v51 = vcombine.high %v18516_v61, %v18522_v44  ;;  %v21601_v57 = vld [vmem:[#allocation51_spill] sm:$0xff]  ;;  %v21602_v19 = vld [vmem:[#allocation74_spill] sm:$0xff]  ;;  %v19018_v34 = vsel %vm9048_vm3, %v18888_v3, -1e+30 }
 0x347   : > { %14630 = vmatprep.subr.bf16.mxu1 %v14629_v6  ;;  %14662 = vmatprep.subr.bf16.mxu0 %v14661_v28  ;;  %v7448_v44 = vrot.slane %v7434_v21, %v15659_v22  ;;  %v21603_v55 = vld [vmem:[#allocation80_spill] sm:$0xff] }
 0x348   : > { %14632 = vmatpush3.bf16.msra.mxu1 %v14629_v6  ;;  %14664 = vmatpush3.bf16.msra.mxu0 %v14661_v28  ;;  %v7328_v54 = vrot.slane %v7314_v46, %v15659_v22  ;;  %v13951_v6 = vpop.f32.mrb[24].mxu1  ;;  %v14007_v28 = vpop.f32.mrb[40].mxu0  ;;  %v7396_v17 = vrot.slane %v7382_v41, %v15659_v22  ;;  %v7502_v46 = vcombine.high %v21602_v19, %v21601_v57  ;;  %v21604_v41 = vld [vmem:[#allocation81_spill] sm:$0xff] }
 0x349   : > { %14666 = vmatprep.subr.bf16.mxu1 %v18973_v8  ;;  %14698 = vmatprep.subr.bf16.mxu0 %v18976_v60  ;;  %v19022_v48 = vsel %vm9048_vm3, %v13951_v6, -1e+30  ;;  %v8284_v32 = vpop.f32.mrb[25].mxu1  ;;  %v8525_v5 = vpop.f32.mrb[41].mxu0  ;;  %v19026_v1 = vsel %vm9048_vm3, %v14007_v28, -1e+30  ;;  %v7464_v3 = vrot.slane %v7450_v51, %v15659_v22  ;;  %v7518_v6 = vcombine.high %v21604_v41, %v21603_v55 }
 0x34a   : > { %9127 = vmax.xlane.f32.xlu1 %v18989_v63  ;;  %9159 = vmax.xlane.f32.xlu0 %v18994_v23  ;;  %v7332_v31 = vcombine.high %v7312_v50, %v7328_v54  ;;  %v19031_v30 = vsel %vm9048_vm3, %v8284_v32, -1e+30  ;;  %v7400_v61 = vcombine.high %v7380_v26, %v7396_v17  ;;  %v7516_v0 = vrot.slane %v7502_v46, %v15659_v22  ;;  %v21610_v41 = vld [vmem:[#allocation88_spill] sm:$0xff] }
 0x34b   : > { %v7331_v28 = vcombine.low %v7312_v50, %v7328_v54  ;;  %v7399_v19 = vcombine.low %v7380_v26, %v7396_v17  ;;  %v7570_v32 = vcombine.high %v18585_v4, %v18610_v58  ;;  %v7586_v8 = vcombine.high %v18652_v62, %v18669_v13  ;;  %v21607_v26 = vld [vmem:[#allocation36_spill] sm:$0xff]  ;;  %v21608_v17 = vld [vmem:[#allocation18_spill] sm:$0xff] }
 0x34c   : > { %v19039_v57 = vpack.c.bf16 %v7400_v61, %v7332_v31  ;;  %v7468_v60 = vcombine.high %v7448_v44, %v7464_v3  ;;  %v7532_v21 = vrot.slane %v7518_v6, %v15659_v22  ;;  %v7638_v51 = vcombine.high %v18682_v53, %v18688_v38  ;;  %v21611_v6 = vld [vmem:[#allocation90_spill] sm:$0xff] }
 0x34d   : > { %v7654_v46 = vcombine.high %v18694_v59, %v18711_v7  ;;  %v19052_v50 = vsel %vm9048_vm3, %v8525_v5, -1e+30  ;;  %v19056_v58 = vpack.c.bf16 %v7399_v19, %v7331_v28  ;;  %v7584_v4 = vrot.slane %v7570_v32, %v15659_v22  ;;  %v21612_v28 = vld [vmem:[#allocation91_spill] sm:$0xff]  ;;  %v21613_v19 = vld [vmem:[#allocation92_spill] sm:$0xff] }
 0x34e   : > { %9125 = vmax.xlane.f32.xlu1 %v19006_v56  ;;  %9157 = vmax.xlane.f32.xlu0 %v19018_v34  ;;  %21605 = vst [vmem:[#allocation86_spill] sm:$0xff] %v19039_v57  ;;  %v7600_v62 = vrot.slane %v7586_v8, %v15659_v22  ;;  %v7536_v13 = vcombine.high %v7516_v0, %v7532_v21  ;;  %v21629_v57 = vld [vmem:[#allocation72_spill] sm:$0xff] }
 0x34f   : > { %21606 = vst [vmem:[#allocation19_spill] sm:$0xff] %v19056_v58  ;;  %v7652_v53 = vrot.slane %v7638_v51, %v15659_v22  ;;  %v7668_v38 = vrot.slane %v7654_v46, %v15659_v22  ;;  %v7467_v59 = vcombine.low %v7448_v44, %v7464_v3  ;;  %v7535_v54 = vcombine.low %v7516_v0, %v7532_v21 }
 0x350   : > { %v7604_v7 = vcombine.high %v7584_v4, %v7600_v62  ;;  %v7706_v31 = vcombine.high %v21607_v26, %v18731_v14  ;;  %v7722_v5 = vcombine.high %v21608_v17, %v18746_v10  ;;  %v19066_v61 = vpack.c.bf16 %v7536_v13, %v7468_v60 }
 0x351   : > { %v7672_v55 = vcombine.high %v7652_v53, %v7668_v38  ;;  %v7774_v8 = vcombine.high %v21611_v6, %v21610_v41  ;;  %v7790_v32 = vcombine.high %v21613_v19, %v21612_v28  ;;  %v19074_v44 = vpack.c.bf16 %v7535_v54, %v7467_v59 }
 0x352   : > { %9131 = vmax.xlane.f32.xlu1 %v19022_v48  ;;  %9163 = vmax.xlane.f32.xlu0 %v19026_v1  ;;  %21609 = vst [vmem:[#allocation42_spill] sm:$0xff] %v19066_v61  ;;  %v7720_v14 = vrot.slane %v7706_v31, %v15659_v22  ;;  %v7736_v3 = vrot.slane %v7722_v5, %v15659_v22 }
 0x353   : > { %21614 = vst [vmem:[#allocation41_spill] sm:$0xff] %v19074_v44  ;;  %v19078_v10 = vpack.c.bf16 %v7672_v55, %v7604_v7  ;;  %v7788_v60 = vrot.slane %v7774_v8, %v15659_v22  ;;  %v7804_v0 = vrot.slane %v7790_v32, %v15659_v22  ;;  %v7603_v21 = vcombine.low %v7584_v4, %v7600_v62 }
 0x354   : > { %v7740_v51 = vcombine.high %v7720_v14, %v7736_v3  ;;  %v7671_v46 = vcombine.low %v7652_v53, %v7668_v38  ;;  %v7842_v13 = vcombine.high %v18786_v11, %v18795_v24  ;;  %v7858_v59 = vcombine.high %v18801_v37, %v18808_v42 }
 0x355   : > { %21615 = vst [vmem:[#allocation45_spill] sm:$0xff] %v19078_v10  ;;  %v7808_v54 = vcombine.high %v7788_v60, %v7804_v0  ;;  %v7910_v26 = vcombine.high %v18816_v27, %v18822_v18  ;;  %v7926_v7 = vcombine.high %v18828_v47, %v18834_v39  ;;  %v7739_v31 = vcombine.low %v7720_v14, %v7736_v3 }
 0x356   : > { %9129 = vmax.xlane.f32.xlu1 %v19031_v30  ;;  %9161 = vmax.xlane.f32.xlu0 %v19052_v50  ;;  %v19090_v17 = vpack.c.bf16 %v7671_v46, %v7603_v21  ;;  %v7856_v4 = vrot.slane %v7842_v13, %v15659_v22  ;;  %v7872_v62 = vrot.slane %v7858_v59, %v15659_v22 }
 0x357   : > { %v7807_v53 = vcombine.low %v7788_v60, %v7804_v0  ;;  %v19094_v38 = vpack.c.bf16 %v7808_v54, %v7740_v51  ;;  %v7924_v11 = vrot.slane %v7910_v26, %v15659_v22  ;;  %v7940_v42 = vrot.slane %v7926_v7, %v15659_v22 }
 0x358   : > { %21616 = vst [vmem:[#allocation44_spill] sm:$0xff] %v19090_v17  ;;  %v7978_v24 = vcombine.high %v18857_v9, %v18864_v45  ;;  %v7876_v37 = vcombine.high %v7856_v4, %v7872_v62  ;;  %v7994_v18 = vcombine.high %v18870_v29, %v18884_v15  ;;  %v8046_v47 = vcombine.high %v18896_v12, %v18902_v36 }
 0x359   : > { %21617 = vst [vmem:[#allocation34_spill] sm:$0xff] %v19094_v38  ;;  %v19100_v27 = vpack.c.bf16 %v7807_v53, %v7739_v31  ;;  %v7944_v39 = vcombine.high %v7924_v11, %v7940_v42  ;;  %v8062_v55 = vcombine.high %v18921_v25, %v18928_v20  ;;  %v7875_v41 = vcombine.low %v7856_v4, %v7872_v62  ;;  %v13954_v36 = vpop.f32.mrb[26].mxu1  ;;  %v14010_v19 = vpop.f32.mrb[42].mxu0 }
 0x35a   : > { %v7992_v5 = vrot.slane %v7978_v24, %v15659_v22  ;;  %v8008_v6 = vrot.slane %v7994_v18, %v15659_v22  ;;  %v8060_v9 = vrot.slane %v8046_v47, %v15659_v22  ;;  %v7943_v45 = vcombine.low %v7924_v11, %v7940_v42  ;;  %v8294_v3 = vpop.f32.mrb[27].mxu1  ;;  %v8535_v60 = vpop.f32.mrb[43].mxu0 }
 0x35b   : > { %21618 = vst [vmem:[#allocation32_spill] sm:$0xff] %v19100_v27  ;;  %v19111_v8 = vpack.c.bf16 %v7944_v39, %v7876_v37  ;;  %v8076_v28 = vrot.slane %v8062_v55, %v15659_v22  ;;  %v19118_v25 = vsel %vm9048_vm3, %v13954_v36, -1e+30  ;;  %v19122_v20 = vsel %vm9048_vm3, %v14010_v19, -1e+30 }
 0x35c   : > { %v8012_v29 = vcombine.high %v7992_v5, %v8008_v6  ;;  %v19114_v15 = vpack.c.bf16 %v7943_v45, %v7875_v41  ;;  %v8011_v12 = vcombine.low %v7992_v5, %v8008_v6  ;;  %9135 = vmax.xlane.f32.xlu1 %v19118_v25  ;;  %9167 = vmax.xlane.f32.xlu0 %v19122_v20  ;;  %v19132_v51 = vsel %vm9048_vm3, %v8294_v3, -1e+30 }
 0x35d   : > { %21619 = vst [vmem:[#allocation20_spill] sm:$0xff] %v19111_v8  ;;  %v8080_v32 = vcombine.high %v8060_v9, %v8076_v28  ;;  %v8079_v14 = vcombine.low %v8060_v9, %v8076_v28  ;;  %v19136_v46 = vsel %vm9048_vm3, %v8535_v60, -1e+30 }
 0x35e   : > { %21620 = vst [vmem:[#allocation30_spill] sm:$0xff] %v19114_v15 }
 0x35f   : > { %v19126_v0 = vpack.c.bf16 %v8080_v32, %v8012_v29  ;;  %v19128_v21 = vpack.c.bf16 %v8079_v14, %v8011_v12 }
 0x360   : > { %9133 = vmax.xlane.f32.xlu1 %v19132_v51  ;;  %9165 = vmax.xlane.f32.xlu0 %v19136_v46 }
 0x361   : > { %21621 = vst [vmem:[#allocation27_spill] sm:$0xff] %v19126_v0  ;;  %21622 = vst [vmem:[#allocation23_spill] sm:$0xff] %v19128_v21 }
 0x370   : > { %v13957_v13 = vpop.f32.mrb[28].mxu1  ;;  %v14013_v59 = vpop.f32.mrb[44].mxu0 }
 0x371   : > { %v19142_v54 = vsel %vm9048_vm3, %v13957_v13, -1e+30  ;;  %v19146_v26 = vsel %vm9048_vm3, %v14013_v59, -1e+30  ;;  %v8304_v7 = vpop.f32.mrb[29].mxu1  ;;  %v8545_v31 = vpop.f32.mrb[45].mxu0 }
 0x372   : > { %9139 = vmax.xlane.f32.xlu1 %v19142_v54  ;;  %9171 = vmax.xlane.f32.xlu0 %v19146_v26  ;;  %v19152_v4 = vsel %vm9048_vm3, %v8304_v7, -1e+30  ;;  %v19156_v62 = vsel %vm9048_vm3, %v8545_v31, -1e+30 }
 0x376   : > { %9137 = vmax.xlane.f32.xlu1 %v19152_v4  ;;  %9169 = vmax.xlane.f32.xlu0 %v19156_v62 }
 0x37a   : > { %v13960_v53 = vpop.f32.mrb[30].mxu1  ;;  %v14016_v11 = vpop.f32.mrb[46].mxu0 }
 0x37b   : > { %v19162_v42 = vsel %vm9048_vm3, %v13960_v53, -1e+30  ;;  %v19166_v24 = vsel %vm9048_vm3, %v14016_v11, -1e+30  ;;  %v8314_v37 = vpop.f32.mrb[31].mxu1  ;;  %v8555_v18 = vpop.f32.mrb[47].mxu0 }
 0x37c   : > { %9175 = vmax.xlane.f32.xlu0 %v19166_v24  ;;  %9143 = vmax.xlane.f32.xlu1 %v19162_v42  ;;  %v19172_v5 = vsel %vm9048_vm3, %v8314_v37, -1e+30  ;;  %v19176_v55 = vsel %vm9048_vm3, %v8555_v18, -1e+30 }
 0x37e   : > { %v14051_v47 = vpop.f32.mrb[32].mxu1  ;;  %v14107_v39 = vpop.f32.mrb[48].mxu0 }
 0x37f   : > { %v8726_v41 = vpop.f32.mrb[33].mxu1  ;;  %v8967_v6 = vpop.f32.mrb[49].mxu0  ;;  %v19182_v9 = vsel %vm9048_vm3, %v14051_v47, -1e+30  ;;  %v19186_v45 = vsel %vm9048_vm3, %v14107_v39, -1e+30 }
 0x380   : > { %9173 = vmax.xlane.f32.xlu0 %v19176_v55  ;;  %9141 = vmax.xlane.f32.xlu1 %v19172_v5  ;;  %v19192_v19 = vsel %vm9048_vm3, %v8726_v41, -1e+30  ;;  %v19196_v32 = vsel %vm9048_vm3, %v8967_v6, -1e+30 }
 0x383   : > { %v14054_v28 = vpop.f32.mrb[34].mxu1  ;;  %v14110_v29 = vpop.f32.mrb[50].mxu0 }
 0x384   : > { %9211 = vmax.xlane.f32.xlu0 %v19186_v45  ;;  %9179 = vmax.xlane.f32.xlu1 %v19182_v9  ;;  %v8736_v12 = vpop.f32.mrb[35].mxu1  ;;  %v8977_v36 = vpop.f32.mrb[51].mxu0  ;;  %v19202_v14 = vsel %vm9048_vm3, %v14054_v28, -1e+30  ;;  %v19206_v3 = vsel %vm9048_vm3, %v14110_v29, -1e+30 }
 0x385   : > { %v19212_v59 = vsel %vm9048_vm3, %v8736_v12, -1e+30  ;;  %v19216_v7 = vsel %vm9048_vm3, %v8977_v36, -1e+30 }
 0x388   : > { %9209 = vmax.xlane.f32.xlu0 %v19196_v32  ;;  %9177 = vmax.xlane.f32.xlu1 %v19192_v19 }
 0x38c   : > { %9215 = vmax.xlane.f32.xlu0 %v19206_v3  ;;  %9183 = vmax.xlane.f32.xlu1 %v19202_v14 }
 0x38d   : > { %v14057_v60 = vpop.f32.mrb[36].mxu1  ;;  %v14113_v13 = vpop.f32.mrb[52].mxu0 }
 0x38e   : > { %v8746_v31 = vpop.f32.mrb[37].mxu1  ;;  %v8987_v53 = vpop.f32.mrb[53].mxu0  ;;  %v19222_v11 = vsel %vm9048_vm3, %v14057_v60, -1e+30  ;;  %v19226_v37 = vsel %vm9048_vm3, %v14113_v13, -1e+30 }
 0x38f   : > { %v19232_v6 = vsel %vm9048_vm3, %v8746_v31, -1e+30  ;;  %v19236_v28 = vsel %vm9048_vm3, %v8987_v53, -1e+30 }
 0x390   : > { %9213 = vmax.xlane.f32.xlu0 %v19216_v7  ;;  %9181 = vmax.xlane.f32.xlu1 %v19212_v59 }
 0x391   : > { %v14060_v18 = vpop.f32.mrb[38].mxu1  ;;  %v14116_v47 = vpop.f32.mrb[54].mxu0 }
 0x392   : > { %v8756_v39 = vpop.f32.mrb[39].mxu1  ;;  %v8997_v41 = vpop.f32.mrb[55].mxu0  ;;  %v19242_v13 = vsel %vm9048_vm3, %v14060_v18, -1e+30  ;;  %v19246_v31 = vsel %vm9048_vm3, %v14116_v47, -1e+30 }
 0x393   : > { %v19252_v53 = vsel %vm9048_vm3, %v8756_v39, -1e+30  ;;  %v19256_v21 = vsel %vm9048_vm3, %v8997_v41, -1e+30 }
 0x394   : > { %9219 = vmax.xlane.f32.xlu0 %v19226_v37  ;;  %9187 = vmax.xlane.f32.xlu1 %v19222_v11 }
 0x398   : > { %9217 = vmax.xlane.f32.xlu0 %v19236_v28  ;;  %9185 = vmax.xlane.f32.xlu1 %v19232_v6  ;;  %v14063_v29 = vpop.f32.mrb[40].mxu1  ;;  %v14119_v12 = vpop.f32.mrb[56].mxu0 }
 0x399   : > { %v8766_v36 = vpop.f32.mrb[41].mxu1  ;;  %v9007_v60 = vpop.f32.mrb[57].mxu0  ;;  %v19262_v18 = vsel %vm9048_vm3, %v14063_v29, -1e+30  ;;  %v19266_v47 = vsel %vm9048_vm3, %v14119_v12, -1e+30 }
 0x39a   : > { %21623 = vst [vmem:[#allocation24_spill] sm:$0xff] %v19262_v18  ;;  %21624 = vst [vmem:[#allocation25_spill] sm:$0xff] %v19266_v47  ;;  %v19272_v41 = vsel %vm9048_vm3, %v8766_v36, -1e+30  ;;  %v19276_v29 = vsel %vm9048_vm3, %v9007_v60, -1e+30 }
 0x39b   : > { %21625 = vst [vmem:[#allocation26_spill] sm:$0xff] %v19272_v41  ;;  %21626 = vst [vmem:[#allocation14_spill] sm:$0xff] %v19276_v29 }
 0x39c   : > { %9223 = vmax.xlane.f32.xlu0 %v19246_v31  ;;  %9191 = vmax.xlane.f32.xlu1 %v19242_v13 }
 0x39f   : > { %v14066_v15 = vpop.f32.mrb[42].mxu1  ;;  %v14122_v0 = vpop.f32.mrb[58].mxu0 }
 0x3a0   : > { %9221 = vmax.xlane.f32.xlu0 %v19256_v21  ;;  %9189 = vmax.xlane.f32.xlu1 %v19252_v53  ;;  %v8776_v39 = vpop.f32.mrb[43].mxu1  ;;  %v9017_v27 = vpop.f32.mrb[59].mxu0  ;;  %v19282_v10 = vsel %vm9048_vm3, %v14066_v15, -1e+30  ;;  %v19286_v36 = vsel %vm9048_vm3, %v14122_v0, -1e+30 }
 0x3a1   : > { %v9116_v8 = vpop.xlane.xlu0 %9115  ;;  %21627 = vst [vmem:[#allocation10_spill] sm:$0xff] %v19282_v10  ;;  %21628 = vst [vmem:[#allocation31_spill] sm:$0xff] %v19286_v36  ;;  %v19297_v15 = vsel %vm9048_vm3, %v9017_v27, -1e+30  ;;  %v21633_v27 = vld [vmem:[#allocation75_spill] sm:$0xff] }
 0x3a2   : > { %v9242_v22 = vsub.f32 %v21629_v57, %v9116_v8  ;;  %21631 = vst [vmem:[#allocation21_spill] sm:$0xff] %v19297_v15 }
 0x3a4   : > { %9227 = vmax.xlane.f32.xlu0 %v19266_v47  ;;  %9195 = vmax.xlane.f32.xlu1 %v19262_v18  ;;  %v14069_v17 = vpop.f32.mrb[44].mxu1  ;;  %v14125_v12 = vpop.f32.mrb[60].mxu0  ;;  %v21632_v47 = vld [vmem:[#allocation82_spill] sm:$0xff] }
 0x3a5   : > { %v8786_v38 = vpop.f32.mrb[45].mxu1  ;;  %v9027_v44 = vpop.f32.mrb[61].mxu0  ;;  %v19304_v57 = vsel %vm9048_vm3, %v14069_v17, -1e+30  ;;  %v19308_v8 = vsel %vm9048_vm3, %v14125_v12, -1e+30 }
 0x3a6   : > { %v9148_v60 = vpop.xlane.xlu0 %9147  ;;  %v19319_v17 = vsel %vm9048_vm3, %v9027_v44, -1e+30  ;;  %v21634_v12 = vld [vmem:[#allocation83_spill] sm:$0xff] }
 0x3a8   : > { %9225 = vmax.xlane.f32.xlu0 %v19276_v29  ;;  %9193 = vmax.xlane.f32.xlu1 %v19272_v41  ;;  %v19293_v29 = vsel %vm9048_vm3, %v8776_v39, -1e+30  ;;  %v9258_v39 = vsub.f32 %v21633_v27, %v9148_v60 }
 0x3a9   : > { %v14072_v58 = vpop.f32.mrb[46].mxu1  ;;  %21630 = vst [vmem:[#allocation33_spill] sm:$0xff] %v19293_v29 }
 0x3aa   : > { %v8796_v41 = vpop.f32.mrb[47].mxu1 }
 0x3ab   : > { %v14128_v61 = vpop.f32.mrb[62].mxu0 }
 0x3ac   : > { %9199 = vmax.xlane.f32.xlu1 %v19282_v10  ;;  %9231 = vmax.xlane.f32.xlu0 %v19286_v36  ;;  %v9037_v0 = vpop.f32.mrb[63].mxu0  ;;  %v9307_v10 = vmul.f32 1.442695, %v9242_v22  ;;  %v19315_v22 = vsel %vm9048_vm3, %v8786_v38, -1e+30 }
 0x3ad   : > { %v19330_v38 = vsel %vm9048_vm3, %v14128_v61, -1e+30  ;;  %v19340_v60 = vsel %vm9048_vm3, %v9037_v0, -1e+30 }
 0x3ae   : > { %14801 = vpow2.f32 %v9307_v10  ;;  %21635 = vst [vmem:[#allocation43_spill] sm:$0xff] %v19330_v38 }
 0x3af   : > { %v9146_v36 = vpop.xlane.xlu1 %9145 }
 0x3b0   : > { %9197 = vmax.xlane.f32.xlu1 %v19293_v29  ;;  %9229 = vmax.xlane.f32.xlu0 %v19297_v15  ;;  %v9257_v18 = vsub.f32 %v21632_v47, %v9146_v36  ;;  %v9114_v15 = vpop.xlane.xlu0 %9113  ;;  %v9339_v47 = vmul.f32 1.442695, %v9258_v39 }
 0x3b1   : > { %v9241_v36 = vsub.f32 %v21634_v12, %v9114_v15  ;;  %v21637_v12 = vld [vmem:[#allocation85_spill] sm:$0xff] }
 0x3b2   : > { %v9337_v29 = vmul.f32 1.442695, %v9257_v18  ;;  %v19326_v18 = vsel %vm9048_vm3, %v14072_v58, -1e+30 }
 0x3b3   : > { %v9305_v10 = vmul.f32 1.442695, %v9241_v36 }
 0x3b4   : > { %9203 = vmax.xlane.f32.xlu1 %v19304_v57  ;;  %9235 = vmax.xlane.f32.xlu0 %v19308_v8  ;;  %14803 = vpow2.f32 %v9337_v29  ;;  %v19336_v29 = vsel %vm9048_vm3, %v8796_v41, -1e+30 }
 0x3b5   : > { %14805 = vpow2.f32 %v9339_v47 }
 0x3b6   : > { %14807 = vpow2.f32 %v9305_v10 }
 0x3b8   : > { %9201 = vmax.xlane.f32.xlu1 %v19315_v22  ;;  %9233 = vmax.xlane.f32.xlu0 %v19319_v17  ;;  %v19343_v15 = vpop.eup %14801 }
 0x3bc   : > { %9207 = vmax.xlane.f32.xlu1 %v19326_v18  ;;  %9239 = vmax.xlane.f32.xlu0 %v19330_v38  ;;  %v9120_v44 = vpop.xlane.xlu1 %9119 }
 0x3bd   : > { %v9244_v58 = vsub.f32 %v18839_v2, %v9120_v44 }
 0x3be   : > { %v19348_v39 = vpop.eup %14803 }
 0x3bf   : > { %21636 = vst [vmem:[#allocation22_spill] sm:$0xff] %v19348_v39  ;;  %v9311_v41 = vmul.f32 1.442695, %v9244_v58  ;;  %v19353_v36 = vpop.eup %14805 }
 0x3c0   : > { %v9152_v61 = vpop.xlane.xlu0 %9151  ;;  %9205 = vmax.xlane.f32.xlu1 %v19336_v29  ;;  %9237 = vmax.xlane.f32.xlu0 %v19340_v60  ;;  %v19357_v58 = vpop.eup %14807 }
 0x3c1   : > { %v9260_v27 = vsub.f32 %v18845_v52, %v9152_v61  ;;  %14809 = vpow2.f32 %v9311_v41 }
 0x3c3   : > { %v9343_v0 = vmul.f32 1.442695, %v9260_v27 }
 0x3c4   : > { %9435 = vadd.xlane.f32.xlu0 %v19343_v15  ;;  %9465 = vadd.xlane.f32.xlu1 %v19348_v39 }
 0x3c5   : > { %14811 = vpow2.f32 %v9343_v0 }
 0x3c7   : > { %v9118_v47 = vpop.xlane.xlu1 %9117 }
 0x3c8   : > { %v9243_v33 = vsub.f32 %v21637_v12, %v9118_v47  ;;  %v9150_v2 = vpop.xlane.xlu0 %9149  ;;  %9467 = vadd.xlane.f32.xlu0 %v19353_v36 }
 0x3c9   : > { %v9259_v10 = vsub.f32 %v18912_v43, %v9150_v2 }
 0x3ca   : > { %v9309_v38 = vmul.f32 1.442695, %v9243_v33 }
 0x3cb   : > { %v9341_v44 = vmul.f32 1.442695, %v9259_v10  ;;  %v19364_v2 = vpop.eup %14809 }
 0x3cc   : > { %9433 = vadd.xlane.f32.xlu0 %v19357_v58 }
 0x3cd   : > { %v9124_v52 = vpop.xlane.xlu1 %9123  ;;  %14813 = vpow2.f32 %v9341_v44 }
 0x3ce   : > { %v9246_v61 = vsub.f32 %v18950_v35, %v9124_v52  ;;  %v9156_v27 = vpop.xlane.xlu0 %9155  ;;  %14815 = vpow2.f32 %v9309_v38 }
 0x3cf   : > { %v9262_v47 = vsub.f32 %v18958_v49, %v9156_v27  ;;  %v19367_v44 = vpop.eup %14811 }
 0x3d0   : > { %v9315_v12 = vmul.f32 1.442695, %v9246_v61  ;;  %9439 = vadd.xlane.f32.xlu0 %v19364_v2 }
 0x3d1   : > { %v9122_v39 = vpop.xlane.xlu1 %9121  ;;  %v9347_v41 = vmul.f32 1.442695, %v9262_v47 }
 0x3d2   : > { %14817 = vpow2.f32 %v9315_v12  ;;  %v9245_v43 = vsub.f32 %v18965_v40, %v9122_v39  ;;  %v9154_v33 = vpop.xlane.xlu0 %9153 }
 0x3d3   : > { %v9261_v0 = vsub.f32 %v18970_v16, %v9154_v33  ;;  %14819 = vpow2.f32 %v9347_v41 }
 0x3d4   : > { %v9313_v10 = vmul.f32 1.442695, %v9245_v43  ;;  %9471 = vadd.xlane.f32.xlu0 %v19367_v44 }
 0x3d5   : > { %v9345_v49 = vmul.f32 1.442695, %v9261_v0 }
 0x3d6   : > { %14821 = vpow2.f32 %v9313_v10 }
 0x3d7   : > { %v9128_v35 = vpop.xlane.xlu1 %9127  ;;  %v9160_v38 = vpop.xlane.xlu0 %9159  ;;  %14823 = vpow2.f32 %v9345_v49 }
 0x3d8   : > { %v9248_v52 = vsub.f32 %v18989_v63, %v9128_v35  ;;  %v9264_v61 = vsub.f32 %v18994_v23, %v9160_v38  ;;  %v19371_v40 = vpop.eup %14813 }
 0x3d9   : > { %9469 = vadd.xlane.f32.xlu1 %v19371_v40  ;;  %v19375_v12 = vpop.eup %14815 }
 0x3da   : > { %v9319_v39 = vmul.f32 1.442695, %v9248_v52  ;;  %v9351_v27 = vmul.f32 1.442695, %v9264_v61  ;;  %9437 = vadd.xlane.f32.xlu0 %v19375_v12 }
 0x3db   : > { %v9126_v16 = vpop.xlane.xlu1 %9125  ;;  %v9158_v47 = vpop.xlane.xlu0 %9157 }
 0x3dc   : > { %14825 = vpow2.f32 %v9319_v39  ;;  %v9247_v41 = vsub.f32 %v19006_v56, %v9126_v16  ;;  %v9263_v63 = vsub.f32 %v19018_v34, %v9158_v47  ;;  %v19379_v43 = vpop.eup %14817 }
 0x3dd   : > { %9443 = vadd.xlane.f32.xlu1 %v19379_v43  ;;  %14827 = vpow2.f32 %v9351_v27  ;;  %v19383_v35 = vpop.eup %14819 }
 0x3de   : > { %v9317_v23 = vmul.f32 1.442695, %v9247_v41  ;;  %v9349_v0 = vmul.f32 1.442695, %v9263_v63  ;;  %9475 = vadd.xlane.f32.xlu0 %v19383_v35 }
 0x3df   : > { %v9132_v33 = vpop.xlane.xlu1 %9131  ;;  %v9164_v10 = vpop.xlane.xlu0 %9163 }
 0x3e0   : > { %14829 = vpow2.f32 %v9317_v23  ;;  %v9250_v49 = vsub.f32 %v19022_v48, %v9132_v33  ;;  %v9266_v56 = vsub.f32 %v19026_v1, %v9164_v10  ;;  %v19387_v38 = vpop.eup %14821 }
 0x3e1   : > { %9441 = vadd.xlane.f32.xlu1 %v19387_v38  ;;  %14831 = vpow2.f32 %v9349_v0  ;;  %v19393_v47 = vpop.eup %14823 }
 0x3e2   : > { %v9323_v34 = vmul.f32 1.442695, %v9250_v49  ;;  %v9355_v61 = vmul.f32 1.442695, %v9266_v56  ;;  %9473 = vadd.xlane.f32.xlu0 %v19393_v47 }
 0x3e3   : > { %v9130_v52 = vpop.xlane.xlu1 %9129  ;;  %v9162_v39 = vpop.xlane.xlu0 %9161 }
 0x3e4   : > { %14833 = vpow2.f32 %v9323_v34  ;;  %v9249_v16 = vsub.f32 %v19031_v30, %v9130_v52  ;;  %v9265_v27 = vsub.f32 %v19052_v50, %v9162_v39 }
 0x3e5   : > { %14835 = vpow2.f32 %v9355_v61 }
 0x3e6   : > { %v19395_v48 = vpop.eup %14825  ;;  %v9321_v1 = vmul.f32 1.442695, %v9249_v16  ;;  %v9353_v41 = vmul.f32 1.442695, %v9265_v27 }
 0x3e7   : > { %9447 = vadd.xlane.f32.xlu1 %v19395_v48  ;;  %v19399_v63 = vpop.eup %14827 }
 0x3e8   : > { %14837 = vpow2.f32 %v9321_v1  ;;  %9479 = vadd.xlane.f32.xlu0 %v19399_v63 }
 0x3e9   : > { %14839 = vpow2.f32 %v9353_v41  ;;  %v9136_v33 = vpop.xlane.xlu1 %9135  ;;  %v9168_v0 = vpop.xlane.xlu0 %9167 }
 0x3ea   : > { %v19401_v23 = vpop.eup %14829  ;;  %v9252_v49 = vsub.f32 %v19118_v25, %v9136_v33  ;;  %v9268_v56 = vsub.f32 %v19122_v20, %v9168_v0 }
 0x3eb   : > { %9445 = vadd.xlane.f32.xlu1 %v19401_v23  ;;  %v19405_v30 = vpop.eup %14831 }
 0x3ec   : > { %9477 = vadd.xlane.f32.xlu0 %v19405_v30  ;;  %v9327_v52 = vmul.f32 1.442695, %v9252_v49  ;;  %v9359_v61 = vmul.f32 1.442695, %v9268_v56 }
 0x3ed   : > { %v9134_v39 = vpop.xlane.xlu1 %9133  ;;  %v9166_v16 = vpop.xlane.xlu0 %9165 }
 0x3ee   : > { %v19407_v50 = vpop.eup %14833  ;;  %14841 = vpow2.f32 %v9327_v52  ;;  %v9251_v1 = vsub.f32 %v19132_v51, %v9134_v39  ;;  %v9267_v41 = vsub.f32 %v19136_v46, %v9166_v16 }
 0x3ef   : > { %9451 = vadd.xlane.f32.xlu1 %v19407_v50  ;;  %v19411_v10 = vpop.eup %14835  ;;  %14843 = vpow2.f32 %v9359_v61 }
 0x3f0   : > { %9483 = vadd.xlane.f32.xlu0 %v19411_v10  ;;  %v9325_v25 = vmul.f32 1.442695, %v9251_v1  ;;  %v9357_v20 = vmul.f32 1.442695, %v9267_v41 }
 0x3f2   : > { %v19415_v34 = vpop.eup %14837  ;;  %14845 = vpow2.f32 %v9325_v25 }
 0x3f3   : > { %9449 = vadd.xlane.f32.xlu1 %v19415_v34  ;;  %v19419_v27 = vpop.eup %14839  ;;  %14847 = vpow2.f32 %v9357_v20 }
 0x3f4   : > { %9481 = vadd.xlane.f32.xlu0 %v19419_v27 }
 0x3f8   : > { %v19424_v33 = vpop.eup %14841 }
 0x3f9   : > { %21638 = vst [vmem:[#allocation40_spill] sm:$0xff] %v19424_v33  ;;  %v19426_v0 = vpop.eup %14843  ;;  %9455 = vadd.xlane.f32.xlu1 %v19424_v33 }
 0x3fa   : > { %21639 = vst [vmem:[#allocation39_spill] sm:$0xff] %v19426_v0  ;;  %9487 = vadd.xlane.f32.xlu0 %v19426_v0 }
 0x3fc   : > { %v19430_v49 = vpop.eup %14845 }
 0x3fd   : > { %21640 = vst [vmem:[#allocation48_spill] sm:$0xff] %v19430_v49  ;;  %v19432_v51 = vpop.eup %14847  ;;  %9453 = vadd.xlane.f32.xlu1 %v19430_v49 }
 0x3fe   : > { %21641 = vst [vmem:[#allocation47_spill] sm:$0xff] %v19432_v51  ;;  %9485 = vadd.xlane.f32.xlu0 %v19432_v51 }
 0x3ff   : > { %v9140_v46 = vpop.xlane.xlu1 %9139  ;;  %v9172_v56 = vpop.xlane.xlu0 %9171 }
 0x400   : > { %v9254_v52 = vsub.f32 %v19142_v54, %v9140_v46  ;;  %v9270_v61 = vsub.f32 %v19146_v26, %v9172_v56 }
 0x402   : > { %v9331_v39 = vmul.f32 1.442695, %v9254_v52  ;;  %v9363_v16 = vmul.f32 1.442695, %v9270_v61 }
 0x403   : > { %v9138_v1 = vpop.xlane.xlu1 %9137  ;;  %v9170_v41 = vpop.xlane.xlu0 %9169 }
 0x404   : > { %14849 = vpow2.f32 %v9331_v39  ;;  %v9253_v25 = vsub.f32 %v19152_v4, %v9138_v1  ;;  %v9269_v20 = vsub.f32 %v19156_v62, %v9170_v41 }
 0x405   : > { %14851 = vpow2.f32 %v9363_v16 }
 0x406   : > { %v9329_v0 = vmul.f32 1.442695, %v9253_v25  ;;  %v9361_v49 = vmul.f32 1.442695, %v9269_v20 }
 0x408   : > { %14853 = vpow2.f32 %v9329_v0 }
 0x409   : > { %14855 = vpow2.f32 %v9361_v49  ;;  %v9144_v33 = vpop.xlane.xlu1 %9143  ;;  %v9176_v51 = vpop.xlane.xlu0 %9175 }
 0x40a   : > { %v9256_v54 = vsub.f32 %v19162_v42, %v9144_v33  ;;  %v9272_v26 = vsub.f32 %v19166_v24, %v9176_v51 }
 0x40c   : > { %v9335_v46 = vmul.f32 1.442695, %v9256_v54  ;;  %v9367_v56 = vmul.f32 1.442695, %v9272_v26 }
 0x40d   : > { %v9142_v52 = vpop.xlane.xlu1 %9141  ;;  %v9174_v61 = vpop.xlane.xlu0 %9173 }
 0x40e   : > { %v19442_v39 = vpop.eup %14849  ;;  %14857 = vpow2.f32 %v9335_v46  ;;  %v9255_v4 = vsub.f32 %v19172_v5, %v9142_v52  ;;  %v9271_v62 = vsub.f32 %v19176_v55, %v9174_v61 }
 0x40f   : > { %v19446_v16 = vpop.eup %14851  ;;  %14859 = vpow2.f32 %v9367_v56  ;;  %9459 = vadd.xlane.f32.xlu1 %v19442_v39 }
 0x410   : > { %v9333_v0 = vmul.f32 1.442695, %v9255_v4  ;;  %v9365_v42 = vmul.f32 1.442695, %v9271_v62  ;;  %9491 = vadd.xlane.f32.xlu0 %v19446_v16 }
 0x411   : > { %v9180_v24 = vpop.xlane.xlu1 %9179  ;;  %v9212_v33 = vpop.xlane.xlu0 %9211 }
 0x412   : > { %v19450_v49 = vpop.eup %14853  ;;  %14861 = vpow2.f32 %v9333_v0  ;;  %v9274_v51 = vsub.f32 %v19182_v9, %v9180_v24  ;;  %v9290_v5 = vsub.f32 %v19186_v45, %v9212_v33 }
 0x413   : > { %v19454_v1 = vpop.eup %14855  ;;  %14863 = vpow2.f32 %v9365_v42  ;;  %9457 = vadd.xlane.f32.xlu1 %v19450_v49 }
 0x414   : > { %v9371_v55 = vmul.f32 1.442695, %v9274_v51  ;;  %v9403_v41 = vmul.f32 1.442695, %v9290_v5  ;;  %9489 = vadd.xlane.f32.xlu0 %v19454_v1 }
 0x415   : > { %v9178_v25 = vpop.xlane.xlu1 %9177  ;;  %v9210_v20 = vpop.xlane.xlu0 %9209 }
 0x416   : > { %14865 = vpow2.f32 %v9371_v55  ;;  %v9273_v54 = vsub.f32 %v19192_v19, %v9178_v25  ;;  %v9289_v26 = vsub.f32 %v19196_v32, %v9210_v20 }
 0x417   : > { %14867 = vpow2.f32 %v9403_v41 }
 0x418   : > { %v19460_v9 = vpop.eup %14857  ;;  %v9369_v45 = vmul.f32 1.442695, %v9273_v54  ;;  %v9401_v46 = vmul.f32 1.442695, %v9289_v26 }
 0x419   : > { %v19462_v56 = vpop.eup %14859  ;;  %v9184_v52 = vpop.xlane.xlu1 %9183  ;;  %9463 = vadd.xlane.f32.xlu1 %v19460_v9 }
 0x41a   : > { %v9216_v61 = vpop.xlane.xlu0 %9215  ;;  %14869 = vpow2.f32 %v9369_v45  ;;  %v9276_v4 = vsub.f32 %v19202_v14, %v9184_v52  ;;  %9495 = vadd.xlane.f32.xlu0 %v19462_v56 }
 0x41b   : > { %v9292_v62 = vsub.f32 %v19206_v3, %v9216_v61  ;;  %14871 = vpow2.f32 %v9401_v46 }
 0x41c   : > { %v19468_v19 = vpop.eup %14861  ;;  %v9375_v32 = vmul.f32 1.442695, %v9276_v4 }
 0x41d   : > { %v9407_v0 = vmul.f32 1.442695, %v9292_v62  ;;  %v19470_v42 = vpop.eup %14863  ;;  %v9182_v24 = vpop.xlane.xlu1 %9181  ;;  %9461 = vadd.xlane.f32.xlu1 %v19468_v19 }
 0x41e   : > { %v9214_v33 = vpop.xlane.xlu0 %9213  ;;  %14873 = vpow2.f32 %v9375_v32  ;;  %v9275_v51 = vsub.f32 %v19212_v59, %v9182_v24  ;;  %9493 = vadd.xlane.f32.xlu0 %v19470_v42 }
 0x41f   : > { %v9291_v14 = vsub.f32 %v19216_v7, %v9214_v33  ;;  %14875 = vpow2.f32 %v9407_v0 }
 0x420   : > { %v19476_v3 = vpop.eup %14865  ;;  %v9373_v5 = vmul.f32 1.442695, %v9275_v51 }
 0x421   : > { %v9405_v55 = vmul.f32 1.442695, %v9291_v14  ;;  %v19478_v41 = vpop.eup %14867  ;;  %v9188_v25 = vpop.xlane.xlu1 %9187  ;;  %9499 = vadd.xlane.f32.xlu1 %v19476_v3 }
 0x422   : > { %v9220_v20 = vpop.xlane.xlu0 %9219  ;;  %14877 = vpow2.f32 %v9373_v5  ;;  %v9278_v54 = vsub.f32 %v19222_v11, %v9188_v25  ;;  %9531 = vadd.xlane.f32.xlu0 %v19478_v41 }
 0x423   : > { %v9294_v59 = vsub.f32 %v19226_v37, %v9220_v20  ;;  %14879 = vpow2.f32 %v9405_v55 }
 0x424   : > { %v19484_v7 = vpop.eup %14869  ;;  %v9379_v26 = vmul.f32 1.442695, %v9278_v54 }
 0x425   : > { %v9411_v45 = vmul.f32 1.442695, %v9294_v59  ;;  %v19486_v46 = vpop.eup %14871  ;;  %v9186_v52 = vpop.xlane.xlu1 %9185  ;;  %9497 = vadd.xlane.f32.xlu1 %v19484_v7 }
 0x426   : > { %v9218_v61 = vpop.xlane.xlu0 %9217  ;;  %14881 = vpow2.f32 %v9379_v26  ;;  %v9277_v4 = vsub.f32 %v19232_v6, %v9186_v52  ;;  %9529 = vadd.xlane.f32.xlu0 %v19486_v46 }
 0x427   : > { %v9293_v11 = vsub.f32 %v19236_v28, %v9218_v61  ;;  %14883 = vpow2.f32 %v9411_v45 }
 0x428   : > { %v19492_v37 = vpop.eup %14873  ;;  %v9377_v62 = vmul.f32 1.442695, %v9277_v4  ;;  %v21642_v4 = vld [vmem:[#allocation24_spill] sm:$0xff] }
 0x429   : > { %v9409_v32 = vmul.f32 1.442695, %v9293_v11  ;;  %v19494_v0 = vpop.eup %14875  ;;  %v9192_v24 = vpop.xlane.xlu1 %9191  ;;  %9503 = vadd.xlane.f32.xlu1 %v19492_v37 }
 0x42a   : > { %v9224_v33 = vpop.xlane.xlu0 %9223  ;;  %14885 = vpow2.f32 %v9377_v62  ;;  %v9280_v51 = vsub.f32 %v19242_v13, %v9192_v24  ;;  %9535 = vadd.xlane.f32.xlu0 %v19494_v0  ;;  %v21643_v62 = vld [vmem:[#allocation25_spill] sm:$0xff] }
 0x42b   : > { %v9296_v6 = vsub.f32 %v19246_v31, %v9224_v33  ;;  %14887 = vpow2.f32 %v9409_v32 }
 0x42c   : > { %v19500_v28 = vpop.eup %14877  ;;  %v9383_v14 = vmul.f32 1.442695, %v9280_v51 }
 0x42d   : > { %v9415_v5 = vmul.f32 1.442695, %v9296_v6  ;;  %v19502_v55 = vpop.eup %14879  ;;  %v9190_v25 = vpop.xlane.xlu1 %9189  ;;  %9501 = vadd.xlane.f32.xlu1 %v19500_v28 }
 0x42e   : > { %v9222_v20 = vpop.xlane.xlu0 %9221  ;;  %14889 = vpow2.f32 %v9383_v14  ;;  %v9279_v54 = vsub.f32 %v19252_v53, %v9190_v25  ;;  %9533 = vadd.xlane.f32.xlu0 %v19502_v55  ;;  %v21644_v14 = vld [vmem:[#allocation26_spill] sm:$0xff] }
 0x42f   : > { %v9295_v13 = vsub.f32 %v19256_v21, %v9222_v20  ;;  %14891 = vpow2.f32 %v9415_v5  ;;  %v21645_v25 = vld [vmem:[#allocation14_spill] sm:$0xff] }
 0x430   : > { %v19508_v31 = vpop.eup %14881  ;;  %v9381_v59 = vmul.f32 1.442695, %v9279_v54 }
 0x431   : > { %v9413_v26 = vmul.f32 1.442695, %v9295_v13  ;;  %v19510_v45 = vpop.eup %14883  ;;  %v9196_v52 = vpop.xlane.xlu1 %9195  ;;  %9507 = vadd.xlane.f32.xlu1 %v19508_v31 }
 0x432   : > { %v9228_v61 = vpop.xlane.xlu0 %9227  ;;  %14893 = vpow2.f32 %v9381_v59  ;;  %v9282_v11 = vsub.f32 %v21642_v4, %v9196_v52  ;;  %9539 = vadd.xlane.f32.xlu0 %v19510_v45  ;;  %v21646_v4 = vld [vmem:[#allocation10_spill] sm:$0xff] }
 0x433   : > { %v9298_v53 = vsub.f32 %v21643_v62, %v9228_v61  ;;  %14895 = vpow2.f32 %v9413_v26  ;;  %v21647_v62 = vld [vmem:[#allocation31_spill] sm:$0xff] }
 0x434   : > { %v19516_v21 = vpop.eup %14885  ;;  %v9387_v32 = vmul.f32 1.442695, %v9282_v11 }
 0x435   : > { %v9419_v24 = vmul.f32 1.442695, %v9298_v53  ;;  %v19518_v33 = vpop.eup %14887  ;;  %v9194_v51 = vpop.xlane.xlu1 %9193  ;;  %9505 = vadd.xlane.f32.xlu1 %v19516_v21 }
 0x436   : > { %v9226_v6 = vpop.xlane.xlu0 %9225  ;;  %14897 = vpow2.f32 %v9387_v32  ;;  %v9281_v5 = vsub.f32 %v21644_v14, %v9194_v51  ;;  %9537 = vadd.xlane.f32.xlu0 %v19518_v33 }
 0x437   : > { %v9297_v20 = vsub.f32 %v21645_v25, %v9226_v6  ;;  %14899 = vpow2.f32 %v9419_v24  ;;  %v21648_v25 = vld [vmem:[#allocation33_spill] sm:$0xff] }
 0x438   : > { %v19524_v54 = vpop.eup %14889  ;;  %v9385_v13 = vmul.f32 1.442695, %v9281_v5 }
 0x439   : > { %v9417_v59 = vmul.f32 1.442695, %v9297_v20  ;;  %v19526_v26 = vpop.eup %14891  ;;  %v9200_v52 = vpop.xlane.xlu1 %9199  ;;  %9511 = vadd.xlane.f32.xlu1 %v19524_v54 }
 0x43a   : > { %v9232_v61 = vpop.xlane.xlu0 %9231  ;;  %14901 = vpow2.f32 %v9385_v13  ;;  %v9284_v11 = vsub.f32 %v21646_v4, %v9200_v52  ;;  %9543 = vadd.xlane.f32.xlu0 %v19526_v26  ;;  %v21649_v13 = vld [vmem:[#allocation21_spill] sm:$0xff] }
 0x43b   : > { %v9300_v53 = vsub.f32 %v21647_v62, %v9232_v61  ;;  %14903 = vpow2.f32 %v9417_v59 }
 0x43c   : > { %v19532_v32 = vpop.eup %14893  ;;  %v9391_v24 = vmul.f32 1.442695, %v9284_v11 }
 0x43d   : > { %v9423_v51 = vmul.f32 1.442695, %v9300_v53  ;;  %v19534_v6 = vpop.eup %14895  ;;  %v9198_v14 = vpop.xlane.xlu1 %9197  ;;  %9509 = vadd.xlane.f32.xlu1 %v19532_v32 }
 0x43e   : > { %v9230_v5 = vpop.xlane.xlu0 %9229  ;;  %14905 = vpow2.f32 %v9391_v24  ;;  %v9283_v20 = vsub.f32 %v21648_v25, %v9198_v14  ;;  %9541 = vadd.xlane.f32.xlu0 %v19534_v6 }
 0x43f   : > { %v9299_v52 = vsub.f32 %v21649_v13, %v9230_v5  ;;  %14907 = vpow2.f32 %v9423_v51 }
 0x440   : > { %v19540_v61 = vpop.eup %14897  ;;  %v9389_v59 = vmul.f32 1.442695, %v9283_v20 }
 0x441   : > { %v9421_v4 = vmul.f32 1.442695, %v9299_v52  ;;  %v19542_v11 = vpop.eup %14899  ;;  %v9204_v62 = vpop.xlane.xlu1 %9203  ;;  %9515 = vadd.xlane.f32.xlu1 %v19540_v61 }
 0x442   : > { %v9236_v53 = vpop.xlane.xlu0 %9235  ;;  %14909 = vpow2.f32 %v9389_v59  ;;  %v9286_v24 = vsub.f32 %v19304_v57, %v9204_v62  ;;  %9547 = vadd.xlane.f32.xlu0 %v19542_v11 }
 0x443   : > { %v9302_v14 = vsub.f32 %v19308_v8, %v9236_v53  ;;  %14911 = vpow2.f32 %v9421_v4 }
 0x444   : > { %v19548_v5 = vpop.eup %14901  ;;  %v9395_v51 = vmul.f32 1.442695, %v9286_v24 }
 0x445   : > { %21650 = vst [vmem:[#allocation49_spill] sm:$0xff] %v19548_v5  ;;  %v9427_v25 = vmul.f32 1.442695, %v9302_v14  ;;  %v19550_v20 = vpop.eup %14903  ;;  %v9202_v13 = vpop.xlane.xlu1 %9201  ;;  %9513 = vadd.xlane.f32.xlu1 %v19548_v5 }
 0x446   : > { %21651 = vst [vmem:[#allocation50_spill] sm:$0xff] %v19550_v20  ;;  %v9234_v52 = vpop.xlane.xlu0 %9233  ;;  %14913 = vpow2.f32 %v9395_v51  ;;  %v9285_v59 = vsub.f32 %v19315_v22, %v9202_v13  ;;  %9545 = vadd.xlane.f32.xlu0 %v19550_v20 }
 0x447   : > { %v9301_v57 = vsub.f32 %v19319_v17, %v9234_v52  ;;  %14915 = vpow2.f32 %v9427_v25 }
 0x448   : > { %v19556_v8 = vpop.eup %14905  ;;  %v9393_v4 = vmul.f32 1.442695, %v9285_v59 }
 0x449   : > { %21652 = vst [vmem:[#allocation79_spill] sm:$0xff] %v19556_v8  ;;  %v9425_v62 = vmul.f32 1.442695, %v9301_v57  ;;  %v19558_v53 = vpop.eup %14907  ;;  %v9208_v24 = vpop.xlane.xlu1 %9207  ;;  %9519 = vadd.xlane.f32.xlu1 %v19556_v8 }
 0x44a   : > { %21653 = vst [vmem:[#allocation13_spill] sm:$0xff] %v19558_v53  ;;  %v9240_v14 = vpop.xlane.xlu0 %9239  ;;  %14917 = vpow2.f32 %v9393_v4  ;;  %v9288_v51 = vsub.f32 %v19326_v18, %v9208_v24  ;;  %9551 = vadd.xlane.f32.xlu0 %v19558_v53  ;;  %v21656_v4 = vld [vmem:[#allocation43_spill] sm:$0xff] }
 0x44b   : > { %14919 = vpow2.f32 %v9425_v62  ;;  %v9304_v18 = vsub.f32 %v21656_v4, %v9240_v14  ;;  %v21663_v4 = vld [vmem:[#allocation67_spill] sm:$0xff] }
 0x44c   : > { %v19563_v22 = vpop.eup %14909  ;;  %v9399_v25 = vmul.f32 1.442695, %v9288_v51 }
 0x44d   : > { %21654 = vst [vmem:[#allocation60_spill] sm:$0xff] %v19563_v22  ;;  %v19565_v17 = vpop.eup %14911  ;;  %v9206_v13 = vpop.xlane.xlu1 %9205  ;;  %9517 = vadd.xlane.f32.xlu1 %v19563_v22 }
 0x44e   : > { %21655 = vst [vmem:[#allocation56_spill] sm:$0xff] %v19565_v17  ;;  %v9238_v52 = vpop.xlane.xlu0 %9237  ;;  %v9287_v59 = vsub.f32 %v19336_v29, %v9206_v13  ;;  %9549 = vadd.xlane.f32.xlu0 %v19565_v17  ;;  %14921 = vpow2.f32 %v9399_v25  ;;  %v21668_v17 = vld [vmem:[#allocation64_spill] sm:$0xff] }
 0x44f   : > { %v9303_v57 = vsub.f32 %v19340_v60, %v9238_v52  ;;  %v9431_v60 = vmul.f32 1.442695, %v9304_v18  ;;  %v21661_v52 = vld [vmem:[#allocation65_spill] sm:$0xff]  ;;  %v21664_v18 = vld [vmem:[#allocation68_spill] sm:$0xff] }
 0x450   : > { %v19572_v24 = vpop.eup %14913  ;;  %v9397_v62 = vmul.f32 1.442695, %v9287_v59  ;;  %v21662_v59 = vld [vmem:[#allocation66_spill] sm:$0xff] }
 0x451   : > { %21657 = vst [vmem:[#allocation57_spill] sm:$0xff] %v19572_v24  ;;  %v9429_v53 = vmul.f32 1.442695, %v9303_v57  ;;  %v19574_v8 = vpop.eup %14915  ;;  %9523 = vadd.xlane.f32.xlu1 %v19572_v24  ;;  %v9466_v29 = vpop.xlane.xlu1 %9465  ;;  %v7162_v57 = vcombine.high %v21662_v59, %v21661_v52  ;;  %v21667_v24 = vld [vmem:[#allocation63_spill] sm:$0xff] }
 0x452   : > { %21658 = vst [vmem:[#allocation84_spill] sm:$0xff] %v19574_v8  ;;  %v9436_v51 = vpop.xlane.xlu0 %9435  ;;  %14923 = vpow2.f32 %v9397_v62  ;;  %9555 = vadd.xlane.f32.xlu0 %v19574_v8  ;;  %v21665_v62 = vld [vmem:[#allocation61_spill] sm:$0xff]  ;;  %v21666_v8 = vld [vmem:[#allocation62_spill] sm:$0xff]  ;;  %v7246_v22 = vcombine.high %v21668_v17, %v21667_v24 }
 0x453   : > { %14925 = vpow2.f32 %v9429_v53  ;;  %v7178_v53 = vcombine.high %v21664_v18, %v21663_v4 }
 0x454   : > { %v19578_v13 = vpop.eup %14917  ;;  %14927 = vrcp.f32 %v9436_v51  ;;  %v7230_v51 = vcombine.high %v21666_v8, %v21665_v62 }
 0x455   : > { %21659 = vst [vmem:[#allocation58_spill] sm:$0xff] %v19578_v13  ;;  %v19580_v14 = vpop.eup %14919  ;;  %9521 = vadd.xlane.f32.xlu1 %v19578_v13  ;;  %14929 = vrcp.f32 %v9466_v29 }
 0x456   : > { %21660 = vst [vmem:[#allocation59_spill] sm:$0xff] %v19580_v14  ;;  %v9468_v25 = vpop.xlane.xlu0 %9467  ;;  %9553 = vadd.xlane.f32.xlu0 %v19580_v14 }
 0x457   : > { %14931 = vrcp.f32 %v9468_v25  ;;  %v21670_v25 = vld [vmem:[#allocation12_spill] sm:$0xff] }
 0x458   : > { %14933 = vpow2.f32 %v9431_v60  ;;  %v19593_v29 = vpop.eup %14921  ;;  %v7176_v14 = vrot.slane %v7162_v57, %v21670_v25  ;;  %v7192_v60 = vrot.slane %v7178_v53, %v21670_v25  ;;  %v7244_v52 = vrot.slane %v7230_v51, %v21670_v25  ;;  %v21672_v51 = vld [vmem:[#allocation22_spill] sm:$0xff] }
 0x459   : > { %21669 = vst [vmem:[#allocation52_spill] sm:$0xff] %v19593_v29  ;;  %v7260_v59 = vrot.slane %v7246_v22, %v21670_v25 }
 0x45a   : > { %v9434_v13 = vpop.xlane.xlu0 %9433  ;;  %v7196_v18 = vcombine.high %v7176_v14, %v7192_v60 }
 0x45b   : > { %14935 = vrcp.f32 %v9434_v13  ;;  %v7264_v57 = vcombine.high %v7244_v52, %v7260_v59 }
 0x45c   : > { %v19601_v4 = vpop.eup %14923 }
 0x45d   : > { %21671 = vst [vmem:[#allocation53_spill] sm:$0xff] %v19601_v4  ;;  %v19603_v8 = vpop.eup %14925  ;;  %9525 = vadd.xlane.f32.xlu1 %v19601_v4 }
 0x45e   : > { %v9440_v17 = vpop.xlane.xlu0 %9439  ;;  %v14928_v24 = vpop.eup %14927  ;;  %9557 = vadd.xlane.f32.xlu0 %v19603_v8 }
 0x45f   : > { %14937 = vrcp.f32 %v9440_v17  ;;  %v14930_v13 = vpop.eup %14929  ;;  %v9626_v53 = vmul.f32 %v14928_v24, %v19343_v15  ;;  %v14701_v15 = vpack.c.bf16 %v7264_v57, %v7196_v18  ;;  %v21673_v24 = vld [vmem:[#allocation87_spill] sm:$0xff] }
 0x460   : > { %v9641_v20 = vmul.f32 %v14930_v13, %v21672_v51  ;;  %v7263_v13 = vcombine.low %v7244_v52, %v7260_v59  ;;  %v21676_v59 = vld [vmem:[#allocation42_spill] sm:$0xff] }
 0x461   : > { %v14932_v62 = vpop.eup %14931  ;;  %9527 = vadd.xlane.f32.xlu1 %v19593_v29  ;;  %9690 = vst [vmem:[%s19613_s16 + $0x8] sm:$0xff] %v9626_v53 }
 0x462   : > { %v19609_v22 = vpop.eup %14933  ;;  %v9472_v5 = vpop.xlane.xlu0 %9471  ;;  %v9642_v4 = vmul.f32 %v14932_v62, %v19353_v36  ;;  %9705 = vst [vmem:[%s19613_s16 + $0x80] sm:$0xff] %v9641_v20  ;;  %14217 = vmatprep.mubr.f32.mxu0 %v9641_v20  ;;  %v7195_v36 = vcombine.low %v7176_v14, %v7192_v60 }
 0x463   : > { %9559 = vadd.xlane.f32.xlu0 %v19609_v22 }
 0x464   : > { %9706 = vst [vmem:[%s19613_s16 + $0x88] sm:$0xff] %v9642_v4  ;;  %14218 = vmatmul.mubr.f32.vlgmr.msra.gmra.mrb[64].mxu0 %v9642_v4  ;;  %v21675_v4 = vld [vmem:[#allocation86_spill] sm:$0xff] }
 0x465   : > { %v14936_v17 = vpop.eup %14935  ;;  %14700 = vmatpush3.bf16.msra.mxu0 %v21673_v24 }
 0x466   : > { %v9470_v25 = vpop.xlane.xlu1 %9469  ;;  %14702 = vmatprep.subr.bf16.mxu0 %v14701_v15  ;;  %v9625_v29 = vmul.f32 %v14936_v17, %v19357_v58 }
 0x467   : > { %14939 = vrcp.f32 %v9470_v25  ;;  %v9438_v51 = vpop.xlane.xlu0 %9437  ;;  %v21674_v25 = vld [vmem:[#allocation9_spill] sm:$0xff] }
 0x468   : > { %14941 = vrcp.f32 %v9472_v5  ;;  %9689 = vst [vmem:[%s19613_s16] sm:$0xff] %v9625_v29  ;;  %14161 = vmatprep.mubr.f32.mxu1 %v9625_v29  ;;  %v14669_v5 = vpack.c.bf16 %v7263_v13, %v7195_v36  ;;  %v21678_v13 = vld [vmem:[#allocation45_spill] sm:$0xff] }
 0x469   : > { %v14938_v20 = vpop.eup %14937  ;;  %14704 = vmatpush3.bf16.msra.mxu0 %v14701_v15  ;;  %14162 = vmatmul.mubr.f32.vlgmr.msra.gmra.mrb[48].mxu1 %v9626_v53  ;;  %v21677_v15 = vld [vmem:[#allocation19_spill] sm:$0xff] }
 0x46a   : > { %v9444_v62 = vpop.xlane.xlu1 %9443  ;;  %14668 = vmatpush3.bf16.msra.mxu1 %v21674_v25  ;;  %14706 = vmatprep.subr.bf16.mxu0 %v21675_v4  ;;  %v9628_v52 = vmul.f32 %v14938_v20, %v19364_v2 }
 0x46b   : > { %14943 = vrcp.f32 %v9444_v62  ;;  %v9476_v60 = vpop.xlane.xlu0 %9475  ;;  %14670 = vmatprep.subr.bf16.mxu1 %v14669_v5 }
 0x46c   : > { %14945 = vrcp.f32 %v9438_v51  ;;  %9692 = vst [vmem:[%s19613_s16 + $0x18] sm:$0xff] %v9628_v52 }
 0x46d   : > { %14708 = vmatpush3.bf16.msra.mxu0 %v21675_v4 }
 0x46e   : > { %v9442_v14 = vpop.xlane.xlu1 %9441  ;;  %14672 = vmatpush3.bf16.msra.mxu1 %v14669_v5  ;;  %14710 = vmatprep.subr.bf16.mxu0 %v21676_v59 }
 0x46f   : > { %14947 = vrcp.f32 %v9442_v14  ;;  %v9474_v18 = vpop.xlane.xlu0 %9473  ;;  %14674 = vmatprep.subr.bf16.mxu1 %v21677_v15 }
 0x470   : > { %14949 = vrcp.f32 %v9476_v60  ;;  %v21681_v60 = vld [vmem:[#allocation44_spill] sm:$0xff] }
 0x471   : > { %v14940_v58 = vpop.eup %14939  ;;  %14951 = vrcp.f32 %v9474_v18  ;;  %14712 = vmatpush3.bf16.msra.mxu0 %v21676_v59 }
 0x472   : > { %v14942_v29 = vpop.eup %14941  ;;  %v9643_v57 = vmul.f32 %v14940_v58, %v19371_v40  ;;  %14676 = vmatpush3.bf16.msra.mxu1 %v21677_v15  ;;  %14714 = vmatprep.subr.bf16.mxu0 %v21678_v13 }
 0x473   : > { %v9644_v2 = vmul.f32 %v14942_v29, %v19367_v44  ;;  %v21679_v44 = vld [vmem:[#allocation41_spill] sm:$0xff] }
 0x474   : > { %v9448_v53 = vpop.xlane.xlu1 %9447  ;;  %9707 = vst [vmem:[%s19613_s16 + $0x90] sm:$0xff] %v9643_v57  ;;  %14220 = vmatprep.mubr.f32.mxu0 %v9643_v57  ;;  %14678 = vmatprep.subr.bf16.mxu1 %v21679_v44  ;;  %v21683_v57 = vld [vmem:[#allocation32_spill] sm:$0xff] }
 0x475   : > { %14953 = vrcp.f32 %v9448_v53  ;;  %v14944_v17 = vpop.eup %14943  ;;  %9708 = vst [vmem:[%s19613_s16 + $0x98] sm:$0xff] %v9644_v2  ;;  %14221 = vmatmul.mubr.f32.gmra.mrb[66].mxu0 %v9644_v2  ;;  %v9480_v40 = vpop.xlane.xlu0 %9479 }
 0x476   : > { %v14946_v24 = vpop.eup %14945  ;;  %v9630_v36 = vmul.f32 %v14944_v17, %v19379_v43  ;;  %14955 = vrcp.f32 %v9480_v40  ;;  %14716 = vmatpush3.bf16.msra.mxu0 %v21678_v13  ;;  %v21680_v43 = vld [vmem:[#allocation34_spill] sm:$0xff]  ;;  %14680 = vmatpush3.bf16.msra.mxu1 %v21679_v44 }
 0x477   : > { %v9627_v51 = vmul.f32 %v14946_v24, %v19375_v12  ;;  %14718 = vmatprep.subr.bf16.mxu0 %v21680_v43  ;;  %14682 = vmatprep.subr.bf16.mxu1 %v21681_v60  ;;  %v21685_v24 = vld [vmem:[#allocation30_spill] sm:$0xff] }
 0x478   : > { %v9446_v62 = vpop.xlane.xlu1 %9445  ;;  %9694 = vst [vmem:[%s19613_s16 + $0x28] sm:$0xff] %v9630_v36 }
 0x479   : > { %14957 = vrcp.f32 %v9446_v62  ;;  %v14948_v20 = vpop.eup %14947  ;;  %9691 = vst [vmem:[%s19613_s16 + $0x10] sm:$0xff] %v9627_v51  ;;  %14164 = vmatprep.mubr.f32.mxu1 %v9627_v51  ;;  %v9478_v25 = vpop.xlane.xlu0 %9477  ;;  %v21686_v62 = vld [vmem:[#allocation23_spill] sm:$0xff] }
 0x47a   : > { %v14950_v5 = vpop.eup %14949  ;;  %14165 = vmatmul.mubr.f32.gmra.mrb[50].mxu1 %v9628_v52  ;;  %v9629_v4 = vmul.f32 %v14948_v20, %v19387_v38  ;;  %14959 = vrcp.f32 %v9478_v25  ;;  %14720 = vmatpush3.bf16.msra.mxu0 %v21680_v43  ;;  %v21682_v38 = vld [vmem:[#allocation20_spill] sm:$0xff] }
 0x47b   : > { %v9646_v12 = vmul.f32 %v14950_v5, %v19383_v35  ;;  %v14952_v58 = vpop.eup %14951  ;;  %14722 = vmatprep.subr.bf16.mxu0 %v21682_v38  ;;  %14684 = vmatpush3.bf16.msra.mxu1 %v21681_v60  ;;  %v21688_v60 = vld [vmem:[#allocation39_spill] sm:$0xff] }
 0x47c   : > { %v9452_v14 = vpop.xlane.xlu1 %9451  ;;  %9693 = vst [vmem:[%s19613_s16 + $0x20] sm:$0xff] %v9629_v4  ;;  %14167 = vmatprep.mubr.f32.mxu1 %v9629_v4  ;;  %v9645_v59 = vmul.f32 %v14952_v58, %v19393_v47  ;;  %14686 = vmatprep.subr.bf16.mxu1 %v21683_v57  ;;  %v21684_v47 = vld [vmem:[#allocation27_spill] sm:$0xff] }
 0x47d   : > { %14961 = vrcp.f32 %v9452_v14  ;;  %9710 = vst [vmem:[%s19613_s16 + $0xa8] sm:$0xff] %v9646_v12  ;;  %v9484_v29 = vpop.xlane.xlu0 %9483  ;;  %v21687_v14 = vld [vmem:[#allocation40_spill] sm:$0xff] }
 0x47e   : > { %14168 = vmatmul.mubr.f32.gmra.mrb[52].mxu1 %v9630_v36  ;;  %14963 = vrcp.f32 %v9484_v29  ;;  %9709 = vst [vmem:[%s19613_s16 + $0xa0] sm:$0xff] %v9645_v59  ;;  %14223 = vmatprep.mubr.f32.mxu0 %v9645_v59  ;;  %v21690_v59 = vld [vmem:[#allocation47_spill] sm:$0xff] }
 0x47f   : > { %v14954_v52 = vpop.eup %14953  ;;  %14724 = vmatpush3.bf16.msra.mxu0 %v21682_v38  ;;  %14688 = vmatpush3.bf16.msra.mxu1 %v21683_v57 }
 0x480   : > { %v9450_v35 = vpop.xlane.xlu1 %9449  ;;  %v9632_v18 = vmul.f32 %v14954_v52, %v19395_v48  ;;  %v14956_v53 = vpop.eup %14955  ;;  %14224 = vmatmul.mubr.f32.gmra.mrb[68].mxu0 %v9646_v12  ;;  %14726 = vmatprep.subr.bf16.mxu0 %v21684_v47 }
 0x481   : > { %14965 = vrcp.f32 %v9450_v35  ;;  %v9482_v2 = vpop.xlane.xlu0 %9481  ;;  %v9648_v17 = vmul.f32 %v14956_v53, %v19399_v63  ;;  %14690 = vmatprep.subr.bf16.mxu1 %v21685_v24 }
 0x482   : > { %9696 = vst [vmem:[%s19613_s16 + $0x38] sm:$0xff] %v9632_v18  ;;  %14967 = vrcp.f32 %v9482_v2 }
 0x483   : > { %v14958_v15 = vpop.eup %14957  ;;  %9712 = vst [vmem:[%s19613_s16 + $0xb8] sm:$0xff] %v9648_v17  ;;  %14728 = vmatpush3.bf16.msra.mxu0 %v21684_v47  ;;  %14692 = vmatpush3.bf16.msra.mxu1 %v21685_v24 }
 0x484   : > { %v9631_v48 = vmul.f32 %v14958_v15, %v19401_v23  ;;  %v14960_v40 = vpop.eup %14959  ;;  %14694 = vmatprep.subr.bf16.mxu1 %v21686_v62 }
 0x485   : > { %v9647_v63 = vmul.f32 %v14960_v40, %v19405_v30 }
 0x486   : > { %9695 = vst [vmem:[%s19613_s16 + $0x30] sm:$0xff] %v9631_v48  ;;  %14170 = vmatprep.mubr.f32.mxu1 %v9631_v48  ;;  %v9456_v20 = vpop.xlane.xlu1 %9455 }
 0x487   : > { %v14962_v36 = vpop.eup %14961  ;;  %14171 = vmatmul.mubr.f32.gmra.mrb[54].mxu1 %v9632_v18  ;;  %9711 = vst [vmem:[%s19613_s16 + $0xb0] sm:$0xff] %v9647_v63  ;;  %14226 = vmatprep.mubr.f32.mxu0 %v9647_v63  ;;  %14969 = vrcp.f32 %v9456_v20 }
 0x488   : > { %v9634_v13 = vmul.f32 %v14962_v36, %v19407_v50  ;;  %v14964_v23 = vpop.eup %14963  ;;  %14227 = vmatmul.mubr.f32.gmra.mrb[70].mxu0 %v9648_v17  ;;  %14696 = vmatpush3.bf16.msra.mxu1 %v21686_v62  ;;  %v9488_v50 = vpop.xlane.xlu0 %9487 }
 0x489   : > { %v9650_v51 = vmul.f32 %v14964_v23, %v19411_v10  ;;  %14971 = vrcp.f32 %v9488_v50 }
 0x48a   : > { %9698 = vst [vmem:[%s19613_s16 + $0x48] sm:$0xff] %v9634_v13  ;;  %v9454_v25 = vpop.xlane.xlu1 %9453 }
 0x48b   : > { %v14966_v44 = vpop.eup %14965  ;;  %9714 = vst [vmem:[%s19613_s16 + $0xc8] sm:$0xff] %v9650_v51  ;;  %14973 = vrcp.f32 %v9454_v25 }
 0x48c   : > { %v9633_v30 = vmul.f32 %v14966_v44, %v19415_v34  ;;  %v14968_v5 = vpop.eup %14967  ;;  %v9486_v10 = vpop.xlane.xlu0 %9485 }
 0x48d   : > { %v9649_v43 = vmul.f32 %v14968_v5, %v19419_v27  ;;  %14975 = vrcp.f32 %v9486_v10  ;;  %v21689_v27 = vld [vmem:[#allocation48_spill] sm:$0xff] }
 0x48e   : > { %9697 = vst [vmem:[%s19613_s16 + $0x40] sm:$0xff] %v9633_v30  ;;  %14173 = vmatprep.mubr.f32.mxu1 %v9633_v30 }
 0x48f   : > { %14174 = vmatmul.mubr.f32.gmra.mrb[56].mxu1 %v9634_v13  ;;  %9713 = vst [vmem:[%s19613_s16 + $0xc0] sm:$0xff] %v9649_v43  ;;  %14229 = vmatprep.mubr.f32.mxu0 %v9649_v43 }
 0x490   : > { %14230 = vmatmul.mubr.f32.gmra.mrb[72].mxu0 %v9650_v51 }
 0x491   : > { %v14970_v34 = vpop.eup %14969 }
 0x492   : > { %v9636_v12 = vmul.f32 %v14970_v34, %v21687_v14 }
 0x493   : > { %v14972_v4 = vpop.eup %14971 }
 0x494   : > { %v9652_v58 = vmul.f32 %v14972_v4, %v21688_v60  ;;  %9700 = vst [vmem:[%s19613_s16 + $0x58] sm:$0xff] %v9636_v12 }
 0x495   : > { %v14974_v52 = vpop.eup %14973 }
 0x496   : > { %9716 = vst [vmem:[%s19613_s16 + $0xd8] sm:$0xff] %v9652_v58  ;;  %v9635_v29 = vmul.f32 %v14974_v52, %v21689_v27 }
 0x497   : > { %v14976_v38 = vpop.eup %14975 }
 0x498   : > { %v9651_v35 = vmul.f32 %v14976_v38, %v21690_v59  ;;  %9699 = vst [vmem:[%s19613_s16 + $0x50] sm:$0xff] %v9635_v29  ;;  %14176 = vmatprep.mubr.f32.mxu1 %v9635_v29 }
 0x499   : > { %14177 = vmatmul.mubr.f32.gmra.mrb[58].mxu1 %v9636_v12 }
 0x49a   : > { %9715 = vst [vmem:[%s19613_s16 + $0xd0] sm:$0xff] %v9651_v35  ;;  %14232 = vmatprep.mubr.f32.mxu0 %v9651_v35 }
 0x49b   : > { %14233 = vmatmul.mubr.f32.gmra.mrb[74].mxu0 %v9652_v58 }
 0x49c   : > { %v9460_v18 = vpop.xlane.xlu1 %9459 }
 0x49d   : > { %14977 = vrcp.f32 %v9460_v18  ;;  %v9492_v57 = vpop.xlane.xlu0 %9491 }
 0x49e   : > { %14979 = vrcp.f32 %v9492_v57 }
 0x4a0   : > { %v9458_v53 = vpop.xlane.xlu1 %9457 }
 0x4a1   : > { %14981 = vrcp.f32 %v9458_v53  ;;  %v9490_v15 = vpop.xlane.xlu0 %9489 }
 0x4a2   : > { %14983 = vrcp.f32 %v9490_v15 }
 0x4a6   : > { %v9464_v47 = vpop.xlane.xlu1 %9463 }
 0x4a7   : > { %v14978_v2 = vpop.eup %14977  ;;  %14985 = vrcp.f32 %v9464_v47  ;;  %v9496_v17 = vpop.xlane.xlu0 %9495 }
 0x4a8   : > { %v14980_v48 = vpop.eup %14979  ;;  %14987 = vrcp.f32 %v9496_v17  ;;  %v9638_v24 = vmul.f32 %v14978_v2, %v19442_v39 }
 0x4a9   : > { %v9654_v40 = vmul.f32 %v14980_v48, %v19446_v16 }
 0x4aa   : > { %v9462_v36 = vpop.xlane.xlu1 %9461  ;;  %9702 = vst [vmem:[%s19613_s16 + $0x68] sm:$0xff] %v9638_v24 }
 0x4ab   : > { %v14982_v63 = vpop.eup %14981  ;;  %14989 = vrcp.f32 %v9462_v36  ;;  %v9494_v13 = vpop.xlane.xlu0 %9493  ;;  %9718 = vst [vmem:[%s19613_s16 + $0xe8] sm:$0xff] %v9654_v40 }
 0x4ac   : > { %v14984_v62 = vpop.eup %14983  ;;  %14991 = vrcp.f32 %v9494_v13  ;;  %v9637_v23 = vmul.f32 %v14982_v63, %v19450_v49 }
 0x4ad   : > { %v9653_v44 = vmul.f32 %v14984_v62, %v19454_v1 }
 0x4ae   : > { %v9500_v51 = vpop.xlane.xlu1 %9499  ;;  %9701 = vst [vmem:[%s19613_s16 + $0x60] sm:$0xff] %v9637_v23  ;;  %14179 = vmatprep.mubr.f32.mxu1 %v9637_v23 }
 0x4af   : > { %14993 = vrcp.f32 %v9500_v51  ;;  %14180 = vmatmul.mubr.f32.gmra.mrb[60].mxu1 %v9638_v24  ;;  %v9532_v39 = vpop.xlane.xlu0 %9531  ;;  %9717 = vst [vmem:[%s19613_s16 + $0xe0] sm:$0xff] %v9653_v44  ;;  %14235 = vmatprep.mubr.f32.mxu0 %v9653_v44 }
 0x4b0   : > { %14995 = vrcp.f32 %v9532_v39  ;;  %14236 = vmatmul.mubr.f32.gmra.mrb[76].mxu0 %v9654_v40 }
 0x4b1   : > { %v14986_v16 = vpop.eup %14985 }
 0x4b2   : > { %v14988_v30 = vpop.eup %14987  ;;  %v9498_v20 = vpop.xlane.xlu1 %9497  ;;  %v9640_v49 = vmul.f32 %v14986_v16, %v19460_v9 }
 0x4b3   : > { %14997 = vrcp.f32 %v9498_v20  ;;  %v9530_v1 = vpop.xlane.xlu0 %9529  ;;  %v9656_v5 = vmul.f32 %v14988_v30, %v19462_v56 }
 0x4b4   : > { %14999 = vrcp.f32 %v9530_v1  ;;  %9704 = vst [vmem:[%s19613_s16 + $0x78] sm:$0xff] %v9640_v49 }
 0x4b5   : > { %v14990_v50 = vpop.eup %14989  ;;  %9720 = vst [vmem:[%s19613_s16 + $0xf8] sm:$0xff] %v9656_v5 }
 0x4b6   : > { %v14992_v43 = vpop.eup %14991  ;;  %v9504_v25 = vpop.xlane.xlu1 %9503  ;;  %v9639_v10 = vmul.f32 %v14990_v50, %v19468_v19 }
 0x4b7   : > { %15001 = vrcp.f32 %v9504_v25  ;;  %v9536_v34 = vpop.xlane.xlu0 %9535  ;;  %v9655_v4 = vmul.f32 %v14992_v43, %v19470_v42 }
 0x4b8   : > { %9703 = vst [vmem:[%s19613_s16 + $0x70] sm:$0xff] %v9639_v10  ;;  %14182 = vmatprep.mubr.f32.mxu1 %v9639_v10  ;;  %15003 = vrcp.f32 %v9536_v34  ;;  %v21691_v10 = vld [vmem:[#allocation49_spill] sm:$0xff] }
 0x4b9   : > { %v14994_v9 = vpop.eup %14993  ;;  %14183 = vmatmul.mubr.f32.gmra.mrb[62].mxu1 %v9640_v49  ;;  %9719 = vst [vmem:[%s19613_s16 + $0xf0] sm:$0xff] %v9655_v4  ;;  %14238 = vmatprep.mubr.f32.mxu0 %v9655_v4 }
 0x4ba   : > { %v14996_v56 = vpop.eup %14995  ;;  %v9658_v14 = vmul.f32 %v14994_v9, %v19476_v3  ;;  %v9502_v12 = vpop.xlane.xlu1 %9501  ;;  %14239 = vmatmul.mubr.f32.gmra.mrb[78].mxu0 %v9656_v5  ;;  %v21692_v9 = vld [vmem:[#allocation50_spill] sm:$0xff] }
 0x4bb   : > { %v9674_v19 = vmul.f32 %v14996_v56, %v19478_v41  ;;  %15005 = vrcp.f32 %v9502_v12  ;;  %v9534_v60 = vpop.xlane.xlu0 %9533  ;;  %v21693_v12 = vld [vmem:[#allocation79_spill] sm:$0xff] }
 0x4bc   : > { %9722 = vst [vmem:[%s19613_s16 + $0x108] sm:$0xff] %v9658_v14  ;;  %15007 = vrcp.f32 %v9534_v60 }
 0x4bd   : > { %v14998_v42 = vpop.eup %14997  ;;  %9738 = vst [vmem:[%s19613_s16 + $0x188] sm:$0xff] %v9674_v19 }
 0x4be   : > { %v15000_v58 = vpop.eup %14999  ;;  %v9508_v52 = vpop.xlane.xlu1 %9507  ;;  %v9657_v38 = vmul.f32 %v14998_v42, %v19484_v7  ;;  %v21694_v42 = vld [vmem:[#allocation13_spill] sm:$0xff] }
 0x4bf   : > { %15009 = vrcp.f32 %v9508_v52  ;;  %v9540_v27 = vpop.xlane.xlu0 %9539  ;;  %v9673_v3 = vmul.f32 %v15000_v58, %v19486_v46 }
 0x4c0   : > { %9721 = vst [vmem:[%s19613_s16 + $0x100] sm:$0xff] %v9657_v38  ;;  %14273 = vmatprep.mubr.f32.mxu1 %v9657_v38  ;;  %15011 = vrcp.f32 %v9540_v27  ;;  %v21695_v27 = vld [vmem:[#allocation60_spill] sm:$0xff] }
 0x4c1   : > { %v15002_v41 = vpop.eup %15001  ;;  %14274 = vmatmul.mubr.f32.vlgmr.msra.gmra.mrb[64].mxu1 %v9658_v14  ;;  %9737 = vst [vmem:[%s19613_s16 + $0x180] sm:$0xff] %v9673_v3  ;;  %14329 = vmatprep.mubr.f32.mxu0 %v9673_v3 }
 0x4c2   : > { %v15004_v29 = vpop.eup %15003  ;;  %v9506_v59 = vpop.xlane.xlu1 %9505  ;;  %14330 = vmatmul.mubr.f32.vlgmr.msra.gmra.mrb[80].mxu0 %v9674_v19  ;;  %v9660_v35 = vmul.f32 %v15002_v41, %v19492_v37  ;;  %v21696_v41 = vld [vmem:[#allocation56_spill] sm:$0xff] }
 0x4c3   : > { %15013 = vrcp.f32 %v9506_v59  ;;  %v9538_v7 = vpop.xlane.xlu0 %9537  ;;  %v9676_v18 = vmul.f32 %v15004_v29, %v19494_v0 }
 0x4c4   : > { %15015 = vrcp.f32 %v9538_v7  ;;  %9724 = vst [vmem:[%s19613_s16 + $0x118] sm:$0xff] %v9660_v35 }
 0x4c5   : > { %v15006_v46 = vpop.eup %15005  ;;  %9740 = vst [vmem:[%s19613_s16 + $0x198] sm:$0xff] %v9676_v18 }
 0x4c6   : > { %v15008_v57 = vpop.eup %15007  ;;  %v9512_v53 = vpop.xlane.xlu1 %9511  ;;  %v9659_v15 = vmul.f32 %v15006_v46, %v19500_v28 }
 0x4c7   : > { %15017 = vrcp.f32 %v9512_v53  ;;  %v9544_v47 = vpop.xlane.xlu0 %9543  ;;  %v9675_v2 = vmul.f32 %v15008_v57, %v19502_v55  ;;  %v21698_v53 = vld [vmem:[#allocation84_spill] sm:$0xff] }
 0x4c8   : > { %9723 = vst [vmem:[%s19613_s16 + $0x110] sm:$0xff] %v9659_v15  ;;  %14276 = vmatprep.mubr.f32.mxu1 %v9659_v15  ;;  %15019 = vrcp.f32 %v9544_v47 }
 0x4c9   : > { %v15010_v37 = vpop.eup %15009  ;;  %14277 = vmatmul.mubr.f32.gmra.mrb[66].mxu1 %v9660_v35  ;;  %9739 = vst [vmem:[%s19613_s16 + $0x190] sm:$0xff] %v9675_v2  ;;  %14332 = vmatprep.mubr.f32.mxu0 %v9675_v2 }
 0x4ca   : > { %v15012_v0 = vpop.eup %15011  ;;  %v9510_v17 = vpop.xlane.xlu1 %9509  ;;  %14333 = vmatmul.mubr.f32.gmra.mrb[82].mxu0 %v9676_v18  ;;  %v9662_v48 = vmul.f32 %v15010_v37, %v19508_v31  ;;  %v21697_v18 = vld [vmem:[#allocation57_spill] sm:$0xff] }
 0x4cb   : > { %15021 = vrcp.f32 %v9510_v17  ;;  %v9542_v28 = vpop.xlane.xlu0 %9541  ;;  %v9678_v24 = vmul.f32 %v15012_v0, %v19510_v45  ;;  %v21699_v0 = vld [vmem:[#allocation58_spill] sm:$0xff] }
 0x4cc   : > { %15023 = vrcp.f32 %v9542_v28  ;;  %9726 = vst [vmem:[%s19613_s16 + $0x128] sm:$0xff] %v9662_v48  ;;  %v21700_v28 = vld [vmem:[#allocation59_spill] sm:$0xff] }
 0x4cd   : > { %v15014_v55 = vpop.eup %15013  ;;  %9742 = vst [vmem:[%s19613_s16 + $0x1a8] sm:$0xff] %v9678_v24 }
 0x4ce   : > { %v15016_v40 = vpop.eup %15015  ;;  %v9516_v36 = vpop.xlane.xlu1 %9515  ;;  %v9661_v63 = vmul.f32 %v15014_v55, %v19516_v21 }
 0x4cf   : > { %15025 = vrcp.f32 %v9516_v36  ;;  %v9548_v13 = vpop.xlane.xlu0 %9547  ;;  %v9677_v62 = vmul.f32 %v15016_v40, %v19518_v33  ;;  %v21701_v36 = vld [vmem:[#allocation53_spill] sm:$0xff] }
 0x4d0   : > { %9725 = vst [vmem:[%s19613_s16 + $0x120] sm:$0xff] %v9661_v63  ;;  %14279 = vmatprep.mubr.f32.mxu1 %v9661_v63  ;;  %15027 = vrcp.f32 %v9548_v13 }
 0x4d1   : > { %v15018_v31 = vpop.eup %15017  ;;  %14280 = vmatmul.mubr.f32.gmra.mrb[68].mxu1 %v9662_v48  ;;  %9741 = vst [vmem:[%s19613_s16 + $0x1a0] sm:$0xff] %v9677_v62  ;;  %14335 = vmatprep.mubr.f32.mxu0 %v9677_v62 }
 0x4d2   : > { %v15020_v45 = vpop.eup %15019  ;;  %v9514_v23 = vpop.xlane.xlu1 %9513  ;;  %14336 = vmatmul.mubr.f32.gmra.mrb[84].mxu0 %v9678_v24  ;;  %v9664_v44 = vmul.f32 %v15018_v31, %v19524_v54 }
 0x4d3   : > { %15029 = vrcp.f32 %v9514_v23  ;;  %v9546_v21 = vpop.xlane.xlu0 %9545  ;;  %v9680_v51 = vmul.f32 %v15020_v45, %v19526_v26  ;;  %v21702_v45 = vld [vmem:[#allocation52_spill] sm:$0xff] }
 0x4d4   : > { %15031 = vrcp.f32 %v9546_v21  ;;  %9728 = vst [vmem:[%s19613_s16 + $0x138] sm:$0xff] %v9664_v44 }
 0x4d5   : > { %v15022_v33 = vpop.eup %15021  ;;  %9744 = vst [vmem:[%s19613_s16 + $0x1b8] sm:$0xff] %v9680_v51 }
 0x4d6   : > { %v15024_v39 = vpop.eup %15023  ;;  %v9520_v16 = vpop.xlane.xlu1 %9519  ;;  %v9663_v30 = vmul.f32 %v15022_v33, %v19532_v32 }
 0x4d7   : > { %15033 = vrcp.f32 %v9520_v16  ;;  %v9552_v20 = vpop.xlane.xlu0 %9551  ;;  %v9679_v49 = vmul.f32 %v15024_v39, %v19534_v6 }
 0x4d8   : > { %9727 = vst [vmem:[%s19613_s16 + $0x130] sm:$0xff] %v9663_v30  ;;  %14282 = vmatprep.mubr.f32.mxu1 %v9663_v30  ;;  %15035 = vrcp.f32 %v9552_v20 }
 0x4d9   : > { %v15026_v54 = vpop.eup %15025  ;;  %14283 = vmatmul.mubr.f32.gmra.mrb[70].mxu1 %v9664_v44  ;;  %9743 = vst [vmem:[%s19613_s16 + $0x1b0] sm:$0xff] %v9679_v49  ;;  %14338 = vmatprep.mubr.f32.mxu0 %v9679_v49 }
 0x4da   : > { %v15028_v26 = vpop.eup %15027  ;;  %v9518_v1 = vpop.xlane.xlu1 %9517  ;;  %14339 = vmatmul.mubr.f32.gmra.mrb[86].mxu0 %v9680_v51  ;;  %v9666_v5 = vmul.f32 %v15026_v54, %v19540_v61 }
 0x4db   : > { %15037 = vrcp.f32 %v9518_v1  ;;  %v9550_v32 = vpop.xlane.xlu0 %9549  ;;  %v9682_v50 = vmul.f32 %v15028_v26, %v19542_v11 }
 0x4dc   : > { %15039 = vrcp.f32 %v9550_v32  ;;  %9730 = vst [vmem:[%s19613_s16 + $0x148] sm:$0xff] %v9666_v5 }
 0x4dd   : > { %v15030_v6 = vpop.eup %15029  ;;  %9746 = vst [vmem:[%s19613_s16 + $0x1c8] sm:$0xff] %v9682_v50 }
 0x4de   : > { %v15032_v43 = vpop.eup %15031  ;;  %v9524_v25 = vpop.xlane.xlu1 %9523  ;;  %v9665_v34 = vmul.f32 %v15030_v6, %v21691_v10 }
 0x4df   : > { %15041 = vrcp.f32 %v9524_v25  ;;  %v9556_v4 = vpop.xlane.xlu0 %9555  ;;  %v9681_v56 = vmul.f32 %v15032_v43, %v21692_v9 }
 0x4e0   : > { %9729 = vst [vmem:[%s19613_s16 + $0x140] sm:$0xff] %v9665_v34  ;;  %14285 = vmatprep.mubr.f32.mxu1 %v9665_v34  ;;  %15043 = vrcp.f32 %v9556_v4 }
 0x4e1   : > { %v15034_v61 = vpop.eup %15033  ;;  %14286 = vmatmul.mubr.f32.gmra.mrb[72].mxu1 %v9666_v5  ;;  %9745 = vst [vmem:[%s19613_s16 + $0x1c0] sm:$0xff] %v9681_v56  ;;  %14341 = vmatprep.mubr.f32.mxu0 %v9681_v56 }
 0x4e2   : > { %v15036_v11 = vpop.eup %15035  ;;  %v9522_v14 = vpop.xlane.xlu1 %9521  ;;  %14342 = vmatmul.mubr.f32.gmra.mrb[88].mxu0 %v9682_v50  ;;  %v9668_v19 = vmul.f32 %v15034_v61, %v21693_v12 }
 0x4e3   : > { %15045 = vrcp.f32 %v9522_v14  ;;  %v9554_v60 = vpop.xlane.xlu0 %9553  ;;  %v9684_v58 = vmul.f32 %v15036_v11, %v21694_v42 }
 0x4e4   : > { %15047 = vrcp.f32 %v9554_v60  ;;  %9732 = vst [vmem:[%s19613_s16 + $0x158] sm:$0xff] %v9668_v19 }
 0x4e5   : > { %v15038_v52 = vpop.eup %15037  ;;  %9748 = vst [vmem:[%s19613_s16 + $0x1d8] sm:$0xff] %v9684_v58 }
 0x4e6   : > { %v15040_v38 = vpop.eup %15039  ;;  %v9667_v3 = vmul.f32 %v15038_v52, %v21695_v27 }
 0x4e7   : > { %v9683_v29 = vmul.f32 %v15040_v38, %v21696_v41 }
 0x4e8   : > { %9731 = vst [vmem:[%s19613_s16 + $0x150] sm:$0xff] %v9667_v3  ;;  %14288 = vmatprep.mubr.f32.mxu1 %v9667_v3 }
 0x4e9   : > { %v15042_v59 = vpop.eup %15041  ;;  %14289 = vmatmul.mubr.f32.gmra.mrb[74].mxu1 %v9668_v19  ;;  %9747 = vst [vmem:[%s19613_s16 + $0x1d0] sm:$0xff] %v9683_v29  ;;  %14344 = vmatprep.mubr.f32.mxu0 %v9683_v29 }
 0x4ea   : > { %v15044_v35 = vpop.eup %15043  ;;  %v9526_v7 = vpop.xlane.xlu1 %9525  ;;  %14345 = vmatmul.mubr.f32.gmra.mrb[90].mxu0 %v9684_v58  ;;  %v9670_v46 = vmul.f32 %v15042_v59, %v21697_v18 }
 0x4eb   : > { %15049 = vrcp.f32 %v9526_v7  ;;  %v9558_v57 = vpop.xlane.xlu0 %9557  ;;  %v9686_v15 = vmul.f32 %v15044_v35, %v21698_v53  ;;  %v21709_v53 = vld [vmem:[#allocation7_spill] sm:$0xff] }
 0x4ec   : > { %15051 = vrcp.f32 %v9558_v57  ;;  %9734 = vst [vmem:[%s19613_s16 + $0x168] sm:$0xff] %v9670_v46 }
 0x4ed   : > { %v15046_v47 = vpop.eup %15045  ;;  %9750 = vst [vmem:[%s19613_s16 + $0x1e8] sm:$0xff] %v9686_v15 }
 0x4ee   : > { %v15048_v2 = vpop.eup %15047  ;;  %v9528_v37 = vpop.xlane.xlu1 %9527  ;;  %v9669_v17 = vmul.f32 %v15046_v47, %v21699_v0 }
 0x4ef   : > { %15053 = vrcp.f32 %v9528_v37  ;;  %v9685_v24 = vmul.f32 %v15048_v2, %v21700_v28 }
 0x4f0   : > { %v9560_v48 = vpop.xlane.xlu0 %9559  ;;  %9733 = vst [vmem:[%s19613_s16 + $0x160] sm:$0xff] %v9669_v17  ;;  %14291 = vmatprep.mubr.f32.mxu1 %v9669_v17 }
 0x4f1   : > { %15055 = vrcp.f32 %v9560_v48  ;;  %14292 = vmatmul.mubr.f32.gmra.mrb[76].mxu1 %v9670_v46  ;;  %9749 = vst [vmem:[%s19613_s16 + $0x1e0] sm:$0xff] %v9685_v24  ;;  %14347 = vmatprep.mubr.f32.mxu0 %v9685_v24 }
 0x4f2   : > { %14348 = vmatmul.mubr.f32.gmra.mrb[92].mxu0 %v9686_v15 }
 0x4f5   : > { %v15050_v55 = vpop.eup %15049 }
 0x4f6   : > { %v15052_v40 = vpop.eup %15051  ;;  %v9671_v63 = vmul.f32 %v15050_v55, %v21701_v36 }
 0x4f7   : > { %v9687_v13 = vmul.f32 %v15052_v40, %v19603_v8 }
 0x4f8   : > { %9735 = vst [vmem:[%s19613_s16 + $0x170] sm:$0xff] %v9671_v63  ;;  %14294 = vmatprep.mubr.f32.mxu1 %v9671_v63 }
 0x4f9   : > { %v15054_v62 = vpop.eup %15053  ;;  %9751 = vst [vmem:[%s19613_s16 + $0x1f0] sm:$0xff] %v9687_v13  ;;  %14350 = vmatprep.mubr.f32.mxu0 %v9687_v13 }
 0x4fa   : > { %v9672_v23 = vmul.f32 %v15054_v62, %v21702_v45  ;;  %v21710_v45 = vld [vmem:[#allocation12_spill] sm:$0xff] }
 0x4fb   : > { %v15056_v31 = vpop.eup %15055 }
 0x4fc   : > { %v9688_v44 = vmul.f32 %v15056_v31, %v19609_v22  ;;  %9736 = vst [vmem:[%s19613_s16 + $0x178] sm:$0xff] %v9672_v23  ;;  %14295 = vmatmul.mubr.f32.gmra.mrb[78].mxu1 %v9672_v23 }
 0x4fe   : > { %9752 = vst [vmem:[%s19613_s16 + $0x1f8] sm:$0xff] %v9688_v44  ;;  %14351 = vmatmul.mubr.f32.gmra.mrb[94].mxu0 %v9688_v44 }
 0x537   : > { %v14219_v21 = vpop.f32.mrb[64].mxu0 }
 0x538   : > { %v9964_v51 = vpop.f32.mrb[65].mxu0 }
 0x53c   : > { %v14163_v33 = vpop.f32.mrb[48].mxu1 }
 0x53d   : > { %v9819_v39 = vpop.f32.mrb[49].mxu1 }
 0x548   : > { %v19767_v16 = vpop.f32.mrb[66].mxu0 }
 0x549   : > { %v19769_v8 = vpop.f32.mrb[67].mxu0 }
 0x54d   : > { %v19771_v30 = vpop.f32.mrb[50].mxu1 }
 0x54e   : > { %v19773_v20 = vpop.f32.mrb[51].mxu1 }
 0x551   : > { %v19775_v49 = vpop.f32.mrb[52].mxu1 }
 0x552   : > { %v19777_v54 = vpop.f32.mrb[53].mxu1 }
 0x553   : > { %v19779_v22 = vpop.f32.mrb[68].mxu0 }
 0x554   : > { %v19781_v26 = vpop.f32.mrb[69].mxu0 }
 0x55a   : > { %v19783_v1 = vpop.f32.mrb[54].mxu1 }
 0x55b   : > { %v19785_v5 = vpop.f32.mrb[55].mxu1  ;;  %v19787_v32 = vpop.f32.mrb[70].mxu0 }
 0x55c   : > { %v19789_v50 = vpop.f32.mrb[71].mxu0 }
 0x562   : > { %v19791_v6 = vpop.f32.mrb[56].mxu1 }
 0x563   : > { %v19793_v43 = vpop.f32.mrb[57].mxu1  ;;  %v19795_v25 = vpop.f32.mrb[72].mxu0 }
 0x564   : > { %v19797_v10 = vpop.f32.mrb[73].mxu0 }
 0x56c   : > { %v19799_v34 = vpop.f32.mrb[58].mxu1 }
 0x56d   : > { %v19801_v4 = vpop.f32.mrb[59].mxu1 }
 0x56e   : > { %v19803_v9 = vpop.f32.mrb[74].mxu0 }
 0x56f   : > { %v19805_v56 = vpop.f32.mrb[75].mxu0 }
 0x582   : > { %v19807_v61 = vpop.f32.mrb[60].mxu1 }
 0x583   : > { %v19809_v11 = vpop.f32.mrb[61].mxu1  ;;  %v19811_v14 = vpop.f32.mrb[76].mxu0 }
 0x584   : > { %21703 = vst [vmem:[#allocation89_spill] sm:$0xff] %v19811_v14  ;;  %v19813_v12 = vpop.f32.mrb[77].mxu0 }
 0x585   : > { %21704 = vst [vmem:[#allocation93_spill] sm:$0xff] %v19813_v12 }
 0x58c   : > { %v19815_v19 = vpop.f32.mrb[62].mxu1 }
 0x58d   : > { %21705 = vst [vmem:[#allocation8_spill] sm:$0xff] %v19815_v19  ;;  %v19817_v60 = vpop.f32.mrb[63].mxu1  ;;  %v19819_v42 = vpop.f32.mrb[78].mxu0 }
 0x58e   : > { %21706 = vst [vmem:[#allocation11_spill] sm:$0xff] %v19817_v60  ;;  %21707 = vst [vmem:[#allocation28_spill] sm:$0xff] %v19819_v42  ;;  %v19821_v58 = vpop.f32.mrb[79].mxu0 }
 0x58f   : > { %21708 = vst [vmem:[#allocation29_spill] sm:$0xff] %v19821_v58 }
 0x594   : > { %v14275_v52 = vpop.f32.mrb[64].mxu1 }
 0x595   : > { %v10401_v38 = vcombine.low %v14163_v33, %v14275_v52  ;;  %v10402_v27 = vcombine.high %v14163_v33, %v14275_v52  ;;  %v10109_v3 = vpop.f32.mrb[65].mxu1  ;;  %v14331_v41 = vpop.f32.mrb[80].mxu0 }
 0x596   : > { %v10333_v29 = vcombine.low %v9819_v39, %v10109_v3  ;;  %v10334_v59 = vcombine.high %v9819_v39, %v10109_v3  ;;  %v10417_v35 = vcombine.low %v14219_v21, %v14331_v41  ;;  %v10418_v7 = vcombine.high %v14219_v21, %v14331_v41  ;;  %v10254_v18 = vpop.f32.mrb[81].mxu0 }
 0x597   : > { %v10349_v46 = vcombine.low %v9964_v51, %v10254_v18  ;;  %v10350_v57 = vcombine.high %v9964_v51, %v10254_v18  ;;  %v10409_v15 = vrot.slane %v10401_v38, %v21709_v53  ;;  %v10416_v47 = vrot.slane %v10402_v27, %v21709_v53 }
 0x598   : > { %v10425_v2 = vrot.slane %v10417_v35, %v21709_v53  ;;  %v10432_v37 = vrot.slane %v10418_v7, %v21709_v53  ;;  %v10341_v0 = vrot.slane %v10333_v29, %v21709_v53  ;;  %v10348_v17 = vrot.slane %v10334_v59, %v21709_v53 }
 0x599   : > { %v10357_v48 = vrot.slane %v10349_v46, %v21709_v53  ;;  %v10364_v28 = vrot.slane %v10350_v57, %v21709_v53 }
 0x59a   : > { %v10433_v24 = vcombine.low %v10409_v15, %v10425_v2  ;;  %v10434_v55 = vcombine.high %v10409_v15, %v10425_v2  ;;  %v10449_v40 = vcombine.low %v10416_v47, %v10432_v37  ;;  %v10450_v36 = vcombine.high %v10416_v47, %v10432_v37 }
 0x59b   : > { %v10365_v63 = vcombine.low %v10341_v0, %v10357_v48  ;;  %v10366_v13 = vcombine.high %v10341_v0, %v10357_v48  ;;  %v10381_v62 = vcombine.low %v10348_v17, %v10364_v28  ;;  %v10382_v31 = vcombine.high %v10348_v17, %v10364_v28 }
 0x59c   : > { %v10441_v23 = vrot.slane %v10433_v24, %v21710_v45  ;;  %v10448_v44 = vrot.slane %v10434_v55, %v21710_v45  ;;  %v10457_v21 = vrot.slane %v10449_v40, %v21710_v45  ;;  %v10464_v51 = vrot.slane %v10450_v36, %v21710_v45  ;;  %v14278_v33 = vpop.f32.mrb[66].mxu1 }
 0x59d   : > { %v10373_v39 = vrot.slane %v10365_v63, %v21710_v45  ;;  %v10380_v52 = vrot.slane %v10366_v13, %v21710_v45  ;;  %v10389_v38 = vrot.slane %v10381_v62, %v21710_v45  ;;  %v10396_v27 = vrot.slane %v10382_v31, %v21710_v45  ;;  %v10119_v3 = vpop.f32.mrb[67].mxu1  ;;  %v14334_v41 = vpop.f32.mrb[82].mxu0 }
 0x59e   : > { %v11489_v29 = vcombine.low %v10441_v23, %v10448_v44  ;;  %v13417_v59 = vcombine.high %v10441_v23, %v10448_v44  ;;  %v11505_v35 = vcombine.low %v10457_v21, %v10464_v51  ;;  %v13418_v7 = vcombine.high %v10457_v21, %v10464_v51  ;;  %v10264_v18 = vpop.f32.mrb[83].mxu0 }
 0x59f   : > { %v11421_v46 = vcombine.low %v10373_v39, %v10380_v52  ;;  %v13415_v57 = vcombine.high %v10373_v39, %v10380_v52  ;;  %v11437_v15 = vcombine.low %v10389_v38, %v10396_v27  ;;  %v13416_v47 = vcombine.high %v10389_v38, %v10396_v27 }
 0x5a0   : > { %v19840_v2 = vrot.slane %v11489_v29, %v21709_v53  ;;  %v19843_v37 = vrot.slane %v13417_v59, %v21709_v53  ;;  %v19846_v0 = vrot.slane %v11505_v35, %v21709_v53  ;;  %v19849_v17 = vrot.slane %v13418_v7, %v21709_v53 }
 0x5a1   : > { %v19852_v48 = vrot.slane %v11421_v46, %v21709_v53  ;;  %v19855_v28 = vrot.slane %v13415_v57, %v21709_v53  ;;  %v19858_v24 = vrot.slane %v11437_v15, %v21709_v53  ;;  %v19861_v55 = vrot.slane %v13416_v47, %v21709_v53 }
 0x5a2   : > { %v10537_v40 = vcombine.low %v19771_v30, %v14278_v33  ;;  %v10538_v36 = vcombine.high %v19771_v30, %v14278_v33  ;;  %v10469_v63 = vcombine.low %v19773_v20, %v10119_v3  ;;  %v10470_v13 = vcombine.high %v19773_v20, %v10119_v3 }
 0x5a3   : > { %v10553_v62 = vcombine.low %v19767_v16, %v14334_v41  ;;  %v10554_v31 = vcombine.high %v19767_v16, %v14334_v41  ;;  %v10485_v23 = vcombine.low %v19769_v8, %v10264_v18  ;;  %v10486_v44 = vcombine.high %v19769_v8, %v10264_v18 }
 0x5a4   : > { %v10545_v21 = vrot.slane %v10537_v40, %v21709_v53  ;;  %v10552_v51 = vrot.slane %v10538_v36, %v21709_v53  ;;  %v10477_v39 = vrot.slane %v10469_v63, %v21709_v53  ;;  %v10484_v30 = vrot.slane %v10470_v13, %v21709_v53  ;;  %v14281_v33 = vpop.f32.mrb[68].mxu1 }
 0x5a5   : > { %v10561_v52 = vrot.slane %v10553_v62, %v21709_v53  ;;  %v10568_v20 = vrot.slane %v10554_v31, %v21709_v53  ;;  %v10493_v38 = vrot.slane %v10485_v23, %v21709_v53  ;;  %v10500_v16 = vrot.slane %v10486_v44, %v21709_v53  ;;  %v10129_v27 = vpop.f32.mrb[69].mxu1  ;;  %v14337_v3 = vpop.f32.mrb[84].mxu0 }
 0x5a6   : > { %v10673_v8 = vcombine.low %v19775_v49, %v14281_v33  ;;  %v10674_v41 = vcombine.high %v19775_v49, %v14281_v33  ;;  %v10605_v29 = vcombine.low %v19777_v54, %v10129_v27  ;;  %v10606_v59 = vcombine.high %v19777_v54, %v10129_v27  ;;  %v10274_v35 = vpop.f32.mrb[85].mxu0 }
 0x5a7   : > { %v10569_v7 = vcombine.low %v10545_v21, %v10561_v52  ;;  %v10570_v18 = vcombine.high %v10545_v21, %v10561_v52  ;;  %v10585_v46 = vcombine.low %v10552_v51, %v10568_v20  ;;  %v10586_v57 = vcombine.high %v10552_v51, %v10568_v20 }
 0x5a8   : > { %v10501_v15 = vcombine.low %v10477_v39, %v10493_v38  ;;  %v10502_v47 = vcombine.high %v10477_v39, %v10493_v38  ;;  %v10517_v40 = vcombine.low %v10484_v30, %v10500_v16  ;;  %v10518_v36 = vcombine.high %v10484_v30, %v10500_v16 }
 0x5a9   : > { %v10577_v63 = vrot.slane %v10569_v7, %v21710_v45  ;;  %v10584_v13 = vrot.slane %v10570_v18, %v21710_v45  ;;  %v10593_v62 = vrot.slane %v10585_v46, %v21710_v45  ;;  %v10600_v49 = vrot.slane %v10586_v57, %v21710_v45 }
 0x5aa   : > { %v10509_v31 = vrot.slane %v10501_v15, %v21710_v45  ;;  %v10516_v54 = vrot.slane %v10502_v47, %v21710_v45  ;;  %v10525_v23 = vrot.slane %v10517_v40, %v21710_v45  ;;  %v10532_v44 = vrot.slane %v10518_v36, %v21710_v45 }
 0x5ab   : > { %v11625_v21 = vcombine.low %v10577_v63, %v10584_v13  ;;  %v13421_v51 = vcombine.high %v10577_v63, %v10584_v13  ;;  %v11641_v39 = vcombine.low %v10593_v62, %v10600_v49  ;;  %v13422_v30 = vcombine.high %v10593_v62, %v10600_v49 }
 0x5ac   : > { %v11557_v33 = vcombine.low %v10509_v31, %v10516_v54  ;;  %v13419_v52 = vcombine.high %v10509_v31, %v10516_v54  ;;  %v11573_v20 = vcombine.low %v10525_v23, %v10532_v44  ;;  %v13420_v38 = vcombine.high %v10525_v23, %v10532_v44  ;;  %v19891_v16 = vpop.f32.mrb[70].mxu1 }
 0x5ad   : > { %v19894_v27 = vrot.slane %v11625_v21, %v21709_v53  ;;  %v19897_v7 = vrot.slane %v13421_v51, %v21709_v53  ;;  %v19900_v18 = vrot.slane %v11641_v39, %v21709_v53  ;;  %v19903_v46 = vrot.slane %v13422_v30, %v21709_v53  ;;  %v19905_v57 = vpop.f32.mrb[71].mxu1  ;;  %v19907_v15 = vpop.f32.mrb[86].mxu0 }
 0x5ae   : > { %v19910_v47 = vrot.slane %v11557_v33, %v21709_v53  ;;  %v19913_v40 = vrot.slane %v13419_v52, %v21709_v53  ;;  %v19916_v36 = vrot.slane %v11573_v20, %v21709_v53  ;;  %v19919_v63 = vrot.slane %v13420_v38, %v21709_v53  ;;  %v19921_v13 = vpop.f32.mrb[87].mxu0 }
 0x5af   : > { %v10681_v62 = vrot.slane %v10673_v8, %v21709_v53  ;;  %v10688_v49 = vrot.slane %v10674_v41, %v21709_v53  ;;  %v10613_v31 = vrot.slane %v10605_v29, %v21709_v53  ;;  %v10620_v54 = vrot.slane %v10606_v59, %v21709_v53 }
 0x5b0   : > { %v10689_v23 = vcombine.low %v19779_v22, %v14337_v3  ;;  %v10690_v44 = vcombine.high %v19779_v22, %v14337_v3  ;;  %v10621_v21 = vcombine.low %v19781_v26, %v10274_v35  ;;  %v10622_v51 = vcombine.high %v19781_v26, %v10274_v35 }
 0x5b1   : > { %v11522_v39 = vcombine.high %v19840_v2, %v19843_v37  ;;  %v11538_v8 = vcombine.high %v19846_v0, %v19849_v17  ;;  %v11521_v41 = vcombine.low %v19840_v2, %v19843_v37  ;;  %v11537_v29 = vcombine.low %v19846_v0, %v19849_v17 }
 0x5b2   : > { %v10697_v59 = vrot.slane %v10689_v23, %v21709_v53  ;;  %v10704_v22 = vrot.slane %v10690_v44, %v21709_v53  ;;  %v10629_v3 = vrot.slane %v10621_v21, %v21709_v53  ;;  %v10636_v26 = vrot.slane %v10622_v51, %v21709_v53 }
 0x5b3   : > { %v19944_v35 = vrot.slane %v11522_v39, %v21710_v45  ;;  %v19947_v30 = vrot.slane %v11538_v8, %v21710_v45  ;;  %v19950_v33 = vrot.slane %v11521_v41, %v21710_v45  ;;  %v19953_v2 = vrot.slane %v11537_v29, %v21710_v45 }
 0x5b4   : > { %v10705_v37 = vcombine.low %v10681_v62, %v10697_v59  ;;  %v10706_v0 = vcombine.high %v10681_v62, %v10697_v59  ;;  %v10721_v17 = vcombine.low %v10688_v49, %v10704_v22  ;;  %v10722_v52 = vcombine.high %v10688_v49, %v10704_v22  ;;  %v19955_v20 = vpop.f32.mrb[72].mxu1 }
 0x5b5   : > { %21711 = vst [vmem:[#allocation46_spill] sm:$0xff] %v19950_v33  ;;  %21712 = vst [vmem:[#allocation37_spill] sm:$0xff] %v19953_v2  ;;  %v10637_v38 = vcombine.low %v10613_v31, %v10629_v3  ;;  %v10638_v23 = vcombine.high %v10613_v31, %v10629_v3  ;;  %v10653_v44 = vcombine.low %v10620_v54, %v10636_v26  ;;  %v19957_v51 = vpop.f32.mrb[73].mxu1  ;;  %v19959_v39 = vpop.f32.mrb[88].mxu0 }
 0x5b6   : > { %v10654_v21 = vcombine.high %v10620_v54, %v10636_v26  ;;  %v10713_v8 = vrot.slane %v10705_v37, %v21710_v45  ;;  %v10720_v41 = vrot.slane %v10706_v0, %v21710_v45  ;;  %v10729_v29 = vrot.slane %v10721_v17, %v21710_v45  ;;  %v19965_v59 = vpop.f32.mrb[89].mxu0 }
 0x5b7   : > { %v10736_v62 = vrot.slane %v10722_v52, %v21710_v45  ;;  %v10645_v49 = vrot.slane %v10637_v38, %v21710_v45  ;;  %v10652_v31 = vrot.slane %v10638_v23, %v21710_v45  ;;  %v10661_v54 = vrot.slane %v10653_v44, %v21710_v45 }
 0x5b8   : > { %v10668_v22 = vrot.slane %v10654_v21, %v21710_v45  ;;  %v11761_v3 = vcombine.low %v10713_v8, %v10720_v41  ;;  %v13425_v26 = vcombine.high %v10713_v8, %v10720_v41 }
 0x5b9   : > { %v11777_v58 = vcombine.low %v10729_v29, %v10736_v62  ;;  %v13426_v37 = vcombine.high %v10729_v29, %v10736_v62  ;;  %v11693_v60 = vcombine.low %v10645_v49, %v10652_v31  ;;  %v13423_v0 = vcombine.high %v10645_v49, %v10652_v31 }
 0x5ba   : > { %v11709_v42 = vcombine.low %v10661_v54, %v10668_v22  ;;  %v13424_v17 = vcombine.high %v10661_v54, %v10668_v22  ;;  %v19972_v52 = vrot.slane %v11761_v3, %v21709_v53  ;;  %v19975_v19 = vrot.slane %v13425_v26, %v21709_v53 }
 0x5bb   : > { %v19978_v38 = vrot.slane %v11777_v58, %v21709_v53  ;;  %v19981_v23 = vrot.slane %v13426_v37, %v21709_v53  ;;  %v19984_v44 = vrot.slane %v11693_v60, %v21709_v53  ;;  %v19987_v21 = vrot.slane %v13423_v0, %v21709_v53 }
 0x5bc   : > { %v19990_v8 = vrot.slane %v11709_v42, %v21709_v53  ;;  %v19993_v41 = vrot.slane %v13424_v17, %v21709_v53  ;;  %v11555_v29 = vcombine.low %v19944_v35, %v19947_v30  ;;  %v11554_v58 = vcombine.high %v19950_v33, %v19953_v2  ;;  %v20003_v49 = vpop.f32.mrb[74].mxu1 }
 0x5bd   : > { %v10809_v62 = vcombine.low %v19783_v1, %v19891_v16  ;;  %v10810_v60 = vcombine.high %v19783_v1, %v19891_v16  ;;  %v10741_v42 = vcombine.low %v19785_v5, %v19905_v57  ;;  %v10742_v31 = vcombine.high %v19785_v5, %v19905_v57  ;;  %v20013_v3 = vpop.f32.mrb[75].mxu1  ;;  %v20015_v26 = vpop.f32.mrb[90].mxu0 }
 0x5be   : > { %v11556_v54 = vcombine.high %v19944_v35, %v19947_v30  ;;  %v11454_v22 = vcombine.high %v19852_v48, %v19855_v28  ;;  %12591 = vrot.lane.b32.xlu1 %v11555_v29, %s15143_s23  ;;  %12527 = vrot.lane.b32.xlu0 %v11554_v58, %s21185_s24  ;;  %v11470_v16 = vcombine.high %v19858_v24, %v19861_v55  ;;  %v20023_v57 = vpop.f32.mrb[91].mxu0 }
 0x5bf   : > { %v10817_v1 = vrot.slane %v10809_v62, %v21709_v53  ;;  %v10824_v5 = vrot.slane %v10810_v60, %v21709_v53  ;;  %v10749_v35 = vrot.slane %v10741_v42, %v21709_v53  ;;  %v10756_v30 = vrot.slane %v10742_v31, %v21709_v53 }
 0x5c0   : > { %v20028_v37 = vrot.slane %v11454_v22, %v21710_v45  ;;  %v10825_v0 = vcombine.low %v19787_v32, %v19907_v15  ;;  %v20033_v17 = vrot.slane %v11470_v16, %v21710_v45  ;;  %v10826_v29 = vcombine.high %v19787_v32, %v19907_v15 }
 0x5c1   : > { %v10757_v58 = vcombine.low %v19789_v50, %v19921_v13  ;;  %v10758_v62 = vcombine.high %v19789_v50, %v19921_v13  ;;  %v11453_v42 = vcombine.low %v19852_v48, %v19855_v28  ;;  %v11469_v31 = vcombine.low %v19858_v24, %v19861_v55 }
 0x5c2   : > { %v10833_v60 = vrot.slane %v10825_v0, %v21709_v53  ;;  %v11589_v22 = vcombine.low %v19910_v47, %v19913_v40  ;;  %12655 = vrot.lane.b32.xlu1 %v11556_v54, %s15145_s14  ;;  %v11488_v32 = vcombine.high %v20028_v37, %v20033_v17  ;;  %v10840_v15 = vrot.slane %v10826_v29, %v21709_v53 }
 0x5c3   : > { %v10765_v50 = vrot.slane %v10757_v58, %v21709_v53  ;;  %v10772_v13 = vrot.slane %v10758_v62, %v21709_v53  ;;  %v20055_v28 = vrot.slane %v11453_v42, %v21710_v45  ;;  %v20058_v24 = vrot.slane %v11469_v31, %v21710_v45 }
 0x5c4   : > { %v10841_v16 = vcombine.low %v10817_v1, %v10833_v60  ;;  %v10842_v48 = vcombine.high %v10817_v1, %v10833_v60  ;;  %12653 = vrot.lane.b32.xlu0 %v11488_v32, %s15145_s14  ;;  %v10857_v55 = vcombine.low %v10824_v5, %v10840_v15  ;;  %v10858_v54 = vcombine.high %v10824_v5, %v10840_v15  ;;  %v20061_v2 = vpop.f32.mrb[76].mxu1 }
 0x5c5   : > { %21713 = vst [vmem:[#allocation38_spill] sm:$0xff] %v20055_v28  ;;  %21714 = vst [vmem:[#allocation55_spill] sm:$0xff] %v20058_v24  ;;  %v10773_v0 = vcombine.low %v10749_v35, %v10765_v50  ;;  %v10774_v33 = vcombine.high %v10749_v35, %v10765_v50  ;;  %v10789_v62 = vcombine.low %v10756_v30, %v10772_v13  ;;  %v20065_v60 = vpop.f32.mrb[77].mxu1  ;;  %v20067_v42 = vpop.f32.mrb[92].mxu0 }
 0x5c6   : > { %v10849_v29 = vrot.slane %v10841_v16, %v21710_v45  ;;  %v10856_v58 = vrot.slane %v10842_v48, %v21710_v45  ;;  %v10790_v1 = vcombine.high %v10756_v30, %v10772_v13  ;;  %21715 = vst [vmem:[#allocation16_spill] sm:$0xff] %v20067_v42  ;;  %v10865_v31 = vrot.slane %v10857_v55, %v21710_v45  ;;  %v20073_v15 = vpop.f32.mrb[93].mxu0 }
 0x5c7   : > { %v10872_v32 = vrot.slane %v10858_v54, %v21710_v45  ;;  %v10781_v5 = vrot.slane %v10773_v0, %v21710_v45  ;;  %v10788_v35 = vrot.slane %v10774_v33, %v21710_v45  ;;  %21716 = vst [vmem:[#allocation54_spill] sm:$0xff] %v20073_v15  ;;  %v10797_v48 = vrot.slane %v10789_v62, %v21710_v45 }
 0x5c8   : > { %v11897_v50 = vcombine.low %v10849_v29, %v10856_v58  ;;  %v13429_v16 = vcombine.high %v10849_v29, %v10856_v58  ;;  %v10804_v30 = vrot.slane %v10790_v1, %v21710_v45 }
 0x5c9   : > { %v11913_v13 = vcombine.low %v10865_v31, %v10872_v32  ;;  %v13430_v12 = vcombine.high %v10865_v31, %v10872_v32  ;;  %v11829_v14 = vcombine.low %v10781_v5, %v10788_v35  ;;  %v13427_v42 = vcombine.high %v10781_v5, %v10788_v35 }
 0x5ca   : > { %v20078_v55 = vrot.slane %v11897_v50, %v21709_v53  ;;  %v20081_v54 = vrot.slane %v13429_v16, %v21709_v53  ;;  %v11845_v0 = vcombine.low %v10797_v48, %v10804_v30  ;;  %v13428_v33 = vcombine.high %v10797_v48, %v10804_v30 }
 0x5cb   : > { %v20084_v15 = vrot.slane %v11913_v13, %v21709_v53  ;;  %v20087_v29 = vrot.slane %v13430_v12, %v21709_v53  ;;  %v20090_v58 = vrot.slane %v11829_v14, %v21709_v53  ;;  %v20093_v62 = vrot.slane %v13427_v42, %v21709_v53 }
 0x5cc   : > { %v20096_v1 = vrot.slane %v11845_v0, %v21709_v53  ;;  %v20099_v31 = vrot.slane %v13428_v33, %v21709_v53  ;;  %v11486_v32 = vcombine.high %v20055_v28, %v20058_v24  ;;  %v20104_v5 = vrot.slane %v11589_v22, %v21710_v45 }
 0x5cd   : > { %21717 = vst [vmem:[#allocation71_spill] sm:$0xff] %v20084_v15  ;;  %v11605_v12 = vcombine.low %v19916_v36, %v19919_v63  ;;  %v10945_v14 = vcombine.low %v19791_v6, %v19955_v20  ;;  %v10946_v42 = vcombine.high %v19791_v6, %v19955_v20  ;;  %v10877_v35 = vcombine.low %v19793_v43, %v19957_v51 }
 0x5ce   : > { %21718 = vst [vmem:[#allocation69_spill] sm:$0xff] %v20104_v5  ;;  %12525 = vrot.lane.b32.xlu1 %v11486_v32, %s21185_s24  ;;  %v10878_v50 = vcombine.high %v19793_v43, %v19957_v51  ;;  %v11487_v22 = vcombine.low %v20028_v37, %v20033_v17  ;;  %v11590_v16 = vcombine.high %v19910_v47, %v19913_v40 }
 0x5cf   : > { %v11606_v48 = vcombine.high %v19916_v36, %v19919_v63  ;;  %v20124_v30 = vrot.slane %v11605_v12, %v21710_v45  ;;  %v10953_v6 = vrot.slane %v10945_v14, %v21709_v53  ;;  %v10960_v20 = vrot.slane %v10946_v42, %v21709_v53  ;;  %v20134_v40 = vpop.f32.mrb[78].mxu1 }
 0x5d0   : > { %v10885_v13 = vrot.slane %v10877_v35, %v21709_v53  ;;  %v10892_v43 = vrot.slane %v10878_v50, %v21709_v53  ;;  %v11604_v51 = vrot.slane %v11590_v16, %v21710_v45  ;;  %v10961_v47 = vcombine.low %v19795_v25, %v19959_v39  ;;  %v20146_v32 = vpop.f32.mrb[79].mxu1 }
 0x5d1   : > { %21719 = vst [vmem:[#allocation35_spill] sm:$0xff] %v20124_v30  ;;  %v11620_v37 = vrot.slane %v11606_v48, %v21710_v45  ;;  %v11622_v36 = vcombine.high %v20104_v5, %v20124_v30  ;;  %v10962_v63 = vcombine.high %v19795_v25, %v19959_v39  ;;  %v10893_v17 = vcombine.low %v19797_v10, %v19965_v59  ;;  %v20144_v33 = vpop.f32.mrb[94].mxu0 }
 0x5d2   : > { %v10894_v0 = vcombine.high %v19797_v10, %v19965_v59  ;;  %12589 = vrot.lane.b32.xlu1 %v11487_v22, %s15143_s23  ;;  %v10969_v14 = vrot.slane %v10961_v47, %v21709_v53  ;;  %v11657_v42 = vcombine.low %v19894_v27, %v19897_v7  ;;  %v11673_v25 = vcombine.low %v19900_v18, %v19903_v46  ;;  %v20154_v39 = vpop.f32.mrb[95].mxu0 }
 0x5d3   : > { %v11623_v12 = vcombine.low %v11604_v51, %v11620_v37  ;;  %12529 = vrot.lane.b32.xlu0 %v11622_v36, %s21185_s24  ;;  %v10976_v10 = vrot.slane %v10962_v63, %v21709_v53  ;;  %v10901_v59 = vrot.slane %v10893_v17, %v21709_v53  ;;  %v11624_v50 = vcombine.high %v11604_v51, %v11620_v37 }
 0x5d4   : > { %v10908_v35 = vrot.slane %v10894_v0, %v21709_v53  ;;  %v10977_v22 = vcombine.low %v10953_v6, %v10969_v14  ;;  %v10978_v16 = vcombine.high %v10953_v6, %v10969_v14  ;;  %v20161_v48 = vrot.slane %v11657_v42, %v21710_v45 }
 0x5d5   : > { %v20164_v47 = vrot.slane %v11673_v25, %v21710_v45  ;;  %v10993_v5 = vcombine.low %v10960_v20, %v10976_v10  ;;  %v10994_v30 = vcombine.high %v10960_v20, %v10976_v10  ;;  %v10909_v28 = vcombine.low %v10885_v13, %v10901_v59 }
 0x5d6   : > { %v10910_v24 = vcombine.high %v10885_v13, %v10901_v59  ;;  %v10985_v36 = vrot.slane %v10977_v22, %v21710_v45  ;;  %v10992_v63 = vrot.slane %v10978_v16, %v21710_v45  ;;  %v10925_v17 = vcombine.low %v10892_v43, %v10908_v35 }
 0x5d7   : > { %v10926_v15 = vcombine.high %v10892_v43, %v10908_v35  ;;  %12593 = vrot.lane.b32.xlu0 %v11623_v12, %s15143_s23  ;;  %v11001_v6 = vrot.slane %v10993_v5, %v21710_v45  ;;  %v11008_v51 = vrot.slane %v10994_v30, %v21710_v45  ;;  %v10917_v37 = vrot.slane %v10909_v28, %v21710_v45 }
 0x5d8   : > { %v10924_v0 = vrot.slane %v10910_v24, %v21710_v45  ;;  %v12033_v14 = vcombine.low %v10985_v36, %v10992_v63  ;;  %v13433_v20 = vcombine.high %v10985_v36, %v10992_v63  ;;  %v10933_v13 = vrot.slane %v10925_v17, %v21710_v45 }
 0x5d9   : > { %v10940_v42 = vrot.slane %v10926_v15, %v21710_v45  ;;  %v12049_v25 = vcombine.low %v11001_v6, %v11008_v51  ;;  %v13434_v10 = vcombine.high %v11001_v6, %v11008_v51  ;;  %v11690_v63 = vcombine.high %v20161_v48, %v20164_v47 }
 0x5da   : > { %v11965_v59 = vcombine.low %v10917_v37, %v10924_v0  ;;  %v13431_v43 = vcombine.high %v10917_v37, %v10924_v0  ;;  %v20176_v12 = vrot.slane %v12033_v14, %v21709_v53  ;;  %v20179_v5 = vrot.slane %v13433_v20, %v21709_v53 }
 0x5db   : > { %v11981_v30 = vcombine.low %v10933_v13, %v10940_v42  ;;  %v13432_v28 = vcombine.high %v10933_v13, %v10940_v42  ;;  %v20182_v24 = vrot.slane %v12049_v25, %v21709_v53  ;;  %v20185_v35 = vrot.slane %v13434_v10, %v21709_v53  ;;  %12657 = vrot.lane.b32.xlu0 %v11624_v50, %s15145_s14 }
 0x5dc   : > { %v20188_v15 = vrot.slane %v11965_v59, %v21709_v53  ;;  %v20191_v22 = vrot.slane %v13431_v43, %v21709_v53  ;;  %v11081_v17 = vcombine.low %v19799_v34, %v20003_v49  ;;  %v11082_v6 = vcombine.high %v19799_v34, %v20003_v49  ;;  %12531 = vrot.lane.b32.xlu1 %v11690_v63, %s21185_s24 }
 0x5dd   : > { %v20195_v16 = vrot.slane %v11981_v30, %v21709_v53  ;;  %v20198_v36 = vrot.slane %v13432_v28, %v21709_v53  ;;  %v11013_v51 = vcombine.low %v19801_v4, %v20013_v3  ;;  %v11014_v50 = vcombine.high %v19801_v4, %v20013_v3 }
 0x5de   : > { %v11658_v37 = vcombine.high %v19894_v27, %v19897_v7  ;;  %v11089_v0 = vrot.slane %v11081_v17, %v21709_v53  ;;  %v11674_v14 = vcombine.high %v19900_v18, %v19903_v46  ;;  %v11725_v20 = vcombine.low %v19984_v44, %v19987_v21 }
 0x5df   : > { %v11741_v34 = vcombine.low %v19990_v8, %v19993_v41  ;;  %v11096_v49 = vrot.slane %v11082_v6, %v21709_v53  ;;  %v11021_v4 = vrot.slane %v11013_v51, %v21709_v53  ;;  %v11028_v3 = vrot.slane %v11014_v50, %v21709_v53 }
 0x5e0   : > { %v11672_v27 = vrot.slane %v11658_v37, %v21710_v45  ;;  %v11688_v7 = vrot.slane %v11674_v14, %v21710_v45  ;;  %v20226_v13 = vrot.slane %v11725_v20, %v21710_v45  ;;  %v11097_v46 = vcombine.low %v19803_v9, %v20015_v26 }
 0x5e1   : > { %v20229_v18 = vrot.slane %v11741_v34, %v21710_v45  ;;  %v11098_v42 = vcombine.high %v19803_v9, %v20015_v26  ;;  %v11029_v25 = vcombine.low %v19805_v56, %v20023_v57  ;;  %v11030_v10 = vcombine.high %v19805_v56, %v20023_v57 }
 0x5e2   : > { %v11726_v59 = vcombine.high %v19984_v44, %v19987_v21  ;;  %v11691_v43 = vcombine.low %v11672_v27, %v11688_v7  ;;  %v11105_v28 = vrot.slane %v11097_v46, %v21709_v53  ;;  %v11692_v63 = vcombine.high %v11672_v27, %v11688_v7 }
 0x5e3   : > { %v11758_v30 = vcombine.high %v20226_v13, %v20229_v18  ;;  %v11112_v17 = vrot.slane %v11098_v42, %v21709_v53  ;;  %v11037_v9 = vrot.slane %v11029_v25, %v21709_v53  ;;  %v11044_v26 = vrot.slane %v11030_v10, %v21709_v53 }
 0x5e4   : > { %v20248_v6 = vrot.slane %v11726_v59, %v21710_v45  ;;  %12595 = vrot.lane.b32.xlu1 %v11691_v43, %s15143_s23  ;;  %v11113_v56 = vcombine.low %v11089_v0, %v11105_v28  ;;  %v11114_v44 = vcombine.high %v11089_v0, %v11105_v28  ;;  %v11742_v21 = vcombine.high %v19990_v8, %v19993_v41 }
 0x5e5   : > { %12533 = vrot.lane.b32.xlu0 %v11758_v30, %s21185_s24  ;;  %v11129_v57 = vcombine.low %v11096_v49, %v11112_v17  ;;  %v11130_v51 = vcombine.high %v11096_v49, %v11112_v17  ;;  %v11045_v50 = vcombine.low %v11021_v4, %v11037_v9  ;;  %v11046_v37 = vcombine.high %v11021_v4, %v11037_v9 }
 0x5e6   : > { %v11121_v14 = vrot.slane %v11113_v56, %v21710_v45  ;;  %v11128_v20 = vrot.slane %v11114_v44, %v21710_v45  ;;  %v11061_v34 = vcombine.low %v11028_v3, %v11044_v26  ;;  %v11062_v27 = vcombine.high %v11028_v3, %v11044_v26 }
 0x5e7   : > { %v11137_v7 = vrot.slane %v11129_v57, %v21710_v45  ;;  %v11144_v46 = vrot.slane %v11130_v51, %v21710_v45  ;;  %v11053_v42 = vrot.slane %v11045_v50, %v21710_v45  ;;  %v11060_v0 = vrot.slane %v11046_v37, %v21710_v45 }
 0x5e8   : > { %v12169_v25 = vcombine.low %v11121_v14, %v11128_v20  ;;  %v13437_v8 = vcombine.high %v11121_v14, %v11128_v20  ;;  %v11069_v41 = vrot.slane %v11061_v34, %v21710_v45  ;;  %v11076_v49 = vrot.slane %v11062_v27, %v21710_v45  ;;  %12659 = vrot.lane.b32.xlu1 %v11692_v63, %s15145_s14 }
 0x5e9   : > { %v12185_v4 = vcombine.low %v11137_v7, %v11144_v46  ;;  %v13438_v10 = vcombine.high %v11137_v7, %v11144_v46  ;;  %v12101_v59 = vcombine.low %v11053_v42, %v11060_v0  ;;  %v13435_v3 = vcombine.high %v11053_v42, %v11060_v0  ;;  %v21720_v0 = vld [vmem:[#allocation16_spill] sm:$0xff] }
 0x5ea   : > { %v20264_v43 = vrot.slane %v12169_v25, %v21709_v53  ;;  %v20267_v30 = vrot.slane %v13437_v8, %v21709_v53  ;;  %v12117_v28 = vcombine.low %v11069_v41, %v11076_v49  ;;  %v13436_v17 = vcombine.high %v11069_v41, %v11076_v49  ;;  %v21721_v25 = vld [vmem:[#allocation89_spill] sm:$0xff]  ;;  %v21722_v41 = vld [vmem:[#allocation54_spill] sm:$0xff] }
 0x5eb   : > { %v20270_v9 = vrot.slane %v12185_v4, %v21709_v53  ;;  %v20273_v26 = vrot.slane %v13438_v10, %v21709_v53  ;;  %v20276_v63 = vrot.slane %v12101_v59, %v21709_v53  ;;  %v20279_v56 = vrot.slane %v13435_v3, %v21709_v53  ;;  %v21723_v49 = vld [vmem:[#allocation93_spill] sm:$0xff] }
 0x5ec   : > { %v20282_v44 = vrot.slane %v12117_v28, %v21709_v53  ;;  %v20285_v57 = vrot.slane %v13436_v17, %v21709_v53  ;;  %v11756_v51 = vrot.slane %v11742_v21, %v21710_v45  ;;  %v11217_v50 = vcombine.low %v19807_v61, %v20061_v2 }
 0x5ed   : > { %v11218_v37 = vcombine.high %v19807_v61, %v20061_v2  ;;  %v11149_v14 = vcombine.low %v19809_v11, %v20065_v60  ;;  %v11150_v20 = vcombine.high %v19809_v11, %v20065_v60  ;;  %v11793_v34 = vcombine.low %v19972_v52, %v19975_v19 }
 0x5ee   : > { %v11759_v27 = vcombine.low %v20248_v6, %v11756_v51  ;;  %v11225_v7 = vrot.slane %v11217_v50, %v21709_v53  ;;  %v11809_v21 = vcombine.low %v19978_v38, %v19981_v23  ;;  %v11760_v46 = vcombine.high %v20248_v6, %v11756_v51 }
 0x5ef   : > { %v11232_v61 = vrot.slane %v11218_v37, %v21709_v53  ;;  %v11157_v2 = vrot.slane %v11149_v14, %v21709_v53  ;;  %v11164_v42 = vrot.slane %v11150_v20, %v21709_v53  ;;  %v20307_v11 = vrot.slane %v11793_v34, %v21710_v45 }
 0x5f0   : > { %12597 = vrot.lane.b32.xlu0 %v11759_v27, %s15143_s23  ;;  %v20311_v60 = vrot.slane %v11809_v21, %v21710_v45  ;;  %v11233_v8 = vcombine.low %v21721_v25, %v21720_v0  ;;  %v11234_v6 = vcombine.high %v21721_v25, %v21720_v0  ;;  %v11165_v4 = vcombine.low %v21723_v49, %v21722_v41 }
 0x5f1   : > { %v11166_v10 = vcombine.high %v21723_v49, %v21722_v41  ;;  %v11794_v59 = vcombine.high %v19972_v52, %v19975_v19  ;;  %v11810_v3 = vcombine.high %v19978_v38, %v19981_v23  ;;  %v11861_v28 = vcombine.low %v20090_v58, %v20093_v62 }
 0x5f2   : > { %v11826_v17 = vcombine.high %v20307_v11, %v20311_v60  ;;  %v11241_v51 = vrot.slane %v11233_v8, %v21709_v53  ;;  %v11248_v50 = vrot.slane %v11234_v6, %v21709_v53  ;;  %v11173_v37 = vrot.slane %v11165_v4, %v21709_v53 }
 0x5f3   : > { %v11180_v14 = vrot.slane %v11166_v10, %v21709_v53  ;;  %v11808_v20 = vrot.slane %v11794_v59, %v21710_v45  ;;  %v11824_v19 = vrot.slane %v11810_v3, %v21710_v45  ;;  %v20336_v52 = vrot.slane %v11861_v28, %v21710_v45 }
 0x5f4   : > { %12535 = vrot.lane.b32.xlu1 %v11826_v17, %s21185_s24  ;;  %12661 = vrot.lane.b32.xlu0 %v11760_v46, %s15145_s14  ;;  %v11249_v38 = vcombine.low %v11225_v7, %v11241_v51  ;;  %v11250_v23 = vcombine.high %v11225_v7, %v11241_v51  ;;  %v11265_v34 = vcombine.low %v11232_v61, %v11248_v50 }
 0x5f5   : > { %v11266_v27 = vcombine.high %v11232_v61, %v11248_v50  ;;  %v11181_v21 = vcombine.low %v11157_v2, %v11173_v37  ;;  %v11182_v0 = vcombine.high %v11157_v2, %v11173_v37  ;;  %v11197_v25 = vcombine.low %v11164_v42, %v11180_v14 }
 0x5f6   : > { %v11257_v8 = vrot.slane %v11249_v38, %v21710_v45  ;;  %v11264_v6 = vrot.slane %v11250_v23, %v21710_v45  ;;  %v11273_v41 = vrot.slane %v11265_v34, %v21710_v45  ;;  %v11198_v49 = vcombine.high %v11164_v42, %v11180_v14 }
 0x5f7   : > { %v11280_v4 = vrot.slane %v11266_v27, %v21710_v45  ;;  %v11189_v10 = vrot.slane %v11181_v21, %v21710_v45  ;;  %v11196_v46 = vrot.slane %v11182_v0, %v21710_v45  ;;  %v11205_v7 = vrot.slane %v11197_v25, %v21710_v45 }
 0x5f8   : > { %v12305_v59 = vcombine.low %v11257_v8, %v11264_v6  ;;  %v13441_v61 = vcombine.high %v11257_v8, %v11264_v6  ;;  %v11212_v2 = vrot.slane %v11198_v49, %v21710_v45  ;;  %v11827_v3 = vcombine.low %v11808_v20, %v11824_v19 }
 0x5f9   : > { %v12321_v28 = vcombine.low %v11273_v41, %v11280_v4  ;;  %v13442_v17 = vcombine.high %v11273_v41, %v11280_v4  ;;  %v12237_v51 = vcombine.low %v11189_v10, %v11196_v46  ;;  %v13439_v50 = vcombine.high %v11189_v10, %v11196_v46  ;;  %v21724_v4 = vld [vmem:[#allocation8_spill] sm:$0xff] }
 0x5fa   : > { %v20349_v37 = vrot.slane %v12305_v59, %v21709_v53  ;;  %v20352_v42 = vrot.slane %v13441_v61, %v21709_v53  ;;  %v12253_v14 = vcombine.low %v11205_v7, %v11212_v2  ;;  %v13440_v38 = vcombine.high %v11205_v7, %v11212_v2  ;;  %12599 = vrot.lane.b32.xlu1 %v11827_v3, %s15143_s23  ;;  %v21725_v59 = vld [vmem:[#allocation28_spill] sm:$0xff] }
 0x5fb   : > { %v20356_v23 = vrot.slane %v12321_v28, %v21709_v53  ;;  %v20359_v34 = vrot.slane %v13442_v17, %v21709_v53  ;;  %v20362_v27 = vrot.slane %v12237_v51, %v21709_v53  ;;  %v20365_v21 = vrot.slane %v13439_v50, %v21709_v53  ;;  %v21727_v50 = vld [vmem:[#allocation29_spill] sm:$0xff] }
 0x5fc   : > { %v20368_v0 = vrot.slane %v12253_v14, %v21709_v53  ;;  %v20371_v25 = vrot.slane %v13440_v38, %v21709_v53  ;;  %v11877_v8 = vcombine.low %v20096_v1, %v20099_v31  ;;  %v11828_v6 = vcombine.high %v11808_v20, %v11824_v19 }
 0x5fd   : > { %v11862_v41 = vcombine.high %v20090_v58, %v20093_v62  ;;  %v11878_v49 = vcombine.high %v20096_v1, %v20099_v31  ;;  %v11353_v10 = vcombine.low %v21724_v4, %v20134_v40  ;;  %v11354_v46 = vcombine.high %v21724_v4, %v20134_v40  ;;  %v21726_v62 = vld [vmem:[#allocation11_spill] sm:$0xff] }
 0x5fe   : > { %v20384_v7 = vrot.slane %v11877_v8, %v21710_v45  ;;  %12663 = vrot.lane.b32.xlu1 %v11828_v6, %s15145_s14  ;;  %v11369_v20 = vcombine.low %v21725_v59, %v20144_v33  ;;  %v11370_v58 = vcombine.high %v21725_v59, %v20144_v33  ;;  %v11285_v1 = vcombine.low %v21726_v62, %v20146_v32 }
 0x5ff   : > { %v11876_v31 = vrot.slane %v11862_v41, %v21710_v45  ;;  %v11892_v19 = vrot.slane %v11878_v49, %v21710_v45  ;;  %v11361_v40 = vrot.slane %v11353_v10, %v21709_v53  ;;  %v11368_v61 = vrot.slane %v11354_v46, %v21709_v53 }
 0x600   : > { %v11894_v2 = vcombine.high %v20336_v52, %v20384_v7  ;;  %v11377_v3 = vrot.slane %v11369_v20, %v21709_v53  ;;  %v11384_v28 = vrot.slane %v11370_v58, %v21709_v53  ;;  %v11286_v33 = vcombine.high %v21726_v62, %v20146_v32 }
 0x601   : > { %v11895_v17 = vcombine.low %v11876_v31, %v11892_v19  ;;  %v11293_v51 = vrot.slane %v11285_v1, %v21709_v53  ;;  %v11301_v14 = vcombine.low %v21727_v50, %v20154_v39  ;;  %v11302_v38 = vcombine.high %v21727_v50, %v20154_v39 }
 0x602   : > { %12537 = vrot.lane.b32.xlu0 %v11894_v2, %s21185_s24  ;;  %v11385_v8 = vcombine.low %v11361_v40, %v11377_v3  ;;  %v11386_v6 = vcombine.high %v11361_v40, %v11377_v3  ;;  %v11401_v41 = vcombine.low %v11368_v61, %v11384_v28  ;;  %v11402_v49 = vcombine.high %v11368_v61, %v11384_v28 }
 0x603   : > { %v11300_v4 = vrot.slane %v11286_v33, %v21709_v53  ;;  %v11309_v10 = vrot.slane %v11301_v14, %v21709_v53  ;;  %v11316_v32 = vrot.slane %v11302_v38, %v21709_v53  ;;  %v11929_v46 = vcombine.low %v20078_v55, %v20081_v54 }
 0x604   : > { %v11393_v59 = vrot.slane %v11385_v8, %v21710_v45  ;;  %v11400_v20 = vrot.slane %v11386_v6, %v21710_v45  ;;  %v11409_v39 = vrot.slane %v11401_v41, %v21710_v45  ;;  %v11416_v58 = vrot.slane %v11402_v49, %v21710_v45 }
 0x605   : > { %v11317_v62 = vcombine.low %v11293_v51, %v11309_v10  ;;  %v11318_v1 = vcombine.high %v11293_v51, %v11309_v10  ;;  %v11333_v40 = vcombine.low %v11300_v4, %v11316_v32  ;;  %v11334_v61 = vcombine.high %v11300_v4, %v11316_v32 }
 0x606   : > { %12601 = vrot.lane.b32.xlu0 %v11895_v17, %s15143_s23  ;;  %v12441_v2 = vcombine.low %v11393_v59, %v11400_v20  ;;  %v13445_v3 = vcombine.high %v11393_v59, %v11400_v20  ;;  %v12457_v28 = vcombine.low %v11409_v39, %v11416_v58  ;;  %v13446_v33 = vcombine.high %v11409_v39, %v11416_v58  ;;  %v21728_v20 = vld [vmem:[#allocation71_spill] sm:$0xff] }
 0x607   : > { %v11325_v50 = vrot.slane %v11317_v62, %v21710_v45  ;;  %v11332_v14 = vrot.slane %v11318_v1, %v21710_v45  ;;  %v11341_v38 = vrot.slane %v11333_v40, %v21710_v45  ;;  %v11348_v8 = vrot.slane %v11334_v61, %v21710_v45 }
 0x608   : > { %v20424_v6 = vrot.slane %v12441_v2, %v21709_v53  ;;  %v20427_v51 = vrot.slane %v13445_v3, %v21709_v53  ;;  %v20430_v17 = vrot.slane %v12457_v28, %v21709_v53  ;;  %v20433_v41 = vrot.slane %v13446_v33, %v21709_v53 }
 0x609   : > { %v12373_v49 = vcombine.low %v11325_v50, %v11332_v14  ;;  %v13443_v4 = vcombine.high %v11325_v50, %v11332_v14  ;;  %v12389_v10 = vcombine.low %v11341_v38, %v11348_v8  ;;  %v13444_v32 = vcombine.high %v11341_v38, %v11348_v8 }
 0x60a   : > { %v20436_v59 = vrot.slane %v11929_v46, %v21710_v45  ;;  %v11945_v39 = vcombine.low %v21728_v20, %v20087_v29  ;;  %v11896_v58 = vcombine.high %v11876_v31, %v11892_v19  ;;  %v11930_v62 = vcombine.high %v20078_v55, %v20081_v54 }
 0x60b   : > { %v20443_v1 = vrot.slane %v12373_v49, %v21709_v53  ;;  %v20446_v40 = vrot.slane %v13443_v4, %v21709_v53  ;;  %v20449_v61 = vrot.slane %v12389_v10, %v21709_v53  ;;  %v20452_v2 = vrot.slane %v13444_v32, %v21709_v53 }
 0x60c   : > { %v20455_v46 = vrot.slane %v11945_v39, %v21710_v45  ;;  %12665 = vrot.lane.b32.xlu0 %v11896_v58, %s15145_s14  ;;  %v11944_v31 = vrot.slane %v11930_v62, %v21710_v45  ;;  %v11946_v55 = vcombine.high %v21728_v20, %v20087_v29  ;;  %v11997_v54 = vcombine.low %v20188_v15, %v20191_v22 }
 0x60d   : > { %v12013_v19 = vcombine.low %v20195_v16, %v20198_v36  ;;  %v11998_v53 = vcombine.high %v20188_v15, %v20191_v22  ;;  %v12014_v3 = vcombine.high %v20195_v16, %v20198_v36  ;;  %v12065_v28 = vcombine.low %v20176_v12, %v20179_v5 }
 0x60e   : > { %v11962_v33 = vcombine.high %v20436_v59, %v20455_v46  ;;  %v11960_v29 = vrot.slane %v11946_v55, %v21710_v45  ;;  %v20475_v50 = vrot.slane %v11997_v54, %v21710_v45  ;;  %v12081_v14 = vcombine.low %v20182_v24, %v20185_v35 }
 0x60f   : > { %v20480_v38 = vrot.slane %v12013_v19, %v21710_v45  ;;  %v12012_v15 = vrot.slane %v11998_v53, %v21710_v45  ;;  %v12028_v22 = vrot.slane %v12014_v3, %v21710_v45  ;;  %v20485_v16 = vrot.slane %v12065_v28, %v21710_v45 }
 0x610   : > { %12539 = vrot.lane.b32.xlu1 %v11962_v33, %s21185_s24  ;;  %v11963_v36 = vcombine.low %v11944_v31, %v11960_v29  ;;  %v11964_v8 = vcombine.high %v11944_v31, %v11960_v29  ;;  %v20489_v49 = vrot.slane %v12081_v14, %v21710_v45  ;;  %v12066_v4 = vcombine.high %v20176_v12, %v20179_v5 }
 0x611   : > { %v12030_v10 = vcombine.high %v20475_v50, %v20480_v38  ;;  %v12031_v32 = vcombine.low %v12012_v15, %v12028_v22  ;;  %v12032_v20 = vcombine.high %v12012_v15, %v12028_v22  ;;  %v12082_v39 = vcombine.high %v20182_v24, %v20185_v35 }
 0x612   : > { %v12098_v58 = vcombine.high %v20485_v16, %v20489_v49  ;;  %v20500_v62 = vrot.slane %v12066_v4, %v21710_v45  ;;  %v12133_v31 = vcombine.low %v20276_v63, %v20279_v56  ;;  %v12149_v12 = vcombine.low %v20282_v44, %v20285_v57 }
 0x613   : > { %12541 = vrot.lane.b32.xlu0 %v12030_v10, %s21185_s24  ;;  %v20508_v5 = vrot.slane %v12082_v39, %v21710_v45  ;;  %v12134_v24 = vcombine.high %v20276_v63, %v20279_v56  ;;  %v12150_v35 = vcombine.high %v20282_v44, %v20285_v57  ;;  %v12201_v55 = vcombine.low %v20264_v43, %v20267_v30 }
 0x614   : > { %12603 = vrot.lane.b32.xlu1 %v11963_v36, %s15143_s23  ;;  %v20518_v54 = vrot.slane %v12133_v31, %v21710_v45  ;;  %v20521_v19 = vrot.slane %v12149_v12, %v21710_v45  ;;  %v12217_v53 = vcombine.low %v20270_v9, %v20273_v26  ;;  %v12202_v63 = vcombine.high %v20264_v43, %v20267_v30 }
 0x615   : > { %v12099_v56 = vcombine.low %v20500_v62, %v20508_v5  ;;  %v12100_v44 = vcombine.high %v20500_v62, %v20508_v5  ;;  %v20532_v57 = vrot.slane %v12134_v24, %v21710_v45  ;;  %v20535_v3 = vrot.slane %v12150_v35, %v21710_v45 }
 0x616   : > { %v12166_v28 = vcombine.high %v20518_v54, %v20521_v19  ;;  %v20540_v33 = vrot.slane %v12201_v55, %v21710_v45  ;;  %v20543_v43 = vrot.slane %v12217_v53, %v21710_v45  ;;  %v20546_v30 = vrot.slane %v12202_v63, %v21710_v45 }
 0x617   : > { %12605 = vrot.lane.b32.xlu0 %v12031_v32, %s15143_s23  ;;  %v12167_v29 = vcombine.low %v20532_v57, %v20535_v3  ;;  %v12168_v14 = vcombine.high %v20532_v57, %v20535_v3  ;;  %v12218_v15 = vcombine.high %v20270_v9, %v20273_v26  ;;  %v12269_v22 = vcombine.low %v20362_v27, %v20365_v21 }
 0x618   : > { %12667 = vrot.lane.b32.xlu1 %v11964_v8, %s15145_s14  ;;  %v12234_v36 = vcombine.high %v20540_v33, %v20543_v43  ;;  %v12285_v4 = vcombine.low %v20368_v0, %v20371_v25  ;;  %v12270_v10 = vcombine.high %v20362_v27, %v20365_v21  ;;  %v12286_v32 = vcombine.high %v20368_v0, %v20371_v25 }
 0x619   : > { %v20567_v39 = vrot.slane %v12218_v15, %v21710_v45  ;;  %v20570_v9 = vrot.slane %v12269_v22, %v21710_v45  ;;  %v12337_v26 = vcombine.low %v20349_v37, %v20352_v42  ;;  %v12353_v8 = vcombine.low %v20356_v23, %v20359_v34 }
 0x61a   : > { %v20577_v31 = vrot.slane %v12285_v4, %v21710_v45  ;;  %v20580_v27 = vrot.slane %v12270_v10, %v21710_v45  ;;  %v20583_v21 = vrot.slane %v12286_v32, %v21710_v45  ;;  %v12338_v0 = vcombine.high %v20349_v37, %v20352_v42 }
 0x61b   : > { %12669 = vrot.lane.b32.xlu0 %v12032_v20, %s15145_s14  ;;  %v12235_v25 = vcombine.low %v20546_v30, %v20567_v39  ;;  %v12236_v12 = vcombine.high %v20546_v30, %v20567_v39  ;;  %v20593_v24 = vrot.slane %v12337_v26, %v21710_v45  ;;  %v20596_v35 = vrot.slane %v12353_v8, %v21710_v45  ;;  %v12751_v8 = vld [vmem:[%s20934_s8] sm:$0xff]  ;;  %v21730_v39 = vld [vmem:[#allocation37_spill] sm:$0xff] }
 0x61c   : > { %12543 = vrot.lane.b32.xlu1 %v12098_v58, %s21185_s24  ;;  %v12302_v55 = vcombine.high %v20570_v9, %v20577_v31  ;;  %v12303_v37 = vcombine.low %v20580_v27, %v20583_v21  ;;  %v12304_v42 = vcombine.high %v20580_v27, %v20583_v21  ;;  %v20606_v20 = vrot.slane %v12338_v0, %v21710_v45  ;;  %v12753_v0 = vld [vmem:[%s20934_s8 + $0x10] sm:$0xff] }
 0x61d   : > { %v12370_v53 = vcombine.high %v20593_v24, %v20596_v35  ;;  %v12354_v63 = vcombine.high %v20356_v23, %v20359_v34  ;;  %v12405_v58 = vcombine.low %v20443_v1, %v20446_v40  ;;  %v12421_v15 = vcombine.low %v20449_v61, %v20452_v2 }
 0x61e   : > { %v12406_v22 = vcombine.high %v20443_v1, %v20446_v40  ;;  %v12422_v4 = vcombine.high %v20449_v61, %v20452_v2  ;;  %v12473_v10 = vcombine.low %v20424_v6, %v20427_v51  ;;  %v12489_v32 = vcombine.low %v20430_v17, %v20433_v41 }
 0x61f   : > { %12545 = vrot.lane.b32.xlu0 %v12166_v28, %s21185_s24  ;;  %v12368_v23 = vrot.slane %v12354_v63, %v21710_v45  ;;  %v20627_v34 = vrot.slane %v12405_v58, %v21710_v45  ;;  %v20630_v26 = vrot.slane %v12421_v15, %v21710_v45  ;;  %v12474_v1 = vcombine.high %v20424_v6, %v20427_v51  ;;  %v12752_v6 = vld [vmem:[%s20934_s8 + $0x8] sm:$0xff]  ;;  %v12754_v63 = vld [vmem:[%s20934_s8 + $0x18] sm:$0xff] }
 0x620   : > { %12607 = vrot.lane.b32.xlu1 %v12099_v56, %s15143_s23  ;;  %v12420_v40 = vrot.slane %v12406_v22, %v21710_v45  ;;  %v12436_v61 = vrot.slane %v12422_v4, %v21710_v45  ;;  %v20638_v2 = vrot.slane %v12473_v10, %v21710_v45  ;;  %v20641_v28 = vrot.slane %v12489_v32, %v21710_v45 }
 0x621   : > { %v12371_v51 = vcombine.low %v20606_v20, %v12368_v23  ;;  %v12438_v56 = vcombine.high %v20627_v34, %v20630_v26  ;;  %v12372_v27 = vcombine.high %v20606_v20, %v12368_v23  ;;  %v12488_v21 = vrot.slane %v12474_v1, %v21710_v45 }
 0x622   : > { %v12439_v58 = vcombine.low %v12420_v40, %v12436_v61  ;;  %v12506_v15 = vcombine.high %v20638_v2, %v20641_v28  ;;  %v12440_v22 = vcombine.high %v12420_v40, %v12436_v61  ;;  %v12490_v4 = vcombine.high %v20430_v17, %v20433_v41 }
 0x623   : > { %12609 = vrot.lane.b32.xlu0 %v12167_v29, %s15143_s23  ;;  %v14729_v20 = vpack.c.bf16 %v12752_v6, %v12751_v8  ;;  %v14733_v32 = vpack.c.bf16 %v12754_v63, %v12753_v0  ;;  %v11825_v23 = vcombine.low %v20307_v11, %v20311_v60  ;;  %v11893_v1 = vcombine.low %v20336_v52, %v20384_v7 }
 0x624   : > { %12671 = vrot.lane.b32.xlu1 %v12100_v44, %s15145_s14  ;;  %v12504_v10 = vrot.slane %v12490_v4, %v21710_v45  ;;  %v11961_v17 = vcombine.low %v20436_v59, %v20455_v46  ;;  %v12029_v41 = vcombine.low %v20475_v50, %v20480_v38  ;;  %v12097_v45 = vcombine.low %v20485_v16, %v20489_v49  ;;  %v21735_v4 = vld [vmem:[#allocation69_spill] sm:$0xff] }
 0x625   : > { %14730 = vmatprep.subr.bf16.mxu1 %v14729_v20  ;;  %v12165_v62 = vcombine.low %v20518_v54, %v20521_v19  ;;  %v12233_v5 = vcombine.low %v20540_v33, %v20543_v43  ;;  %v12301_v44 = vcombine.low %v20570_v9, %v20577_v31  ;;  %v12369_v61 = vcombine.low %v20593_v24, %v20596_v35 }
 0x626   : > { %v12507_v29 = vcombine.low %v12488_v21, %v12504_v10  ;;  %v12508_v40 = vcombine.high %v12488_v21, %v12504_v10  ;;  %14732 = vmatpush3.bf16.msra.mxu1 %v14729_v20  ;;  %v12437_v8 = vcombine.low %v20627_v34, %v20630_v26  ;;  %v12505_v57 = vcombine.low %v20638_v2, %v20641_v28 }
 0x627   : > { %12673 = vrot.lane.b32.xlu0 %v12168_v14, %s15145_s14  ;;  %14734 = vmatprep.subr.bf16.mxu1 %v14733_v32 }
 0x628   : > { %12547 = vrot.lane.b32.xlu1 %v12234_v36, %s21729_s13 }
 0x62a   : > { %14736 = vmatpush3.bf16.msra.mxu1 %v14733_v32 }
 0x62b   : > { %12549 = vrot.lane.b32.xlu0 %v12302_v55, %s21729_s13 }
 0x62c   : > { %12611 = vrot.lane.b32.xlu1 %v12235_v25, %s15143_s23 }
 0x62f   : > { %12613 = vrot.lane.b32.xlu0 %v12303_v37, %s15143_s23  ;;  %v21732_v37 = vld [vmem:[#allocation55_spill] sm:$0xff] }
 0x630   : > { %12675 = vrot.lane.b32.xlu1 %v12236_v12, %s15145_s14  ;;  %v12592_v3 = vpop.permute.xlu1 %12591  ;;  %v12528_v14 = vpop.permute.xlu0 %12527  ;;  %v21731_v12 = vld [vmem:[#allocation46_spill] sm:$0xff] }
 0x631   : > { %v11553_v55 = vcombine.low %v21731_v12, %v21730_v39 }
 0x633   : > { %12677 = vrot.lane.b32.xlu0 %v12304_v42, %s15145_s14  ;;  %v21733_v42 = vld [vmem:[#allocation38_spill] sm:$0xff]  ;;  %v12702_v6 = vsel %vm8081_vm1, %v11553_v55, %v12528_v14 }
 0x634   : > { %12551 = vrot.lane.b32.xlu1 %v12370_v53, %s21729_s13  ;;  %v12656_v36 = vpop.permute.xlu1 %12655  ;;  %v11485_v53 = vcombine.low %v21733_v42, %v21732_v37  ;;  %v12719_v0 = vsel %vm12717_vm4, %v12702_v6, %v12592_v3  ;;  %v11757_v42 = vcombine.low %v20226_v13, %v20229_v18 }
 0x636   : > { %v12654_v25 = vpop.permute.xlu0 %12653 }
 0x637   : > { %12553 = vrot.lane.b32.xlu0 %v12438_v56, %s21729_s13 }
 0x638   : > { %12615 = vrot.lane.b32.xlu1 %v12371_v51, %s15143_s23 }
 0x63b   : > { %12617 = vrot.lane.b32.xlu0 %v12439_v58, %s15143_s23  ;;  %v12736_v58 = vsel %vm12734_vm5, %v12719_v0, %v12656_v36 }
 0x63c   : > { %12679 = vrot.lane.b32.xlu1 %v12372_v27, %s15145_s14 }
 0x63f   : > { %12681 = vrot.lane.b32.xlu0 %v12440_v22, %s15145_s14  ;;  %v21734_v22 = vld [vmem:[#allocation35_spill] sm:$0xff] }
 0x640   : > { %12555 = vrot.lane.b32.xlu1 %v12506_v15, %s21729_s13  ;;  %v12526_v30 = vpop.permute.xlu1 %12525  ;;  %v11621_v20 = vcombine.low %v21735_v4, %v21734_v22 }
 0x641   : > { %v12701_v51 = vsel %vm8081_vm1, %v11485_v53, %v12526_v30 }
 0x644   : > { %12619 = vrot.lane.b32.xlu1 %v12507_v29, %s15143_s23  ;;  %v12590_v56 = vpop.permute.xlu1 %12589  ;;  %s13472_s23 = sshll.u32 %s15128_s20, 13  ;;  %s15146_s20 = smov [#allocation2]  }
 0x645   : > { %v12530_v27 = vpop.permute.xlu0 %12529  ;;  %v12718_v21 = vsel %vm12717_vm4, %v12701_v51, %v12590_v56  ;;  %s20831_s26 = scalar_lea.hbm %s20937_s11, %s13472_s23  ;;  %s15062_s0 = sshll.u32 %s15146_s20, 4  ;;  %s15063_s0 = int_to_ptr.vmem [resolvable:$false] %s15062_s0 }
 0x646   : > { %v12735_v63 = vsel %vm12734_vm5, %v12718_v21, %v12654_v25  ;;  %v12703_v10 = vsel %vm8081_vm1, %v11621_v20, %v12530_v27  ;;  %s15064_s24 = scalar_lea.vmem %s15063_s0, 16384  ;;  %p15065_p1 = scmp.lt.s32.totalorder %s20834_s28, %s15063_s0 }
 0x647   : > { %14361 = vmatprep.mubr.msk.f32.mxu1 %vm503_vm0, %v12735_v63  ;;  %p15066_p2 = scmp.lt.s32.totalorder %s15064_s24, %s15058_s25 }
 0x648   : > { %12683 = vrot.lane.b32.xlu1 %v12508_v40, %s15145_s14  ;;  %14362 = vmatmul.mubr.msk.f32.vlgmr.msra.gmra.mrb[80].mxu1 %vm503_vm0, %v12736_v58  ;;  %v11689_v40 = vcombine.low %v20161_v48, %v20164_v47 }
 0x649   : > { %v12594_v15 = vpop.permute.xlu0 %12593  ;;  %p15067_p3 = por %p15066_p2, %p15065_p1 }
 0x64a   : > { %v12720_v32 = vsel %vm12717_vm4, %v12703_v10, %v12594_v15 }
 0x64b   : > { %p15068_p5 = pnand %p15067_p3, %p15061_p0 }
 0x64d   : > { %v12658_v29 = vpop.permute.xlu0 %12657 }
 0x64e   : > { %v12737_v3 = vsel %vm12734_vm5, %v12720_v32, %v12658_v29  ;;  %v12532_v14 = vpop.permute.xlu1 %12531 }
 0x64f   : > { %14364 = vmatprep.mubr.msk.f32.mxu1 %vm503_vm0, %v12737_v3  ;;  %v12704_v25 = vsel %vm8081_vm1, %v11689_v40, %v12532_v14 }
 0x656   : > { %v12596_v36 = vpop.permute.xlu1 %12595 }
 0x657   : > { %v12721_v30 = vsel %vm12717_vm4, %v12704_v25, %v12596_v36  ;;  %v12534_v55 = vpop.permute.xlu0 %12533 }
 0x658   : > { %v12705_v53 = vsel %vm8081_vm1, %v11757_v42, %v12534_v55 }
 0x65a   : > { %v12660_v39 = vpop.permute.xlu1 %12659 }
 0x65b   : > { %v12738_v12 = vsel %vm12734_vm5, %v12721_v30, %v12660_v39 }
 0x65c   : > { %14365 = vmatmul.mubr.msk.f32.gmra.mrb[82].mxu1 %vm503_vm0, %v12738_v12 }
 0x662   : > { %v12598_v37 = vpop.permute.xlu0 %12597 }
 0x663   : > { %v12722_v6 = vsel %vm12717_vm4, %v12705_v53, %v12598_v37 }
 0x666   : > { %v12536_v51 = vpop.permute.xlu1 %12535  ;;  %v12662_v48 = vpop.permute.xlu0 %12661 }
 0x667   : > { %v12739_v47 = vsel %vm12734_vm5, %v12722_v6, %v12662_v48  ;;  %v12706_v27 = vsel %vm8081_vm1, %v11825_v23, %v12536_v51 }
 0x668   : > { %14367 = vmatprep.mubr.msk.f32.mxu1 %vm503_vm0, %v12739_v47 }
 0x66c   : > { %v12600_v56 = vpop.permute.xlu1 %12599 }
 0x66d   : > { %v12723_v21 = vsel %vm12717_vm4, %v12706_v27, %v12600_v56 }
 0x670   : > { %v12664_v0 = vpop.permute.xlu1 %12663 }
 0x671   : > { %v12740_v13 = vsel %vm12734_vm5, %v12723_v21, %v12664_v0 }
 0x672   : > { %14368 = vmatmul.mubr.msk.f32.gmra.mrb[84].mxu1 %vm503_vm0, %v12740_v13 }
 0x674   : > { %v12538_v18 = vpop.permute.xlu0 %12537 }
 0x675   : > { %v12707_v58 = vsel %vm8081_vm1, %v11893_v1, %v12538_v18 }
 0x678   : > { %v12602_v63 = vpop.permute.xlu0 %12601 }
 0x679   : > { %v12724_v15 = vsel %vm12717_vm4, %v12707_v58, %v12602_v63 }
 0x67e   : > { %v12666_v22 = vpop.permute.xlu0 %12665 }
 0x67f   : > { %v12741_v11 = vsel %vm12734_vm5, %v12724_v15, %v12666_v22 }
 0x680   : > { %14370 = vmatprep.mubr.msk.f32.mxu1 %vm503_vm0, %v12741_v11 }
 0x682   : > { %v12540_v60 = vpop.permute.xlu1 %12539 }
 0x683   : > { %v12708_v20 = vsel %vm8081_vm1, %v11961_v17, %v12540_v60 }
 0x685   : > { %v12542_v23 = vpop.permute.xlu0 %12541 }
 0x686   : > { %v12604_v4 = vpop.permute.xlu1 %12603  ;;  %v12709_v32 = vsel %vm8081_vm1, %v12029_v41, %v12542_v23 }
 0x687   : > { %v12725_v52 = vsel %vm12717_vm4, %v12708_v20, %v12604_v4 }
 0x689   : > { %v12606_v10 = vpop.permute.xlu0 %12605 }
 0x68a   : > { %v12668_v7 = vpop.permute.xlu1 %12667  ;;  %v12726_v29 = vsel %vm12717_vm4, %v12709_v32, %v12606_v10 }
 0x68b   : > { %v12742_v1 = vsel %vm12734_vm5, %v12725_v52, %v12668_v7 }
 0x68c   : > { %14371 = vmatmul.mubr.msk.f32.gmra.mrb[86].mxu1 %vm503_vm0, %v12742_v1 }
 0x68d   : > { %v12670_v3 = vpop.permute.xlu0 %12669 }
 0x68e   : > { %v12544_v14 = vpop.permute.xlu1 %12543  ;;  %v12743_v59 = vsel %vm12734_vm5, %v12726_v29, %v12670_v3 }
 0x68f   : > { %14373 = vmatprep.mubr.msk.f32.mxu1 %vm503_vm0, %v12743_v59  ;;  %v12710_v36 = vsel %vm8081_vm1, %v12097_v45, %v12544_v14 }
 0x691   : > { %v12546_v46 = vpop.permute.xlu0 %12545 }
 0x692   : > { %v12608_v17 = vpop.permute.xlu1 %12607  ;;  %v12711_v25 = vsel %vm8081_vm1, %v12165_v62, %v12546_v46 }
 0x693   : > { %v12727_v38 = vsel %vm12717_vm4, %v12710_v36, %v12608_v17 }
 0x695   : > { %v12610_v50 = vpop.permute.xlu0 %12609 }
 0x696   : > { %v12672_v41 = vpop.permute.xlu1 %12671  ;;  %v12728_v30 = vsel %vm12717_vm4, %v12711_v25, %v12610_v50 }
 0x697   : > { %v12744_v40 = vsel %vm12734_vm5, %v12727_v38, %v12672_v41 }
 0x698   : > { %14374 = vmatmul.mubr.msk.f32.gmra.mrb[88].mxu1 %vm503_vm0, %v12744_v40 }
 0x699   : > { %v12674_v39 = vpop.permute.xlu0 %12673 }
 0x69a   : > { %v12548_v12 = vpop.permute.xlu1 %12547  ;;  %v12745_v16 = vsel %vm12734_vm5, %v12728_v30, %v12674_v39 }
 0x69b   : > { %14376 = vmatprep.mubr.msk.f32.mxu1 %vm503_vm0, %v12745_v16  ;;  %v12712_v55 = vsel %vm8081_vm1, %v12233_v5, %v12548_v12 }
 0x69d   : > { %v12550_v49 = vpop.permute.xlu0 %12549 }
 0x69e   : > { %v12612_v45 = vpop.permute.xlu1 %12611  ;;  %v12713_v42 = vsel %vm8081_vm1, %v12301_v44, %v12550_v49 }
 0x69f   : > { %v12729_v19 = vsel %vm12717_vm4, %v12712_v55, %v12612_v45 }
 0x6a1   : > { %v12614_v54 = vpop.permute.xlu0 %12613 }
 0x6a2   : > { %v12676_v62 = vpop.permute.xlu1 %12675  ;;  %v12730_v53 = vsel %vm12717_vm4, %v12713_v42, %v12614_v54 }
 0x6a3   : > { %v12746_v37 = vsel %vm12734_vm5, %v12729_v19, %v12676_v62 }
 0x6a4   : > { %14377 = vmatmul.mubr.msk.f32.gmra.mrb[90].mxu1 %vm503_vm0, %v12746_v37 }
 0x6a5   : > { %v12678_v6 = vpop.permute.xlu0 %12677 }
 0x6a6   : > { %v12552_v51 = vpop.permute.xlu1 %12551  ;;  %v12747_v33 = vsel %vm12734_vm5, %v12730_v53, %v12678_v6 }
 0x6a7   : > { %14379 = vmatprep.mubr.msk.f32.mxu1 %vm503_vm0, %v12747_v33  ;;  %v12714_v48 = vsel %vm8081_vm1, %v12369_v61, %v12552_v51 }
 0x6a9   : > { %v12554_v43 = vpop.permute.xlu0 %12553 }
 0x6aa   : > { %v12616_v5 = vpop.permute.xlu1 %12615  ;;  %v12715_v56 = vsel %vm8081_vm1, %v12437_v8, %v12554_v43 }
 0x6ab   : > { %v12731_v31 = vsel %vm12717_vm4, %v12714_v48, %v12616_v5 }
 0x6ad   : > { %v12618_v9 = vpop.permute.xlu0 %12617 }
 0x6ae   : > { %v12680_v44 = vpop.permute.xlu1 %12679  ;;  %v12732_v24 = vsel %vm12717_vm4, %v12715_v56, %v12618_v9 }
 0x6af   : > { %v12748_v47 = vsel %vm12734_vm5, %v12731_v31, %v12680_v44 }
 0x6b0   : > { %14380 = vmatmul.mubr.msk.f32.gmra.mrb[92].mxu1 %vm503_vm0, %v12748_v47 }
 0x6b1   : > { %v12682_v35 = vpop.permute.xlu0 %12681 }
 0x6b2   : > { %v12556_v61 = vpop.permute.xlu1 %12555  ;;  %v12749_v27 = vsel %vm12734_vm5, %v12732_v24, %v12682_v35 }
 0x6b3   : > { %14382 = vmatprep.mubr.msk.f32.mxu1 %vm503_vm0, %v12749_v27  ;;  %v12716_v34 = vsel %vm8081_vm1, %v12505_v57, %v12556_v61 }
 0x6b6   : > { %v12620_v21 = vpop.permute.xlu1 %12619 }
 0x6b7   : > { %v12733_v26 = vsel %vm12717_vm4, %v12716_v34, %v12620_v21 }
 0x6ba   : > { %v12684_v8 = vpop.permute.xlu1 %12683 }
 0x6bb   : > { %v12750_v0 = vsel %vm12734_vm5, %v12733_v26, %v12684_v8 }
 0x6bc   : > { %14383 = vmatmul.mubr.msk.f32.gmra.mrb[94].mxu1 %vm503_vm0, %v12750_v0 }
 0x6bd   : > { %15071 = shalt.err (!%p15068_p5)
}
 0x6be   : > { %s15072_s16 = scalar_lea.hbm %s20831_s26, 8192  ;;  %s15076_s21 = scalar_lea.hbm %s20937_s11, 16384 }
 0x6bf   : > { %p15073_p6 = scmp.ne.s32.totalorder %s20831_s26, %s15072_s16  ;;  %p15077_p10 = scmp.lt.u32.totalorder %s20831_s26, %s20937_s11 }
 0x6c0   : > { %p15078_p11 = scmp.lt.u32.totalorder %s15076_s21, %s15072_s16  ;;  %p15080_p13 = scmp.lt.u32.totalorder %s15072_s16, %s20831_s26 }
 0x6c1   : > { %p15074_p7 = pnand %p15073_p6, %p15248_p4 }
 0x6c2   : > { %p15079_p12 = por %p15078_p11, %p15077_p10 }
 0x6c3   : > { %p15075_p9 = pneg %p15074_p7 }
 0x6c4   : > { %p15081_p0 = por %p15080_p13, %p15079_p12 }
 0x6c6   : > { %p15082_p1 = pnand %p15081_p0, %p15075_p9 }
 0x6c8   : > { %15085 = shalt.err (!%p15082_p1)
}
 0x6c9   : > { %s15147_s25 = smov 128   ;;  %v13447_v2 = vld [vmem:[%s20935_s9] ss:$0 sm:$0xff]  ;;  %s20870_s16 = scalar_lea.vmem %s20936_s10, %s15295_s12 }
 0x6ca   : > { %14737 = dma.vmem_to_hbm [thread:$0]  (%p15248_p4), %s20834_s28, 8192, %s20831_s26, %s20838_s15, %s15147_s25, %s15147_s25, %s21729_s13  }
 0x71b   : > { %v14363_v28 = vpop.f32.mrb[80].mxu1 }
 0x71c   : > { %v12882_v57 = vadd.f32 %v14363_v28, %v13447_v2  ;;  %v12876_v13 = vpop.f32.mrb[81].mxu1 }
 0x71d   : > { %v12877_v18 = vadd.f32 %v13447_v2, %v12876_v13 }
 0x71e   : > { %12956 = vst.msk [vmem:[%s20870_s16 + $0x8] sm:$0xff] %vm503_vm0, %v12882_v57 }
 0x71f   : > { %12955 = vst.msk [vmem:[%s20870_s16] sm:$0xff] %vm503_vm0, %v12877_v18 }
 0x72f   : > { %v14366_v63 = vpop.f32.mrb[82].mxu1 }
 0x730   : > { %v12892_v58 = vadd.f32 %v14366_v63, %v13447_v2  ;;  %v12886_v15 = vpop.f32.mrb[83].mxu1 }
 0x731   : > { %v12887_v22 = vadd.f32 %v13447_v2, %v12886_v15 }
 0x732   : > { %12958 = vst.msk [vmem:[%s20870_s16 + $0x18] sm:$0xff] %vm503_vm0, %v12892_v58 }
 0x733   : > { %12957 = vst.msk [vmem:[%s20870_s16 + $0x10] sm:$0xff] %vm503_vm0, %v12887_v22 }
 0x745   : > { %v14369_v11 = vpop.f32.mrb[84].mxu1 }
 0x746   : > { %v12902_v60 = vadd.f32 %v14369_v11, %v13447_v2  ;;  %v12896_v23 = vpop.f32.mrb[85].mxu1 }
 0x747   : > { %v12897_v4 = vadd.f32 %v13447_v2, %v12896_v23 }
 0x748   : > { %12960 = vst.msk [vmem:[%s20870_s16 + $0x28] sm:$0xff] %vm503_vm0, %v12902_v60 }
 0x749   : > { %12959 = vst.msk [vmem:[%s20870_s16 + $0x20] sm:$0xff] %vm503_vm0, %v12897_v4 }
 0x75f   : > { %v14372_v20 = vpop.f32.mrb[86].mxu1 }
 0x760   : > { %v12912_v10 = vadd.f32 %v14372_v20, %v13447_v2  ;;  %v12906_v52 = vpop.f32.mrb[87].mxu1 }
 0x761   : > { %v12907_v7 = vadd.f32 %v13447_v2, %v12906_v52 }
 0x762   : > { %12962 = vst.msk [vmem:[%s20870_s16 + $0x38] sm:$0xff] %vm503_vm0, %v12912_v10 }
 0x763   : > { %12961 = vst.msk [vmem:[%s20870_s16 + $0x30] sm:$0xff] %vm503_vm0, %v12907_v7 }
 0x76b   : > { %v14375_v1 = vpop.f32.mrb[88].mxu1 }
 0x76c   : > { %v12922_v32 = vadd.f32 %v14375_v1, %v13447_v2  ;;  %v12916_v29 = vpop.f32.mrb[89].mxu1 }
 0x76d   : > { %v12917_v3 = vadd.f32 %v13447_v2, %v12916_v29 }
 0x76e   : > { %12964 = vst.msk [vmem:[%s20870_s16 + $0x48] sm:$0xff] %vm503_vm0, %v12922_v32 }
 0x76f   : > { %12963 = vst.msk [vmem:[%s20870_s16 + $0x40] sm:$0xff] %vm503_vm0, %v12917_v3 }
 0x777   : > { %v14378_v14 = vpop.f32.mrb[90].mxu1 }
 0x778   : > { %v12932_v59 = vadd.f32 %v14378_v14, %v13447_v2  ;;  %v12926_v46 = vpop.f32.mrb[91].mxu1 }
 0x779   : > { %v12927_v17 = vadd.f32 %v13447_v2, %v12926_v46 }
 0x77a   : > { %12966 = vst.msk [vmem:[%s20870_s16 + $0x58] sm:$0xff] %vm503_vm0, %v12932_v59 }
 0x77b   : > { %12965 = vst.msk [vmem:[%s20870_s16 + $0x50] sm:$0xff] %vm503_vm0, %v12927_v17 }
 0x783   : > { %v14381_v36 = vpop.f32.mrb[92].mxu1 }
 0x784   : > { %v12942_v50 = vadd.f32 %v14381_v36, %v13447_v2  ;;  %v12936_v38 = vpop.f32.mrb[93].mxu1 }
 0x785   : > { %v12937_v41 = vadd.f32 %v13447_v2, %v12936_v38 }
 0x786   : > { %12968 = vst.msk [vmem:[%s20870_s16 + $0x68] sm:$0xff] %vm503_vm0, %v12942_v50 }
 0x787   : > { %12967 = vst.msk [vmem:[%s20870_s16 + $0x60] sm:$0xff] %vm503_vm0, %v12937_v41 }
 0x78f   : > { %v14384_v40 = vpop.f32.mrb[94].mxu1 }
 0x790   : > { %v12952_v25 = vadd.f32 %v14384_v40, %v13447_v2  ;;  %v12946_v30 = vpop.f32.mrb[95].mxu1 }
 0x791   : > { %v12947_v39 = vadd.f32 %v13447_v2, %v12946_v30 }
 0x792   : > { %12970 = vst.msk [vmem:[%s20870_s16 + $0x78] sm:$0xff] %vm503_vm0, %v12952_v25 }
 0x793   : > { %12969 = vst.msk [vmem:[%s20870_s16 + $0x70] sm:$0xff] %vm503_vm0, %v12947_v39 }
 0x794 PF: > { %p14743_p4 = scmp.ge.s32.totalorder %s15136_s22, 2  ;;  %s13027_s27 = sand.u32 1, %s15116_s17  }
 0x795   : > { %s13028_s12 = scalar_lea.sflag [#allocation3], %s13027_s27 }
 0x796   : > { %p14740_p2 = pnand %p14743_p4, %p15255_p8 }
 0x798   : > { %15111 = dma.done.wait (!%p14740_p2), %s13028_s12, 8192  }
 0x799   : > { %15113 = vsyncadd (!%p14740_p2), %s13028_s12, 4294959104  ;;  %s25_s22 = sadd.s32 1, %s15136_s22   ;;  %s21737_s20 = sld [smem:[#allocation5_spill]] }
 0x79a   : > { %p22_p3 = scmp.ge.s32.totalorder %s25_s22, 4   ;;  %s21738_s21 = sld [smem:[#allocation6_spill]] }
 0x79b   : > { %s21739_s17 = smov %s15120_s18  ;;  %s21740_s18 = smov %s15124_s19 }
 0x79c   : > { %s21741_s19 = smov %s15261_s30  ;;  %24 = sbr.rel (!%p22_p3) target bundleno = 6 (0x6), region = 110 }
 0x7a3   :  { %13033 = vsyncpa [#allocation3], 1 }
 0x7a4   :  { %13035 = vsyncpa [#allocation3 + $0x1], 1 }

</bundles_post_ra>
